<compile_context>
chip_gen: v7x
topology: tpu7x:2x2x1
jax: 0.10.0
libtpu: 0.0.40
codegen_flags: <defaults>
</compile_context>

<pallas_src>
import functools

import jax
import jax.numpy as jnp
from jax.experimental import pallas as pl
from jax.experimental.pallas import tpu as pltpu


# dim = 8  ->  channels: 128d, 64d, 16d, 8d, 2d, 1
CHANNELS = (1024, 512, 128, 64, 16, 1)
EPS = 1e-5

# v7x only: shard the 4-way parity grid axis across the two TensorCores.
USE_CORE_PARALLEL = False


def _parity_semantics():
    return (pltpu.CORE_PARALLEL,) if USE_CORE_PARALLEL else ("parallel",)


# ----------------------------------------------------------------------------
# Pallas kernel: per-parity matmul with fused epilogue.
# grid = (parity,); single K step -> no accumulator scratch.
# ----------------------------------------------------------------------------

def _conv_mm_kernel(a_ref, b_ref, *out_refs, with_stats, act):
    acc = jnp.dot(a_ref[...], b_ref[...], preferred_element_type=jnp.float32)

    if with_stats:
        o_ref, sum_ref, sq_ref = out_refs
        # Single pass over the f32 acc: square once, reduce both along
        # sublanes (XLU), lane-dense (1, Cout) stores.
        sq = acc * acc
        sum_ref[...] = jnp.sum(acc, axis=0, keepdims=True)
        sq_ref[...] = jnp.sum(sq, axis=0, keepdims=True)
    else:
        (o_ref,) = out_refs

    y = acc
    if act == "sigmoid":
        y = jax.nn.sigmoid(y)
    o_ref[...] = y.astype(o_ref.dtype)


def conv_parity_matmul(a, b, *, with_stats, act=None, out_dtype=jnp.bfloat16):
    """a: (4, M, K) bf16 parity patches, b: (4, K, Cout) bf16 parity weights.

    Returns (4, M, Cout) conv output (+ per-parity channel sum / sum-of-squares
    when with_stats).  Whole-M, whole-K tiles; grid iterates parity only so the
    next parity's weight DMA overlaps the current matmul.
    """
    p, m, k = a.shape
    _, _, n = b.shape

    kern = functools.partial(_conv_mm_kernel, with_stats=with_stats, act=act)

    o_shape = jax.ShapeDtypeStruct((p, m, n), out_dtype)
    o_spec = pl.BlockSpec((None, m, n), lambda pi: (pi, 0, 0))
    if with_stats:
        s_shape = jax.ShapeDtypeStruct((p, 1, n), jnp.float32)
        s_spec = pl.BlockSpec((None, 1, n), lambda pi: (pi, 0, 0))
        out_shape = (o_shape, s_shape, s_shape)
        out_specs = (o_spec, s_spec, s_spec)
    else:
        out_shape = o_shape
        out_specs = o_spec

    return pl.pallas_call(
        kern,
        out_shape=out_shape,
        grid_spec=pltpu.PrefetchScalarGridSpec(
            num_scalar_prefetch=0,
            grid=(p,),
            in_specs=[pl.BlockSpec((None, m, k), lambda pi: (pi, 0, 0)),
                      pl.BlockSpec((None, k, n), lambda pi: (pi, 0, 0))],
            out_specs=out_specs),
        compiler_params=pltpu.CompilerParams(
            dimension_semantics=_parity_semantics(),
            # Peak ~8.5 MiB (layer 0): explicit 32 MiB limit is safe on all
            # generations incl. v7x's 64 MiB physical VMEM.
            vmem_limit_bytes=32 * 1024 * 1024),
    )(a, b)


# ----------------------------------------------------------------------------
# ConvTranspose2d(Cin, Cout, 4, 2, 1, bias=False) via output-parity matmuls.
#
# For output pixel y[2r+py, 2c+px]:
#   y = sum_{dy,dx in {0,1}} xp[r+py+dy, c+px+dx] @ w[:, :, 3-py-2dy, 3-px-2dx]
# where xp is the input zero-padded by 1 on each spatial side.
# ----------------------------------------------------------------------------

def parity_im2col(x):
    """x: (N, h, w, Cin) bf16 -> A: (4, N*h*w, 4*Cin) bf16, parity py-major."""
    n, h, w, cin = x.shape
    xp = jnp.pad(x, ((0, 0), (1, 1), (1, 1), (0, 0)))
    mats = []
    for py in range(2):
        for px in range(2):
            taps = [xp[:, py + dy: py + dy + h, px + dx: px + dx + w, :]
                    for dy in range(2) for dx in range(2)]
            a = jnp.concatenate(taps, axis=-1).reshape(n * h * w, 4 * cin)
            mats.append(a)
    return jnp.stack(mats, axis=0)


def parity_to_nhwc(y, n, h, w, cout):
    """y: (4, N*h*w, Cout) -> (N, 2h, 2w, Cout) pixel shuffle."""
    y = y.reshape(2, 2, n, h, w, cout)            # (py, px, n, r, c, ch)
    y = jnp.transpose(y, (2, 3, 0, 4, 1, 5))      # (n, r, py, c, px, ch)
    return y.reshape(n, 2 * h, 2 * w, cout)


# ----------------------------------------------------------------------------
# Parameters
# ----------------------------------------------------------------------------

def init_params(key):
    """PyTorch-layout parameters: ConvTranspose2d weight (Cin, Cout, 4, 4)."""
    params = []
    for i in range(5):
        key, wk = jax.random.split(key)
        cin, cout = CHANNELS[i], CHANNELS[i + 1]
        p = {"w": 0.02 * jax.random.normal(wk, (cin, cout, 4, 4), jnp.float32)}
        if i < 4:
            # BatchNorm2d default init: weight=1, bias=0.
            p["gamma"] = jnp.ones((cout,), jnp.float32)
            p["beta"] = jnp.zeros((cout,), jnp.float32)
        params.append(p)
    return params


def prepare_params(params):
    """One-time repack: parity weight matrices (4, 4*Cin, Cout) in bf16
    (no lane padding -- out blocks use the true Cout).  Done outside jit."""
    prep = []
    for p in params:
        w = p["w"]
        mats = []
        for py in range(2):
            for px in range(2):
                taps = [w[:, :, 3 - py - 2 * dy, 3 - px - 2 * dx]
                        for dy in range(2) for dx in range(2)]
                mats.append(jnp.concatenate(taps, axis=0))     # (4*Cin, Cout)
        b = jnp.stack(mats, axis=0)                            # (4, 4*Cin, Cout)
        lp = {"wmat": b.astype(jnp.bfloat16)}
        if "gamma" in p:
            lp["gamma"], lp["beta"] = p["gamma"], p["beta"]
        prep.append(lp)
    return prep


# ----------------------------------------------------------------------------
# Full DecoderPre forward
# ----------------------------------------------------------------------------

def decoder_pre_forward(x_nchw, prep):
    x = jnp.transpose(x_nchw, (0, 2, 3, 1)).astype(jnp.bfloat16)   # NCHW->NHWC
    n_layers = len(prep)
    for i, lp in enumerate(prep):
        n, h, w, _ = x.shape
        cout = CHANNELS[i + 1]
        a = parity_im2col(x)                       # (4, n*h*w, 4*Cin) bf16
        m = a.shape[1]
        if i < n_layers - 1:
            # ConvTranspose + fused batch-stat emission (single pallas_call).
            y, s, sq = conv_parity_matmul(a, lp["wmat"], with_stats=True,
                                          out_dtype=jnp.bfloat16)
            cnt = 4.0 * m                          # = n * (2h) * (2w)
            mean = jnp.sum(s, axis=(0, 1)) / cnt
            var = jnp.sum(sq, axis=(0, 1)) / cnt - mean * mean
            var = jnp.maximum(var, 0.0)            # guard f32 cancellation
            scale = lp["gamma"] * jax.lax.rsqrt(var + EPS)
            shift = lp["beta"] - mean * scale
            # BN affine + ReLU as glue: XLA fuses it with the next layer's
            # im2col pad/slice/concat (no extra pallas_call, no extra HBM
            # activation round trip).  Kept out of the matmul kernel so the
            # zero-padded border taps stay exactly zero after ReLU.
            yact = jnp.maximum(y.astype(jnp.float32) * scale + shift, 0.0)
            x = parity_to_nhwc(yact.astype(jnp.bfloat16), n, h, w, cout)
        else:
            # Last layer: Sigmoid fused into the matmul epilogue, f32 out.
            y = conv_parity_matmul(a, lp["wmat"], with_stats=False,
                                   act="sigmoid", out_dtype=jnp.float32)
            x = parity_to_nhwc(y, n, h, w, cout)   # f32
    return jnp.transpose(x, (0, 3, 1, 2))          # NHWC -> NCHW


if __name__ == "__main__":
    key = jax.random.PRNGKey(0)
    key, xk = jax.random.split(key)
    params = init_params(key)
    prep = prepare_params(params)

    # Input: (N, C=1024, H=2, W=2) -> output (N, 1, 64, 64).
    x = jax.random.normal(xk, (2, 1024, 2, 2), jnp.float32)

    fwd = jax.jit(decoder_pre_forward)
    out = jax.block_until_ready(fwd(x, prep))

    assert out.shape == (2, 1, 64, 64), out.shape
    assert out.dtype == jnp.float32
    assert bool(jnp.all(jnp.isfinite(out)))
    print("KERNEL_OK")
</pallas_src>

<mosaic_0001>
module attributes {stable_mosaic.version = 11 : i64} {
  func.func @_conv_mm_kernel(%arg0: i32, %arg1: memref<1x8x4096xbf16, #tpu.memory_space<vmem>>, %arg2: memref<1x4096x512xbf16, #tpu.memory_space<vmem>>, %arg3: memref<1x8x512xbf16, #tpu.memory_space<vmem>>, %arg4: memref<1x1x512xf32, #tpu.memory_space<vmem>>, %arg5: memref<1x1x512xf32, #tpu.memory_space<vmem>>) attributes {dimension_semantics = [#tpu.dimension_semantics<parallel>], iteration_bounds = array<i64: 4>, scalar_prefetch = 0 : i64, scratch_operands = 0 : i64, tpu.core_type = #tpu.core_type<tc>, window_params = [{transform_indices = @transform_0, window_bounds = array<i64: 1, 8, 4096>}, {transform_indices = @transform_1, window_bounds = array<i64: 1, 4096, 512>}, {transform_indices = @transform_2, window_bounds = array<i64: 1, 8, 512>}, {transform_indices = @transform_3, window_bounds = array<i64: 1, 1, 512>}, {transform_indices = @transform_4, window_bounds = array<i64: 1, 1, 512>}]} {
    %c0 = arith.constant 0 : index
    %c0_0 = arith.constant 0 : index
    %c0_1 = arith.constant 0 : index
    %0 = vector.load %arg1[%c0, %c0_0, %c0_1] : memref<1x8x4096xbf16, #tpu.memory_space<vmem>>, vector<1x8x4096xbf16>
    %1 = vector.shape_cast %0 : vector<1x8x4096xbf16> to vector<8x4096xbf16>
    %c0_2 = arith.constant 0 : index
    %c0_3 = arith.constant 0 : index
    %c0_4 = arith.constant 0 : index
    %2 = vector.load %arg2[%c0_2, %c0_3, %c0_4] : memref<1x4096x512xbf16, #tpu.memory_space<vmem>>, vector<1x4096x512xbf16>
    %3 = vector.shape_cast %2 : vector<1x4096x512xbf16> to vector<4096x512xbf16>
    %cst = arith.constant dense<0.000000e+00> : vector<8x512xf32>
    %4 = tpu.matmul %1, %3, %cst {dimension_numbers = #tpu.dot_dimension_numbers<[1], [0], [0], [1], [0, 0, 1, 1], [], []>} : vector<8x4096xbf16>, vector<4096x512xbf16>, vector<8x512xf32> -> vector<8x512xf32>
    %5 = arith.mulf %4, %4 : vector<8x512xf32>
    %cst_5 = arith.constant dense<0.000000e+00> : vector<512xf32>
    %6 = vector.multi_reduction <add>, %4, %cst_5 [0] : vector<8x512xf32> to vector<512xf32>
    %7 = vector.shape_cast %6 : vector<512xf32> to vector<1x512xf32>
    %c0_6 = arith.constant 0 : index
    %c0_7 = arith.constant 0 : index
    %c0_8 = arith.constant 0 : index
    %8 = vector.load %arg4[%c0_6, %c0_7, %c0_8] : memref<1x1x512xf32, #tpu.memory_space<vmem>>, vector<1x1x512xf32>
    %9 = vector.shape_cast %8 : vector<1x1x512xf32> to vector<1x512xf32>
    %10 = vector.shape_cast %7 : vector<1x512xf32> to vector<1x1x512xf32>
    tpu.vector_store %arg4[%c0_6, %c0_7, %c0_8], %10 {strides = array<i32>} : memref<1x1x512xf32, #tpu.memory_space<vmem>>, vector<1x1x512xf32>,
    %cst_9 = arith.constant dense<0.000000e+00> : vector<512xf32>
    %11 = vector.multi_reduction <add>, %5, %cst_9 [0] : vector<8x512xf32> to vector<512xf32>
    %12 = vector.shape_cast %11 : vector<512xf32> to vector<1x512xf32>
    %c0_10 = arith.constant 0 : index
    %c0_11 = arith.constant 0 : index
    %c0_12 = arith.constant 0 : index
    %13 = vector.load %arg5[%c0_10, %c0_11, %c0_12] : memref<1x1x512xf32, #tpu.memory_space<vmem>>, vector<1x1x512xf32>
    %14 = vector.shape_cast %13 : vector<1x1x512xf32> to vector<1x512xf32>
    %15 = vector.shape_cast %12 : vector<1x512xf32> to vector<1x1x512xf32>
    tpu.vector_store %arg5[%c0_10, %c0_11, %c0_12], %15 {strides = array<i32>} : memref<1x1x512xf32, #tpu.memory_space<vmem>>, vector<1x1x512xf32>,
    %16 = arith.truncf %4 : vector<8x512xf32> to vector<8x512xbf16>
    %c0_13 = arith.constant 0 : index
    %c0_14 = arith.constant 0 : index
    %c0_15 = arith.constant 0 : index
    %17 = vector.load %arg3[%c0_13, %c0_14, %c0_15] : memref<1x8x512xbf16, #tpu.memory_space<vmem>>, vector<1x8x512xbf16>
    %18 = vector.shape_cast %17 : vector<1x8x512xbf16> to vector<8x512xbf16>
    %19 = vector.shape_cast %16 : vector<8x512xbf16> to vector<1x8x512xbf16>
    tpu.vector_store %arg3[%c0_13, %c0_14, %c0_15], %19 {strides = array<i32>} : memref<1x8x512xbf16, #tpu.memory_space<vmem>>, vector<1x8x512xbf16>,
    return
  }
  func.func @transform_0(%arg0: i32) -> (i32, i32, i32) {
    %c0_i32 = arith.constant 0 : i32
    %c0_i32_0 = arith.constant 0 : i32
    %c0_i32_1 = arith.constant 0 : i32
    return %arg0, %c0_i32, %c0_i32_0 : i32, i32, i32
  }
  func.func @transform_1(%arg0: i32) -> (i32, i32, i32) {
    %c0_i32 = arith.constant 0 : i32
    %c0_i32_0 = arith.constant 0 : i32
    %c0_i32_1 = arith.constant 0 : i32
    return %arg0, %c0_i32, %c0_i32_0 : i32, i32, i32
  }
  func.func @transform_2(%arg0: i32) -> (i32, i32, i32) {
    %c0_i32 = arith.constant 0 : i32
    %c0_i32_0 = arith.constant 0 : i32
    %c0_i32_1 = arith.constant 0 : i32
    return %arg0, %c0_i32, %c0_i32_0 : i32, i32, i32
  }
  func.func @transform_3(%arg0: i32) -> (i32, i32, i32) {
    %c0_i32 = arith.constant 0 : i32
    %c0_i32_0 = arith.constant 0 : i32
    %c0_i32_1 = arith.constant 0 : i32
    return %arg0, %c0_i32, %c0_i32_0 : i32, i32, i32
  }
  func.func @transform_4(%arg0: i32) -> (i32, i32, i32) {
    %c0_i32 = arith.constant 0 : i32
    %c0_i32_0 = arith.constant 0 : i32
    %c0_i32_1 = arith.constant 0 : i32
    return %arg0, %c0_i32, %c0_i32_0 : i32, i32, i32
  }
}

module attributes {stable_mosaic.version = 11 : i64} {
  func.func @_conv_mm_kernel(%arg0: i32, %arg1: memref<1x32x2048xbf16, #tpu.memory_space<vmem>>, %arg2: memref<1x2048x128xbf16, #tpu.memory_space<vmem>>, %arg3: memref<1x32x128xbf16, #tpu.memory_space<vmem>>, %arg4: memref<1x1x128xf32, #tpu.memory_space<vmem>>, %arg5: memref<1x1x128xf32, #tpu.memory_space<vmem>>) attributes {dimension_semantics = [#tpu.dimension_semantics<parallel>], iteration_bounds = array<i64: 4>, scalar_prefetch = 0 : i64, scratch_operands = 0 : i64, tpu.core_type = #tpu.core_type<tc>, window_params = [{transform_indices = @transform_0, window_bounds = array<i64: 1, 32, 2048>}, {transform_indices = @transform_1, window_bounds = array<i64: 1, 2048, 128>}, {transform_indices = @transform_2, window_bounds = array<i64: 1, 32, 128>}, {transform_indices = @transform_3, window_bounds = array<i64: 1, 1, 128>}, {transform_indices = @transform_4, window_bounds = array<i64: 1, 1, 128>}]} {
    %c0 = arith.constant 0 : index
    %c0_0 = arith.constant 0 : index
    %c0_1 = arith.constant 0 : index
    %0 = vector.load %arg1[%c0, %c0_0, %c0_1] : memref<1x32x2048xbf16, #tpu.memory_space<vmem>>, vector<1x32x2048xbf16>
    %1 = vector.shape_cast %0 : vector<1x32x2048xbf16> to vector<32x2048xbf16>
    %c0_2 = arith.constant 0 : index
    %c0_3 = arith.constant 0 : index
    %c0_4 = arith.constant 0 : index
    %2 = vector.load %arg2[%c0_2, %c0_3, %c0_4] : memref<1x2048x128xbf16, #tpu.memory_space<vmem>>, vector<1x2048x128xbf16>
    %3 = vector.shape_cast %2 : vector<1x2048x128xbf16> to vector<2048x128xbf16>
    %cst = arith.constant dense<0.000000e+00> : vector<32x128xf32>
    %4 = tpu.matmul %1, %3, %cst {dimension_numbers = #tpu.dot_dimension_numbers<[1], [0], [0], [1], [0, 0, 1, 1], [], []>} : vector<32x2048xbf16>, vector<2048x128xbf16>, vector<32x128xf32> -> vector<32x128xf32>
    %5 = arith.mulf %4, %4 : vector<32x128xf32>
    %cst_5 = arith.constant dense<0.000000e+00> : vector<128xf32>
    %6 = vector.multi_reduction <add>, %4, %cst_5 [0] : vector<32x128xf32> to vector<128xf32>
    %7 = vector.shape_cast %6 : vector<128xf32> to vector<1x128xf32>
    %c0_6 = arith.constant 0 : index
    %c0_7 = arith.constant 0 : index
    %c0_8 = arith.constant 0 : index
    %8 = vector.load %arg4[%c0_6, %c0_7, %c0_8] : memref<1x1x128xf32, #tpu.memory_space<vmem>>, vector<1x1x128xf32>
    %9 = vector.shape_cast %8 : vector<1x1x128xf32> to vector<1x128xf32>
    %10 = vector.shape_cast %7 : vector<1x128xf32> to vector<1x1x128xf32>
    tpu.vector_store %arg4[%c0_6, %c0_7, %c0_8], %10 {strides = array<i32>} : memref<1x1x128xf32, #tpu.memory_space<vmem>>, vector<1x1x128xf32>,
    %cst_9 = arith.constant dense<0.000000e+00> : vector<128xf32>
    %11 = vector.multi_reduction <add>, %5, %cst_9 [0] : vector<32x128xf32> to vector<128xf32>
    %12 = vector.shape_cast %11 : vector<128xf32> to vector<1x128xf32>
    %c0_10 = arith.constant 0 : index
    %c0_11 = arith.constant 0 : index
    %c0_12 = arith.constant 0 : index
    %13 = vector.load %arg5[%c0_10, %c0_11, %c0_12] : memref<1x1x128xf32, #tpu.memory_space<vmem>>, vector<1x1x128xf32>
    %14 = vector.shape_cast %13 : vector<1x1x128xf32> to vector<1x128xf32>
    %15 = vector.shape_cast %12 : vector<1x128xf32> to vector<1x1x128xf32>
    tpu.vector_store %arg5[%c0_10, %c0_11, %c0_12], %15 {strides = array<i32>} : memref<1x1x128xf32, #tpu.memory_space<vmem>>, vector<1x1x128xf32>,
    %16 = arith.truncf %4 : vector<32x128xf32> to vector<32x128xbf16>
    %c0_13 = arith.constant 0 : index
    %c0_14 = arith.constant 0 : index
    %c0_15 = arith.constant 0 : index
    %17 = vector.load %arg3[%c0_13, %c0_14, %c0_15] : memref<1x32x128xbf16, #tpu.memory_space<vmem>>, vector<1x32x128xbf16>
    %18 = vector.shape_cast %17 : vector<1x32x128xbf16> to vector<32x128xbf16>
    %19 = vector.shape_cast %16 : vector<32x128xbf16> to vector<1x32x128xbf16>
    tpu.vector_store %arg3[%c0_13, %c0_14, %c0_15], %19 {strides = array<i32>} : memref<1x32x128xbf16, #tpu.memory_space<vmem>>, vector<1x32x128xbf16>,
    return
  }
  func.func @transform_0(%arg0: i32) -> (i32, i32, i32) {
    %c0_i32 = arith.constant 0 : i32
    %c0_i32_0 = arith.constant 0 : i32
    %c0_i32_1 = arith.constant 0 : i32
    return %arg0, %c0_i32, %c0_i32_0 : i32, i32, i32
  }
  func.func @transform_1(%arg0: i32) -> (i32, i32, i32) {
    %c0_i32 = arith.constant 0 : i32
    %c0_i32_0 = arith.constant 0 : i32
    %c0_i32_1 = arith.constant 0 : i32
    return %arg0, %c0_i32, %c0_i32_0 : i32, i32, i32
  }
  func.func @transform_2(%arg0: i32) -> (i32, i32, i32) {
    %c0_i32 = arith.constant 0 : i32
    %c0_i32_0 = arith.constant 0 : i32
    %c0_i32_1 = arith.constant 0 : i32
    return %arg0, %c0_i32, %c0_i32_0 : i32, i32, i32
  }
  func.func @transform_3(%arg0: i32) -> (i32, i32, i32) {
    %c0_i32 = arith.constant 0 : i32
    %c0_i32_0 = arith.constant 0 : i32
    %c0_i32_1 = arith.constant 0 : i32
    return %arg0, %c0_i32, %c0_i32_0 : i32, i32, i32
  }
  func.func @transform_4(%arg0: i32) -> (i32, i32, i32) {
    %c0_i32 = arith.constant 0 : i32
    %c0_i32_0 = arith.constant 0 : i32
    %c0_i32_1 = arith.constant 0 : i32
    return %arg0, %c0_i32, %c0_i32_0 : i32, i32, i32
  }
}

module attributes {stable_mosaic.version = 11 : i64} {
  func.func @_conv_mm_kernel(%arg0: i32, %arg1: memref<1x128x512xbf16, #tpu.memory_space<vmem>>, %arg2: memref<1x512x64xbf16, #tpu.memory_space<vmem>>, %arg3: memref<1x128x64xbf16, #tpu.memory_space<vmem>>, %arg4: memref<1x1x64xf32, #tpu.memory_space<vmem>>, %arg5: memref<1x1x64xf32, #tpu.memory_space<vmem>>) attributes {dimension_semantics = [#tpu.dimension_semantics<parallel>], iteration_bounds = array<i64: 4>, scalar_prefetch = 0 : i64, scratch_operands = 0 : i64, tpu.core_type = #tpu.core_type<tc>, window_params = [{transform_indices = @transform_0, window_bounds = array<i64: 1, 128, 512>}, {transform_indices = @transform_1, window_bounds = array<i64: 1, 512, 64>}, {transform_indices = @transform_2, window_bounds = array<i64: 1, 128, 64>}, {transform_indices = @transform_3, window_bounds = array<i64: 1, 1, 64>}, {transform_indices = @transform_4, window_bounds = array<i64: 1, 1, 64>}]} {
    %c0 = arith.constant 0 : index
    %c0_0 = arith.constant 0 : index
    %c0_1 = arith.constant 0 : index
    %0 = vector.load %arg1[%c0, %c0_0, %c0_1] : memref<1x128x512xbf16, #tpu.memory_space<vmem>>, vector<1x128x512xbf16>
    %1 = vector.shape_cast %0 : vector<1x128x512xbf16> to vector<128x512xbf16>
    %c0_2 = arith.constant 0 : index
    %c0_3 = arith.constant 0 : index
    %c0_4 = arith.constant 0 : index
    %2 = vector.load %arg2[%c0_2, %c0_3, %c0_4] : memref<1x512x64xbf16, #tpu.memory_space<vmem>>, vector<1x512x64xbf16>
    %3 = vector.shape_cast %2 : vector<1x512x64xbf16> to vector<512x64xbf16>
    %cst = arith.constant dense<0.000000e+00> : vector<128x64xf32>
    %4 = tpu.matmul %1, %3, %cst {dimension_numbers = #tpu.dot_dimension_numbers<[1], [0], [0], [1], [0, 0, 1, 1], [], []>} : vector<128x512xbf16>, vector<512x64xbf16>, vector<128x64xf32> -> vector<128x64xf32>
    %5 = arith.mulf %4, %4 : vector<128x64xf32>
    %cst_5 = arith.constant dense<0.000000e+00> : vector<64xf32>
    %6 = vector.multi_reduction <add>, %4, %cst_5 [0] : vector<128x64xf32> to vector<64xf32>
    %7 = vector.shape_cast %6 : vector<64xf32> to vector<1x64xf32>
    %c0_6 = arith.constant 0 : index
    %c0_7 = arith.constant 0 : index
    %c0_8 = arith.constant 0 : index
    %8 = vector.load %arg4[%c0_6, %c0_7, %c0_8] : memref<1x1x64xf32, #tpu.memory_space<vmem>>, vector<1x1x64xf32>
    %9 = vector.shape_cast %8 : vector<1x1x64xf32> to vector<1x64xf32>
    %10 = vector.shape_cast %7 : vector<1x64xf32> to vector<1x1x64xf32>
    tpu.vector_store %arg4[%c0_6, %c0_7, %c0_8], %10 {strides = array<i32>} : memref<1x1x64xf32, #tpu.memory_space<vmem>>, vector<1x1x64xf32>,
    %cst_9 = arith.constant dense<0.000000e+00> : vector<64xf32>
    %11 = vector.multi_reduction <add>, %5, %cst_9 [0] : vector<128x64xf32> to vector<64xf32>
    %12 = vector.shape_cast %11 : vector<64xf32> to vector<1x64xf32>
    %c0_10 = arith.constant 0 : index
    %c0_11 = arith.constant 0 : index
    %c0_12 = arith.constant 0 : index
    %13 = vector.load %arg5[%c0_10, %c0_11, %c0_12] : memref<1x1x64xf32, #tpu.memory_space<vmem>>, vector<1x1x64xf32>
    %14 = vector.shape_cast %13 : vector<1x1x64xf32> to vector<1x64xf32>
    %15 = vector.shape_cast %12 : vector<1x64xf32> to vector<1x1x64xf32>
    tpu.vector_store %arg5[%c0_10, %c0_11, %c0_12], %15 {strides = array<i32>} : memref<1x1x64xf32, #tpu.memory_space<vmem>>, vector<1x1x64xf32>,
    %16 = arith.truncf %4 : vector<128x64xf32> to vector<128x64xbf16>
    %c0_13 = arith.constant 0 : index
    %c0_14 = arith.constant 0 : index
    %c0_15 = arith.constant 0 : index
    %17 = vector.load %arg3[%c0_13, %c0_14, %c0_15] : memref<1x128x64xbf16, #tpu.memory_space<vmem>>, vector<1x128x64xbf16>
    %18 = vector.shape_cast %17 : vector<1x128x64xbf16> to vector<128x64xbf16>
    %19 = vector.shape_cast %16 : vector<128x64xbf16> to vector<1x128x64xbf16>
    tpu.vector_store %arg3[%c0_13, %c0_14, %c0_15], %19 {strides = array<i32>} : memref<1x128x64xbf16, #tpu.memory_space<vmem>>, vector<1x128x64xbf16>,
    return
  }
  func.func @transform_0(%arg0: i32) -> (i32, i32, i32) {
    %c0_i32 = arith.constant 0 : i32
    %c0_i32_0 = arith.constant 0 : i32
    %c0_i32_1 = arith.constant 0 : i32
    return %arg0, %c0_i32, %c0_i32_0 : i32, i32, i32
  }
  func.func @transform_1(%arg0: i32) -> (i32, i32, i32) {
    %c0_i32 = arith.constant 0 : i32
    %c0_i32_0 = arith.constant 0 : i32
    %c0_i32_1 = arith.constant 0 : i32
    return %arg0, %c0_i32, %c0_i32_0 : i32, i32, i32
  }
  func.func @transform_2(%arg0: i32) -> (i32, i32, i32) {
    %c0_i32 = arith.constant 0 : i32
    %c0_i32_0 = arith.constant 0 : i32
    %c0_i32_1 = arith.constant 0 : i32
    return %arg0, %c0_i32, %c0_i32_0 : i32, i32, i32
  }
  func.func @transform_3(%arg0: i32) -> (i32, i32, i32) {
    %c0_i32 = arith.constant 0 : i32
    %c0_i32_0 = arith.constant 0 : i32
    %c0_i32_1 = arith.constant 0 : i32
    return %arg0, %c0_i32, %c0_i32_0 : i32, i32, i32
  }
  func.func @transform_4(%arg0: i32) -> (i32, i32, i32) {
    %c0_i32 = arith.constant 0 : i32
    %c0_i32_0 = arith.constant 0 : i32
    %c0_i32_1 = arith.constant 0 : i32
    return %arg0, %c0_i32, %c0_i32_0 : i32, i32, i32
  }
}

module attributes {stable_mosaic.version = 11 : i64} {
  func.func @_conv_mm_kernel(%arg0: i32, %arg1: memref<1x512x256xbf16, #tpu.memory_space<vmem>>, %arg2: memref<1x256x16xbf16, #tpu.memory_space<vmem>>, %arg3: memref<1x512x16xbf16, #tpu.memory_space<vmem>>, %arg4: memref<1x1x16xf32, #tpu.memory_space<vmem>>, %arg5: memref<1x1x16xf32, #tpu.memory_space<vmem>>) attributes {dimension_semantics = [#tpu.dimension_semantics<parallel>], iteration_bounds = array<i64: 4>, scalar_prefetch = 0 : i64, scratch_operands = 0 : i64, tpu.core_type = #tpu.core_type<tc>, window_params = [{transform_indices = @transform_0, window_bounds = array<i64: 1, 512, 256>}, {transform_indices = @transform_1, window_bounds = array<i64: 1, 256, 16>}, {transform_indices = @transform_2, window_bounds = array<i64: 1, 512, 16>}, {transform_indices = @transform_3, window_bounds = array<i64: 1, 1, 16>}, {transform_indices = @transform_4, window_bounds = array<i64: 1, 1, 16>}]} {
    %c0 = arith.constant 0 : index
    %c0_0 = arith.constant 0 : index
    %c0_1 = arith.constant 0 : index
    %0 = vector.load %arg1[%c0, %c0_0, %c0_1] : memref<1x512x256xbf16, #tpu.memory_space<vmem>>, vector<1x512x256xbf16>
    %1 = vector.shape_cast %0 : vector<1x512x256xbf16> to vector<512x256xbf16>
    %c0_2 = arith.constant 0 : index
    %c0_3 = arith.constant 0 : index
    %c0_4 = arith.constant 0 : index
    %2 = vector.load %arg2[%c0_2, %c0_3, %c0_4] : memref<1x256x16xbf16, #tpu.memory_space<vmem>>, vector<1x256x16xbf16>
    %3 = vector.shape_cast %2 : vector<1x256x16xbf16> to vector<256x16xbf16>
    %cst = arith.constant dense<0.000000e+00> : vector<512x16xf32>
    %4 = tpu.matmul %1, %3, %cst {dimension_numbers = #tpu.dot_dimension_numbers<[1], [0], [0], [1], [0, 0, 1, 1], [], []>} : vector<512x256xbf16>, vector<256x16xbf16>, vector<512x16xf32> -> vector<512x16xf32>
    %5 = arith.mulf %4, %4 : vector<512x16xf32>
    %cst_5 = arith.constant dense<0.000000e+00> : vector<16xf32>
    %6 = vector.multi_reduction <add>, %4, %cst_5 [0] : vector<512x16xf32> to vector<16xf32>
    %7 = vector.shape_cast %6 : vector<16xf32> to vector<1x16xf32>
    %c0_6 = arith.constant 0 : index
    %c0_7 = arith.constant 0 : index
    %c0_8 = arith.constant 0 : index
    %8 = vector.load %arg4[%c0_6, %c0_7, %c0_8] : memref<1x1x16xf32, #tpu.memory_space<vmem>>, vector<1x1x16xf32>
    %9 = vector.shape_cast %8 : vector<1x1x16xf32> to vector<1x16xf32>
    %10 = vector.shape_cast %7 : vector<1x16xf32> to vector<1x1x16xf32>
    tpu.vector_store %arg4[%c0_6, %c0_7, %c0_8], %10 {strides = array<i32>} : memref<1x1x16xf32, #tpu.memory_space<vmem>>, vector<1x1x16xf32>,
    %cst_9 = arith.constant dense<0.000000e+00> : vector<16xf32>
    %11 = vector.multi_reduction <add>, %5, %cst_9 [0] : vector<512x16xf32> to vector<16xf32>
    %12 = vector.shape_cast %11 : vector<16xf32> to vector<1x16xf32>
    %c0_10 = arith.constant 0 : index
    %c0_11 = arith.constant 0 : index
    %c0_12 = arith.constant 0 : index
    %13 = vector.load %arg5[%c0_10, %c0_11, %c0_12] : memref<1x1x16xf32, #tpu.memory_space<vmem>>, vector<1x1x16xf32>
    %14 = vector.shape_cast %13 : vector<1x1x16xf32> to vector<1x16xf32>
    %15 = vector.shape_cast %12 : vector<1x16xf32> to vector<1x1x16xf32>
    tpu.vector_store %arg5[%c0_10, %c0_11, %c0_12], %15 {strides = array<i32>} : memref<1x1x16xf32, #tpu.memory_space<vmem>>, vector<1x1x16xf32>,
    %16 = arith.truncf %4 : vector<512x16xf32> to vector<512x16xbf16>
    %c0_13 = arith.constant 0 : index
    %c0_14 = arith.constant 0 : index
    %c0_15 = arith.constant 0 : index
    %17 = vector.load %arg3[%c0_13, %c0_14, %c0_15] : memref<1x512x16xbf16, #tpu.memory_space<vmem>>, vector<1x512x16xbf16>
    %18 = vector.shape_cast %17 : vector<1x512x16xbf16> to vector<512x16xbf16>
    %19 = vector.shape_cast %16 : vector<512x16xbf16> to vector<1x512x16xbf16>
    tpu.vector_store %arg3[%c0_13, %c0_14, %c0_15], %19 {strides = array<i32>} : memref<1x512x16xbf16, #tpu.memory_space<vmem>>, vector<1x512x16xbf16>,
    return
  }
  func.func @transform_0(%arg0: i32) -> (i32, i32, i32) {
    %c0_i32 = arith.constant 0 : i32
    %c0_i32_0 = arith.constant 0 : i32
    %c0_i32_1 = arith.constant 0 : i32
    return %arg0, %c0_i32, %c0_i32_0 : i32, i32, i32
  }
  func.func @transform_1(%arg0: i32) -> (i32, i32, i32) {
    %c0_i32 = arith.constant 0 : i32
    %c0_i32_0 = arith.constant 0 : i32
    %c0_i32_1 = arith.constant 0 : i32
    return %arg0, %c0_i32, %c0_i32_0 : i32, i32, i32
  }
  func.func @transform_2(%arg0: i32) -> (i32, i32, i32) {
    %c0_i32 = arith.constant 0 : i32
    %c0_i32_0 = arith.constant 0 : i32
    %c0_i32_1 = arith.constant 0 : i32
    return %arg0, %c0_i32, %c0_i32_0 : i32, i32, i32
  }
  func.func @transform_3(%arg0: i32) -> (i32, i32, i32) {
    %c0_i32 = arith.constant 0 : i32
    %c0_i32_0 = arith.constant 0 : i32
    %c0_i32_1 = arith.constant 0 : i32
    return %arg0, %c0_i32, %c0_i32_0 : i32, i32, i32
  }
  func.func @transform_4(%arg0: i32) -> (i32, i32, i32) {
    %c0_i32 = arith.constant 0 : i32
    %c0_i32_0 = arith.constant 0 : i32
    %c0_i32_1 = arith.constant 0 : i32
    return %arg0, %c0_i32, %c0_i32_0 : i32, i32, i32
  }
}

module attributes {stable_mosaic.version = 11 : i64} {
  func.func @_conv_mm_kernel(%arg0: i32, %arg1: memref<1x2048x64xbf16, #tpu.memory_space<vmem>>, %arg2: memref<1x64x1xbf16, #tpu.memory_space<vmem>>, %arg3: memref<1x2048x1xf32, #tpu.memory_space<vmem>>) attributes {dimension_semantics = [#tpu.dimension_semantics<parallel>], iteration_bounds = array<i64: 4>, scalar_prefetch = 0 : i64, scratch_operands = 0 : i64, tpu.core_type = #tpu.core_type<tc>, window_params = [{transform_indices = @transform_0, window_bounds = array<i64: 1, 2048, 64>}, {transform_indices = @transform_1, window_bounds = array<i64: 1, 64, 1>}, {transform_indices = @transform_2, window_bounds = array<i64: 1, 2048, 1>}]} {
    %c0 = arith.constant 0 : index
    %c0_0 = arith.constant 0 : index
    %c0_1 = arith.constant 0 : index
    %0 = vector.load %arg1[%c0, %c0_0, %c0_1] : memref<1x2048x64xbf16, #tpu.memory_space<vmem>>, vector<1x2048x64xbf16>
    %1 = vector.shape_cast %0 : vector<1x2048x64xbf16> to vector<2048x64xbf16>
    %c0_2 = arith.constant 0 : index
    %c0_3 = arith.constant 0 : index
    %c0_4 = arith.constant 0 : index
    %2 = vector.load %arg2[%c0_2, %c0_3, %c0_4] : memref<1x64x1xbf16, #tpu.memory_space<vmem>>, vector<1x64x1xbf16>
    %3 = vector.shape_cast %2 : vector<1x64x1xbf16> to vector<64x1xbf16>
    %cst = arith.constant dense<0.000000e+00> : vector<2048x1xf32>
    %4 = tpu.matmul %1, %3, %cst {dimension_numbers = #tpu.dot_dimension_numbers<[1], [0], [0], [1], [0, 0, 1, 1], [], []>} : vector<2048x64xbf16>, vector<64x1xbf16>, vector<2048x1xf32> -> vector<2048x1xf32>
    %5 = arith.negf %4 : vector<2048x1xf32>
    %6 = math.exp %5 : vector<2048x1xf32>
    %cst_5 = arith.constant 1.000000e+00 : f32
    %7 = vector.broadcast %cst_5 : f32 to vector<2048x1xf32>
    %8 = arith.addf %7, %6 : vector<2048x1xf32>
    %9 = arith.divf %7, %8 : vector<2048x1xf32>
    %c0_6 = arith.constant 0 : index
    %c0_7 = arith.constant 0 : index
    %c0_8 = arith.constant 0 : index
    %10 = vector.load %arg3[%c0_6, %c0_7, %c0_8] : memref<1x2048x1xf32, #tpu.memory_space<vmem>>, vector<1x2048x1xf32>
    %11 = vector.shape_cast %10 : vector<1x2048x1xf32> to vector<2048x1xf32>
    %12 = vector.shape_cast %9 : vector<2048x1xf32> to vector<1x2048x1xf32>
    tpu.vector_store %arg3[%c0_6, %c0_7, %c0_8], %12 {strides = array<i32>} : memref<1x2048x1xf32, #tpu.memory_space<vmem>>, vector<1x2048x1xf32>,
    return
  }
  func.func @transform_0(%arg0: i32) -> (i32, i32, i32) {
    %c0_i32 = arith.constant 0 : i32
    %c0_i32_0 = arith.constant 0 : i32
    %c0_i32_1 = arith.constant 0 : i32
    return %arg0, %c0_i32, %c0_i32_0 : i32, i32, i32
  }
  func.func @transform_1(%arg0: i32) -> (i32, i32, i32) {
    %c0_i32 = arith.constant 0 : i32
    %c0_i32_0 = arith.constant 0 : i32
    %c0_i32_1 = arith.constant 0 : i32
    return %arg0, %c0_i32, %c0_i32_0 : i32, i32, i32
  }
  func.func @transform_2(%arg0: i32) -> (i32, i32, i32) {
    %c0_i32 = arith.constant 0 : i32
    %c0_i32_0 = arith.constant 0 : i32
    %c0_i32_1 = arith.constant 0 : i32
    return %arg0, %c0_i32, %c0_i32_0 : i32, i32, i32
  }
}

</mosaic_0001>

<bundles_post_ra>
// kernel: decoder_pre_forward.6
= control target key start
LH: loop header
LB: loop body
LE: loop exit
PB: predicated region body
PF: predicated region fallthrough
CT: control target
= control target key end

     0   :  { %s2593_s15 = smov 0   ;;  %s2790_s0 = inlined_call_operand.vmem [shape: bf16[4,32,2048], index: 0, kind: input, shape index: {}]   ;;  %s2791_s1 = inlined_call_operand.vmem [shape: bf16[4,2048,128], index: 1, kind: input, shape index: {}]   ;;  %s2792_s2 = inlined_call_operand.vmem [shape: bf16[4,32,128], index: 2, kind: output, shape index: {0}]   ;;  %s2793_s3 = inlined_call_operand.vmem [shape: f32[4,1,128], index: 3, kind: output, shape index: {1}]   ;;  %s2794_s4 = inlined_call_operand.vmem [shape: f32[4,1,128], index: 4, kind: output, shape index: {2}]  }
   0x1 LB: > { %s2005_s16 = sadd.s32 4294967295, %s2566_s15   ;;  %p2009_p0 = scmp.ge.s32.totalorder %s2566_s15, 1  ;;  %s2566_s15 = sphi %s2593_s15, %s15_s15  }
   0x2   : > { %p177_p1 = scmp.lt.s32.totalorder %s2566_s15, 5 }
   0x4   : > { %p178_p2 = pnand %p2009_p0, %p177_p1 }
   0x5   : > { %p214_p3 = scmp.lt.s32.totalorder (!%p178_p2), %s2005_s16, 3 }
   0x6   : > { %181 = sbr.rel (%p178_p2) target bundleno = 392 (0x188), region = 28 }
   0xd   : > { %s2796_s16 = smov (!%p214_p3, %s2005_s16), 3 }
   0xe   : > { %s2183_s17 = sshll.u32 %s2796_s16, 10  ;;  %s2182_s21 = sshll.u32 %s2796_s16, 8 }
   0xf   : > { %s2607_s20 = scalar_lea.vmem %s2791_s1, %s2183_s17  ;;  %s2643_s24 = scalar_lea.vmem %s2790_s0, %s2182_s21 }
  0x10   : > { %v2432_v0 = vld [vmem:[%s2607_s20 + $0x40] sm:$0xff]   ;;  %v2436_v4 = vld [vmem:[%s2607_s20 + $0x48] sm:$0xff]   ;;  %v2440_v8 = vld [vmem:[%s2607_s20 + $0x50] sm:$0xff]   ;;  %s2184_s25 = sshll.u32 %s2796_s16, 4  ;;  %s231_s5 = scalar_lea.vmem %s2793_s3, %s2796_s16 }
  0x11   : > { %v2433_v1 = vld [vmem:[%s2607_s20 + $0xc0] sm:$0xff]   ;;  %2200 = vmatprep.subr.bf16.mxu0 %v2432_v0  ;;  %v2437_v5 = vld [vmem:[%s2607_s20 + $0xc8] sm:$0xff]   ;;  %v2441_v9 = vld [vmem:[%s2607_s20 + $0xd0] sm:$0xff]   ;;  %s228_s28 = scalar_lea.vmem %s2792_s2, %s2184_s25  ;;  %s234_s8 = scalar_lea.vmem %s2794_s4, %s2796_s16 }
  0x12   : > { %v2434_v2 = vld [vmem:[%s2607_s20] sm:$0xff]   ;;  %2228 = vmatprep.subr.bf16.mxu1 %v2433_v1  ;;  %v2438_v6 = vld [vmem:[%s2607_s20 + $0x8] sm:$0xff]   ;;  %v2442_v10 = vld [vmem:[%s2607_s20 + $0x10] sm:$0xff]  }
  0x13   : > { %v2435_v3 = vld [vmem:[%s2607_s20 + $0x80] sm:$0xff]   ;;  %2201 = vmatpush3.bf16.msra.mxu0 %v2434_v2  ;;  %v2439_v7 = vld [vmem:[%s2607_s20 + $0x88] sm:$0xff]   ;;  %v2443_v11 = vld [vmem:[%s2607_s20 + $0x90] sm:$0xff]  }
  0x14   : > { %2229 = vmatpush3.bf16.msra.mxu1 %v2435_v3  ;;  %2202 = vmatprep.subr.bf16.mxu0 %v2436_v4  ;;  %v2444_v12 = vld [vmem:[%s2607_s20 + $0x58] sm:$0xff]   ;;  %v2448_v16 = vld [vmem:[%s2607_s20 + $0x60] sm:$0xff]   ;;  %v2452_v20 = vld [vmem:[%s2607_s20 + $0x68] sm:$0xff]  }
  0x15   : > { %2230 = vmatprep.subr.bf16.mxu1 %v2437_v5  ;;  %v2445_v13 = vld [vmem:[%s2607_s20 + $0xd8] sm:$0xff]   ;;  %v2449_v17 = vld [vmem:[%s2607_s20 + $0xe0] sm:$0xff]   ;;  %v2453_v21 = vld [vmem:[%s2607_s20 + $0xe8] sm:$0xff]  }
  0x16   : > { %v2446_v14 = vld [vmem:[%s2607_s20 + $0x18] sm:$0xff]   ;;  %v2450_v18 = vld [vmem:[%s2607_s20 + $0x20] sm:$0xff]   ;;  %v2454_v22 = vld [vmem:[%s2607_s20 + $0x28] sm:$0xff]  }
  0x17   : > { %2203 = vmatpush3.bf16.msra.mxu0 %v2438_v6  ;;  %v2447_v15 = vld [vmem:[%s2607_s20 + $0x98] sm:$0xff]   ;;  %v2451_v19 = vld [vmem:[%s2607_s20 + $0xa0] sm:$0xff]   ;;  %v2455_v23 = vld [vmem:[%s2607_s20 + $0xa8] sm:$0xff]  }
  0x18   : > { %2231 = vmatpush3.bf16.msra.mxu1 %v2439_v7  ;;  %2204 = vmatprep.subr.bf16.mxu0 %v2440_v8  ;;  %v2456_v24 = vld [vmem:[%s2607_s20 + $0x70] sm:$0xff]   ;;  %v2460_v28 = vld [vmem:[%s2607_s20 + $0x78] sm:$0xff]   ;;  %v236_v32 = vld [vmem:[%s2643_s24] sm:$0xff] }
  0x19   : > { %2232 = vmatprep.subr.bf16.mxu1 %v2441_v9  ;;  %v2457_v25 = vld [vmem:[%s2607_s20 + $0xf0] sm:$0xff]   ;;  %v2461_v29 = vld [vmem:[%s2607_s20 + $0xf8] sm:$0xff]   ;;  %v244_v33 = vld [vmem:[%s2643_s24 + $0x40] sm:$0xff] }
  0x1a   : > { %v2458_v26 = vld [vmem:[%s2607_s20 + $0x30] sm:$0xff]   ;;  %v2462_v30 = vld [vmem:[%s2607_s20 + $0x38] sm:$0xff]   ;;  %v237_v34 = vld [vmem:[%s2643_s24 + $0x8] sm:$0xff]  ;;  %v2016_v35 = vcombine.low %v236_v32, %v244_v33  ;;  %v2017_v36 = vcombine.high %v236_v32, %v244_v33 }
  0x1b   : > { %2205 = vmatpush3.bf16.msra.mxu0 %v2442_v10  ;;  %v2459_v27 = vld [vmem:[%s2607_s20 + $0xb0] sm:$0xff]   ;;  %v2463_v31 = vld [vmem:[%s2607_s20 + $0xb8] sm:$0xff]   ;;  %v245_v37 = vld [vmem:[%s2643_s24 + $0x48] sm:$0xff] }
  0x1c   : > { %2233 = vmatpush3.bf16.msra.mxu1 %v2443_v11  ;;  %2206 = vmatprep.subr.bf16.mxu0 %v2444_v12  ;;  %v2018_v38 = vcombine.low %v237_v34, %v245_v37  ;;  %v2019_v39 = vcombine.high %v237_v34, %v245_v37  ;;  %v2464_v40 = vld [vmem:[%s2607_s20 + $0x140] sm:$0xff]   ;;  %v2468_v44 = vld [vmem:[%s2607_s20 + $0x148] sm:$0xff]   ;;  %v2472_v48 = vld [vmem:[%s2607_s20 + $0x150] sm:$0xff]  }
  0x1d   : > { %2234 = vmatprep.subr.bf16.mxu1 %v2445_v13  ;;  %1484 = vmatprep.mubr.bf16.mxu0 %v2017_v36  ;;  %v2465_v41 = vld [vmem:[%s2607_s20 + $0x1c0] sm:$0xff]   ;;  %v2469_v45 = vld [vmem:[%s2607_s20 + $0x1c8] sm:$0xff]   ;;  %v2473_v49 = vld [vmem:[%s2607_s20 + $0x1d0] sm:$0xff]  }
  0x1e   : > { %1533 = vmatprep.mubr.bf16.mxu1 %v2019_v39  ;;  %v2466_v42 = vld [vmem:[%s2607_s20 + $0x100] sm:$0xff]   ;;  %v2470_v46 = vld [vmem:[%s2607_s20 + $0x108] sm:$0xff]   ;;  %v2474_v50 = vld [vmem:[%s2607_s20 + $0x110] sm:$0xff]  }
  0x1f   : > { %2207 = vmatpush3.bf16.msra.mxu0 %v2446_v14  ;;  %v2467_v43 = vld [vmem:[%s2607_s20 + $0x180] sm:$0xff]   ;;  %v2471_v47 = vld [vmem:[%s2607_s20 + $0x188] sm:$0xff]   ;;  %v2475_v51 = vld [vmem:[%s2607_s20 + $0x190] sm:$0xff]  }
  0x20   : > { %2235 = vmatpush3.bf16.msra.mxu1 %v2447_v15  ;;  %2208 = vmatprep.subr.bf16.mxu0 %v2448_v16  ;;  %v2476_v52 = vld [vmem:[%s2607_s20 + $0x158] sm:$0xff]   ;;  %v2480_v56 = vld [vmem:[%s2607_s20 + $0x160] sm:$0xff]   ;;  %v2484_v60 = vld [vmem:[%s2607_s20 + $0x168] sm:$0xff]  }
  0x21   : > { %2236 = vmatprep.subr.bf16.mxu1 %v2449_v17  ;;  %v2477_v53 = vld [vmem:[%s2607_s20 + $0x1d8] sm:$0xff]   ;;  %v2481_v57 = vld [vmem:[%s2607_s20 + $0x1e0] sm:$0xff]   ;;  %v2485_v61 = vld [vmem:[%s2607_s20 + $0x1e8] sm:$0xff]  }
  0x22   : > { %v2478_v54 = vld [vmem:[%s2607_s20 + $0x118] sm:$0xff]   ;;  %v2482_v58 = vld [vmem:[%s2607_s20 + $0x120] sm:$0xff]   ;;  %v253_v1 = vld [vmem:[%s2643_s24 + $0x88] sm:$0xff] }
  0x23   : > { %2209 = vmatpush3.bf16.msra.mxu0 %v2450_v18  ;;  %v2479_v55 = vld [vmem:[%s2607_s20 + $0x198] sm:$0xff]   ;;  %v2483_v59 = vld [vmem:[%s2607_s20 + $0x1a0] sm:$0xff]   ;;  %v261_v2 = vld [vmem:[%s2643_s24 + $0xc8] sm:$0xff] }
  0x24   : > { %2237 = vmatpush3.bf16.msra.mxu1 %v2451_v19  ;;  %2210 = vmatprep.subr.bf16.mxu0 %v2452_v20  ;;  %v252_v62 = vld [vmem:[%s2643_s24 + $0x80] sm:$0xff]  ;;  %v2035_v4 = vcombine.high %v253_v1, %v261_v2  ;;  %v2486_v5 = vld [vmem:[%s2607_s20 + $0x128] sm:$0xff]   ;;  %v2034_v6 = vcombine.low %v253_v1, %v261_v2  ;;  %v2488_v8 = vld [vmem:[%s2607_s20 + $0x170] sm:$0xff]  }
  0x25   : > { %2238 = vmatprep.subr.bf16.mxu1 %v2453_v21  ;;  %v260_v63 = vld [vmem:[%s2643_s24 + $0xc0] sm:$0xff]  ;;  %v2487_v7 = vld [vmem:[%s2607_s20 + $0x1a8] sm:$0xff]   ;;  %v2489_v9 = vld [vmem:[%s2607_s20 + $0x1f0] sm:$0xff]  }
  0x26   : > { %v2033_v0 = vcombine.high %v252_v62, %v260_v63  ;;  %v2032_v3 = vcombine.low %v252_v62, %v260_v63  ;;  %v2490_v10 = vld [vmem:[%s2607_s20 + $0x130] sm:$0xff]   ;;  %v2492_v12 = vld [vmem:[%s2607_s20 + $0x178] sm:$0xff]   ;;  %v248_v1 = vld [vmem:[%s2643_s24 + $0x60] sm:$0xff] }
  0x27   : > { %2211 = vmatpush3.bf16.msra.mxu0 %v2454_v22  ;;  %v2491_v11 = vld [vmem:[%s2607_s20 + $0x1b0] sm:$0xff]   ;;  %v2493_v13 = vld [vmem:[%s2607_s20 + $0x1f8] sm:$0xff]  }
  0x28   : > { %2239 = vmatpush3.bf16.msra.mxu1 %v2455_v23  ;;  %2212 = vmatprep.subr.bf16.mxu0 %v2456_v24  ;;  %v2494_v14 = vld [vmem:[%s2607_s20 + $0x138] sm:$0xff]   ;;  %v238_v16 = vld [vmem:[%s2643_s24 + $0x10] sm:$0xff]  ;;  %v2496_v24 = vld [vmem:[%s2607_s20 + $0x240] sm:$0xff]  }
  0x29   : > { %2240 = vmatprep.subr.bf16.mxu1 %v2457_v25  ;;  %v2495_v15 = vld [vmem:[%s2607_s20 + $0x1b8] sm:$0xff]   ;;  %v246_v17 = vld [vmem:[%s2643_s24 + $0x50] sm:$0xff]  ;;  %v2497_v25 = vld [vmem:[%s2607_s20 + $0x2c0] sm:$0xff]  }
  0x2a   : > { %v239_v18 = vld [vmem:[%s2643_s24 + $0x18] sm:$0xff]  ;;  %v2020_v20 = vcombine.low %v238_v16, %v246_v17  ;;  %v2021_v21 = vcombine.high %v238_v16, %v246_v17  ;;  %v254_v32 = vld [vmem:[%s2643_s24 + $0x90] sm:$0xff]  ;;  %v256_v16 = vld [vmem:[%s2643_s24 + $0xa0] sm:$0xff] }
  0x2b   : > { %2213 = vmatpush3.bf16.msra.mxu0 %v2458_v26  ;;  %v247_v19 = vld [vmem:[%s2643_s24 + $0x58] sm:$0xff]  ;;  %v2498_v26 = vld [vmem:[%s2607_s20 + $0x200] sm:$0xff]   ;;  %v262_v33 = vld [vmem:[%s2643_s24 + $0xd0] sm:$0xff] }
  0x2c   : > { %2241 = vmatpush3.bf16.msra.mxu1 %v2459_v27  ;;  %2214 = vmatprep.subr.bf16.mxu0 %v2460_v28  ;;  %v2022_v22 = vcombine.low %v239_v18, %v247_v19  ;;  %v2023_v23 = vcombine.high %v239_v18, %v247_v19  ;;  %v2499_v27 = vld [vmem:[%s2607_s20 + $0x280] sm:$0xff]   ;;  %v2500_v28 = vld [vmem:[%s2607_s20 + $0x248] sm:$0xff]   ;;  %v2037_v34 = vcombine.high %v254_v32, %v262_v33  ;;  %v2504_v36 = vld [vmem:[%s2607_s20 + $0x250] sm:$0xff]  }
  0x2d   : > { %2242 = vmatprep.subr.bf16.mxu1 %v2461_v29  ;;  %v2501_v29 = vld [vmem:[%s2607_s20 + $0x2c8] sm:$0xff]   ;;  %v2505_v37 = vld [vmem:[%s2607_s20 + $0x2d0] sm:$0xff]   ;;  %v263_v39 = vld [vmem:[%s2643_s24 + $0xd8] sm:$0xff] }
  0x2e   : > { %v2526_v62 = vld [vmem:[%s2607_s20 + $0x238] sm:$0xff]   ;;  %v264_v17 = vld [vmem:[%s2643_s24 + $0xe0] sm:$0xff] }
  0x2f   : > { %2215 = vmatpush3.bf16.msra.mxu0 %v2462_v30  ;;  %v2502_v30 = vld [vmem:[%s2607_s20 + $0x208] sm:$0xff]   ;;  %v2527_v63 = vld [vmem:[%s2607_s20 + $0x2b8] sm:$0xff]   ;;  %v2041_v18 = vcombine.high %v256_v16, %v264_v17  ;;  %v2040_v19 = vcombine.low %v256_v16, %v264_v17 }
  0x30   : > { %2243 = vmatpush3.bf16.msra.mxu1 %v2463_v31  ;;  %2256 = vmatprep.subr.bf16.mxu0 %v2464_v40  ;;  %v2503_v31 = vld [vmem:[%s2607_s20 + $0x288] sm:$0xff]  }
  0x31   : > { %2284 = vmatprep.subr.bf16.mxu1 %v2465_v41  ;;  %v2506_v41 = vld [vmem:[%s2607_s20 + $0x210] sm:$0xff]  }
  0x32   : > { %1485 = vmatmul.mubr.bf16.vlgmr.msra.gmra.mrb[0].mxu0 %v2016_v35  ;;  %v2036_v35 = vcombine.low %v254_v32, %v262_v33  ;;  %v2544_v32 = vld [vmem:[%s2607_s20 + $0x360] sm:$0xff]  }
  0x33   : > { %1534 = vmatmul.mubr.bf16.vlgmr.msra.gmra.mrb[0].mxu1 %v2018_v38  ;;  %2257 = vmatpush3.bf16.msra.mxu0 %v2466_v42  ;;  %v255_v38 = vld [vmem:[%s2643_s24 + $0x98] sm:$0xff]  ;;  %v2545_v33 = vld [vmem:[%s2607_s20 + $0x3e0] sm:$0xff]  }
  0x34   : > { %2285 = vmatpush3.bf16.msra.mxu1 %v2467_v43  ;;  %2258 = vmatprep.subr.bf16.mxu0 %v2468_v44  ;;  %v2039_v40 = vcombine.high %v255_v38, %v263_v39  ;;  %v2038_v42 = vcombine.low %v255_v38, %v263_v39  ;;  %v2507_v43 = vld [vmem:[%s2607_s20 + $0x290] sm:$0xff]   ;;  %v2508_v44 = vld [vmem:[%s2607_s20 + $0x258] sm:$0xff]   ;;  %v2550_v38 = vld [vmem:[%s2607_s20 + $0x328] sm:$0xff]  }
  0x35   : > { %2286 = vmatprep.subr.bf16.mxu1 %v2469_v45  ;;  %1492 = vmatprep.mubr.bf16.mxu0 %v2033_v0  ;;  %v2509_v45 = vld [vmem:[%s2607_s20 + $0x2d8] sm:$0xff]   ;;  %v240_v0 = vld [vmem:[%s2643_s24 + $0x20] sm:$0xff]  ;;  %v2551_v39 = vld [vmem:[%s2607_s20 + $0x3a8] sm:$0xff]  }
  0x36   : > { %1541 = vmatprep.mubr.bf16.mxu1 %v2035_v4  ;;  %v2024_v2 = vcombine.low %v240_v0, %v248_v1  ;;  %v241_v4 = vld [vmem:[%s2643_s24 + $0x28] sm:$0xff] }
  0x37   : > { %2259 = vmatpush3.bf16.msra.mxu0 %v2470_v46  ;;  %v2510_v46 = vld [vmem:[%s2607_s20 + $0x218] sm:$0xff]  }
  0x38   : > { %2287 = vmatpush3.bf16.msra.mxu1 %v2471_v47  ;;  %2260 = vmatprep.subr.bf16.mxu0 %v2472_v48  ;;  %v2511_v47 = vld [vmem:[%s2607_s20 + $0x298] sm:$0xff]   ;;  %v2512_v48 = vld [vmem:[%s2607_s20 + $0x260] sm:$0xff]  }
  0x39   : > { %2288 = vmatprep.subr.bf16.mxu1 %v2473_v49  ;;  %v2513_v49 = vld [vmem:[%s2607_s20 + $0x2e0] sm:$0xff]  }
  0x3a   : > { %1493 = vmatmul.mubr.bf16.gmra.mrb[4].mxu0 %v2032_v3  ;;  %v2025_v3 = vcombine.high %v240_v0, %v248_v1 }
  0x3b   : > { %2261 = vmatpush3.bf16.msra.mxu0 %v2474_v50  ;;  %1542 = vmatmul.mubr.bf16.gmra.mrb[4].mxu1 %v2034_v6  ;;  %v2514_v50 = vld [vmem:[%s2607_s20 + $0x220] sm:$0xff]  }
  0x3c   : > { %2289 = vmatpush3.bf16.msra.mxu1 %v2475_v51  ;;  %2262 = vmatprep.subr.bf16.mxu0 %v2476_v52  ;;  %v2515_v51 = vld [vmem:[%s2607_s20 + $0x2a0] sm:$0xff]   ;;  %v2516_v52 = vld [vmem:[%s2607_s20 + $0x268] sm:$0xff]  }
  0x3d   : > { %2290 = vmatprep.subr.bf16.mxu1 %v2477_v53  ;;  %1582 = vmatprep.mubr.bf16.mxu0 %v2021_v21  ;;  %v2517_v53 = vld [vmem:[%s2607_s20 + $0x2e8] sm:$0xff]   ;;  %v2537_v21 = vld [vmem:[%s2607_s20 + $0x3d0] sm:$0xff]  }
  0x3e   : > { %1631 = vmatprep.mubr.bf16.mxu1 %v2023_v23  ;;  %v265_v23 = vld [vmem:[%s2643_s24 + $0xe8] sm:$0xff] }
  0x3f   : > { %2263 = vmatpush3.bf16.msra.mxu0 %v2478_v54  ;;  %v2518_v54 = vld [vmem:[%s2607_s20 + $0x228] sm:$0xff]  }
  0x40   : > { %2291 = vmatpush3.bf16.msra.mxu1 %v2479_v55  ;;  %2264 = vmatprep.subr.bf16.mxu0 %v2480_v56  ;;  %v2519_v55 = vld [vmem:[%s2607_s20 + $0x2a8] sm:$0xff]   ;;  %v2520_v56 = vld [vmem:[%s2607_s20 + $0x270] sm:$0xff]  }
  0x41   : > { %2292 = vmatprep.subr.bf16.mxu1 %v2481_v57  ;;  %v2521_v57 = vld [vmem:[%s2607_s20 + $0x2f0] sm:$0xff]  }
  0x43   : > { %2265 = vmatpush3.bf16.msra.mxu0 %v2482_v58  ;;  %v2522_v58 = vld [vmem:[%s2607_s20 + $0x230] sm:$0xff]  }
  0x44   : > { %2293 = vmatpush3.bf16.msra.mxu1 %v2483_v59  ;;  %2266 = vmatprep.subr.bf16.mxu0 %v2484_v60  ;;  %v2523_v59 = vld [vmem:[%s2607_s20 + $0x2b0] sm:$0xff]   ;;  %v2524_v60 = vld [vmem:[%s2607_s20 + $0x278] sm:$0xff]  }
  0x45   : > { %2294 = vmatprep.subr.bf16.mxu1 %v2485_v61  ;;  %v2525_v61 = vld [vmem:[%s2607_s20 + $0x2f8] sm:$0xff]  }
  0x47   : > { %2267 = vmatpush3.bf16.msra.mxu0 %v2486_v5  ;;  %v249_v5 = vld [vmem:[%s2643_s24 + $0x68] sm:$0xff] }
  0x48   : > { %2295 = vmatpush3.bf16.msra.mxu1 %v2487_v7  ;;  %2268 = vmatprep.subr.bf16.mxu0 %v2488_v8  ;;  %v2026_v6 = vcombine.low %v241_v4, %v249_v5  ;;  %v2027_v7 = vcombine.high %v241_v4, %v249_v5  ;;  %v2528_v8 = vld [vmem:[%s2607_s20 + $0x340] sm:$0xff]  }
  0x49   : > { %2296 = vmatprep.subr.bf16.mxu1 %v2489_v9  ;;  %v2529_v9 = vld [vmem:[%s2607_s20 + $0x3c0] sm:$0xff]  }
  0x4b   : > { %2269 = vmatpush3.bf16.msra.mxu0 %v2490_v10  ;;  %v2530_v10 = vld [vmem:[%s2607_s20 + $0x300] sm:$0xff]  }
  0x4c   : > { %2297 = vmatpush3.bf16.msra.mxu1 %v2491_v11  ;;  %2270 = vmatprep.subr.bf16.mxu0 %v2492_v12  ;;  %v2531_v11 = vld [vmem:[%s2607_s20 + $0x380] sm:$0xff]   ;;  %v2532_v12 = vld [vmem:[%s2607_s20 + $0x348] sm:$0xff]  }
  0x4d   : > { %2298 = vmatprep.subr.bf16.mxu1 %v2493_v13  ;;  %v2533_v13 = vld [vmem:[%s2607_s20 + $0x3c8] sm:$0xff]  }
  0x4f   : > { %2271 = vmatpush3.bf16.msra.mxu0 %v2494_v14  ;;  %v2534_v14 = vld [vmem:[%s2607_s20 + $0x308] sm:$0xff]  }
  0x50   : > { %2299 = vmatpush3.bf16.msra.mxu1 %v2495_v15  ;;  %2312 = vmatprep.subr.bf16.mxu0 %v2496_v24  ;;  %v2535_v15 = vld [vmem:[%s2607_s20 + $0x388] sm:$0xff]  }
  0x51   : > { %2340 = vmatprep.subr.bf16.mxu1 %v2497_v25  ;;  %v2538_v25 = vld [vmem:[%s2607_s20 + $0x310] sm:$0xff]  }
  0x52   : > { %1583 = vmatmul.mubr.bf16.vlgmr.msra.gmra.mrb[8].mxu0 %v2020_v20  ;;  %v2536_v20 = vld [vmem:[%s2607_s20 + $0x350] sm:$0xff]  }
  0x53   : > { %1632 = vmatmul.mubr.bf16.vlgmr.msra.gmra.mrb[8].mxu1 %v2022_v22  ;;  %2313 = vmatpush3.bf16.msra.mxu0 %v2498_v26  ;;  %v257_v22 = vld [vmem:[%s2643_s24 + $0xa8] sm:$0xff] }
  0x54   : > { %2341 = vmatpush3.bf16.msra.mxu1 %v2499_v27  ;;  %2314 = vmatprep.subr.bf16.mxu0 %v2500_v28  ;;  %v2043_v24 = vcombine.high %v257_v22, %v265_v23  ;;  %v2042_v26 = vcombine.low %v257_v22, %v265_v23  ;;  %v2539_v27 = vld [vmem:[%s2607_s20 + $0x390] sm:$0xff]   ;;  %v2540_v28 = vld [vmem:[%s2607_s20 + $0x358] sm:$0xff]  }
  0x55   : > { %2342 = vmatprep.subr.bf16.mxu1 %v2501_v29  ;;  %1590 = vmatprep.mubr.bf16.mxu0 %v2037_v34  ;;  %v2541_v29 = vld [vmem:[%s2607_s20 + $0x3d8] sm:$0xff]   ;;  %v2546_v34 = vld [vmem:[%s2607_s20 + $0x320] sm:$0xff]  }
  0x56   : > { %1639 = vmatprep.mubr.bf16.mxu1 %v2039_v40  ;;  %v2552_v40 = vld [vmem:[%s2607_s20 + $0x370] sm:$0xff]  }
  0x57   : > { %2315 = vmatpush3.bf16.msra.mxu0 %v2502_v30  ;;  %v2542_v30 = vld [vmem:[%s2607_s20 + $0x318] sm:$0xff]  }
  0x58   : > { %2343 = vmatpush3.bf16.msra.mxu1 %v2503_v31  ;;  %2316 = vmatprep.subr.bf16.mxu0 %v2504_v36  ;;  %v2543_v31 = vld [vmem:[%s2607_s20 + $0x398] sm:$0xff]   ;;  %v2548_v36 = vld [vmem:[%s2607_s20 + $0x368] sm:$0xff]  }
  0x59   : > { %2344 = vmatprep.subr.bf16.mxu1 %v2505_v37  ;;  %v2549_v37 = vld [vmem:[%s2607_s20 + $0x3e8] sm:$0xff]  }
  0x5a   : > { %1591 = vmatmul.mubr.bf16.gmra.mrb[12].mxu0 %v2036_v35  ;;  %v2547_v35 = vld [vmem:[%s2607_s20 + $0x3a0] sm:$0xff]  }
  0x5b   : > { %2317 = vmatpush3.bf16.msra.mxu0 %v2506_v41  ;;  %1640 = vmatmul.mubr.bf16.gmra.mrb[12].mxu1 %v2038_v42  ;;  %v2553_v41 = vld [vmem:[%s2607_s20 + $0x3f0] sm:$0xff]  }
  0x5c   : > { %2345 = vmatpush3.bf16.msra.mxu1 %v2507_v43  ;;  %2318 = vmatprep.subr.bf16.mxu0 %v2508_v44  ;;  %v2554_v42 = vld [vmem:[%s2607_s20 + $0x330] sm:$0xff]   ;;  %v2556_v44 = vld [vmem:[%s2607_s20 + $0x378] sm:$0xff]  }
  0x5d   : > { %2346 = vmatprep.subr.bf16.mxu1 %v2509_v45  ;;  %1680 = vmatprep.mubr.bf16.mxu0 %v2025_v3  ;;  %v2555_v43 = vld [vmem:[%s2607_s20 + $0x3b0] sm:$0xff]   ;;  %v2557_v45 = vld [vmem:[%s2607_s20 + $0x3f8] sm:$0xff]  }
  0x5e   : > { %1729 = vmatprep.mubr.bf16.mxu1 %v2027_v7 }
  0x5f   : > { %2319 = vmatpush3.bf16.msra.mxu0 %v2510_v46  ;;  %v2558_v46 = vld [vmem:[%s2607_s20 + $0x338] sm:$0xff]  }
  0x60   : > { %2347 = vmatpush3.bf16.msra.mxu1 %v2511_v47  ;;  %2320 = vmatprep.subr.bf16.mxu0 %v2512_v48  ;;  %v2559_v47 = vld [vmem:[%s2607_s20 + $0x3b8] sm:$0xff]   ;;  %v242_v48 = vld [vmem:[%s2643_s24 + $0x30] sm:$0xff] }
  0x61   : > { %2348 = vmatprep.subr.bf16.mxu1 %v2513_v49  ;;  %v250_v49 = vld [vmem:[%s2643_s24 + $0x70] sm:$0xff] }
  0x63   : > { %2321 = vmatpush3.bf16.msra.mxu0 %v2514_v50  ;;  %v243_v50 = vld [vmem:[%s2643_s24 + $0x38] sm:$0xff] }
  0x64   : > { %2349 = vmatpush3.bf16.msra.mxu1 %v2515_v51  ;;  %2322 = vmatprep.subr.bf16.mxu0 %v2516_v52  ;;  %v2028_v51 = vcombine.low %v242_v48, %v250_v49  ;;  %v2029_v52 = vcombine.high %v242_v48, %v250_v49 }
  0x65   : > { %2350 = vmatprep.subr.bf16.mxu1 %v2517_v53  ;;  %v251_v53 = vld [vmem:[%s2643_s24 + $0x78] sm:$0xff] }
  0x67   : > { %2323 = vmatpush3.bf16.msra.mxu0 %v2518_v54  ;;  %v258_v54 = vld [vmem:[%s2643_s24 + $0xb0] sm:$0xff] }
  0x68   : > { %2351 = vmatpush3.bf16.msra.mxu1 %v2519_v55  ;;  %2324 = vmatprep.subr.bf16.mxu0 %v2520_v56  ;;  %v266_v55 = vld [vmem:[%s2643_s24 + $0xf0] sm:$0xff]  ;;  %v2030_v56 = vcombine.low %v243_v50, %v251_v53 }
  0x69   : > { %2352 = vmatprep.subr.bf16.mxu1 %v2521_v57  ;;  %v2031_v57 = vcombine.high %v243_v50, %v251_v53 }
  0x6b   : > { %2325 = vmatpush3.bf16.msra.mxu0 %v2522_v58  ;;  %v2045_v58 = vcombine.high %v258_v54, %v266_v55 }
  0x6c   : > { %2353 = vmatpush3.bf16.msra.mxu1 %v2523_v59  ;;  %2326 = vmatprep.subr.bf16.mxu0 %v2524_v60  ;;  %v259_v59 = vld [vmem:[%s2643_s24 + $0xb8] sm:$0xff] }
  0x6d   : > { %2354 = vmatprep.subr.bf16.mxu1 %v2525_v61  ;;  %v267_v60 = vld [vmem:[%s2643_s24 + $0xf8] sm:$0xff] }
  0x6e   : > { %v2047_v61 = vcombine.high %v259_v59, %v267_v60 }
  0x6f   : > { %2327 = vmatpush3.bf16.msra.mxu0 %v2526_v62  ;;  %v2044_v62 = vcombine.low %v258_v54, %v266_v55 }
  0x70   : > { %2355 = vmatpush3.bf16.msra.mxu1 %v2527_v63  ;;  %2368 = vmatprep.subr.bf16.mxu0 %v2528_v8  ;;  %v2046_v63 = vcombine.low %v259_v59, %v267_v60 }
  0x71   : > { %2396 = vmatprep.subr.bf16.mxu1 %v2529_v9 }
  0x72   : > { %1681 = vmatmul.mubr.bf16.vlgmr.msra.gmra.mrb[16].mxu0 %v2024_v2 }
  0x73   : > { %1730 = vmatmul.mubr.bf16.vlgmr.msra.gmra.mrb[16].mxu1 %v2026_v6  ;;  %2369 = vmatpush3.bf16.msra.mxu0 %v2530_v10 }
  0x74   : > { %2397 = vmatpush3.bf16.msra.mxu1 %v2531_v11  ;;  %2370 = vmatprep.subr.bf16.mxu0 %v2532_v12 }
  0x75   : > { %2398 = vmatprep.subr.bf16.mxu1 %v2533_v13  ;;  %1688 = vmatprep.mubr.bf16.mxu0 %v2041_v18 }
  0x76   : > { %1737 = vmatprep.mubr.bf16.mxu1 %v2043_v24 }
  0x77   : > { %2371 = vmatpush3.bf16.msra.mxu0 %v2534_v14 }
  0x78   : > { %2399 = vmatpush3.bf16.msra.mxu1 %v2535_v15  ;;  %2372 = vmatprep.subr.bf16.mxu0 %v2536_v20 }
  0x79   : > { %2400 = vmatprep.subr.bf16.mxu1 %v2537_v21 }
  0x7a   : > { %1689 = vmatmul.mubr.bf16.gmra.mrb[20].mxu0 %v2040_v19 }
  0x7b   : > { %2373 = vmatpush3.bf16.msra.mxu0 %v2538_v25  ;;  %1738 = vmatmul.mubr.bf16.gmra.mrb[20].mxu1 %v2042_v26 }
  0x7c   : > { %2401 = vmatpush3.bf16.msra.mxu1 %v2539_v27  ;;  %2374 = vmatprep.subr.bf16.mxu0 %v2540_v28 }
  0x7d   : > { %2402 = vmatprep.subr.bf16.mxu1 %v2541_v29  ;;  %1778 = vmatprep.mubr.bf16.mxu0 %v2029_v52 }
  0x7e   : > { %1827 = vmatprep.mubr.bf16.mxu1 %v2031_v57 }
  0x7f   : > { %2375 = vmatpush3.bf16.msra.mxu0 %v2542_v30 }
  0x80   : > { %2403 = vmatpush3.bf16.msra.mxu1 %v2543_v31  ;;  %2376 = vmatprep.subr.bf16.mxu0 %v2544_v32 }
  0x81   : > { %2404 = vmatprep.subr.bf16.mxu1 %v2545_v33 }
  0x83   : > { %2377 = vmatpush3.bf16.msra.mxu0 %v2546_v34 }
  0x84   : > { %2405 = vmatpush3.bf16.msra.mxu1 %v2547_v35  ;;  %2378 = vmatprep.subr.bf16.mxu0 %v2548_v36 }
  0x85   : > { %2406 = vmatprep.subr.bf16.mxu1 %v2549_v37 }
  0x87   : > { %2379 = vmatpush3.bf16.msra.mxu0 %v2550_v38 }
  0x88   : > { %2407 = vmatpush3.bf16.msra.mxu1 %v2551_v39  ;;  %2380 = vmatprep.subr.bf16.mxu0 %v2552_v40 }
  0x89   : > { %2408 = vmatprep.subr.bf16.mxu1 %v2553_v41 }
  0x8b   : > { %2381 = vmatpush3.bf16.msra.mxu0 %v2554_v42 }
  0x8c   : > { %2409 = vmatpush3.bf16.msra.mxu1 %v2555_v43  ;;  %2382 = vmatprep.subr.bf16.mxu0 %v2556_v44 }
  0x8d   : > { %2410 = vmatprep.subr.bf16.mxu1 %v2557_v45 }
  0x8f   : > { %2383 = vmatpush3.bf16.msra.mxu0 %v2558_v46 }
  0x90   : > { %2411 = vmatpush3.bf16.msra.mxu1 %v2559_v47 }
  0x92   : > { %1779 = vmatmul.mubr.bf16.vlgmr.msra.gmra.mrb[24].mxu0 %v2028_v51 }
  0x93   : > { %1828 = vmatmul.mubr.bf16.vlgmr.msra.gmra.mrb[24].mxu1 %v2030_v56  ;;  %1786 = vmatprep.mubr.bf16.mxu0 %v2045_v58 }
  0x94   : > { %1835 = vmatprep.mubr.bf16.mxu1 %v2047_v61 }
  0x9a   : > { %1787 = vmatmul.mubr.bf16.gmra.mrb[28].mxu0 %v2044_v62 }
  0x9b   : > { %1836 = vmatmul.mubr.bf16.gmra.mrb[28].mxu1 %v2046_v63 }
 0x105   : > { %v2216_v0 = vpop.f32.mrb[0].mxu0 }
 0x106   : > { %v2244_v1 = vpop.f32.mrb[0].mxu1  ;;  %v2217_v2 = vpop.f32.mrb[1].mxu0 }
 0x107   : > { %v2218_v3 = vadd.f32 %v2217_v2, %v2216_v0  ;;  %v2245_v4 = vpop.f32.mrb[1].mxu1  ;;  %v2219_v5 = vpop.f32.mrb[2].mxu0 }
 0x108   : > { %v2246_v6 = vadd.f32 %v2245_v4, %v2244_v1  ;;  %v2247_v7 = vpop.f32.mrb[2].mxu1  ;;  %v2220_v8 = vpop.f32.mrb[3].mxu0 }
 0x109   : > { %v2221_v9 = vadd.f32 %v2220_v8, %v2219_v5  ;;  %v2248_v10 = vpop.f32.mrb[3].mxu1 }
 0x10a   : > { %v1536_v11 = vadd.f32 %v2246_v6, %v2218_v3  ;;  %v2249_v12 = vadd.f32 %v2248_v10, %v2247_v7 }
 0x10c   : > { %v1539_v13 = vadd.f32 %v2249_v12, %v2221_v9 }
 0x10d   : > { %v2222_v14 = vpop.f32.mrb[4].mxu0 }
 0x10e   : > { %v2250_v15 = vpop.f32.mrb[4].mxu1  ;;  %v2223_v16 = vpop.f32.mrb[5].mxu0 }
 0x10f   : > { %v2224_v17 = vadd.f32 %v2223_v16, %v2222_v14  ;;  %v2251_v18 = vpop.f32.mrb[5].mxu1  ;;  %v2225_v19 = vpop.f32.mrb[6].mxu0 }
 0x110   : > { %v2252_v20 = vadd.f32 %v2251_v18, %v2250_v15  ;;  %v2253_v21 = vpop.f32.mrb[6].mxu1  ;;  %v2226_v22 = vpop.f32.mrb[7].mxu0 }
 0x111   : > { %v2227_v23 = vadd.f32 %v2226_v22, %v2225_v19  ;;  %v2254_v24 = vpop.f32.mrb[7].mxu1 }
 0x112   : > { %v1544_v25 = vadd.f32 %v2252_v20, %v2224_v17  ;;  %v2255_v26 = vadd.f32 %v2254_v24, %v2253_v21 }
 0x114   : > { %v1547_v27 = vadd.f32 %v2255_v26, %v2227_v23 }
 0x125   : > { %v2272_v28 = vpop.f32.mrb[8].mxu0 }
 0x126   : > { %v2300_v29 = vpop.f32.mrb[8].mxu1  ;;  %v2273_v30 = vpop.f32.mrb[9].mxu0 }
 0x127   : > { %v2301_v31 = vpop.f32.mrb[9].mxu1  ;;  %v2274_v32 = vadd.f32 %v2273_v30, %v2272_v28  ;;  %v2275_v34 = vpop.f32.mrb[10].mxu0 }
 0x128   : > { %v2302_v33 = vadd.f32 %v2301_v31, %v2300_v29  ;;  %v2303_v35 = vpop.f32.mrb[10].mxu1  ;;  %v2276_v36 = vpop.f32.mrb[11].mxu0 }
 0x129   : > { %v2304_v37 = vpop.f32.mrb[11].mxu1  ;;  %v1585_v38 = vadd.f32 %v2274_v32, %v1536_v11  ;;  %v2277_v39 = vadd.f32 %v2276_v36, %v2275_v34 }
 0x12a   : > { %v2305_v40 = vadd.f32 %v2304_v37, %v2303_v35 }
 0x12b   : > { %v1634_v41 = vadd.f32 %v2302_v33, %v1585_v38  ;;  %v1588_v42 = vadd.f32 %v2277_v39, %v1539_v13 }
 0x12d   : > { %v1637_v43 = vadd.f32 %v2305_v40, %v1588_v42  ;;  %v2278_v44 = vpop.f32.mrb[12].mxu0 }
 0x12e   : > { %v2279_v45 = vpop.f32.mrb[13].mxu0  ;;  %v2306_v50 = vpop.f32.mrb[12].mxu1 }
 0x12f   : > { %v2280_v46 = vadd.f32 %v2279_v45, %v2278_v44  ;;  %v2281_v47 = vpop.f32.mrb[14].mxu0  ;;  %v2307_v52 = vpop.f32.mrb[13].mxu1 }
 0x130   : > { %v2282_v48 = vpop.f32.mrb[15].mxu0  ;;  %v2308_v54 = vadd.f32 %v2307_v52, %v2306_v50  ;;  %v2309_v55 = vpop.f32.mrb[14].mxu1 }
 0x131   : > { %v1593_v49 = vadd.f32 %v2280_v46, %v1544_v25  ;;  %v2283_v51 = vadd.f32 %v2282_v48, %v2281_v47  ;;  %v2310_v56 = vpop.f32.mrb[15].mxu1 }
 0x132   : > { %v2311_v58 = vadd.f32 %v2310_v56, %v2309_v55 }
 0x133   : > { %v1596_v53 = vadd.f32 %v2283_v51, %v1547_v27  ;;  %v1642_v57 = vadd.f32 %v2308_v54, %v1593_v49 }
 0x135   : > { %v1645_v59 = vadd.f32 %v2311_v58, %v1596_v53 }
 0x145   : > { %v2328_v60 = vpop.f32.mrb[16].mxu0 }
 0x146   : > { %v2356_v61 = vpop.f32.mrb[16].mxu1  ;;  %v2329_v62 = vpop.f32.mrb[17].mxu0 }
 0x147   : > { %v2330_v63 = vadd.f32 %v2329_v62, %v2328_v60  ;;  %v2357_v0 = vpop.f32.mrb[17].mxu1  ;;  %v2331_v1 = vpop.f32.mrb[18].mxu0 }
 0x148   : > { %v2358_v2 = vadd.f32 %v2357_v0, %v2356_v61  ;;  %v2359_v3 = vpop.f32.mrb[18].mxu1  ;;  %v2332_v4 = vpop.f32.mrb[19].mxu0 }
 0x149   : > { %v1683_v5 = vadd.f32 %v2330_v63, %v1634_v41  ;;  %v2333_v6 = vadd.f32 %v2332_v4, %v2331_v1  ;;  %v2360_v7 = vpop.f32.mrb[19].mxu1 }
 0x14a   : > { %v2361_v8 = vadd.f32 %v2360_v7, %v2359_v3 }
 0x14b   : > { %v1732_v9 = vadd.f32 %v2358_v2, %v1683_v5  ;;  %v1686_v10 = vadd.f32 %v2333_v6, %v1637_v43 }
 0x14d   : > { %v1735_v11 = vadd.f32 %v2361_v8, %v1686_v10  ;;  %v2334_v12 = vpop.f32.mrb[20].mxu0 }
 0x14e   : > { %v2335_v13 = vpop.f32.mrb[21].mxu0  ;;  %v2362_v16 = vpop.f32.mrb[20].mxu1 }
 0x14f   : > { %v2336_v14 = vadd.f32 %v2335_v13, %v2334_v12  ;;  %v2337_v15 = vpop.f32.mrb[22].mxu0  ;;  %v2363_v20 = vpop.f32.mrb[21].mxu1 }
 0x150   : > { %v2338_v17 = vpop.f32.mrb[23].mxu0  ;;  %v2364_v21 = vadd.f32 %v2363_v20, %v2362_v16  ;;  %v2365_v22 = vpop.f32.mrb[22].mxu1 }
 0x151   : > { %v1691_v18 = vadd.f32 %v2336_v14, %v1642_v57  ;;  %v2339_v19 = vadd.f32 %v2338_v17, %v2337_v15  ;;  %v2366_v24 = vpop.f32.mrb[23].mxu1 }
 0x152   : > { %v2367_v26 = vadd.f32 %v2366_v24, %v2365_v22 }
 0x153   : > { %v1694_v23 = vadd.f32 %v2339_v19, %v1645_v59  ;;  %v1740_v25 = vadd.f32 %v2364_v21, %v1691_v18 }
 0x155   : > { %v1743_v27 = vadd.f32 %v2367_v26, %v1694_v23 }
 0x165   : > { %v2384_v28 = vpop.f32.mrb[24].mxu0 }
 0x166   : > { %v2412_v29 = vpop.f32.mrb[24].mxu1  ;;  %v2385_v30 = vpop.f32.mrb[25].mxu0 }
 0x167   : > { %v2386_v31 = vadd.f32 %v2385_v30, %v2384_v28  ;;  %v2413_v32 = vpop.f32.mrb[25].mxu1  ;;  %v2387_v33 = vpop.f32.mrb[26].mxu0 }
 0x168   : > { %v2414_v34 = vadd.f32 %v2413_v32, %v2412_v29  ;;  %v2415_v35 = vpop.f32.mrb[26].mxu1  ;;  %v2388_v36 = vpop.f32.mrb[27].mxu0 }
 0x169   : > { %v1781_v37 = vadd.f32 %v2386_v31, %v1732_v9  ;;  %v2389_v38 = vadd.f32 %v2388_v36, %v2387_v33  ;;  %v2416_v39 = vpop.f32.mrb[27].mxu1 }
 0x16a   : > { %v2417_v40 = vadd.f32 %v2416_v39, %v2415_v35 }
 0x16b   : > { %v1830_v41 = vadd.f32 %v2414_v34, %v1781_v37  ;;  %v1784_v42 = vadd.f32 %v2389_v38, %v1735_v11 }
 0x16d   : > { %v1833_v43 = vadd.f32 %v2417_v40, %v1784_v42  ;;  %v2390_v44 = vpop.f32.mrb[28].mxu0  ;;  %v1844_v45 = vmul.f32 %v1830_v41, %v1830_v41 }
 0x16e   : > { %v2418_v46 = vpop.f32.mrb[28].mxu1  ;;  %v2391_v47 = vpop.f32.mrb[29].mxu0 }
 0x16f   : > { %v1845_v48 = vmul.f32 %v1833_v43, %v1833_v43  ;;  %v1848_v49 = vadd.f32 %v1833_v43, %v1830_v41  ;;  %v2192_v50 = vpack.c.bf16 %v1833_v43, %v1830_v41  ;;  %v2392_v51 = vadd.f32 %v2391_v47, %v2390_v44  ;;  %v2419_v52 = vpop.f32.mrb[29].mxu1  ;;  %v2393_v53 = vpop.f32.mrb[30].mxu0 }
 0x170   : > { %v2420_v54 = vadd.f32 %v2419_v52, %v2418_v46  ;;  %v2421_v55 = vpop.f32.mrb[30].mxu1  ;;  %v2394_v56 = vpop.f32.mrb[31].mxu0 }
 0x171   : > { %v1858_v57 = vadd.f32 %v1845_v48, %v1844_v45  ;;  %2193 = vst [vmem:[%s228_s28] sm:$0xff] %v2192_v50   ;;  %v1789_v58 = vadd.f32 %v2392_v51, %v1740_v25  ;;  %v2395_v59 = vadd.f32 %v2394_v56, %v2393_v53  ;;  %v2422_v60 = vpop.f32.mrb[31].mxu1 }
 0x172   : > { %v2423_v61 = vadd.f32 %v2422_v60, %v2421_v55 }
 0x173   : > { %v1838_v62 = vadd.f32 %v2420_v54, %v1789_v58  ;;  %v1792_v63 = vadd.f32 %v2395_v59, %v1743_v27 }
 0x175   : > { %v1846_v0 = vmul.f32 %v1838_v62, %v1838_v62  ;;  %v1849_v1 = vadd.f32 %v1848_v49, %v1838_v62  ;;  %v1841_v2 = vadd.f32 %v2423_v61, %v1792_v63 }
 0x177   : > { %v1859_v3 = vadd.f32 %v1858_v57, %v1846_v0  ;;  %v1847_v4 = vmul.f32 %v1841_v2, %v1841_v2  ;;  %v1850_v5 = vadd.f32 %v1849_v1, %v1841_v2  ;;  %v2197_v6 = vpack.c.bf16 %v1841_v2, %v1838_v62 }
 0x179   : > { %v1851_v7 = vrot.slane %v1850_v5, 4  ;;  %v1860_v8 = vadd.f32 %v1859_v3, %v1847_v4  ;;  %2199 = vst [vmem:[%s228_s28 + $0x8] sm:$0xff] %v2197_v6  }
 0x17b   : > { %v1852_v9 = vadd.f32 %v1851_v7, %v1850_v5  ;;  %v1861_v10 = vrot.slane %v1860_v8, 4 }
 0x17d   : > { %v1853_v11 = vrot.slane %v1852_v9, 2  ;;  %v1862_v12 = vadd.f32 %v1861_v10, %v1860_v8 }
 0x17f   : > { %v1854_v13 = vadd.f32 %v1853_v11, %v1852_v9  ;;  %v1863_v14 = vrot.slane %v1862_v12, 2 }
 0x181   : > { %v1855_v15 = vrot.slane %v1854_v13, 1  ;;  %v1864_v16 = vadd.f32 %v1863_v14, %v1862_v12 }
 0x183   : > { %v1856_v17 = vadd.f32 %v1855_v15, %v1854_v13  ;;  %v1865_v18 = vrot.slane %v1864_v16, 1 }
 0x185   : > { %1857 = vst [vmem:[%s231_s5] sm:$0x1] %v1856_v17  ;;  %v1866_v19 = vadd.f32 %v1865_v18, %v1864_v16 }
 0x187   : > { %1867 = vst [vmem:[%s234_s8] sm:$0x1] %v1866_v19 }
 0x188 PF: > { %s15_s15 = sadd.s32 1, %s2566_s15  }
 0x189   : > { %p12_p4 = scmp.ge.s32.totalorder %s15_s15, 6  }
 0x18b   :  { %14 = sbr.rel (!%p12_p4) target bundleno = 1 (0x1), region = 85 }

// kernel: decoder_pre_forward.7
= control target key start
LH: loop header
LB: loop body
LE: loop exit
PB: predicated region body
PF: predicated region fallthrough
CT: control target
= control target key end

     0   :  { %s1531_s15 = smov 0   ;;  %s1701_s0 = inlined_call_operand.vmem [shape: bf16[4,128,512], index: 0, kind: input, shape index: {}]   ;;  %s1702_s1 = inlined_call_operand.vmem [shape: bf16[4,512,64], index: 1, kind: input, shape index: {}]   ;;  %s1703_s2 = inlined_call_operand.vmem [shape: bf16[4,128,64], index: 2, kind: output, shape index: {0}]   ;;  %s1704_s3 = inlined_call_operand.vmem [shape: f32[4,1,64], index: 3, kind: output, shape index: {1}]   ;;  %s1705_s4 = inlined_call_operand.vmem [shape: f32[4,1,64], index: 4, kind: output, shape index: {2}]  }
   0x1 LB: > { %s1170_s16 = sadd.s32 4294967295, %s1504_s15   ;;  %p1174_p0 = scmp.ge.s32.totalorder %s1504_s15, 1  ;;  %s1504_s15 = sphi %s1531_s15, %s15_s15  }
   0x2   : > { %p177_p1 = scmp.lt.s32.totalorder %s1504_s15, 5 }
   0x4   : > { %p178_p2 = pnand %p1174_p0, %p177_p1 }
   0x5   : > { %p214_p3 = scmp.lt.s32.totalorder (!%p178_p2), %s1170_s16, 3  ;;  %vm894_vm0 = vcmask (!%p178_p2), 523264   ;;  %vm1036_vm1 = vcmask (!%p178_p2), 519168   ;;  %vm932_vm2 = vcmask (!%p178_p2), 516096  }
   0x6   : > { %181 = sbr.rel (%p178_p2) target bundleno = 344 (0x158), region = 28 }
   0xd   : > { %s1707_s16 = smov (!%p214_p3, %s1170_s16), 3 }
   0xe   : > { %s1263_s17 = sshll.u32 %s1707_s16, 8  ;;  %s1265_s24 = sshll.u32 %s1707_s16, 6 }
   0xf   : > { %s1547_s20 = scalar_lea.vmem %s1702_s1, %s1263_s17  ;;  %s1584_s23 = scalar_lea.vmem %s1701_s0, %s1263_s17 }
  0x10   : > { %v1418_v0 = vld [vmem:[%s1547_s20 + $0x40] sm:$0xff]   ;;  %v1422_v4 = vld [vmem:[%s1547_s20 + $0x48] sm:$0xff]   ;;  %v1426_v8 = vld [vmem:[%s1547_s20 + $0x50] sm:$0xff]   ;;  %s1624_s27 = scalar_lea.vmem %s1703_s2, %s1265_s24  ;;  %s231_s30 = scalar_lea.vmem %s1704_s3, %s1707_s16 }
  0x11   : > { %v1419_v1 = vld [vmem:[%s1547_s20 + $0xc0] sm:$0xff]   ;;  %1282 = vmatprep.subr.bf16.mxu0 %v1418_v0  ;;  %v1423_v5 = vld [vmem:[%s1547_s20 + $0xc8] sm:$0xff]   ;;  %v1427_v9 = vld [vmem:[%s1547_s20 + $0xd0] sm:$0xff]   ;;  %s234_s7 = scalar_lea.vmem %s1705_s4, %s1707_s16 }
  0x12   : > { %v1420_v2 = vld [vmem:[%s1547_s20] sm:$0xff]   ;;  %1346 = vmatprep.subr.bf16.mxu1 %v1419_v1  ;;  %v1424_v6 = vld [vmem:[%s1547_s20 + $0x8] sm:$0xff]   ;;  %v1428_v10 = vld [vmem:[%s1547_s20 + $0x10] sm:$0xff]  }
  0x13   : > { %v1421_v3 = vld [vmem:[%s1547_s20 + $0x80] sm:$0xff]   ;;  %1283 = vmatpush3.bf16.msra.mxu0 %v1420_v2  ;;  %v1425_v7 = vld [vmem:[%s1547_s20 + $0x88] sm:$0xff]   ;;  %v1429_v11 = vld [vmem:[%s1547_s20 + $0x90] sm:$0xff]  }
  0x14   : > { %1347 = vmatpush3.bf16.msra.mxu1 %v1421_v3  ;;  %1284 = vmatprep.subr.bf16.mxu0 %v1422_v4  ;;  %v1430_v12 = vld [vmem:[%s1547_s20 + $0x58] sm:$0xff]   ;;  %v1434_v16 = vld [vmem:[%s1547_s20 + $0x60] sm:$0xff]   ;;  %v1438_v20 = vld [vmem:[%s1547_s20 + $0x68] sm:$0xff]  }
  0x15   : > { %1348 = vmatprep.subr.bf16.mxu1 %v1423_v5  ;;  %v1431_v13 = vld [vmem:[%s1547_s20 + $0xd8] sm:$0xff]   ;;  %v1435_v17 = vld [vmem:[%s1547_s20 + $0xe0] sm:$0xff]   ;;  %v1439_v21 = vld [vmem:[%s1547_s20 + $0xe8] sm:$0xff]  }
  0x16   : > { %v1432_v14 = vld [vmem:[%s1547_s20 + $0x18] sm:$0xff]   ;;  %v1436_v18 = vld [vmem:[%s1547_s20 + $0x20] sm:$0xff]   ;;  %v1440_v22 = vld [vmem:[%s1547_s20 + $0x28] sm:$0xff]  }
  0x17   : > { %1285 = vmatpush3.bf16.msra.mxu0 %v1424_v6  ;;  %v1433_v15 = vld [vmem:[%s1547_s20 + $0x98] sm:$0xff]   ;;  %v1437_v19 = vld [vmem:[%s1547_s20 + $0xa0] sm:$0xff]   ;;  %v1441_v23 = vld [vmem:[%s1547_s20 + $0xa8] sm:$0xff]  }
  0x18   : > { %1349 = vmatpush3.bf16.msra.mxu1 %v1425_v7  ;;  %1286 = vmatprep.subr.bf16.mxu0 %v1426_v8  ;;  %v1442_v24 = vld [vmem:[%s1547_s20 + $0x70] sm:$0xff]   ;;  %v1446_v28 = vld [vmem:[%s1547_s20 + $0x78] sm:$0xff]  }
  0x19   : > { %1350 = vmatprep.subr.bf16.mxu1 %v1427_v9  ;;  %v1443_v25 = vld [vmem:[%s1547_s20 + $0xf0] sm:$0xff]   ;;  %v1447_v29 = vld [vmem:[%s1547_s20 + $0xf8] sm:$0xff]  }
  0x1a   : > { %v1444_v26 = vld [vmem:[%s1547_s20 + $0x30] sm:$0xff]   ;;  %v1448_v30 = vld [vmem:[%s1547_s20 + $0x38] sm:$0xff]  }
  0x1b   : > { %1287 = vmatpush3.bf16.msra.mxu0 %v1428_v10  ;;  %v1445_v27 = vld [vmem:[%s1547_s20 + $0xb0] sm:$0xff]   ;;  %v1449_v31 = vld [vmem:[%s1547_s20 + $0xb8] sm:$0xff]  }
  0x1c   : > { %1351 = vmatpush3.bf16.msra.mxu1 %v1429_v11  ;;  %1288 = vmatprep.subr.bf16.mxu0 %v1430_v12  ;;  %v1450_v32 = vld [vmem:[%s1584_s23] ss:$16 sps:$4 sm:$0xff]   ;;  %v1452_v33 = vld [vmem:[%s1584_s23 + $0x4] ss:$16 sps:$4 sm:$0xff]   ;;  %v1453_v34 = vld [vmem:[%s1584_s23 + $0x8] ss:$16 sps:$4 sm:$0xff]  }
  0x1d   : > { %1352 = vmatprep.subr.bf16.mxu1 %v1431_v13  ;;  %v1455_v35 = vld [vmem:[%s1584_s23 + $0xc] ss:$16 sps:$4 sm:$0xff]   ;;  %716 = vmatprep.mubr.bf16.mxu0 %v1452_v33  ;;  %v1456_v36 = vld [vmem:[%s1584_s23 + $0x24] ss:$16 sps:$4 sm:$0xff]   ;;  %v1460_v38 = vld [vmem:[%s1584_s23 + $0x20] ss:$16 sps:$4 sm:$0xff]  }
  0x1e   : > { %813 = vmatprep.mubr.bf16.mxu1 %v1455_v35  ;;  %v1458_v37 = vld [vmem:[%s1584_s23 + $0x2c] ss:$16 sps:$4 sm:$0xff]   ;;  %v1461_v39 = vld [vmem:[%s1584_s23 + $0x28] ss:$16 sps:$4 sm:$0xff]   ;;  %v1462_v40 = vld [vmem:[%s1584_s23 + $0x44] ss:$16 sps:$4 sm:$0xff]  }
  0x1f   : > { %1289 = vmatpush3.bf16.msra.mxu0 %v1432_v14  ;;  %v1464_v41 = vld [vmem:[%s1584_s23 + $0x4c] ss:$16 sps:$4 sm:$0xff]   ;;  %v1466_v42 = vld [vmem:[%s1584_s23 + $0x40] ss:$16 sps:$4 sm:$0xff]   ;;  %v1467_v43 = vld [vmem:[%s1584_s23 + $0x48] ss:$16 sps:$4 sm:$0xff]  }
  0x20   : > { %1353 = vmatpush3.bf16.msra.mxu1 %v1433_v15  ;;  %1290 = vmatprep.subr.bf16.mxu0 %v1434_v16  ;;  %v1468_v44 = vld [vmem:[%s1584_s23 + $0x64] ss:$16 sps:$4 sm:$0xff]   ;;  %v1470_v45 = vld [vmem:[%s1584_s23 + $0x6c] ss:$16 sps:$4 sm:$0xff]   ;;  %v1472_v46 = vld [vmem:[%s1584_s23 + $0x60] ss:$16 sps:$4 sm:$0xff]  }
  0x21   : > { %1354 = vmatprep.subr.bf16.mxu1 %v1435_v17  ;;  %v1473_v47 = vld [vmem:[%s1584_s23 + $0x68] ss:$16 sps:$4 sm:$0xff]   ;;  %v1474_v48 = vld [vmem:[%s1584_s23 + $0x84] ss:$16 sps:$4 sm:$0xff]   ;;  %v1476_v49 = vld [vmem:[%s1584_s23 + $0x8c] ss:$16 sps:$4 sm:$0xff]  }
  0x22   : > { %v1478_v50 = vld [vmem:[%s1584_s23 + $0x80] ss:$16 sps:$4 sm:$0xff]   ;;  %v1479_v51 = vld [vmem:[%s1584_s23 + $0x88] ss:$16 sps:$4 sm:$0xff]   ;;  %v1480_v52 = vld [vmem:[%s1584_s23 + $0xa4] ss:$16 sps:$4 sm:$0xff]  }
  0x23   : > { %1291 = vmatpush3.bf16.msra.mxu0 %v1436_v18  ;;  %v1482_v53 = vld [vmem:[%s1584_s23 + $0xac] ss:$16 sps:$4 sm:$0xff]   ;;  %v1484_v54 = vld [vmem:[%s1584_s23 + $0xa0] ss:$16 sps:$4 sm:$0xff]   ;;  %v1485_v55 = vld [vmem:[%s1584_s23 + $0xa8] ss:$16 sps:$4 sm:$0xff]  }
  0x24   : > { %1355 = vmatpush3.bf16.msra.mxu1 %v1437_v19  ;;  %1292 = vmatprep.subr.bf16.mxu0 %v1438_v20  ;;  %v1486_v56 = vld [vmem:[%s1584_s23 + $0xc4] ss:$16 sps:$4 sm:$0xff]   ;;  %v1488_v57 = vld [vmem:[%s1584_s23 + $0xcc] ss:$16 sps:$4 sm:$0xff]   ;;  %v1490_v58 = vld [vmem:[%s1584_s23 + $0xc0] ss:$16 sps:$4 sm:$0xff]  }
  0x25   : > { %1356 = vmatprep.subr.bf16.mxu1 %v1439_v21  ;;  %v1491_v59 = vld [vmem:[%s1584_s23 + $0xc8] ss:$16 sps:$4 sm:$0xff]   ;;  %v1492_v60 = vld [vmem:[%s1584_s23 + $0xe4] ss:$16 sps:$4 sm:$0xff]   ;;  %v1494_v61 = vld [vmem:[%s1584_s23 + $0xec] ss:$16 sps:$4 sm:$0xff]  }
  0x26   : > { %v1496_v62 = vld [vmem:[%s1584_s23 + $0xe0] ss:$16 sps:$4 sm:$0xff]   ;;  %v1497_v63 = vld [vmem:[%s1584_s23 + $0xe8] ss:$16 sps:$4 sm:$0xff]  }
  0x27   : > { %1293 = vmatpush3.bf16.msra.mxu0 %v1440_v22 }
  0x28   : > { %1357 = vmatpush3.bf16.msra.mxu1 %v1441_v23  ;;  %1294 = vmatprep.subr.bf16.mxu0 %v1442_v24 }
  0x29   : > { %1358 = vmatprep.subr.bf16.mxu1 %v1443_v25 }
  0x2b   : > { %1295 = vmatpush3.bf16.msra.mxu0 %v1444_v26 }
  0x2c   : > { %1359 = vmatpush3.bf16.msra.mxu1 %v1445_v27  ;;  %1296 = vmatprep.subr.bf16.mxu0 %v1446_v28 }
  0x2d   : > { %1360 = vmatprep.subr.bf16.mxu1 %v1447_v29 }
  0x2f   : > { %1297 = vmatpush3.bf16.msra.mxu0 %v1448_v30 }
  0x30   : > { %1361 = vmatpush3.bf16.msra.mxu1 %v1449_v31 }
  0x32   : > { %717 = vmatmul.mubr.bf16.vlgmr.msra.gmra.mrb[0].mxu0 %v1450_v32 }
  0x33   : > { %814 = vmatmul.mubr.bf16.vlgmr.msra.gmra.mrb[0].mxu1 %v1453_v34  ;;  %724 = vmatprep.mubr.bf16.mxu0 %v1456_v36 }
  0x34   : > { %821 = vmatprep.mubr.bf16.mxu1 %v1458_v37 }
  0x3a   : > { %725 = vmatmul.mubr.bf16.gmra.mrb[4].mxu0 %v1460_v38 }
  0x3b   : > { %822 = vmatmul.mubr.bf16.gmra.mrb[4].mxu1 %v1461_v39  ;;  %732 = vmatprep.mubr.bf16.mxu0 %v1462_v40 }
  0x3c   : > { %829 = vmatprep.mubr.bf16.mxu1 %v1464_v41 }
  0x42   : > { %733 = vmatmul.mubr.bf16.gmra.mrb[8].mxu0 %v1466_v42 }
  0x43   : > { %830 = vmatmul.mubr.bf16.gmra.mrb[8].mxu1 %v1467_v43  ;;  %740 = vmatprep.mubr.bf16.mxu0 %v1468_v44 }
  0x44   : > { %837 = vmatprep.mubr.bf16.mxu1 %v1470_v45 }
  0x4a   : > { %741 = vmatmul.mubr.bf16.gmra.mrb[12].mxu0 %v1472_v46 }
  0x4b   : > { %838 = vmatmul.mubr.bf16.gmra.mrb[12].mxu1 %v1473_v47  ;;  %748 = vmatprep.mubr.bf16.mxu0 %v1474_v48 }
  0x4c   : > { %845 = vmatprep.mubr.bf16.mxu1 %v1476_v49 }
  0x52   : > { %749 = vmatmul.mubr.bf16.gmra.mrb[16].mxu0 %v1478_v50 }
  0x53   : > { %846 = vmatmul.mubr.bf16.gmra.mrb[16].mxu1 %v1479_v51  ;;  %756 = vmatprep.mubr.bf16.mxu0 %v1480_v52 }
  0x54   : > { %853 = vmatprep.mubr.bf16.mxu1 %v1482_v53 }
  0x5a   : > { %757 = vmatmul.mubr.bf16.gmra.mrb[20].mxu0 %v1484_v54 }
  0x5b   : > { %854 = vmatmul.mubr.bf16.gmra.mrb[20].mxu1 %v1485_v55  ;;  %764 = vmatprep.mubr.bf16.mxu0 %v1486_v56 }
  0x5c   : > { %861 = vmatprep.mubr.bf16.mxu1 %v1488_v57 }
  0x62   : > { %765 = vmatmul.mubr.bf16.gmra.mrb[24].mxu0 %v1490_v58 }
  0x63   : > { %862 = vmatmul.mubr.bf16.gmra.mrb[24].mxu1 %v1491_v59  ;;  %772 = vmatprep.mubr.bf16.mxu0 %v1492_v60 }
  0x64   : > { %869 = vmatprep.mubr.bf16.mxu1 %v1494_v61 }
  0x6a   : > { %773 = vmatmul.mubr.bf16.gmra.mrb[28].mxu0 %v1496_v62 }
  0x6b   : > { %870 = vmatmul.mubr.bf16.gmra.mrb[28].mxu1 %v1497_v63 }
 0x105   : > { %v1298_v0 = vpop.f32.mrb[0].mxu0 }
 0x106   : > { %v1362_v1 = vpop.f32.mrb[0].mxu1  ;;  %v1299_v2 = vpop.f32.mrb[1].mxu0 }
 0x107   : > { %v1300_v3 = vadd.f32 %v1299_v2, %v1298_v0  ;;  %v1363_v4 = vpop.f32.mrb[1].mxu1  ;;  %v1301_v5 = vpop.f32.mrb[2].mxu0 }
 0x108   : > { %v1364_v6 = vadd.f32 %v1363_v4, %v1362_v1  ;;  %v1365_v7 = vpop.f32.mrb[2].mxu1  ;;  %v1302_v8 = vpop.f32.mrb[3].mxu0 }
 0x109   : > { %v1303_v9 = vadd.f32 %v1302_v8, %v1301_v5  ;;  %v1366_v10 = vpop.f32.mrb[3].mxu1 }
 0x10a   : > { %v816_v11 = vadd.f32 %v1364_v6, %v1300_v3  ;;  %v1367_v12 = vadd.f32 %v1366_v10, %v1365_v7 }
 0x10c   : > { %v878_v13 = vmul.f32 %v816_v11, %v816_v11  ;;  %v1266_v14 = vpack.c.bf16 %v816_v11, %v816_v11  ;;  %v819_v15 = vadd.f32 %v1367_v12, %v1303_v9  ;;  %v895_v17 = vsel %vm894_vm0, %v816_v11, 0.0 }
 0x10d   : > { %v1304_v16 = vpop.f32.mrb[4].mxu0 }
 0x10e   : > { %1037 = vst.msk [vmem:[%s1624_s27] sm:$0xf] %vm1036_vm1, %v1266_v14  ;;  %v879_v18 = vmul.f32 %v819_v15, %v819_v15  ;;  %v896_v19 = vsel %vm894_vm0, %v819_v15, 0.0  ;;  %v1267_v20 = vpack.c.bf16 %v819_v15, %v819_v15  ;;  %v1368_v21 = vpop.f32.mrb[4].mxu1  ;;  %v1305_v22 = vpop.f32.mrb[5].mxu0  ;;  %v934_v27 = vsel %vm894_vm0, %v878_v13, 0.0 }
 0x10f   : > { %v897_v23 = vadd.f32 %v896_v19, %v895_v17  ;;  %v1306_v24 = vadd.f32 %v1305_v22, %v1304_v16  ;;  %v1369_v25 = vpop.f32.mrb[5].mxu1  ;;  %v1307_v26 = vpop.f32.mrb[6].mxu0 }
 0x110   : > { %v935_v28 = vsel %vm894_vm0, %v879_v18, 0.0  ;;  %1038 = vst.msk [vmem:[%s1624_s27 + $0x4] sm:$0xf] %vm1036_vm1, %v1267_v20  ;;  %v1370_v29 = vadd.f32 %v1369_v25, %v1368_v21  ;;  %v1371_v30 = vpop.f32.mrb[6].mxu1  ;;  %v1308_v31 = vpop.f32.mrb[7].mxu0 }
 0x111   : > { %v936_v32 = vadd.f32 %v935_v28, %v934_v27  ;;  %v1309_v33 = vadd.f32 %v1308_v31, %v1307_v26  ;;  %v1372_v34 = vpop.f32.mrb[7].mxu1 }
 0x112   : > { %v824_v35 = vadd.f32 %v1370_v29, %v1306_v24  ;;  %v1373_v36 = vadd.f32 %v1372_v34, %v1371_v30 }
 0x114   : > { %v880_v37 = vmul.f32 %v824_v35, %v824_v35  ;;  %v898_v38 = vsel %vm894_vm0, %v824_v35, 0.0  ;;  %v1268_v39 = vpack.c.bf16 %v824_v35, %v824_v35  ;;  %v827_v40 = vadd.f32 %v1373_v36, %v1309_v33 }
 0x115   : > { %v899_v41 = vadd.f32 %v898_v38, %v897_v23  ;;  %v1310_v42 = vpop.f32.mrb[8].mxu0 }
 0x116   : > { %v937_v43 = vsel %vm894_vm0, %v880_v37, 0.0  ;;  %1039 = vst.msk [vmem:[%s1624_s27 + $0x8] sm:$0xf] %vm1036_vm1, %v1268_v39  ;;  %v881_v44 = vmul.f32 %v827_v40, %v827_v40  ;;  %v900_v45 = vsel %vm894_vm0, %v827_v40, 0.0  ;;  %v1269_v46 = vpack.c.bf16 %v827_v40, %v827_v40  ;;  %v1374_v47 = vpop.f32.mrb[8].mxu1  ;;  %v1311_v48 = vpop.f32.mrb[9].mxu0 }
 0x117   : > { %v938_v49 = vadd.f32 %v937_v43, %v936_v32  ;;  %v901_v50 = vadd.f32 %v900_v45, %v899_v41  ;;  %v1312_v51 = vadd.f32 %v1311_v48, %v1310_v42  ;;  %v1375_v52 = vpop.f32.mrb[9].mxu1  ;;  %v1313_v53 = vpop.f32.mrb[10].mxu0 }
 0x118   : > { %v939_v54 = vsel %vm894_vm0, %v881_v44, 0.0  ;;  %1040 = vst.msk [vmem:[%s1624_s27 + $0xc] sm:$0xf] %vm1036_vm1, %v1269_v46  ;;  %v1376_v55 = vadd.f32 %v1375_v52, %v1374_v47  ;;  %v1377_v56 = vpop.f32.mrb[10].mxu1  ;;  %v1314_v57 = vpop.f32.mrb[11].mxu0 }
 0x119   : > { %v940_v58 = vadd.f32 %v939_v54, %v938_v49  ;;  %v1315_v59 = vadd.f32 %v1314_v57, %v1313_v53  ;;  %v1378_v60 = vpop.f32.mrb[11].mxu1 }
 0x11a   : > { %v832_v61 = vadd.f32 %v1376_v55, %v1312_v51  ;;  %v1379_v62 = vadd.f32 %v1378_v60, %v1377_v56 }
 0x11c   : > { %v882_v63 = vmul.f32 %v832_v61, %v832_v61  ;;  %v902_v0 = vsel %vm894_vm0, %v832_v61, 0.0  ;;  %v1270_v1 = vpack.c.bf16 %v832_v61, %v832_v61  ;;  %v835_v2 = vadd.f32 %v1379_v62, %v1315_v59 }
 0x11d   : > { %v903_v3 = vadd.f32 %v902_v0, %v901_v50  ;;  %v1316_v4 = vpop.f32.mrb[12].mxu0 }
 0x11e   : > { %v941_v5 = vsel %vm894_vm0, %v882_v63, 0.0  ;;  %1041 = vst.msk [vmem:[%s1624_s27 + $0x10] sm:$0xf] %vm1036_vm1, %v1270_v1  ;;  %v883_v6 = vmul.f32 %v835_v2, %v835_v2  ;;  %v904_v7 = vsel %vm894_vm0, %v835_v2, 0.0  ;;  %v1271_v8 = vpack.c.bf16 %v835_v2, %v835_v2  ;;  %v1380_v9 = vpop.f32.mrb[12].mxu1  ;;  %v1317_v10 = vpop.f32.mrb[13].mxu0 }
 0x11f   : > { %v942_v11 = vadd.f32 %v941_v5, %v940_v58  ;;  %v905_v12 = vadd.f32 %v904_v7, %v903_v3  ;;  %v1318_v13 = vadd.f32 %v1317_v10, %v1316_v4  ;;  %v1381_v14 = vpop.f32.mrb[13].mxu1  ;;  %v1319_v15 = vpop.f32.mrb[14].mxu0 }
 0x120   : > { %v943_v16 = vsel %vm894_vm0, %v883_v6, 0.0  ;;  %1042 = vst.msk [vmem:[%s1624_s27 + $0x14] sm:$0xf] %vm1036_vm1, %v1271_v8  ;;  %v1382_v17 = vadd.f32 %v1381_v14, %v1380_v9  ;;  %v1383_v18 = vpop.f32.mrb[14].mxu1  ;;  %v1320_v19 = vpop.f32.mrb[15].mxu0 }
 0x121   : > { %v944_v20 = vadd.f32 %v943_v16, %v942_v11  ;;  %v1321_v21 = vadd.f32 %v1320_v19, %v1319_v15  ;;  %v1384_v22 = vpop.f32.mrb[15].mxu1 }
 0x122   : > { %v840_v23 = vadd.f32 %v1382_v17, %v1318_v13  ;;  %v1385_v24 = vadd.f32 %v1384_v22, %v1383_v18 }
 0x124   : > { %v884_v25 = vmul.f32 %v840_v23, %v840_v23  ;;  %v906_v26 = vsel %vm894_vm0, %v840_v23, 0.0  ;;  %v1272_v27 = vpack.c.bf16 %v840_v23, %v840_v23  ;;  %v843_v28 = vadd.f32 %v1385_v24, %v1321_v21 }
 0x125   : > { %v907_v29 = vadd.f32 %v906_v26, %v905_v12  ;;  %v1322_v30 = vpop.f32.mrb[16].mxu0 }
 0x126   : > { %v945_v31 = vsel %vm894_vm0, %v884_v25, 0.0  ;;  %1043 = vst.msk [vmem:[%s1624_s27 + $0x18] sm:$0xf] %vm1036_vm1, %v1272_v27  ;;  %v885_v32 = vmul.f32 %v843_v28, %v843_v28  ;;  %v908_v33 = vsel %vm894_vm0, %v843_v28, 0.0  ;;  %v1273_v34 = vpack.c.bf16 %v843_v28, %v843_v28  ;;  %v1386_v35 = vpop.f32.mrb[16].mxu1  ;;  %v1323_v36 = vpop.f32.mrb[17].mxu0 }
 0x127   : > { %v946_v37 = vadd.f32 %v945_v31, %v944_v20  ;;  %v909_v38 = vadd.f32 %v908_v33, %v907_v29  ;;  %v1324_v39 = vadd.f32 %v1323_v36, %v1322_v30  ;;  %v1387_v40 = vpop.f32.mrb[17].mxu1  ;;  %v1325_v41 = vpop.f32.mrb[18].mxu0 }
 0x128   : > { %v947_v42 = vsel %vm894_vm0, %v885_v32, 0.0  ;;  %1044 = vst.msk [vmem:[%s1624_s27 + $0x1c] sm:$0xf] %vm1036_vm1, %v1273_v34  ;;  %v1388_v43 = vadd.f32 %v1387_v40, %v1386_v35  ;;  %v1389_v44 = vpop.f32.mrb[18].mxu1  ;;  %v1326_v45 = vpop.f32.mrb[19].mxu0 }
 0x129   : > { %v948_v46 = vadd.f32 %v947_v42, %v946_v37  ;;  %v1327_v47 = vadd.f32 %v1326_v45, %v1325_v41  ;;  %v1390_v48 = vpop.f32.mrb[19].mxu1 }
 0x12a   : > { %v848_v49 = vadd.f32 %v1388_v43, %v1324_v39  ;;  %v1391_v50 = vadd.f32 %v1390_v48, %v1389_v44 }
 0x12c   : > { %v886_v51 = vmul.f32 %v848_v49, %v848_v49  ;;  %v910_v52 = vsel %vm894_vm0, %v848_v49, 0.0  ;;  %v1274_v53 = vpack.c.bf16 %v848_v49, %v848_v49  ;;  %v851_v54 = vadd.f32 %v1391_v50, %v1327_v47 }
 0x12d   : > { %v911_v55 = vadd.f32 %v910_v52, %v909_v38  ;;  %v1328_v56 = vpop.f32.mrb[20].mxu0 }
 0x12e   : > { %v949_v57 = vsel %vm894_vm0, %v886_v51, 0.0  ;;  %1045 = vst.msk [vmem:[%s1624_s27 + $0x20] sm:$0xf] %vm1036_vm1, %v1274_v53  ;;  %v887_v58 = vmul.f32 %v851_v54, %v851_v54  ;;  %v912_v59 = vsel %vm894_vm0, %v851_v54, 0.0  ;;  %v1275_v60 = vpack.c.bf16 %v851_v54, %v851_v54  ;;  %v1392_v61 = vpop.f32.mrb[20].mxu1  ;;  %v1329_v62 = vpop.f32.mrb[21].mxu0 }
 0x12f   : > { %v950_v63 = vadd.f32 %v949_v57, %v948_v46  ;;  %v913_v0 = vadd.f32 %v912_v59, %v911_v55  ;;  %v1330_v1 = vadd.f32 %v1329_v62, %v1328_v56  ;;  %v1393_v2 = vpop.f32.mrb[21].mxu1  ;;  %v1331_v3 = vpop.f32.mrb[22].mxu0 }
 0x130   : > { %v951_v4 = vsel %vm894_vm0, %v887_v58, 0.0  ;;  %1046 = vst.msk [vmem:[%s1624_s27 + $0x24] sm:$0xf] %vm1036_vm1, %v1275_v60  ;;  %v1394_v5 = vadd.f32 %v1393_v2, %v1392_v61  ;;  %v1395_v6 = vpop.f32.mrb[22].mxu1  ;;  %v1332_v7 = vpop.f32.mrb[23].mxu0 }
 0x131   : > { %v952_v8 = vadd.f32 %v951_v4, %v950_v63  ;;  %v1333_v9 = vadd.f32 %v1332_v7, %v1331_v3  ;;  %v1396_v10 = vpop.f32.mrb[23].mxu1 }
 0x132   : > { %v856_v11 = vadd.f32 %v1394_v5, %v1330_v1  ;;  %v1397_v12 = vadd.f32 %v1396_v10, %v1395_v6 }
 0x134   : > { %v888_v13 = vmul.f32 %v856_v11, %v856_v11  ;;  %v914_v14 = vsel %vm894_vm0, %v856_v11, 0.0  ;;  %v1276_v15 = vpack.c.bf16 %v856_v11, %v856_v11  ;;  %v859_v16 = vadd.f32 %v1397_v12, %v1333_v9 }
 0x135   : > { %v915_v17 = vadd.f32 %v914_v14, %v913_v0  ;;  %v1334_v18 = vpop.f32.mrb[24].mxu0 }
 0x136   : > { %v953_v19 = vsel %vm894_vm0, %v888_v13, 0.0  ;;  %1047 = vst.msk [vmem:[%s1624_s27 + $0x28] sm:$0xf] %vm1036_vm1, %v1276_v15  ;;  %v889_v20 = vmul.f32 %v859_v16, %v859_v16  ;;  %v916_v21 = vsel %vm894_vm0, %v859_v16, 0.0  ;;  %v1277_v22 = vpack.c.bf16 %v859_v16, %v859_v16  ;;  %v1398_v23 = vpop.f32.mrb[24].mxu1  ;;  %v1335_v24 = vpop.f32.mrb[25].mxu0 }
 0x137   : > { %v954_v25 = vadd.f32 %v953_v19, %v952_v8  ;;  %v917_v26 = vadd.f32 %v916_v21, %v915_v17  ;;  %v1336_v27 = vadd.f32 %v1335_v24, %v1334_v18  ;;  %v1399_v28 = vpop.f32.mrb[25].mxu1  ;;  %v1337_v29 = vpop.f32.mrb[26].mxu0 }
 0x138   : > { %v955_v30 = vsel %vm894_vm0, %v889_v20, 0.0  ;;  %1048 = vst.msk [vmem:[%s1624_s27 + $0x2c] sm:$0xf] %vm1036_vm1, %v1277_v22  ;;  %v1400_v31 = vadd.f32 %v1399_v28, %v1398_v23  ;;  %v1401_v32 = vpop.f32.mrb[26].mxu1  ;;  %v1338_v33 = vpop.f32.mrb[27].mxu0 }
 0x139   : > { %v956_v34 = vadd.f32 %v955_v30, %v954_v25  ;;  %v1339_v35 = vadd.f32 %v1338_v33, %v1337_v29  ;;  %v1402_v36 = vpop.f32.mrb[27].mxu1 }
 0x13a   : > { %v864_v37 = vadd.f32 %v1400_v31, %v1336_v27  ;;  %v1403_v38 = vadd.f32 %v1402_v36, %v1401_v32 }
 0x13c   : > { %v890_v39 = vmul.f32 %v864_v37, %v864_v37  ;;  %v918_v40 = vsel %vm894_vm0, %v864_v37, 0.0  ;;  %v1278_v41 = vpack.c.bf16 %v864_v37, %v864_v37  ;;  %v867_v42 = vadd.f32 %v1403_v38, %v1339_v35 }
 0x13d   : > { %v919_v43 = vadd.f32 %v918_v40, %v917_v26  ;;  %v1340_v44 = vpop.f32.mrb[28].mxu0 }
 0x13e   : > { %v957_v45 = vsel %vm894_vm0, %v890_v39, 0.0  ;;  %1049 = vst.msk [vmem:[%s1624_s27 + $0x30] sm:$0xf] %vm1036_vm1, %v1278_v41  ;;  %v891_v46 = vmul.f32 %v867_v42, %v867_v42  ;;  %v920_v47 = vsel %vm894_vm0, %v867_v42, 0.0  ;;  %v1279_v48 = vpack.c.bf16 %v867_v42, %v867_v42  ;;  %v1404_v49 = vpop.f32.mrb[28].mxu1  ;;  %v1341_v50 = vpop.f32.mrb[29].mxu0 }
 0x13f   : > { %v958_v51 = vadd.f32 %v957_v45, %v956_v34  ;;  %v921_v52 = vadd.f32 %v920_v47, %v919_v43  ;;  %v1342_v53 = vadd.f32 %v1341_v50, %v1340_v44  ;;  %v1405_v54 = vpop.f32.mrb[29].mxu1  ;;  %v1343_v55 = vpop.f32.mrb[30].mxu0 }
 0x140   : > { %v959_v56 = vsel %vm894_vm0, %v891_v46, 0.0  ;;  %1050 = vst.msk [vmem:[%s1624_s27 + $0x34] sm:$0xf] %vm1036_vm1, %v1279_v48  ;;  %v1406_v57 = vadd.f32 %v1405_v54, %v1404_v49  ;;  %v1407_v58 = vpop.f32.mrb[30].mxu1  ;;  %v1344_v59 = vpop.f32.mrb[31].mxu0 }
 0x141   : > { %v960_v60 = vadd.f32 %v959_v56, %v958_v51  ;;  %v1345_v61 = vadd.f32 %v1344_v59, %v1343_v55  ;;  %v1408_v62 = vpop.f32.mrb[31].mxu1 }
 0x142   : > { %v872_v63 = vadd.f32 %v1406_v57, %v1342_v53  ;;  %v1409_v0 = vadd.f32 %v1408_v62, %v1407_v58 }
 0x144   : > { %v892_v1 = vmul.f32 %v872_v63, %v872_v63  ;;  %v922_v2 = vsel %vm894_vm0, %v872_v63, 0.0  ;;  %v1280_v3 = vpack.c.bf16 %v872_v63, %v872_v63  ;;  %v875_v4 = vadd.f32 %v1409_v0, %v1345_v61 }
 0x145   : > { %v923_v5 = vadd.f32 %v922_v2, %v921_v52 }
 0x146   : > { %v961_v6 = vsel %vm894_vm0, %v892_v1, 0.0  ;;  %1051 = vst.msk [vmem:[%s1624_s27 + $0x38] sm:$0xf] %vm1036_vm1, %v1280_v3  ;;  %v893_v7 = vmul.f32 %v875_v4, %v875_v4  ;;  %v924_v8 = vsel %vm894_vm0, %v875_v4, 0.0  ;;  %v1281_v9 = vpack.c.bf16 %v875_v4, %v875_v4 }
 0x147   : > { %v962_v10 = vadd.f32 %v961_v6, %v960_v60  ;;  %v925_v11 = vadd.f32 %v924_v8, %v923_v5 }
 0x148   : > { %v963_v12 = vsel %vm894_vm0, %v893_v7, 0.0  ;;  %1052 = vst.msk [vmem:[%s1624_s27 + $0x3c] sm:$0xf] %vm1036_vm1, %v1281_v9 }
 0x149   : > { %v926_v13 = vrot.slane %v925_v11, 4  ;;  %v964_v14 = vadd.f32 %v963_v12, %v962_v10 }
 0x14b   : > { %v927_v15 = vadd.f32 %v926_v13, %v925_v11  ;;  %v965_v16 = vrot.slane %v964_v14, 4 }
 0x14d   : > { %v928_v17 = vrot.slane %v927_v15, 2  ;;  %v966_v18 = vadd.f32 %v965_v16, %v964_v14 }
 0x14f   : > { %v929_v19 = vadd.f32 %v928_v17, %v927_v15  ;;  %v967_v20 = vrot.slane %v966_v18, 2 }
 0x151   : > { %v930_v21 = vrot.slane %v929_v19, 1  ;;  %v968_v22 = vadd.f32 %v967_v20, %v966_v18 }
 0x153   : > { %v931_v23 = vadd.f32 %v930_v21, %v929_v19  ;;  %v969_v24 = vrot.slane %v968_v22, 1 }
 0x155   : > { %933 = vst.msk [vmem:[%s231_s30] sm:$0x1] %vm932_vm2, %v931_v23  ;;  %v970_v25 = vadd.f32 %v969_v24, %v968_v22 }
 0x157   : > { %971 = vst.msk [vmem:[%s234_s7] sm:$0x1] %vm932_vm2, %v970_v25 }
 0x158 PF: > { %s15_s15 = sadd.s32 1, %s1504_s15  }
 0x159   : > { %p12_p4 = scmp.ge.s32.totalorder %s15_s15, 6  }
 0x15b   :  { %14 = sbr.rel (!%p12_p4) target bundleno = 1 (0x1), region = 85 }

// kernel: decoder_pre_forward.5
= control target key start
LH: loop header
LB: loop body
LE: loop exit
PB: predicated region body
PF: predicated region fallthrough
CT: control target
= control target key end

     0   :  { %10 = vsyncpa [#allocation3], 0  ;;  %s12299_s0 = inlined_call_operand.vmem [shape: bf16[4,8,4096], index: 0, kind: input, shape index: {}]   ;;  %s12300_s1 = inlined_call_operand.hbm [shape: bf16[4,4096,512], index: 1, kind: input, shape index: {}]   ;;  %s12301_s2 = inlined_call_operand.vmem [shape: bf16[4,8,512], index: 2, kind: output, shape index: {0}]   ;;  %s12302_s3 = inlined_call_operand.vmem [shape: f32[4,1,512], index: 3, kind: output, shape index: {1}]   ;;  %s12303_s4 = inlined_call_operand.vmem [shape: f32[4,1,512], index: 4, kind: output, shape index: {2}]  }
   0x1   :  { %12 = vsyncpa [#allocation3 + $0x1], 0  ;;  %s11022_s15 = smov 0   ;;  %s11024_s16 = smov 0  }
   0x2   :  { %s11026_s17 = smov 0   ;;  %s11028_s18 = smov 0  }
   0x3 LB: > { %s11041_s19 = sadd.s32 4294967295, %s10991_s18   ;;  %s11044_s20 = sadd.s32 1, %s10991_s18   ;;  %s10991_s18 = sphi %s11028_s18, %s12310_s18   ;;  %s10987_s17 = sphi %s11026_s17, %s12309_s17   ;;  %s10983_s16 = sphi %s11024_s16, %s12308_s16   ;;  %s10979_s15 = sphi %s11022_s15, %s12307_s15  }
   0x4   : > { %s48_s21 = ssub.s32 %s10991_s18, %s11044_s20  ;;  %s51_s22 = sadd.s32 1, %s10987_s17 }
   0x5   : > { %p49_p0 = scmp.eq.s32.totalorder %s48_s21, 0  ;;  %p58_p1 = scmp.ne.s32.totalorder %s10987_s17, %s10983_s16 }
   0x6   : > { %p59_p2 = scmp.eq.s32.totalorder %s10991_s18, 0  ;;  %p64_p3 = scmp.ne.s32.totalorder %s10983_s16, %s10979_s15 }
   0x7   : > { %s11054_s23 = scalar_select %p49_p0, %s10987_s17, %s51_s22  }
   0x8   : > { %p60_p4 = por %p59_p2, %p58_p1  ;;  %p65_p5 = scmp.eq.s32.totalorder %s11041_s19, 0 }
   0x9   : > { %p9323_p6 = scmp.lt.s32.totalorder %s10991_s18, 4  ;;  %s174_s25 = sand.u32 1, %s10987_s17  }
   0xa   : > { %p11058_p7 = por %p65_p5, %p64_p3  ;;  %s8121_s26 = sshll.u32 %s174_s25, 13 }
   0xb   : > { %s9192_s27 = sshll.u32 %s10991_s18, 17  ;;  %s178_s5 = scalar_lea.vmem [#allocation2], %s8121_s26 }
   0xc   : > { %s11067_s30 = scalar_lea.hbm %s12300_s1, %s9192_s27  ;;  %s185_s6 = sshll.u32 %s178_s5, 4  ;;  %s11069_s6 = int_to_ptr.vmem [resolvable:$true] %s185_s6 }
   0xd   : > { %p11071_p8 = pnand %p9323_p6, %p60_p4  ;;  %s11076_s8 = scalar_lea.sflag [#allocation3], %s174_s25 }
   0xe   : > { %s10927_s9 = scalar_lea.hbm %s11067_s30, 131072  ;;  %s10932_s12 = scalar_lea.hbm %s12300_s1, 524288 }
   0xf   : > { %p10928_p10 = scmp.ne.s32.totalorder %s11067_s30, %s10927_s9  ;;  %p10929_p11 = pneg %p11071_p8 }
  0x10   : > { %p10933_p0 = scmp.lt.u32.totalorder %s11067_s30, %s12300_s1  ;;  %p10934_p1 = scmp.lt.u32.totalorder %s10932_s12, %s10927_s9 }
  0x11   : > { %p10930_p12 = pnand %p10929_p11, %p10928_p10  ;;  %p10936_p3 = scmp.lt.u32.totalorder %s10927_s9, %s11067_s30 }
  0x12   : > { %p10935_p2 = por %p10934_p1, %p10933_p0 }
  0x13   : > { %p10931_p13 = pneg %p10930_p12 }
  0x14   : > { %p10937_p4 = por %p10936_p3, %p10935_p2 }
  0x16   : > { %p10938_p5 = pnand %p10937_p4, %p10931_p13 }
  0x18   : > { %10941 = shalt.err (!%p10938_p5)
}
  0x19   : > { %s10942_s15 = scalar_lea.vmem %s11069_s6, 131072  ;;  %s10993_s21 = smov [#allocation2]  }
  0x1a   : > { %p10943_p6 = scmp.ne.s32.totalorder %s11069_s6, %s10942_s15  ;;  %s10947_s22 = sshll.u32 %s10993_s21, 4  ;;  %s10948_s22 = int_to_ptr.vmem [resolvable:$false] %s10947_s22 }
  0x1b   : > { %s10949_s25 = scalar_lea.vmem %s10948_s22, 262144  ;;  %p10950_p9 = scmp.lt.s32.totalorder %s11069_s6, %s10948_s22 }
  0x1c   : > { %p10945_p10 = pnand %p10943_p6, %p10929_p11  ;;  %p10951_p0 = scmp.lt.s32.totalorder %s10949_s25, %s10942_s15 }
  0x1e   : > { %p10946_p12 = pneg %p10945_p10  ;;  %p10952_p1 = por %p10951_p0, %p10950_p9 }
  0x20   : > { %p10953_p2 = pnand %p10952_p1, %p10946_p12 }
  0x22   : > { %10956 = shalt.err (!%p10953_p2)
}
  0x23   : > { %s10994_s26 = smov 256   ;;  %s10995_s27 = smov 16  }
  0x24   : > { %9322 = dma.hbm_to_vmem [thread:$0]  (!%p11071_p8), %s11067_s30, 131072, %s11069_s6, %s11076_s8, %s10994_s26, %s10994_s26, %s10995_s27  }
  0x25   : > { %p193_p11 = scmp.lt.s32.totalorder %s10991_s18, 5  ;;  %p12306_p13 = scmp.ge.s32.totalorder %s10991_s18, 1 }
  0x27   : > { %p194_p3 = pnand %p12306_p13, %p193_p11 }
  0x28   : > { %s199_s28 = sand.u32 (!%p194_p3), 1, %s10983_s16  }
  0x29   : > { %197 = sbr.rel (%p194_p3) target bundleno = 1310 (0x51e), region = 28  ;;  %s8125_s29 = sshll.u32 (!%p194_p3), %s199_s28, 13 }
  0x2a   : > { %s200_s5 = scalar_lea.sflag (!%p194_p3), [#allocation3], %s199_s28  ;;  %s11108_s9 = scalar_lea.vmem (!%p194_p3), [#allocation2], %s8125_s29 }
  0x30   : > { %10974 = dma.done.wait (%p11058_p7), %s200_s5, 131072  }
  0x31   : > { %10976 = vsyncadd (%p11058_p7), %s200_s5, 4294836224  ;;  %v9359_v0 = vld [vmem:[%s11108_s9 + $0x4] ss:$16 sps:$4 sm:$0xff]   ;;  %v9361_v1 = vld [vmem:[%s11108_s9 + $0xc] ss:$16 sps:$4 sm:$0xff]   ;;  %p241_p7 = scmp.lt.s32.totalorder %s11041_s19, 3 }
  0x32   : > { %6531 = vmatprep.subr.bf16.mxu0 %v9359_v0  ;;  %v9363_v2 = vld [vmem:[%s11108_s9] ss:$16 sps:$4 sm:$0xff]   ;;  %v9364_v3 = vld [vmem:[%s11108_s9 + $0x8] ss:$16 sps:$4 sm:$0xff]   ;;  %7187 = vmatprep.subr.bf16.mxu1 %v9361_v1  ;;  %v9365_v4 = vld [vmem:[%s11108_s9 + $0x24] ss:$16 sps:$4 sm:$0xff]  }
  0x33   : > { %6532 = vmatpush1.bf16.msra.mxu0 %v9363_v2  ;;  %7188 = vmatpush1.bf16.msra.mxu1 %v9364_v3  ;;  %v9367_v5 = vld [vmem:[%s11108_s9 + $0x2c] ss:$16 sps:$4 sm:$0xff]   ;;  %v9369_v6 = vld [vmem:[%s11108_s9 + $0x20] ss:$16 sps:$4 sm:$0xff]   ;;  %v9370_v7 = vld [vmem:[%s11108_s9 + $0x28] ss:$16 sps:$4 sm:$0xff]  }
  0x34   : > { %6533 = vmatprep.subr.bf16.mxu0 %v9365_v4  ;;  %7189 = vmatprep.subr.bf16.mxu1 %v9367_v5  ;;  %v9371_v8 = vld [vmem:[%s11108_s9 + $0x44] ss:$16 sps:$4 sm:$0xff]   ;;  %v9373_v9 = vld [vmem:[%s11108_s9 + $0x4c] ss:$16 sps:$4 sm:$0xff]   ;;  %v9375_v10 = vld [vmem:[%s11108_s9 + $0x40] ss:$16 sps:$4 sm:$0xff]  }
  0x35   : > { %v9376_v11 = vld [vmem:[%s11108_s9 + $0x48] ss:$16 sps:$4 sm:$0xff]   ;;  %v9377_v12 = vld [vmem:[%s11108_s9 + $0x64] ss:$16 sps:$4 sm:$0xff]   ;;  %v9379_v13 = vld [vmem:[%s11108_s9 + $0x6c] ss:$16 sps:$4 sm:$0xff]  }
  0x36   : > { %v9381_v14 = vld [vmem:[%s11108_s9 + $0x60] ss:$16 sps:$4 sm:$0xff]   ;;  %v9382_v15 = vld [vmem:[%s11108_s9 + $0x68] ss:$16 sps:$4 sm:$0xff]   ;;  %v9383_v16 = vld [vmem:[%s11108_s9 + $0x84] ss:$16 sps:$4 sm:$0xff]  }
  0x37   : > { %6534 = vmatpush1.bf16.msra.mxu0 %v9369_v6  ;;  %7190 = vmatpush1.bf16.msra.mxu1 %v9370_v7  ;;  %v9385_v17 = vld [vmem:[%s11108_s9 + $0x8c] ss:$16 sps:$4 sm:$0xff]   ;;  %v9387_v18 = vld [vmem:[%s11108_s9 + $0x80] ss:$16 sps:$4 sm:$0xff]   ;;  %v9388_v19 = vld [vmem:[%s11108_s9 + $0x88] ss:$16 sps:$4 sm:$0xff]  }
  0x38   : > { %6535 = vmatprep.subr.bf16.mxu0 %v9371_v8  ;;  %7191 = vmatprep.subr.bf16.mxu1 %v9373_v9  ;;  %v9389_v20 = vld [vmem:[%s11108_s9 + $0xa4] ss:$16 sps:$4 sm:$0xff]   ;;  %v9391_v21 = vld [vmem:[%s11108_s9 + $0xac] ss:$16 sps:$4 sm:$0xff]   ;;  %v9393_v22 = vld [vmem:[%s11108_s9 + $0xa0] ss:$16 sps:$4 sm:$0xff]  }
  0x39   : > { %v9394_v23 = vld [vmem:[%s11108_s9 + $0xa8] ss:$16 sps:$4 sm:$0xff]   ;;  %v9395_v24 = vld [vmem:[%s11108_s9 + $0xc4] ss:$16 sps:$4 sm:$0xff]   ;;  %v9397_v25 = vld [vmem:[%s11108_s9 + $0xcc] ss:$16 sps:$4 sm:$0xff]  }
  0x3a   : > { %v9399_v26 = vld [vmem:[%s11108_s9 + $0xc0] ss:$16 sps:$4 sm:$0xff]   ;;  %v9400_v27 = vld [vmem:[%s11108_s9 + $0xc8] ss:$16 sps:$4 sm:$0xff]   ;;  %v9401_v28 = vld [vmem:[%s11108_s9 + $0xe4] ss:$16 sps:$4 sm:$0xff]  }
  0x3b   : > { %6536 = vmatpush1.bf16.msra.mxu0 %v9375_v10  ;;  %7192 = vmatpush1.bf16.msra.mxu1 %v9376_v11  ;;  %v9403_v29 = vld [vmem:[%s11108_s9 + $0xec] ss:$16 sps:$4 sm:$0xff]   ;;  %v9405_v30 = vld [vmem:[%s11108_s9 + $0xe0] ss:$16 sps:$4 sm:$0xff]   ;;  %v9406_v31 = vld [vmem:[%s11108_s9 + $0xe8] ss:$16 sps:$4 sm:$0xff]  }
  0x3c   : > { %6537 = vmatprep.subr.bf16.mxu0 %v9377_v12  ;;  %7193 = vmatprep.subr.bf16.mxu1 %v9379_v13  ;;  %v9407_v32 = vld [vmem:[%s11108_s9 + $0x104] ss:$16 sps:$4 sm:$0xff]   ;;  %v9409_v33 = vld [vmem:[%s11108_s9 + $0x10c] ss:$16 sps:$4 sm:$0xff]   ;;  %v9411_v34 = vld [vmem:[%s11108_s9 + $0x100] ss:$16 sps:$4 sm:$0xff]  }
  0x3d   : > { %v9412_v35 = vld [vmem:[%s11108_s9 + $0x108] ss:$16 sps:$4 sm:$0xff]   ;;  %v9413_v36 = vld [vmem:[%s11108_s9 + $0x124] ss:$16 sps:$4 sm:$0xff]   ;;  %s12312_s19 = smov (!%p241_p7, %s11041_s19), 3 }
  0x3e   : > { %v9415_v37 = vld [vmem:[%s11108_s9 + $0x12c] ss:$16 sps:$4 sm:$0xff]   ;;  %v9417_v38 = vld [vmem:[%s11108_s9 + $0x120] ss:$16 sps:$4 sm:$0xff]   ;;  %v9418_v39 = vld [vmem:[%s11108_s9 + $0x128] ss:$16 sps:$4 sm:$0xff]  }
  0x3f   : > { %6538 = vmatpush1.bf16.msra.mxu0 %v9381_v14  ;;  %7194 = vmatpush1.bf16.msra.mxu1 %v9382_v15  ;;  %v9419_v40 = vld [vmem:[%s11108_s9 + $0x144] ss:$16 sps:$4 sm:$0xff]   ;;  %s9193_s18 = sshll.u32 %s12312_s19, 7  ;;  %v9421_v41 = vld [vmem:[%s11108_s9 + $0x14c] ss:$16 sps:$4 sm:$0xff]   ;;  %s9194_s7 = sshll.u32 %s12312_s19, 4 }
  0x40   : > { %6539 = vmatprep.subr.bf16.mxu0 %v9383_v16  ;;  %7195 = vmatprep.subr.bf16.mxu1 %v9385_v17  ;;  %v9423_v42 = vld [vmem:[%s11108_s9 + $0x140] ss:$16 sps:$4 sm:$0xff]   ;;  %v9424_v43 = vld [vmem:[%s11108_s9 + $0x148] ss:$16 sps:$4 sm:$0xff]   ;;  %s11166_s6 = scalar_lea.vmem %s12299_s0, %s9193_s18  ;;  %v9425_v44 = vld [vmem:[%s11108_s9 + $0x164] ss:$16 sps:$4 sm:$0xff]   ;;  %s12266_s11 = scalar_lea.vmem %s12301_s2, %s9194_s7 }
  0x41   : > { %v9427_v45 = vld [vmem:[%s11108_s9 + $0x16c] ss:$16 sps:$4 sm:$0xff]   ;;  %v259_v46 = vld [vmem:[%s11166_s6] sm:$0xff]  ;;  %v9430_v49 = vld [vmem:[%s11108_s9 + $0x168] ss:$16 sps:$4 sm:$0xff]   ;;  %s8130_s12 = sshll.u32 %s12312_s19, 2 }
  0x42   : > { %v9429_v47 = vld [vmem:[%s11108_s9 + $0x160] ss:$16 sps:$4 sm:$0xff]   ;;  %v8133_v48 = vcombine.high %v259_v46, %v259_v46  ;;  %v9431_v50 = vld [vmem:[%s11108_s9 + $0x184] ss:$16 sps:$4 sm:$0xff]   ;;  %v9433_v51 = vld [vmem:[%s11108_s9 + $0x18c] ss:$16 sps:$4 sm:$0xff]   ;;  %v8132_v4 = vcombine.low %v259_v46, %v259_v46  ;;  %s254_s15 = scalar_lea.vmem %s12302_s3, %s8130_s12  ;;  %s258_s25 = scalar_lea.vmem %s12303_s4, %s8130_s12 }
  0x43   : > { %6540 = vmatpush1.bf16.msra.mxu0 %v9387_v18  ;;  %7196 = vmatpush1.bf16.msra.mxu1 %v9388_v19  ;;  %v9435_v52 = vld [vmem:[%s11108_s9 + $0x180] ss:$16 sps:$4 sm:$0xff]   ;;  %v9436_v53 = vld [vmem:[%s11108_s9 + $0x188] ss:$16 sps:$4 sm:$0xff]   ;;  %v9437_v54 = vld [vmem:[%s11108_s9 + $0x1a4] ss:$16 sps:$4 sm:$0xff]  }
  0x44   : > { %6541 = vmatprep.subr.bf16.mxu0 %v9389_v20  ;;  %7197 = vmatprep.subr.bf16.mxu1 %v9391_v21  ;;  %v9439_v55 = vld [vmem:[%s11108_s9 + $0x1ac] ss:$16 sps:$4 sm:$0xff]   ;;  %v9441_v56 = vld [vmem:[%s11108_s9 + $0x1a0] ss:$16 sps:$4 sm:$0xff]   ;;  %v9442_v57 = vld [vmem:[%s11108_s9 + $0x1a8] ss:$16 sps:$4 sm:$0xff]  }
  0x45   : > { %6563 = vmatprep.mubr.bf16.mxu0 %v8133_v48  ;;  %7219 = vmatprep.mubr.bf16.mxu1 %v8133_v48  ;;  %v9443_v58 = vld [vmem:[%s11108_s9 + $0x1c4] ss:$16 sps:$4 sm:$0xff]   ;;  %v9445_v59 = vld [vmem:[%s11108_s9 + $0x1cc] ss:$16 sps:$4 sm:$0xff]   ;;  %v9447_v60 = vld [vmem:[%s11108_s9 + $0x1c0] ss:$16 sps:$4 sm:$0xff]  }
  0x46   : > { %v9448_v61 = vld [vmem:[%s11108_s9 + $0x1c8] ss:$16 sps:$4 sm:$0xff]   ;;  %v9449_v62 = vld [vmem:[%s11108_s9 + $0x1e4] ss:$16 sps:$4 sm:$0xff]   ;;  %v9451_v63 = vld [vmem:[%s11108_s9 + $0x1ec] ss:$16 sps:$4 sm:$0xff]  }
  0x47   : > { %6542 = vmatpush1.bf16.msra.mxu0 %v9393_v22  ;;  %7198 = vmatpush1.bf16.msra.mxu1 %v9394_v23  ;;  %v9453_v0 = vld [vmem:[%s11108_s9 + $0x1e0] ss:$16 sps:$4 sm:$0xff]   ;;  %v9454_v1 = vld [vmem:[%s11108_s9 + $0x1e8] ss:$16 sps:$4 sm:$0xff]   ;;  %v9459_v2 = vld [vmem:[%s11108_s9 + $0x204] ss:$16 sps:$4 sm:$0xff]  }
  0x48   : > { %6543 = vmatprep.subr.bf16.mxu0 %v9395_v24  ;;  %7199 = vmatprep.subr.bf16.mxu1 %v9397_v25  ;;  %v9462_v3 = vld [vmem:[%s11108_s9 + $0x20c] ss:$16 sps:$4 sm:$0xff]   ;;  %v9457_v5 = vld [vmem:[%s11108_s9 + $0x200] ss:$16 sps:$4 sm:$0xff]   ;;  %v9460_v6 = vld [vmem:[%s11108_s9 + $0x208] ss:$16 sps:$4 sm:$0xff]  }
  0x49   : > { %v9465_v7 = vld [vmem:[%s11108_s9 + $0x224] ss:$16 sps:$4 sm:$0xff]   ;;  %v9468_v8 = vld [vmem:[%s11108_s9 + $0x22c] ss:$16 sps:$4 sm:$0xff]   ;;  %v9463_v9 = vld [vmem:[%s11108_s9 + $0x220] ss:$16 sps:$4 sm:$0xff]  }
  0x4a   : > { %v9466_v10 = vld [vmem:[%s11108_s9 + $0x228] ss:$16 sps:$4 sm:$0xff]   ;;  %v9471_v11 = vld [vmem:[%s11108_s9 + $0x244] ss:$16 sps:$4 sm:$0xff]   ;;  %v9474_v12 = vld [vmem:[%s11108_s9 + $0x24c] ss:$16 sps:$4 sm:$0xff]  }
  0x4b   : > { %6544 = vmatpush1.bf16.msra.mxu0 %v9399_v26  ;;  %7200 = vmatpush1.bf16.msra.mxu1 %v9400_v27  ;;  %v9469_v13 = vld [vmem:[%s11108_s9 + $0x240] ss:$16 sps:$4 sm:$0xff]   ;;  %v9472_v14 = vld [vmem:[%s11108_s9 + $0x248] ss:$16 sps:$4 sm:$0xff]   ;;  %v9477_v15 = vld [vmem:[%s11108_s9 + $0x264] ss:$16 sps:$4 sm:$0xff]  }
  0x4c   : > { %6545 = vmatprep.subr.bf16.mxu0 %v9401_v28  ;;  %7201 = vmatprep.subr.bf16.mxu1 %v9403_v29  ;;  %v9480_v16 = vld [vmem:[%s11108_s9 + $0x26c] ss:$16 sps:$4 sm:$0xff]   ;;  %v9475_v17 = vld [vmem:[%s11108_s9 + $0x260] ss:$16 sps:$4 sm:$0xff]   ;;  %v9478_v18 = vld [vmem:[%s11108_s9 + $0x268] ss:$16 sps:$4 sm:$0xff]  }
  0x4d   : > { %v9483_v19 = vld [vmem:[%s11108_s9 + $0x284] ss:$16 sps:$4 sm:$0xff]   ;;  %v9486_v20 = vld [vmem:[%s11108_s9 + $0x28c] ss:$16 sps:$4 sm:$0xff]   ;;  %v9481_v21 = vld [vmem:[%s11108_s9 + $0x280] ss:$16 sps:$4 sm:$0xff]  }
  0x4e   : > { %v9484_v22 = vld [vmem:[%s11108_s9 + $0x288] ss:$16 sps:$4 sm:$0xff]   ;;  %v9489_v23 = vld [vmem:[%s11108_s9 + $0x2a4] ss:$16 sps:$4 sm:$0xff]   ;;  %v9492_v24 = vld [vmem:[%s11108_s9 + $0x2ac] ss:$16 sps:$4 sm:$0xff]  }
  0x4f   : > { %6546 = vmatpush1.bf16.msra.mxu0 %v9405_v30  ;;  %7202 = vmatpush1.bf16.msra.mxu1 %v9406_v31  ;;  %v9487_v25 = vld [vmem:[%s11108_s9 + $0x2a0] ss:$16 sps:$4 sm:$0xff]   ;;  %v9490_v26 = vld [vmem:[%s11108_s9 + $0x2a8] ss:$16 sps:$4 sm:$0xff]   ;;  %v9495_v27 = vld [vmem:[%s11108_s9 + $0x2c4] ss:$16 sps:$4 sm:$0xff]  }
  0x50   : > { %6547 = vmatprep.subr.bf16.mxu0 %v9407_v32  ;;  %7203 = vmatprep.subr.bf16.mxu1 %v9409_v33  ;;  %v9498_v28 = vld [vmem:[%s11108_s9 + $0x2cc] ss:$16 sps:$4 sm:$0xff]   ;;  %v9493_v31 = vld [vmem:[%s11108_s9 + $0x2c0] ss:$16 sps:$4 sm:$0xff]   ;;  %v9496_v32 = vld [vmem:[%s11108_s9 + $0x2c8] ss:$16 sps:$4 sm:$0xff]  }
  0x51   : > { %v11216_v29 = vld [vmem:[%s11166_s6 + $0x8] sm:$0xff]  ;;  %v9501_v33 = vld [vmem:[%s11108_s9 + $0x2e4] ss:$16 sps:$4 sm:$0xff]  }
  0x52   : > { %v8135_v30 = vcombine.high %v11216_v29, %v11216_v29  ;;  %v9522_v46 = vld [vmem:[%s11108_s9 + $0x34c] ss:$16 sps:$4 sm:$0xff]   ;;  %v9520_v48 = vld [vmem:[%s11108_s9 + $0x348] ss:$16 sps:$4 sm:$0xff]  }
  0x53   : > { %6548 = vmatpush1.bf16.msra.mxu0 %v9411_v34  ;;  %7204 = vmatpush1.bf16.msra.mxu1 %v9412_v35  ;;  %v9504_v34 = vld [vmem:[%s11108_s9 + $0x2ec] ss:$16 sps:$4 sm:$0xff]   ;;  %v9499_v35 = vld [vmem:[%s11108_s9 + $0x2e0] ss:$16 sps:$4 sm:$0xff]  }
  0x54   : > { %6549 = vmatprep.subr.bf16.mxu0 %v9413_v36  ;;  %7205 = vmatprep.subr.bf16.mxu1 %v9415_v37  ;;  %v9502_v36 = vld [vmem:[%s11108_s9 + $0x2e8] ss:$16 sps:$4 sm:$0xff]   ;;  %v9507_v37 = vld [vmem:[%s11108_s9 + $0x304] ss:$16 sps:$4 sm:$0xff]  }
  0x57   : > { %6550 = vmatpush1.bf16.msra.mxu0 %v9417_v38  ;;  %7206 = vmatpush1.bf16.msra.mxu1 %v9418_v39  ;;  %v9510_v38 = vld [vmem:[%s11108_s9 + $0x30c] ss:$16 sps:$4 sm:$0xff]   ;;  %v9505_v39 = vld [vmem:[%s11108_s9 + $0x300] ss:$16 sps:$4 sm:$0xff]  }
  0x58   : > { %6551 = vmatprep.subr.bf16.mxu0 %v9419_v40  ;;  %7207 = vmatprep.subr.bf16.mxu1 %v9421_v41  ;;  %v9508_v40 = vld [vmem:[%s11108_s9 + $0x308] ss:$16 sps:$4 sm:$0xff]   ;;  %v9513_v41 = vld [vmem:[%s11108_s9 + $0x324] ss:$16 sps:$4 sm:$0xff]  }
  0x5b   : > { %6552 = vmatpush1.bf16.msra.mxu0 %v9423_v42  ;;  %7208 = vmatpush1.bf16.msra.mxu1 %v9424_v43  ;;  %v9516_v42 = vld [vmem:[%s11108_s9 + $0x32c] ss:$16 sps:$4 sm:$0xff]   ;;  %v9511_v43 = vld [vmem:[%s11108_s9 + $0x320] ss:$16 sps:$4 sm:$0xff]  }
  0x5c   : > { %6553 = vmatprep.subr.bf16.mxu0 %v9425_v44  ;;  %7209 = vmatprep.subr.bf16.mxu1 %v9427_v45  ;;  %v9514_v44 = vld [vmem:[%s11108_s9 + $0x328] ss:$16 sps:$4 sm:$0xff]   ;;  %v9519_v45 = vld [vmem:[%s11108_s9 + $0x344] ss:$16 sps:$4 sm:$0xff]  }
  0x5f   : > { %6554 = vmatpush1.bf16.msra.mxu0 %v9429_v47  ;;  %7210 = vmatpush1.bf16.msra.mxu1 %v9430_v49  ;;  %v9517_v47 = vld [vmem:[%s11108_s9 + $0x340] ss:$16 sps:$4 sm:$0xff]   ;;  %v9525_v49 = vld [vmem:[%s11108_s9 + $0x364] ss:$16 sps:$4 sm:$0xff]  }
  0x60   : > { %6555 = vmatprep.subr.bf16.mxu0 %v9431_v50  ;;  %7211 = vmatprep.subr.bf16.mxu1 %v9433_v51  ;;  %v9528_v50 = vld [vmem:[%s11108_s9 + $0x36c] ss:$16 sps:$4 sm:$0xff]   ;;  %v9523_v51 = vld [vmem:[%s11108_s9 + $0x360] ss:$16 sps:$4 sm:$0xff]  }
  0x63   : > { %6556 = vmatpush1.bf16.msra.mxu0 %v9435_v52  ;;  %7212 = vmatpush1.bf16.msra.mxu1 %v9436_v53  ;;  %v9526_v52 = vld [vmem:[%s11108_s9 + $0x368] ss:$16 sps:$4 sm:$0xff]   ;;  %v9531_v53 = vld [vmem:[%s11108_s9 + $0x384] ss:$16 sps:$4 sm:$0xff]  }
  0x64   : > { %6557 = vmatprep.subr.bf16.mxu0 %v9437_v54  ;;  %7213 = vmatprep.subr.bf16.mxu1 %v9439_v55  ;;  %v9534_v54 = vld [vmem:[%s11108_s9 + $0x38c] ss:$16 sps:$4 sm:$0xff]   ;;  %v9529_v55 = vld [vmem:[%s11108_s9 + $0x380] ss:$16 sps:$4 sm:$0xff]  }
  0x67   : > { %6558 = vmatpush1.bf16.msra.mxu0 %v9441_v56  ;;  %7214 = vmatpush1.bf16.msra.mxu1 %v9442_v57  ;;  %v9532_v56 = vld [vmem:[%s11108_s9 + $0x388] ss:$16 sps:$4 sm:$0xff]   ;;  %v9537_v57 = vld [vmem:[%s11108_s9 + $0x3a4] ss:$16 sps:$4 sm:$0xff]  }
  0x68   : > { %6559 = vmatprep.subr.bf16.mxu0 %v9443_v58  ;;  %7215 = vmatprep.subr.bf16.mxu1 %v9445_v59  ;;  %v9540_v58 = vld [vmem:[%s11108_s9 + $0x3ac] ss:$16 sps:$4 sm:$0xff]   ;;  %v9535_v59 = vld [vmem:[%s11108_s9 + $0x3a0] ss:$16 sps:$4 sm:$0xff]  }
  0x6b   : > { %6560 = vmatpush1.bf16.msra.mxu0 %v9447_v60  ;;  %7216 = vmatpush1.bf16.msra.mxu1 %v9448_v61  ;;  %v9538_v60 = vld [vmem:[%s11108_s9 + $0x3a8] ss:$16 sps:$4 sm:$0xff]   ;;  %v9543_v61 = vld [vmem:[%s11108_s9 + $0x3c4] ss:$16 sps:$4 sm:$0xff]  }
  0x6c   : > { %6561 = vmatprep.subr.bf16.mxu0 %v9449_v62  ;;  %7217 = vmatprep.subr.bf16.mxu1 %v9451_v63  ;;  %v9546_v62 = vld [vmem:[%s11108_s9 + $0x3cc] ss:$16 sps:$4 sm:$0xff]   ;;  %v9541_v63 = vld [vmem:[%s11108_s9 + $0x3c0] ss:$16 sps:$4 sm:$0xff]  }
  0x6f   : > { %6562 = vmatpush1.bf16.msra.mxu0 %v9453_v0  ;;  %7218 = vmatpush1.bf16.msra.mxu1 %v9454_v1  ;;  %v9544_v0 = vld [vmem:[%s11108_s9 + $0x3c8] ss:$16 sps:$4 sm:$0xff]   ;;  %v9549_v1 = vld [vmem:[%s11108_s9 + $0x3e4] ss:$16 sps:$4 sm:$0xff]  }
  0x70   : > { %6572 = vmatprep.subr.bf16.mxu0 %v9459_v2  ;;  %7228 = vmatprep.subr.bf16.mxu1 %v9462_v3  ;;  %v9552_v2 = vld [vmem:[%s11108_s9 + $0x3ec] ss:$16 sps:$4 sm:$0xff]   ;;  %v9547_v3 = vld [vmem:[%s11108_s9 + $0x3e0] ss:$16 sps:$4 sm:$0xff]  }
  0x72   : > { %6564 = vmatmul.mubr.bf16.vlgmr.msra.gmra.mrb[0].mxu0 %v8132_v4  ;;  %7220 = vmatmul.mubr.bf16.vlgmr.msra.gmra.mrb[0].mxu1 %v8132_v4  ;;  %v9550_v4 = vld [vmem:[%s11108_s9 + $0x3e8] ss:$16 sps:$4 sm:$0xff]  }
  0x73   : > { %6573 = vmatpush1.bf16.msra.mxu0 %v9457_v5  ;;  %7229 = vmatpush1.bf16.msra.mxu1 %v9460_v6  ;;  %v9557_v5 = vld [vmem:[%s11108_s9 + $0x404] ss:$16 sps:$4 sm:$0xff]   ;;  %v9560_v6 = vld [vmem:[%s11108_s9 + $0x40c] ss:$16 sps:$4 sm:$0xff]  }
  0x74   : > { %6574 = vmatprep.subr.bf16.mxu0 %v9465_v7  ;;  %7230 = vmatprep.subr.bf16.mxu1 %v9468_v8  ;;  %v8134_v7 = vcombine.low %v11216_v29, %v11216_v29  ;;  %v9555_v8 = vld [vmem:[%s11108_s9 + $0x400] ss:$16 sps:$4 sm:$0xff]   ;;  %v9590_v29 = vld [vmem:[%s11108_s9 + $0x4ac] ss:$16 sps:$4 sm:$0xff]  }
  0x75   : > { %6604 = vmatprep.mubr.bf16.mxu0 %v8135_v30  ;;  %7260 = vmatprep.mubr.bf16.mxu1 %v8135_v30  ;;  %v9585_v30 = vld [vmem:[%s11108_s9 + $0x4a0] ss:$16 sps:$4 sm:$0xff]  }
  0x77   : > { %6575 = vmatpush1.bf16.msra.mxu0 %v9463_v9  ;;  %7231 = vmatpush1.bf16.msra.mxu1 %v9466_v10  ;;  %v9558_v9 = vld [vmem:[%s11108_s9 + $0x408] ss:$16 sps:$4 sm:$0xff]   ;;  %v9563_v10 = vld [vmem:[%s11108_s9 + $0x424] ss:$16 sps:$4 sm:$0xff]  }
  0x78   : > { %6576 = vmatprep.subr.bf16.mxu0 %v9471_v11  ;;  %7232 = vmatprep.subr.bf16.mxu1 %v9474_v12  ;;  %v11266_v11 = vld [vmem:[%s11166_s6 + $0x10] sm:$0xff]  ;;  %v9566_v12 = vld [vmem:[%s11108_s9 + $0x42c] ss:$16 sps:$4 sm:$0xff]  }
  0x7b   : > { %6577 = vmatpush1.bf16.msra.mxu0 %v9469_v13  ;;  %7233 = vmatpush1.bf16.msra.mxu1 %v9472_v14  ;;  %v8137_v13 = vcombine.high %v11266_v11, %v11266_v11  ;;  %v9561_v14 = vld [vmem:[%s11108_s9 + $0x420] ss:$16 sps:$4 sm:$0xff]  }
  0x7c   : > { %6578 = vmatprep.subr.bf16.mxu0 %v9477_v15  ;;  %7234 = vmatprep.subr.bf16.mxu1 %v9480_v16  ;;  %v9564_v15 = vld [vmem:[%s11108_s9 + $0x428] ss:$16 sps:$4 sm:$0xff]   ;;  %v9569_v16 = vld [vmem:[%s11108_s9 + $0x444] ss:$16 sps:$4 sm:$0xff]  }
  0x7f   : > { %6579 = vmatpush1.bf16.msra.mxu0 %v9475_v17  ;;  %7235 = vmatpush1.bf16.msra.mxu1 %v9478_v18  ;;  %v9572_v17 = vld [vmem:[%s11108_s9 + $0x44c] ss:$16 sps:$4 sm:$0xff]   ;;  %v9567_v18 = vld [vmem:[%s11108_s9 + $0x440] ss:$16 sps:$4 sm:$0xff]  }
  0x80   : > { %6580 = vmatprep.subr.bf16.mxu0 %v9483_v19  ;;  %7236 = vmatprep.subr.bf16.mxu1 %v9486_v20  ;;  %v9570_v19 = vld [vmem:[%s11108_s9 + $0x448] ss:$16 sps:$4 sm:$0xff]   ;;  %v9575_v20 = vld [vmem:[%s11108_s9 + $0x464] ss:$16 sps:$4 sm:$0xff]  }
  0x83   : > { %6581 = vmatpush1.bf16.msra.mxu0 %v9481_v21  ;;  %7237 = vmatpush1.bf16.msra.mxu1 %v9484_v22  ;;  %v9578_v21 = vld [vmem:[%s11108_s9 + $0x46c] ss:$16 sps:$4 sm:$0xff]   ;;  %v9573_v22 = vld [vmem:[%s11108_s9 + $0x460] ss:$16 sps:$4 sm:$0xff]  }
  0x84   : > { %6582 = vmatprep.subr.bf16.mxu0 %v9489_v23  ;;  %7238 = vmatprep.subr.bf16.mxu1 %v9492_v24  ;;  %v9576_v23 = vld [vmem:[%s11108_s9 + $0x468] ss:$16 sps:$4 sm:$0xff]   ;;  %v9581_v24 = vld [vmem:[%s11108_s9 + $0x484] ss:$16 sps:$4 sm:$0xff]  }
  0x87   : > { %6583 = vmatpush1.bf16.msra.mxu0 %v9487_v25  ;;  %7239 = vmatpush1.bf16.msra.mxu1 %v9490_v26  ;;  %v9584_v25 = vld [vmem:[%s11108_s9 + $0x48c] ss:$16 sps:$4 sm:$0xff]   ;;  %v9579_v26 = vld [vmem:[%s11108_s9 + $0x480] ss:$16 sps:$4 sm:$0xff]  }
  0x88   : > { %6584 = vmatprep.subr.bf16.mxu0 %v9495_v27  ;;  %7240 = vmatprep.subr.bf16.mxu1 %v9498_v28  ;;  %v9582_v27 = vld [vmem:[%s11108_s9 + $0x488] ss:$16 sps:$4 sm:$0xff]   ;;  %v9587_v28 = vld [vmem:[%s11108_s9 + $0x4a4] ss:$16 sps:$4 sm:$0xff]  }
  0x8b   : > { %6585 = vmatpush1.bf16.msra.mxu0 %v9493_v31  ;;  %7241 = vmatpush1.bf16.msra.mxu1 %v9496_v32  ;;  %v9588_v31 = vld [vmem:[%s11108_s9 + $0x4a8] ss:$16 sps:$4 sm:$0xff]   ;;  %v9593_v32 = vld [vmem:[%s11108_s9 + $0x4c4] ss:$16 sps:$4 sm:$0xff]  }
  0x8c   : > { %6586 = vmatprep.subr.bf16.mxu0 %v9501_v33  ;;  %7242 = vmatprep.subr.bf16.mxu1 %v9504_v34  ;;  %v9596_v33 = vld [vmem:[%s11108_s9 + $0x4cc] ss:$16 sps:$4 sm:$0xff]   ;;  %v9591_v34 = vld [vmem:[%s11108_s9 + $0x4c0] ss:$16 sps:$4 sm:$0xff]  }
  0x8f   : > { %6587 = vmatpush1.bf16.msra.mxu0 %v9499_v35  ;;  %7243 = vmatpush1.bf16.msra.mxu1 %v9502_v36  ;;  %v9594_v35 = vld [vmem:[%s11108_s9 + $0x4c8] ss:$16 sps:$4 sm:$0xff]   ;;  %v9599_v36 = vld [vmem:[%s11108_s9 + $0x4e4] ss:$16 sps:$4 sm:$0xff]  }
  0x90   : > { %6588 = vmatprep.subr.bf16.mxu0 %v9507_v37  ;;  %7244 = vmatprep.subr.bf16.mxu1 %v9510_v38  ;;  %v9602_v37 = vld [vmem:[%s11108_s9 + $0x4ec] ss:$16 sps:$4 sm:$0xff]   ;;  %v9597_v38 = vld [vmem:[%s11108_s9 + $0x4e0] ss:$16 sps:$4 sm:$0xff]  }
  0x93   : > { %6589 = vmatpush1.bf16.msra.mxu0 %v9505_v39  ;;  %7245 = vmatpush1.bf16.msra.mxu1 %v9508_v40  ;;  %v9600_v39 = vld [vmem:[%s11108_s9 + $0x4e8] ss:$16 sps:$4 sm:$0xff]   ;;  %v9605_v40 = vld [vmem:[%s11108_s9 + $0x504] ss:$16 sps:$4 sm:$0xff]  }
  0x94   : > { %6590 = vmatprep.subr.bf16.mxu0 %v9513_v41  ;;  %7246 = vmatprep.subr.bf16.mxu1 %v9516_v42  ;;  %v9608_v41 = vld [vmem:[%s11108_s9 + $0x50c] ss:$16 sps:$4 sm:$0xff]   ;;  %v9603_v42 = vld [vmem:[%s11108_s9 + $0x500] ss:$16 sps:$4 sm:$0xff]  }
  0x97   : > { %6591 = vmatpush1.bf16.msra.mxu0 %v9511_v43  ;;  %7247 = vmatpush1.bf16.msra.mxu1 %v9514_v44  ;;  %v9606_v43 = vld [vmem:[%s11108_s9 + $0x508] ss:$16 sps:$4 sm:$0xff]   ;;  %v9611_v44 = vld [vmem:[%s11108_s9 + $0x524] ss:$16 sps:$4 sm:$0xff]  }
  0x98   : > { %6592 = vmatprep.subr.bf16.mxu0 %v9519_v45  ;;  %7248 = vmatprep.subr.bf16.mxu1 %v9522_v46  ;;  %v9614_v45 = vld [vmem:[%s11108_s9 + $0x52c] ss:$16 sps:$4 sm:$0xff]   ;;  %v9609_v46 = vld [vmem:[%s11108_s9 + $0x520] ss:$16 sps:$4 sm:$0xff]  }
  0x9b   : > { %6593 = vmatpush1.bf16.msra.mxu0 %v9517_v47  ;;  %7249 = vmatpush1.bf16.msra.mxu1 %v9520_v48  ;;  %v9612_v47 = vld [vmem:[%s11108_s9 + $0x528] ss:$16 sps:$4 sm:$0xff]   ;;  %v9617_v48 = vld [vmem:[%s11108_s9 + $0x544] ss:$16 sps:$4 sm:$0xff]  }
  0x9c   : > { %6594 = vmatprep.subr.bf16.mxu0 %v9525_v49  ;;  %7250 = vmatprep.subr.bf16.mxu1 %v9528_v50  ;;  %v9620_v49 = vld [vmem:[%s11108_s9 + $0x54c] ss:$16 sps:$4 sm:$0xff]   ;;  %v9615_v50 = vld [vmem:[%s11108_s9 + $0x540] ss:$16 sps:$4 sm:$0xff]  }
  0x9f   : > { %6595 = vmatpush1.bf16.msra.mxu0 %v9523_v51  ;;  %7251 = vmatpush1.bf16.msra.mxu1 %v9526_v52  ;;  %v9618_v51 = vld [vmem:[%s11108_s9 + $0x548] ss:$16 sps:$4 sm:$0xff]   ;;  %v9623_v52 = vld [vmem:[%s11108_s9 + $0x564] ss:$16 sps:$4 sm:$0xff]  }
  0xa0   : > { %6596 = vmatprep.subr.bf16.mxu0 %v9531_v53  ;;  %7252 = vmatprep.subr.bf16.mxu1 %v9534_v54  ;;  %v9626_v53 = vld [vmem:[%s11108_s9 + $0x56c] ss:$16 sps:$4 sm:$0xff]   ;;  %v9621_v54 = vld [vmem:[%s11108_s9 + $0x560] ss:$16 sps:$4 sm:$0xff]  }
  0xa3   : > { %6597 = vmatpush1.bf16.msra.mxu0 %v9529_v55  ;;  %7253 = vmatpush1.bf16.msra.mxu1 %v9532_v56  ;;  %v9624_v55 = vld [vmem:[%s11108_s9 + $0x568] ss:$16 sps:$4 sm:$0xff]   ;;  %v9629_v56 = vld [vmem:[%s11108_s9 + $0x584] ss:$16 sps:$4 sm:$0xff]  }
  0xa4   : > { %6598 = vmatprep.subr.bf16.mxu0 %v9537_v57  ;;  %7254 = vmatprep.subr.bf16.mxu1 %v9540_v58  ;;  %v9632_v57 = vld [vmem:[%s11108_s9 + $0x58c] ss:$16 sps:$4 sm:$0xff]   ;;  %v9627_v58 = vld [vmem:[%s11108_s9 + $0x580] ss:$16 sps:$4 sm:$0xff]  }
  0xa7   : > { %6599 = vmatpush1.bf16.msra.mxu0 %v9535_v59  ;;  %7255 = vmatpush1.bf16.msra.mxu1 %v9538_v60  ;;  %v9630_v59 = vld [vmem:[%s11108_s9 + $0x588] ss:$16 sps:$4 sm:$0xff]   ;;  %v9635_v60 = vld [vmem:[%s11108_s9 + $0x5a4] ss:$16 sps:$4 sm:$0xff]  }
  0xa8   : > { %6600 = vmatprep.subr.bf16.mxu0 %v9543_v61  ;;  %7256 = vmatprep.subr.bf16.mxu1 %v9546_v62  ;;  %v9638_v61 = vld [vmem:[%s11108_s9 + $0x5ac] ss:$16 sps:$4 sm:$0xff]   ;;  %v9633_v62 = vld [vmem:[%s11108_s9 + $0x5a0] ss:$16 sps:$4 sm:$0xff]  }
  0xab   : > { %6601 = vmatpush1.bf16.msra.mxu0 %v9541_v63  ;;  %7257 = vmatpush1.bf16.msra.mxu1 %v9544_v0  ;;  %v9636_v63 = vld [vmem:[%s11108_s9 + $0x5a8] ss:$16 sps:$4 sm:$0xff]   ;;  %v9641_v0 = vld [vmem:[%s11108_s9 + $0x5c4] ss:$16 sps:$4 sm:$0xff]  }
  0xac   : > { %6602 = vmatprep.subr.bf16.mxu0 %v9549_v1  ;;  %7258 = vmatprep.subr.bf16.mxu1 %v9552_v2  ;;  %v9644_v1 = vld [vmem:[%s11108_s9 + $0x5cc] ss:$16 sps:$4 sm:$0xff]   ;;  %v9639_v2 = vld [vmem:[%s11108_s9 + $0x5c0] ss:$16 sps:$4 sm:$0xff]  }
  0xaf   : > { %6603 = vmatpush1.bf16.msra.mxu0 %v9547_v3  ;;  %7259 = vmatpush1.bf16.msra.mxu1 %v9550_v4  ;;  %v9642_v3 = vld [vmem:[%s11108_s9 + $0x5c8] ss:$16 sps:$4 sm:$0xff]   ;;  %v9647_v4 = vld [vmem:[%s11108_s9 + $0x5e4] ss:$16 sps:$4 sm:$0xff]  }
  0xb0   : > { %6613 = vmatprep.subr.bf16.mxu0 %v9557_v5  ;;  %7269 = vmatprep.subr.bf16.mxu1 %v9560_v6  ;;  %v9650_v5 = vld [vmem:[%s11108_s9 + $0x5ec] ss:$16 sps:$4 sm:$0xff]   ;;  %v9645_v6 = vld [vmem:[%s11108_s9 + $0x5e0] ss:$16 sps:$4 sm:$0xff]  }
  0xb2   : > { %6605 = vmatmul.mubr.bf16.vlgmr.msra.gmra.mrb[0].mxu0 %v8134_v7  ;;  %7261 = vmatmul.mubr.bf16.vlgmr.msra.gmra.mrb[0].mxu1 %v8134_v7  ;;  %v9648_v7 = vld [vmem:[%s11108_s9 + $0x5e8] ss:$16 sps:$4 sm:$0xff]  }
  0xb3   : > { %6614 = vmatpush1.bf16.msra.mxu0 %v9555_v8  ;;  %7270 = vmatpush1.bf16.msra.mxu1 %v9558_v9  ;;  %v9655_v8 = vld [vmem:[%s11108_s9 + $0x604] ss:$16 sps:$4 sm:$0xff]   ;;  %v9658_v9 = vld [vmem:[%s11108_s9 + $0x60c] ss:$16 sps:$4 sm:$0xff]  }
  0xb4   : > { %6615 = vmatprep.subr.bf16.mxu0 %v9563_v10  ;;  %7271 = vmatprep.subr.bf16.mxu1 %v9566_v12  ;;  %v9653_v10 = vld [vmem:[%s11108_s9 + $0x600] ss:$16 sps:$4 sm:$0xff]   ;;  %v8136_v12 = vcombine.low %v11266_v11, %v11266_v11 }
  0xb5   : > { %6645 = vmatprep.mubr.bf16.mxu0 %v8137_v13  ;;  %7301 = vmatprep.mubr.bf16.mxu1 %v8137_v13  ;;  %v9656_v13 = vld [vmem:[%s11108_s9 + $0x608] ss:$16 sps:$4 sm:$0xff]   ;;  %v9659_v11 = vld [vmem:[%s11108_s9 + $0x620] ss:$16 sps:$4 sm:$0xff]  }
  0xb7   : > { %6616 = vmatpush1.bf16.msra.mxu0 %v9561_v14  ;;  %7272 = vmatpush1.bf16.msra.mxu1 %v9564_v15  ;;  %v11336_v14 = vld [vmem:[%s11166_s6 + $0x18] sm:$0xff]  ;;  %v9661_v15 = vld [vmem:[%s11108_s9 + $0x624] ss:$16 sps:$4 sm:$0xff]  }
  0xb8   : > { %6617 = vmatprep.subr.bf16.mxu0 %v9569_v16  ;;  %7273 = vmatprep.subr.bf16.mxu1 %v9572_v17  ;;  %v9664_v16 = vld [vmem:[%s11108_s9 + $0x62c] ss:$16 sps:$4 sm:$0xff]   ;;  %v8139_v17 = vcombine.high %v11336_v14, %v11336_v14 }
  0xbb   : > { %6618 = vmatpush1.bf16.msra.mxu0 %v9567_v18  ;;  %7274 = vmatpush1.bf16.msra.mxu1 %v9570_v19  ;;  %v9662_v18 = vld [vmem:[%s11108_s9 + $0x628] ss:$16 sps:$4 sm:$0xff]   ;;  %v9667_v19 = vld [vmem:[%s11108_s9 + $0x644] ss:$16 sps:$4 sm:$0xff]  }
  0xbc   : > { %6619 = vmatprep.subr.bf16.mxu0 %v9575_v20  ;;  %7275 = vmatprep.subr.bf16.mxu1 %v9578_v21  ;;  %v9670_v20 = vld [vmem:[%s11108_s9 + $0x64c] ss:$16 sps:$4 sm:$0xff]   ;;  %v9665_v21 = vld [vmem:[%s11108_s9 + $0x640] ss:$16 sps:$4 sm:$0xff]  }
  0xbf   : > { %6620 = vmatpush1.bf16.msra.mxu0 %v9573_v22  ;;  %7276 = vmatpush1.bf16.msra.mxu1 %v9576_v23  ;;  %v9668_v22 = vld [vmem:[%s11108_s9 + $0x648] ss:$16 sps:$4 sm:$0xff]   ;;  %v9673_v23 = vld [vmem:[%s11108_s9 + $0x664] ss:$16 sps:$4 sm:$0xff]  }
  0xc0   : > { %6621 = vmatprep.subr.bf16.mxu0 %v9581_v24  ;;  %7277 = vmatprep.subr.bf16.mxu1 %v9584_v25  ;;  %v9676_v24 = vld [vmem:[%s11108_s9 + $0x66c] ss:$16 sps:$4 sm:$0xff]   ;;  %v9671_v25 = vld [vmem:[%s11108_s9 + $0x660] ss:$16 sps:$4 sm:$0xff]  }
  0xc3   : > { %6622 = vmatpush1.bf16.msra.mxu0 %v9579_v26  ;;  %7278 = vmatpush1.bf16.msra.mxu1 %v9582_v27  ;;  %v9674_v26 = vld [vmem:[%s11108_s9 + $0x668] ss:$16 sps:$4 sm:$0xff]   ;;  %v9679_v27 = vld [vmem:[%s11108_s9 + $0x684] ss:$16 sps:$4 sm:$0xff]  }
  0xc4   : > { %6623 = vmatprep.subr.bf16.mxu0 %v9587_v28  ;;  %7279 = vmatprep.subr.bf16.mxu1 %v9590_v29  ;;  %v9682_v28 = vld [vmem:[%s11108_s9 + $0x68c] ss:$16 sps:$4 sm:$0xff]   ;;  %v9677_v29 = vld [vmem:[%s11108_s9 + $0x680] ss:$16 sps:$4 sm:$0xff]  }
  0xc7   : > { %6624 = vmatpush1.bf16.msra.mxu0 %v9585_v30  ;;  %7280 = vmatpush1.bf16.msra.mxu1 %v9588_v31  ;;  %v9680_v30 = vld [vmem:[%s11108_s9 + $0x688] ss:$16 sps:$4 sm:$0xff]   ;;  %v9685_v31 = vld [vmem:[%s11108_s9 + $0x6a4] ss:$16 sps:$4 sm:$0xff]  }
  0xc8   : > { %6625 = vmatprep.subr.bf16.mxu0 %v9593_v32  ;;  %7281 = vmatprep.subr.bf16.mxu1 %v9596_v33  ;;  %v9688_v32 = vld [vmem:[%s11108_s9 + $0x6ac] ss:$16 sps:$4 sm:$0xff]   ;;  %v9683_v33 = vld [vmem:[%s11108_s9 + $0x6a0] ss:$16 sps:$4 sm:$0xff]  }
  0xcb   : > { %6626 = vmatpush1.bf16.msra.mxu0 %v9591_v34  ;;  %7282 = vmatpush1.bf16.msra.mxu1 %v9594_v35  ;;  %v9686_v34 = vld [vmem:[%s11108_s9 + $0x6a8] ss:$16 sps:$4 sm:$0xff]   ;;  %v9691_v35 = vld [vmem:[%s11108_s9 + $0x6c4] ss:$16 sps:$4 sm:$0xff]  }
  0xcc   : > { %6627 = vmatprep.subr.bf16.mxu0 %v9599_v36  ;;  %7283 = vmatprep.subr.bf16.mxu1 %v9602_v37  ;;  %v9694_v36 = vld [vmem:[%s11108_s9 + $0x6cc] ss:$16 sps:$4 sm:$0xff]   ;;  %v9689_v37 = vld [vmem:[%s11108_s9 + $0x6c0] ss:$16 sps:$4 sm:$0xff]  }
  0xcf   : > { %6628 = vmatpush1.bf16.msra.mxu0 %v9597_v38  ;;  %7284 = vmatpush1.bf16.msra.mxu1 %v9600_v39  ;;  %v9692_v38 = vld [vmem:[%s11108_s9 + $0x6c8] ss:$16 sps:$4 sm:$0xff]   ;;  %v9697_v39 = vld [vmem:[%s11108_s9 + $0x6e4] ss:$16 sps:$4 sm:$0xff]  }
  0xd0   : > { %6629 = vmatprep.subr.bf16.mxu0 %v9605_v40  ;;  %7285 = vmatprep.subr.bf16.mxu1 %v9608_v41  ;;  %v9700_v40 = vld [vmem:[%s11108_s9 + $0x6ec] ss:$16 sps:$4 sm:$0xff]   ;;  %v9695_v41 = vld [vmem:[%s11108_s9 + $0x6e0] ss:$16 sps:$4 sm:$0xff]  }
  0xd3   : > { %6630 = vmatpush1.bf16.msra.mxu0 %v9603_v42  ;;  %7286 = vmatpush1.bf16.msra.mxu1 %v9606_v43  ;;  %v9698_v42 = vld [vmem:[%s11108_s9 + $0x6e8] ss:$16 sps:$4 sm:$0xff]   ;;  %v9703_v43 = vld [vmem:[%s11108_s9 + $0x704] ss:$16 sps:$4 sm:$0xff]  }
  0xd4   : > { %6631 = vmatprep.subr.bf16.mxu0 %v9611_v44  ;;  %7287 = vmatprep.subr.bf16.mxu1 %v9614_v45  ;;  %v9706_v44 = vld [vmem:[%s11108_s9 + $0x70c] ss:$16 sps:$4 sm:$0xff]   ;;  %v9701_v45 = vld [vmem:[%s11108_s9 + $0x700] ss:$16 sps:$4 sm:$0xff]  }
  0xd7   : > { %6632 = vmatpush1.bf16.msra.mxu0 %v9609_v46  ;;  %7288 = vmatpush1.bf16.msra.mxu1 %v9612_v47  ;;  %v9704_v46 = vld [vmem:[%s11108_s9 + $0x708] ss:$16 sps:$4 sm:$0xff]   ;;  %v9709_v47 = vld [vmem:[%s11108_s9 + $0x724] ss:$16 sps:$4 sm:$0xff]  }
  0xd8   : > { %6633 = vmatprep.subr.bf16.mxu0 %v9617_v48  ;;  %7289 = vmatprep.subr.bf16.mxu1 %v9620_v49  ;;  %v9712_v48 = vld [vmem:[%s11108_s9 + $0x72c] ss:$16 sps:$4 sm:$0xff]   ;;  %v9707_v49 = vld [vmem:[%s11108_s9 + $0x720] ss:$16 sps:$4 sm:$0xff]  }
  0xdb   : > { %6634 = vmatpush1.bf16.msra.mxu0 %v9615_v50  ;;  %7290 = vmatpush1.bf16.msra.mxu1 %v9618_v51  ;;  %v9710_v50 = vld [vmem:[%s11108_s9 + $0x728] ss:$16 sps:$4 sm:$0xff]   ;;  %v9715_v51 = vld [vmem:[%s11108_s9 + $0x744] ss:$16 sps:$4 sm:$0xff]  }
  0xdc   : > { %6635 = vmatprep.subr.bf16.mxu0 %v9623_v52  ;;  %7291 = vmatprep.subr.bf16.mxu1 %v9626_v53  ;;  %v9718_v52 = vld [vmem:[%s11108_s9 + $0x74c] ss:$16 sps:$4 sm:$0xff]   ;;  %v9713_v53 = vld [vmem:[%s11108_s9 + $0x740] ss:$16 sps:$4 sm:$0xff]  }
  0xdf   : > { %6636 = vmatpush1.bf16.msra.mxu0 %v9621_v54  ;;  %7292 = vmatpush1.bf16.msra.mxu1 %v9624_v55  ;;  %v9716_v54 = vld [vmem:[%s11108_s9 + $0x748] ss:$16 sps:$4 sm:$0xff]   ;;  %v9721_v55 = vld [vmem:[%s11108_s9 + $0x764] ss:$16 sps:$4 sm:$0xff]  }
  0xe0   : > { %6637 = vmatprep.subr.bf16.mxu0 %v9629_v56  ;;  %7293 = vmatprep.subr.bf16.mxu1 %v9632_v57  ;;  %v9724_v56 = vld [vmem:[%s11108_s9 + $0x76c] ss:$16 sps:$4 sm:$0xff]   ;;  %v9719_v57 = vld [vmem:[%s11108_s9 + $0x760] ss:$16 sps:$4 sm:$0xff]  }
  0xe3   : > { %6638 = vmatpush1.bf16.msra.mxu0 %v9627_v58  ;;  %7294 = vmatpush1.bf16.msra.mxu1 %v9630_v59  ;;  %v9722_v58 = vld [vmem:[%s11108_s9 + $0x768] ss:$16 sps:$4 sm:$0xff]   ;;  %v9727_v59 = vld [vmem:[%s11108_s9 + $0x784] ss:$16 sps:$4 sm:$0xff]  }
  0xe4   : > { %6639 = vmatprep.subr.bf16.mxu0 %v9635_v60  ;;  %7295 = vmatprep.subr.bf16.mxu1 %v9638_v61  ;;  %v9730_v60 = vld [vmem:[%s11108_s9 + $0x78c] ss:$16 sps:$4 sm:$0xff]   ;;  %v9725_v61 = vld [vmem:[%s11108_s9 + $0x780] ss:$16 sps:$4 sm:$0xff]  }
  0xe7   : > { %6640 = vmatpush1.bf16.msra.mxu0 %v9633_v62  ;;  %7296 = vmatpush1.bf16.msra.mxu1 %v9636_v63  ;;  %v9728_v62 = vld [vmem:[%s11108_s9 + $0x788] ss:$16 sps:$4 sm:$0xff]   ;;  %v9733_v63 = vld [vmem:[%s11108_s9 + $0x7a4] ss:$16 sps:$4 sm:$0xff]  }
  0xe8   : > { %6641 = vmatprep.subr.bf16.mxu0 %v9641_v0  ;;  %7297 = vmatprep.subr.bf16.mxu1 %v9644_v1  ;;  %v9736_v0 = vld [vmem:[%s11108_s9 + $0x7ac] ss:$16 sps:$4 sm:$0xff]   ;;  %v9731_v1 = vld [vmem:[%s11108_s9 + $0x7a0] ss:$16 sps:$4 sm:$0xff]  }
  0xeb   : > { %6642 = vmatpush1.bf16.msra.mxu0 %v9639_v2  ;;  %7298 = vmatpush1.bf16.msra.mxu1 %v9642_v3  ;;  %v9734_v2 = vld [vmem:[%s11108_s9 + $0x7a8] ss:$16 sps:$4 sm:$0xff]   ;;  %v9739_v3 = vld [vmem:[%s11108_s9 + $0x7c4] ss:$16 sps:$4 sm:$0xff]  }
  0xec   : > { %6643 = vmatprep.subr.bf16.mxu0 %v9647_v4  ;;  %7299 = vmatprep.subr.bf16.mxu1 %v9650_v5  ;;  %v9742_v4 = vld [vmem:[%s11108_s9 + $0x7cc] ss:$16 sps:$4 sm:$0xff]   ;;  %v9737_v5 = vld [vmem:[%s11108_s9 + $0x7c0] ss:$16 sps:$4 sm:$0xff]  }
  0xef   : > { %6644 = vmatpush1.bf16.msra.mxu0 %v9645_v6  ;;  %7300 = vmatpush1.bf16.msra.mxu1 %v9648_v7  ;;  %v9740_v6 = vld [vmem:[%s11108_s9 + $0x7c8] ss:$16 sps:$4 sm:$0xff]   ;;  %v9745_v7 = vld [vmem:[%s11108_s9 + $0x7e4] ss:$16 sps:$4 sm:$0xff]  }
  0xf0   : > { %6654 = vmatprep.subr.bf16.mxu0 %v9655_v8  ;;  %7310 = vmatprep.subr.bf16.mxu1 %v9658_v9  ;;  %v9748_v8 = vld [vmem:[%s11108_s9 + $0x7ec] ss:$16 sps:$4 sm:$0xff]   ;;  %v9743_v9 = vld [vmem:[%s11108_s9 + $0x7e0] ss:$16 sps:$4 sm:$0xff]  }
  0xf2   : > { %6646 = vmatmul.mubr.bf16.vlgmr.msra.gmra.mrb[0].mxu0 %v8136_v12  ;;  %7302 = vmatmul.mubr.bf16.vlgmr.msra.gmra.mrb[0].mxu1 %v8136_v12  ;;  %v9753_v12 = vld [vmem:[%s11108_s9 + $0x804] ss:$16 sps:$4 sm:$0xff]  }
  0xf3   : > { %6655 = vmatpush1.bf16.msra.mxu0 %v9653_v10  ;;  %7311 = vmatpush1.bf16.msra.mxu1 %v9656_v13  ;;  %v9746_v10 = vld [vmem:[%s11108_s9 + $0x7e8] ss:$16 sps:$4 sm:$0xff]   ;;  %v9756_v13 = vld [vmem:[%s11108_s9 + $0x80c] ss:$16 sps:$4 sm:$0xff]  }
  0xf4   : > { %6656 = vmatprep.subr.bf16.mxu0 %v9661_v15  ;;  %7312 = vmatprep.subr.bf16.mxu1 %v9664_v16  ;;  %v9751_v15 = vld [vmem:[%s11108_s9 + $0x800] ss:$16 sps:$4 sm:$0xff]   ;;  %v8138_v16 = vcombine.low %v11336_v14, %v11336_v14 }
  0xf5   : > { %6686 = vmatprep.mubr.bf16.mxu0 %v8139_v17  ;;  %7342 = vmatprep.mubr.bf16.mxu1 %v8139_v17  ;;  %v11406_v17 = vld [vmem:[%s11166_s6 + $0x20] sm:$0xff] }
  0xf6   : > { %v9757_v14 = vld [vmem:[%s11108_s9 + $0x820] ss:$16 sps:$4 sm:$0xff]  }
  0xf7   : > { %6657 = vmatpush1.bf16.msra.mxu0 %v9659_v11  ;;  %7313 = vmatpush1.bf16.msra.mxu1 %v9662_v18  ;;  %v9754_v11 = vld [vmem:[%s11108_s9 + $0x808] ss:$16 sps:$4 sm:$0xff]   ;;  %v9759_v18 = vld [vmem:[%s11108_s9 + $0x824] ss:$16 sps:$4 sm:$0xff]  }
  0xf8   : > { %6658 = vmatprep.subr.bf16.mxu0 %v9667_v19  ;;  %7314 = vmatprep.subr.bf16.mxu1 %v9670_v20  ;;  %v9762_v19 = vld [vmem:[%s11108_s9 + $0x82c] ss:$16 sps:$4 sm:$0xff]   ;;  %v8141_v20 = vcombine.high %v11406_v17, %v11406_v17 }
  0xfb   : > { %6659 = vmatpush1.bf16.msra.mxu0 %v9665_v21  ;;  %7315 = vmatpush1.bf16.msra.mxu1 %v9668_v22  ;;  %v9760_v21 = vld [vmem:[%s11108_s9 + $0x828] ss:$16 sps:$4 sm:$0xff]   ;;  %v9765_v22 = vld [vmem:[%s11108_s9 + $0x844] ss:$16 sps:$4 sm:$0xff]  }
  0xfc   : > { %6660 = vmatprep.subr.bf16.mxu0 %v9673_v23  ;;  %7316 = vmatprep.subr.bf16.mxu1 %v9676_v24  ;;  %v9768_v23 = vld [vmem:[%s11108_s9 + $0x84c] ss:$16 sps:$4 sm:$0xff]   ;;  %v9763_v24 = vld [vmem:[%s11108_s9 + $0x840] ss:$16 sps:$4 sm:$0xff]  }
  0xff   : > { %6661 = vmatpush1.bf16.msra.mxu0 %v9671_v25  ;;  %7317 = vmatpush1.bf16.msra.mxu1 %v9674_v26  ;;  %v9766_v25 = vld [vmem:[%s11108_s9 + $0x848] ss:$16 sps:$4 sm:$0xff]   ;;  %v9771_v26 = vld [vmem:[%s11108_s9 + $0x864] ss:$16 sps:$4 sm:$0xff]  }
 0x100   : > { %6662 = vmatprep.subr.bf16.mxu0 %v9679_v27  ;;  %7318 = vmatprep.subr.bf16.mxu1 %v9682_v28  ;;  %v9774_v27 = vld [vmem:[%s11108_s9 + $0x86c] ss:$16 sps:$4 sm:$0xff]   ;;  %v9769_v28 = vld [vmem:[%s11108_s9 + $0x860] ss:$16 sps:$4 sm:$0xff]  }
 0x103   : > { %6663 = vmatpush1.bf16.msra.mxu0 %v9677_v29  ;;  %7319 = vmatpush1.bf16.msra.mxu1 %v9680_v30  ;;  %v9772_v29 = vld [vmem:[%s11108_s9 + $0x868] ss:$16 sps:$4 sm:$0xff]   ;;  %v9777_v30 = vld [vmem:[%s11108_s9 + $0x884] ss:$16 sps:$4 sm:$0xff]  }
 0x104   : > { %6664 = vmatprep.subr.bf16.mxu0 %v9685_v31  ;;  %7320 = vmatprep.subr.bf16.mxu1 %v9688_v32  ;;  %v9780_v31 = vld [vmem:[%s11108_s9 + $0x88c] ss:$16 sps:$4 sm:$0xff]   ;;  %v9775_v32 = vld [vmem:[%s11108_s9 + $0x880] ss:$16 sps:$4 sm:$0xff]  }
 0x107   : > { %6665 = vmatpush1.bf16.msra.mxu0 %v9683_v33  ;;  %7321 = vmatpush1.bf16.msra.mxu1 %v9686_v34  ;;  %v9778_v33 = vld [vmem:[%s11108_s9 + $0x888] ss:$16 sps:$4 sm:$0xff]   ;;  %v9783_v34 = vld [vmem:[%s11108_s9 + $0x8a4] ss:$16 sps:$4 sm:$0xff]  }
 0x108   : > { %6666 = vmatprep.subr.bf16.mxu0 %v9691_v35  ;;  %7322 = vmatprep.subr.bf16.mxu1 %v9694_v36  ;;  %v9786_v35 = vld [vmem:[%s11108_s9 + $0x8ac] ss:$16 sps:$4 sm:$0xff]   ;;  %v9781_v36 = vld [vmem:[%s11108_s9 + $0x8a0] ss:$16 sps:$4 sm:$0xff]  }
 0x10b   : > { %6667 = vmatpush1.bf16.msra.mxu0 %v9689_v37  ;;  %7323 = vmatpush1.bf16.msra.mxu1 %v9692_v38  ;;  %v9784_v37 = vld [vmem:[%s11108_s9 + $0x8a8] ss:$16 sps:$4 sm:$0xff]   ;;  %v9789_v38 = vld [vmem:[%s11108_s9 + $0x8c4] ss:$16 sps:$4 sm:$0xff]  }
 0x10c   : > { %6668 = vmatprep.subr.bf16.mxu0 %v9697_v39  ;;  %7324 = vmatprep.subr.bf16.mxu1 %v9700_v40  ;;  %v9792_v39 = vld [vmem:[%s11108_s9 + $0x8cc] ss:$16 sps:$4 sm:$0xff]   ;;  %v9787_v40 = vld [vmem:[%s11108_s9 + $0x8c0] ss:$16 sps:$4 sm:$0xff]  }
 0x10f   : > { %6669 = vmatpush1.bf16.msra.mxu0 %v9695_v41  ;;  %7325 = vmatpush1.bf16.msra.mxu1 %v9698_v42  ;;  %v9790_v41 = vld [vmem:[%s11108_s9 + $0x8c8] ss:$16 sps:$4 sm:$0xff]   ;;  %v9795_v42 = vld [vmem:[%s11108_s9 + $0x8e4] ss:$16 sps:$4 sm:$0xff]  }
 0x110   : > { %6670 = vmatprep.subr.bf16.mxu0 %v9703_v43  ;;  %7326 = vmatprep.subr.bf16.mxu1 %v9706_v44  ;;  %v9798_v43 = vld [vmem:[%s11108_s9 + $0x8ec] ss:$16 sps:$4 sm:$0xff]   ;;  %v9793_v44 = vld [vmem:[%s11108_s9 + $0x8e0] ss:$16 sps:$4 sm:$0xff]  }
 0x113   : > { %6671 = vmatpush1.bf16.msra.mxu0 %v9701_v45  ;;  %7327 = vmatpush1.bf16.msra.mxu1 %v9704_v46  ;;  %v9796_v45 = vld [vmem:[%s11108_s9 + $0x8e8] ss:$16 sps:$4 sm:$0xff]   ;;  %v9801_v46 = vld [vmem:[%s11108_s9 + $0x904] ss:$16 sps:$4 sm:$0xff]  }
 0x114   : > { %6672 = vmatprep.subr.bf16.mxu0 %v9709_v47  ;;  %7328 = vmatprep.subr.bf16.mxu1 %v9712_v48  ;;  %v9804_v47 = vld [vmem:[%s11108_s9 + $0x90c] ss:$16 sps:$4 sm:$0xff]   ;;  %v9799_v48 = vld [vmem:[%s11108_s9 + $0x900] ss:$16 sps:$4 sm:$0xff]  }
 0x117   : > { %6673 = vmatpush1.bf16.msra.mxu0 %v9707_v49  ;;  %7329 = vmatpush1.bf16.msra.mxu1 %v9710_v50  ;;  %v9802_v49 = vld [vmem:[%s11108_s9 + $0x908] ss:$16 sps:$4 sm:$0xff]   ;;  %v9807_v50 = vld [vmem:[%s11108_s9 + $0x924] ss:$16 sps:$4 sm:$0xff]  }
 0x118   : > { %6674 = vmatprep.subr.bf16.mxu0 %v9715_v51  ;;  %7330 = vmatprep.subr.bf16.mxu1 %v9718_v52  ;;  %v9810_v51 = vld [vmem:[%s11108_s9 + $0x92c] ss:$16 sps:$4 sm:$0xff]   ;;  %v9805_v52 = vld [vmem:[%s11108_s9 + $0x920] ss:$16 sps:$4 sm:$0xff]  }
 0x11b   : > { %6675 = vmatpush1.bf16.msra.mxu0 %v9713_v53  ;;  %7331 = vmatpush1.bf16.msra.mxu1 %v9716_v54  ;;  %v9808_v53 = vld [vmem:[%s11108_s9 + $0x928] ss:$16 sps:$4 sm:$0xff]   ;;  %v9813_v54 = vld [vmem:[%s11108_s9 + $0x944] ss:$16 sps:$4 sm:$0xff]  }
 0x11c   : > { %6676 = vmatprep.subr.bf16.mxu0 %v9721_v55  ;;  %7332 = vmatprep.subr.bf16.mxu1 %v9724_v56  ;;  %v9816_v55 = vld [vmem:[%s11108_s9 + $0x94c] ss:$16 sps:$4 sm:$0xff]   ;;  %v9811_v56 = vld [vmem:[%s11108_s9 + $0x940] ss:$16 sps:$4 sm:$0xff]  }
 0x11f   : > { %6677 = vmatpush1.bf16.msra.mxu0 %v9719_v57  ;;  %7333 = vmatpush1.bf16.msra.mxu1 %v9722_v58  ;;  %v9814_v57 = vld [vmem:[%s11108_s9 + $0x948] ss:$16 sps:$4 sm:$0xff]   ;;  %v9819_v58 = vld [vmem:[%s11108_s9 + $0x964] ss:$16 sps:$4 sm:$0xff]  }
 0x120   : > { %6678 = vmatprep.subr.bf16.mxu0 %v9727_v59  ;;  %7334 = vmatprep.subr.bf16.mxu1 %v9730_v60  ;;  %v9822_v59 = vld [vmem:[%s11108_s9 + $0x96c] ss:$16 sps:$4 sm:$0xff]   ;;  %v9817_v60 = vld [vmem:[%s11108_s9 + $0x960] ss:$16 sps:$4 sm:$0xff]  }
 0x123   : > { %6679 = vmatpush1.bf16.msra.mxu0 %v9725_v61  ;;  %7335 = vmatpush1.bf16.msra.mxu1 %v9728_v62  ;;  %v9820_v61 = vld [vmem:[%s11108_s9 + $0x968] ss:$16 sps:$4 sm:$0xff]   ;;  %v9825_v62 = vld [vmem:[%s11108_s9 + $0x984] ss:$16 sps:$4 sm:$0xff]  }
 0x124   : > { %6680 = vmatprep.subr.bf16.mxu0 %v9733_v63  ;;  %7336 = vmatprep.subr.bf16.mxu1 %v9736_v0  ;;  %v9828_v63 = vld [vmem:[%s11108_s9 + $0x98c] ss:$16 sps:$4 sm:$0xff]   ;;  %v9823_v0 = vld [vmem:[%s11108_s9 + $0x980] ss:$16 sps:$4 sm:$0xff]  }
 0x127   : > { %6681 = vmatpush1.bf16.msra.mxu0 %v9731_v1  ;;  %7337 = vmatpush1.bf16.msra.mxu1 %v9734_v2  ;;  %v9826_v1 = vld [vmem:[%s11108_s9 + $0x988] ss:$16 sps:$4 sm:$0xff]   ;;  %v9831_v2 = vld [vmem:[%s11108_s9 + $0x9a4] ss:$16 sps:$4 sm:$0xff]  }
 0x128   : > { %6682 = vmatprep.subr.bf16.mxu0 %v9739_v3  ;;  %7338 = vmatprep.subr.bf16.mxu1 %v9742_v4  ;;  %v9834_v3 = vld [vmem:[%s11108_s9 + $0x9ac] ss:$16 sps:$4 sm:$0xff]   ;;  %v9829_v4 = vld [vmem:[%s11108_s9 + $0x9a0] ss:$16 sps:$4 sm:$0xff]  }
 0x12b   : > { %6683 = vmatpush1.bf16.msra.mxu0 %v9737_v5  ;;  %7339 = vmatpush1.bf16.msra.mxu1 %v9740_v6  ;;  %v9832_v5 = vld [vmem:[%s11108_s9 + $0x9a8] ss:$16 sps:$4 sm:$0xff]   ;;  %v9837_v6 = vld [vmem:[%s11108_s9 + $0x9c4] ss:$16 sps:$4 sm:$0xff]  }
 0x12c   : > { %6684 = vmatprep.subr.bf16.mxu0 %v9745_v7  ;;  %7340 = vmatprep.subr.bf16.mxu1 %v9748_v8  ;;  %v9840_v7 = vld [vmem:[%s11108_s9 + $0x9cc] ss:$16 sps:$4 sm:$0xff]   ;;  %v9835_v8 = vld [vmem:[%s11108_s9 + $0x9c0] ss:$16 sps:$4 sm:$0xff]  }
 0x12f   : > { %6685 = vmatpush1.bf16.msra.mxu0 %v9743_v9  ;;  %7341 = vmatpush1.bf16.msra.mxu1 %v9746_v10  ;;  %v9838_v9 = vld [vmem:[%s11108_s9 + $0x9c8] ss:$16 sps:$4 sm:$0xff]   ;;  %v9843_v10 = vld [vmem:[%s11108_s9 + $0x9e4] ss:$16 sps:$4 sm:$0xff]  }
 0x130   : > { %6695 = vmatprep.subr.bf16.mxu0 %v9753_v12  ;;  %7351 = vmatprep.subr.bf16.mxu1 %v9756_v13  ;;  %v9846_v12 = vld [vmem:[%s11108_s9 + $0x9ec] ss:$16 sps:$4 sm:$0xff]   ;;  %v9841_v13 = vld [vmem:[%s11108_s9 + $0x9e0] ss:$16 sps:$4 sm:$0xff]  }
 0x132   : > { %6687 = vmatmul.mubr.bf16.vlgmr.msra.gmra.mrb[0].mxu0 %v8138_v16  ;;  %7343 = vmatmul.mubr.bf16.vlgmr.msra.gmra.mrb[0].mxu1 %v8138_v16  ;;  %v9851_v16 = vld [vmem:[%s11108_s9 + $0xa04] ss:$16 sps:$4 sm:$0xff]  }
 0x133   : > { %6696 = vmatpush1.bf16.msra.mxu0 %v9751_v15  ;;  %7352 = vmatpush1.bf16.msra.mxu1 %v9754_v11  ;;  %v9844_v15 = vld [vmem:[%s11108_s9 + $0x9e8] ss:$16 sps:$4 sm:$0xff]   ;;  %v9854_v11 = vld [vmem:[%s11108_s9 + $0xa0c] ss:$16 sps:$4 sm:$0xff]  }
 0x134   : > { %6697 = vmatprep.subr.bf16.mxu0 %v9759_v18  ;;  %7353 = vmatprep.subr.bf16.mxu1 %v9762_v19  ;;  %v11474_v18 = vld [vmem:[%s11166_s6 + $0x28] sm:$0xff]  ;;  %v8140_v19 = vcombine.low %v11406_v17, %v11406_v17  ;;  %v9855_v17 = vld [vmem:[%s11108_s9 + $0xa20] ss:$16 sps:$4 sm:$0xff]  }
 0x135   : > { %6727 = vmatprep.mubr.bf16.mxu0 %v8141_v20  ;;  %7383 = vmatprep.mubr.bf16.mxu1 %v8141_v20  ;;  %v9849_v20 = vld [vmem:[%s11108_s9 + $0xa00] ss:$16 sps:$4 sm:$0xff]  }
 0x137   : > { %6698 = vmatpush1.bf16.msra.mxu0 %v9757_v14  ;;  %7354 = vmatpush1.bf16.msra.mxu1 %v9760_v21  ;;  %v9852_v14 = vld [vmem:[%s11108_s9 + $0xa08] ss:$16 sps:$4 sm:$0xff]   ;;  %v9857_v21 = vld [vmem:[%s11108_s9 + $0xa24] ss:$16 sps:$4 sm:$0xff]  }
 0x138   : > { %6699 = vmatprep.subr.bf16.mxu0 %v9765_v22  ;;  %7355 = vmatprep.subr.bf16.mxu1 %v9768_v23  ;;  %v9860_v22 = vld [vmem:[%s11108_s9 + $0xa2c] ss:$16 sps:$4 sm:$0xff]   ;;  %v8143_v23 = vcombine.high %v11474_v18, %v11474_v18 }
 0x13b   : > { %6700 = vmatpush1.bf16.msra.mxu0 %v9763_v24  ;;  %7356 = vmatpush1.bf16.msra.mxu1 %v9766_v25  ;;  %v9858_v24 = vld [vmem:[%s11108_s9 + $0xa28] ss:$16 sps:$4 sm:$0xff]   ;;  %v9863_v25 = vld [vmem:[%s11108_s9 + $0xa44] ss:$16 sps:$4 sm:$0xff]  }
 0x13c   : > { %6701 = vmatprep.subr.bf16.mxu0 %v9771_v26  ;;  %7357 = vmatprep.subr.bf16.mxu1 %v9774_v27  ;;  %v9866_v26 = vld [vmem:[%s11108_s9 + $0xa4c] ss:$16 sps:$4 sm:$0xff]   ;;  %v9861_v27 = vld [vmem:[%s11108_s9 + $0xa40] ss:$16 sps:$4 sm:$0xff]  }
 0x13f   : > { %6702 = vmatpush1.bf16.msra.mxu0 %v9769_v28  ;;  %7358 = vmatpush1.bf16.msra.mxu1 %v9772_v29  ;;  %v9864_v28 = vld [vmem:[%s11108_s9 + $0xa48] ss:$16 sps:$4 sm:$0xff]   ;;  %v9869_v29 = vld [vmem:[%s11108_s9 + $0xa64] ss:$16 sps:$4 sm:$0xff]  }
 0x140   : > { %6703 = vmatprep.subr.bf16.mxu0 %v9777_v30  ;;  %7359 = vmatprep.subr.bf16.mxu1 %v9780_v31  ;;  %v9872_v30 = vld [vmem:[%s11108_s9 + $0xa6c] ss:$16 sps:$4 sm:$0xff]   ;;  %v9867_v31 = vld [vmem:[%s11108_s9 + $0xa60] ss:$16 sps:$4 sm:$0xff]  }
 0x143   : > { %6704 = vmatpush1.bf16.msra.mxu0 %v9775_v32  ;;  %7360 = vmatpush1.bf16.msra.mxu1 %v9778_v33  ;;  %v9870_v32 = vld [vmem:[%s11108_s9 + $0xa68] ss:$16 sps:$4 sm:$0xff]   ;;  %v9875_v33 = vld [vmem:[%s11108_s9 + $0xa84] ss:$16 sps:$4 sm:$0xff]  }
 0x144   : > { %6705 = vmatprep.subr.bf16.mxu0 %v9783_v34  ;;  %7361 = vmatprep.subr.bf16.mxu1 %v9786_v35  ;;  %v9878_v34 = vld [vmem:[%s11108_s9 + $0xa8c] ss:$16 sps:$4 sm:$0xff]   ;;  %v9873_v35 = vld [vmem:[%s11108_s9 + $0xa80] ss:$16 sps:$4 sm:$0xff]  }
 0x147   : > { %6706 = vmatpush1.bf16.msra.mxu0 %v9781_v36  ;;  %7362 = vmatpush1.bf16.msra.mxu1 %v9784_v37  ;;  %v9876_v36 = vld [vmem:[%s11108_s9 + $0xa88] ss:$16 sps:$4 sm:$0xff]   ;;  %v9881_v37 = vld [vmem:[%s11108_s9 + $0xaa4] ss:$16 sps:$4 sm:$0xff]  }
 0x148   : > { %6707 = vmatprep.subr.bf16.mxu0 %v9789_v38  ;;  %7363 = vmatprep.subr.bf16.mxu1 %v9792_v39  ;;  %v9884_v38 = vld [vmem:[%s11108_s9 + $0xaac] ss:$16 sps:$4 sm:$0xff]   ;;  %v9879_v39 = vld [vmem:[%s11108_s9 + $0xaa0] ss:$16 sps:$4 sm:$0xff]  }
 0x14b   : > { %6708 = vmatpush1.bf16.msra.mxu0 %v9787_v40  ;;  %7364 = vmatpush1.bf16.msra.mxu1 %v9790_v41  ;;  %v9882_v40 = vld [vmem:[%s11108_s9 + $0xaa8] ss:$16 sps:$4 sm:$0xff]   ;;  %v9887_v41 = vld [vmem:[%s11108_s9 + $0xac4] ss:$16 sps:$4 sm:$0xff]  }
 0x14c   : > { %6709 = vmatprep.subr.bf16.mxu0 %v9795_v42  ;;  %7365 = vmatprep.subr.bf16.mxu1 %v9798_v43  ;;  %v9890_v42 = vld [vmem:[%s11108_s9 + $0xacc] ss:$16 sps:$4 sm:$0xff]   ;;  %v9885_v43 = vld [vmem:[%s11108_s9 + $0xac0] ss:$16 sps:$4 sm:$0xff]  }
 0x14f   : > { %6710 = vmatpush1.bf16.msra.mxu0 %v9793_v44  ;;  %7366 = vmatpush1.bf16.msra.mxu1 %v9796_v45  ;;  %v9888_v44 = vld [vmem:[%s11108_s9 + $0xac8] ss:$16 sps:$4 sm:$0xff]   ;;  %v9893_v45 = vld [vmem:[%s11108_s9 + $0xae4] ss:$16 sps:$4 sm:$0xff]  }
 0x150   : > { %6711 = vmatprep.subr.bf16.mxu0 %v9801_v46  ;;  %7367 = vmatprep.subr.bf16.mxu1 %v9804_v47  ;;  %v9896_v46 = vld [vmem:[%s11108_s9 + $0xaec] ss:$16 sps:$4 sm:$0xff]   ;;  %v9891_v47 = vld [vmem:[%s11108_s9 + $0xae0] ss:$16 sps:$4 sm:$0xff]  }
 0x153   : > { %6712 = vmatpush1.bf16.msra.mxu0 %v9799_v48  ;;  %7368 = vmatpush1.bf16.msra.mxu1 %v9802_v49  ;;  %v9894_v48 = vld [vmem:[%s11108_s9 + $0xae8] ss:$16 sps:$4 sm:$0xff]   ;;  %v9899_v49 = vld [vmem:[%s11108_s9 + $0xb04] ss:$16 sps:$4 sm:$0xff]  }
 0x154   : > { %6713 = vmatprep.subr.bf16.mxu0 %v9807_v50  ;;  %7369 = vmatprep.subr.bf16.mxu1 %v9810_v51  ;;  %v9902_v50 = vld [vmem:[%s11108_s9 + $0xb0c] ss:$16 sps:$4 sm:$0xff]   ;;  %v9897_v51 = vld [vmem:[%s11108_s9 + $0xb00] ss:$16 sps:$4 sm:$0xff]  }
 0x157   : > { %6714 = vmatpush1.bf16.msra.mxu0 %v9805_v52  ;;  %7370 = vmatpush1.bf16.msra.mxu1 %v9808_v53  ;;  %v9900_v52 = vld [vmem:[%s11108_s9 + $0xb08] ss:$16 sps:$4 sm:$0xff]   ;;  %v9905_v53 = vld [vmem:[%s11108_s9 + $0xb24] ss:$16 sps:$4 sm:$0xff]  }
 0x158   : > { %6715 = vmatprep.subr.bf16.mxu0 %v9813_v54  ;;  %7371 = vmatprep.subr.bf16.mxu1 %v9816_v55  ;;  %v9908_v54 = vld [vmem:[%s11108_s9 + $0xb2c] ss:$16 sps:$4 sm:$0xff]   ;;  %v9903_v55 = vld [vmem:[%s11108_s9 + $0xb20] ss:$16 sps:$4 sm:$0xff]  }
 0x15b   : > { %6716 = vmatpush1.bf16.msra.mxu0 %v9811_v56  ;;  %7372 = vmatpush1.bf16.msra.mxu1 %v9814_v57  ;;  %v9906_v56 = vld [vmem:[%s11108_s9 + $0xb28] ss:$16 sps:$4 sm:$0xff]   ;;  %v9911_v57 = vld [vmem:[%s11108_s9 + $0xb44] ss:$16 sps:$4 sm:$0xff]  }
 0x15c   : > { %6717 = vmatprep.subr.bf16.mxu0 %v9819_v58  ;;  %7373 = vmatprep.subr.bf16.mxu1 %v9822_v59  ;;  %v9914_v58 = vld [vmem:[%s11108_s9 + $0xb4c] ss:$16 sps:$4 sm:$0xff]   ;;  %v9909_v59 = vld [vmem:[%s11108_s9 + $0xb40] ss:$16 sps:$4 sm:$0xff]  }
 0x15f   : > { %6718 = vmatpush1.bf16.msra.mxu0 %v9817_v60  ;;  %7374 = vmatpush1.bf16.msra.mxu1 %v9820_v61  ;;  %v9912_v60 = vld [vmem:[%s11108_s9 + $0xb48] ss:$16 sps:$4 sm:$0xff]   ;;  %v9917_v61 = vld [vmem:[%s11108_s9 + $0xb64] ss:$16 sps:$4 sm:$0xff]  }
 0x160   : > { %6719 = vmatprep.subr.bf16.mxu0 %v9825_v62  ;;  %7375 = vmatprep.subr.bf16.mxu1 %v9828_v63  ;;  %v9920_v62 = vld [vmem:[%s11108_s9 + $0xb6c] ss:$16 sps:$4 sm:$0xff]   ;;  %v9915_v63 = vld [vmem:[%s11108_s9 + $0xb60] ss:$16 sps:$4 sm:$0xff]  }
 0x163   : > { %6720 = vmatpush1.bf16.msra.mxu0 %v9823_v0  ;;  %7376 = vmatpush1.bf16.msra.mxu1 %v9826_v1  ;;  %v9918_v0 = vld [vmem:[%s11108_s9 + $0xb68] ss:$16 sps:$4 sm:$0xff]   ;;  %v9923_v1 = vld [vmem:[%s11108_s9 + $0xb84] ss:$16 sps:$4 sm:$0xff]  }
 0x164   : > { %6721 = vmatprep.subr.bf16.mxu0 %v9831_v2  ;;  %7377 = vmatprep.subr.bf16.mxu1 %v9834_v3  ;;  %v9926_v2 = vld [vmem:[%s11108_s9 + $0xb8c] ss:$16 sps:$4 sm:$0xff]   ;;  %v9921_v3 = vld [vmem:[%s11108_s9 + $0xb80] ss:$16 sps:$4 sm:$0xff]  }
 0x167   : > { %6722 = vmatpush1.bf16.msra.mxu0 %v9829_v4  ;;  %7378 = vmatpush1.bf16.msra.mxu1 %v9832_v5  ;;  %v9924_v4 = vld [vmem:[%s11108_s9 + $0xb88] ss:$16 sps:$4 sm:$0xff]   ;;  %v9929_v5 = vld [vmem:[%s11108_s9 + $0xba4] ss:$16 sps:$4 sm:$0xff]  }
 0x168   : > { %6723 = vmatprep.subr.bf16.mxu0 %v9837_v6  ;;  %7379 = vmatprep.subr.bf16.mxu1 %v9840_v7  ;;  %v9932_v6 = vld [vmem:[%s11108_s9 + $0xbac] ss:$16 sps:$4 sm:$0xff]   ;;  %v9927_v7 = vld [vmem:[%s11108_s9 + $0xba0] ss:$16 sps:$4 sm:$0xff]  }
 0x16b   : > { %6724 = vmatpush1.bf16.msra.mxu0 %v9835_v8  ;;  %7380 = vmatpush1.bf16.msra.mxu1 %v9838_v9  ;;  %v9930_v8 = vld [vmem:[%s11108_s9 + $0xba8] ss:$16 sps:$4 sm:$0xff]   ;;  %v9935_v9 = vld [vmem:[%s11108_s9 + $0xbc4] ss:$16 sps:$4 sm:$0xff]  }
 0x16c   : > { %6725 = vmatprep.subr.bf16.mxu0 %v9843_v10  ;;  %7381 = vmatprep.subr.bf16.mxu1 %v9846_v12  ;;  %v9938_v10 = vld [vmem:[%s11108_s9 + $0xbcc] ss:$16 sps:$4 sm:$0xff]   ;;  %v9933_v12 = vld [vmem:[%s11108_s9 + $0xbc0] ss:$16 sps:$4 sm:$0xff]  }
 0x16f   : > { %6726 = vmatpush1.bf16.msra.mxu0 %v9841_v13  ;;  %7382 = vmatpush1.bf16.msra.mxu1 %v9844_v15  ;;  %v9936_v13 = vld [vmem:[%s11108_s9 + $0xbc8] ss:$16 sps:$4 sm:$0xff]   ;;  %v9941_v15 = vld [vmem:[%s11108_s9 + $0xbe4] ss:$16 sps:$4 sm:$0xff]  }
 0x170   : > { %6736 = vmatprep.subr.bf16.mxu0 %v9851_v16  ;;  %7392 = vmatprep.subr.bf16.mxu1 %v9854_v11  ;;  %v9944_v16 = vld [vmem:[%s11108_s9 + $0xbec] ss:$16 sps:$4 sm:$0xff]   ;;  %v9939_v11 = vld [vmem:[%s11108_s9 + $0xbe0] ss:$16 sps:$4 sm:$0xff]  }
 0x172   : > { %6728 = vmatmul.mubr.bf16.vlgmr.msra.gmra.mrb[0].mxu0 %v8140_v19  ;;  %7384 = vmatmul.mubr.bf16.vlgmr.msra.gmra.mrb[0].mxu1 %v8140_v19  ;;  %v9942_v19 = vld [vmem:[%s11108_s9 + $0xbe8] ss:$16 sps:$4 sm:$0xff]  }
 0x173   : > { %6737 = vmatpush1.bf16.msra.mxu0 %v9849_v20  ;;  %7393 = vmatpush1.bf16.msra.mxu1 %v9852_v14  ;;  %v9949_v20 = vld [vmem:[%s11108_s9 + $0xc04] ss:$16 sps:$4 sm:$0xff]   ;;  %v9952_v14 = vld [vmem:[%s11108_s9 + $0xc0c] ss:$16 sps:$4 sm:$0xff]  }
 0x174   : > { %6738 = vmatprep.subr.bf16.mxu0 %v9857_v21  ;;  %7394 = vmatprep.subr.bf16.mxu1 %v9860_v22  ;;  %v11545_v21 = vld [vmem:[%s11166_s6 + $0x30] sm:$0xff]  ;;  %v8142_v22 = vcombine.low %v11474_v18, %v11474_v18 }
 0x175   : > { %6768 = vmatprep.mubr.bf16.mxu0 %v8143_v23  ;;  %7424 = vmatprep.mubr.bf16.mxu1 %v8143_v23  ;;  %v9947_v23 = vld [vmem:[%s11108_s9 + $0xc00] ss:$16 sps:$4 sm:$0xff]  }
 0x176   : > { %v9953_v18 = vld [vmem:[%s11108_s9 + $0xc20] ss:$16 sps:$4 sm:$0xff]  }
 0x177   : > { %6739 = vmatpush1.bf16.msra.mxu0 %v9855_v17  ;;  %7395 = vmatpush1.bf16.msra.mxu1 %v9858_v24  ;;  %v9950_v17 = vld [vmem:[%s11108_s9 + $0xc08] ss:$16 sps:$4 sm:$0xff]   ;;  %v9955_v24 = vld [vmem:[%s11108_s9 + $0xc24] ss:$16 sps:$4 sm:$0xff]  }
 0x178   : > { %6740 = vmatprep.subr.bf16.mxu0 %v9863_v25  ;;  %7396 = vmatprep.subr.bf16.mxu1 %v9866_v26  ;;  %v9958_v25 = vld [vmem:[%s11108_s9 + $0xc2c] ss:$16 sps:$4 sm:$0xff]   ;;  %v8145_v26 = vcombine.high %v11545_v21, %v11545_v21 }
 0x17b   : > { %6741 = vmatpush1.bf16.msra.mxu0 %v9861_v27  ;;  %7397 = vmatpush1.bf16.msra.mxu1 %v9864_v28  ;;  %v9956_v27 = vld [vmem:[%s11108_s9 + $0xc28] ss:$16 sps:$4 sm:$0xff]   ;;  %v9961_v28 = vld [vmem:[%s11108_s9 + $0xc44] ss:$16 sps:$4 sm:$0xff]  }
 0x17c   : > { %6742 = vmatprep.subr.bf16.mxu0 %v9869_v29  ;;  %7398 = vmatprep.subr.bf16.mxu1 %v9872_v30  ;;  %v9964_v29 = vld [vmem:[%s11108_s9 + $0xc4c] ss:$16 sps:$4 sm:$0xff]   ;;  %v9959_v30 = vld [vmem:[%s11108_s9 + $0xc40] ss:$16 sps:$4 sm:$0xff]  }
 0x17f   : > { %6743 = vmatpush1.bf16.msra.mxu0 %v9867_v31  ;;  %7399 = vmatpush1.bf16.msra.mxu1 %v9870_v32  ;;  %v9962_v31 = vld [vmem:[%s11108_s9 + $0xc48] ss:$16 sps:$4 sm:$0xff]   ;;  %v9967_v32 = vld [vmem:[%s11108_s9 + $0xc64] ss:$16 sps:$4 sm:$0xff]  }
 0x180   : > { %6744 = vmatprep.subr.bf16.mxu0 %v9875_v33  ;;  %7400 = vmatprep.subr.bf16.mxu1 %v9878_v34  ;;  %v9970_v33 = vld [vmem:[%s11108_s9 + $0xc6c] ss:$16 sps:$4 sm:$0xff]   ;;  %v9965_v34 = vld [vmem:[%s11108_s9 + $0xc60] ss:$16 sps:$4 sm:$0xff]  }
 0x183   : > { %6745 = vmatpush1.bf16.msra.mxu0 %v9873_v35  ;;  %7401 = vmatpush1.bf16.msra.mxu1 %v9876_v36  ;;  %v9968_v35 = vld [vmem:[%s11108_s9 + $0xc68] ss:$16 sps:$4 sm:$0xff]   ;;  %v9973_v36 = vld [vmem:[%s11108_s9 + $0xc84] ss:$16 sps:$4 sm:$0xff]  }
 0x184   : > { %6746 = vmatprep.subr.bf16.mxu0 %v9881_v37  ;;  %7402 = vmatprep.subr.bf16.mxu1 %v9884_v38  ;;  %v9976_v37 = vld [vmem:[%s11108_s9 + $0xc8c] ss:$16 sps:$4 sm:$0xff]   ;;  %v9971_v38 = vld [vmem:[%s11108_s9 + $0xc80] ss:$16 sps:$4 sm:$0xff]  }
 0x187   : > { %6747 = vmatpush1.bf16.msra.mxu0 %v9879_v39  ;;  %7403 = vmatpush1.bf16.msra.mxu1 %v9882_v40  ;;  %v9974_v39 = vld [vmem:[%s11108_s9 + $0xc88] ss:$16 sps:$4 sm:$0xff]   ;;  %v9979_v40 = vld [vmem:[%s11108_s9 + $0xca4] ss:$16 sps:$4 sm:$0xff]  }
 0x188   : > { %6748 = vmatprep.subr.bf16.mxu0 %v9887_v41  ;;  %7404 = vmatprep.subr.bf16.mxu1 %v9890_v42  ;;  %v9982_v41 = vld [vmem:[%s11108_s9 + $0xcac] ss:$16 sps:$4 sm:$0xff]   ;;  %v9977_v42 = vld [vmem:[%s11108_s9 + $0xca0] ss:$16 sps:$4 sm:$0xff]  }
 0x18b   : > { %6749 = vmatpush1.bf16.msra.mxu0 %v9885_v43  ;;  %7405 = vmatpush1.bf16.msra.mxu1 %v9888_v44  ;;  %v9980_v43 = vld [vmem:[%s11108_s9 + $0xca8] ss:$16 sps:$4 sm:$0xff]   ;;  %v9985_v44 = vld [vmem:[%s11108_s9 + $0xcc4] ss:$16 sps:$4 sm:$0xff]  }
 0x18c   : > { %6750 = vmatprep.subr.bf16.mxu0 %v9893_v45  ;;  %7406 = vmatprep.subr.bf16.mxu1 %v9896_v46  ;;  %v9988_v45 = vld [vmem:[%s11108_s9 + $0xccc] ss:$16 sps:$4 sm:$0xff]   ;;  %v9983_v46 = vld [vmem:[%s11108_s9 + $0xcc0] ss:$16 sps:$4 sm:$0xff]  }
 0x18f   : > { %6751 = vmatpush1.bf16.msra.mxu0 %v9891_v47  ;;  %7407 = vmatpush1.bf16.msra.mxu1 %v9894_v48  ;;  %v9986_v47 = vld [vmem:[%s11108_s9 + $0xcc8] ss:$16 sps:$4 sm:$0xff]   ;;  %v9991_v48 = vld [vmem:[%s11108_s9 + $0xce4] ss:$16 sps:$4 sm:$0xff]  }
 0x190   : > { %6752 = vmatprep.subr.bf16.mxu0 %v9899_v49  ;;  %7408 = vmatprep.subr.bf16.mxu1 %v9902_v50  ;;  %v9994_v49 = vld [vmem:[%s11108_s9 + $0xcec] ss:$16 sps:$4 sm:$0xff]   ;;  %v9989_v50 = vld [vmem:[%s11108_s9 + $0xce0] ss:$16 sps:$4 sm:$0xff]  }
 0x193   : > { %6753 = vmatpush1.bf16.msra.mxu0 %v9897_v51  ;;  %7409 = vmatpush1.bf16.msra.mxu1 %v9900_v52  ;;  %v9992_v51 = vld [vmem:[%s11108_s9 + $0xce8] ss:$16 sps:$4 sm:$0xff]   ;;  %v9997_v52 = vld [vmem:[%s11108_s9 + $0xd04] ss:$16 sps:$4 sm:$0xff]  }
 0x194   : > { %6754 = vmatprep.subr.bf16.mxu0 %v9905_v53  ;;  %7410 = vmatprep.subr.bf16.mxu1 %v9908_v54  ;;  %v10000_v53 = vld [vmem:[%s11108_s9 + $0xd0c] ss:$16 sps:$4 sm:$0xff]   ;;  %v9995_v54 = vld [vmem:[%s11108_s9 + $0xd00] ss:$16 sps:$4 sm:$0xff]  }
 0x197   : > { %6755 = vmatpush1.bf16.msra.mxu0 %v9903_v55  ;;  %7411 = vmatpush1.bf16.msra.mxu1 %v9906_v56  ;;  %v9998_v55 = vld [vmem:[%s11108_s9 + $0xd08] ss:$16 sps:$4 sm:$0xff]   ;;  %v10003_v56 = vld [vmem:[%s11108_s9 + $0xd24] ss:$16 sps:$4 sm:$0xff]  }
 0x198   : > { %6756 = vmatprep.subr.bf16.mxu0 %v9911_v57  ;;  %7412 = vmatprep.subr.bf16.mxu1 %v9914_v58  ;;  %v10006_v57 = vld [vmem:[%s11108_s9 + $0xd2c] ss:$16 sps:$4 sm:$0xff]   ;;  %v10001_v58 = vld [vmem:[%s11108_s9 + $0xd20] ss:$16 sps:$4 sm:$0xff]  }
 0x19b   : > { %6757 = vmatpush1.bf16.msra.mxu0 %v9909_v59  ;;  %7413 = vmatpush1.bf16.msra.mxu1 %v9912_v60  ;;  %v10004_v59 = vld [vmem:[%s11108_s9 + $0xd28] ss:$16 sps:$4 sm:$0xff]   ;;  %v10009_v60 = vld [vmem:[%s11108_s9 + $0xd44] ss:$16 sps:$4 sm:$0xff]  }
 0x19c   : > { %6758 = vmatprep.subr.bf16.mxu0 %v9917_v61  ;;  %7414 = vmatprep.subr.bf16.mxu1 %v9920_v62  ;;  %v10012_v61 = vld [vmem:[%s11108_s9 + $0xd4c] ss:$16 sps:$4 sm:$0xff]   ;;  %v10007_v62 = vld [vmem:[%s11108_s9 + $0xd40] ss:$16 sps:$4 sm:$0xff]  }
 0x19f   : > { %6759 = vmatpush1.bf16.msra.mxu0 %v9915_v63  ;;  %7415 = vmatpush1.bf16.msra.mxu1 %v9918_v0  ;;  %v10010_v63 = vld [vmem:[%s11108_s9 + $0xd48] ss:$16 sps:$4 sm:$0xff]   ;;  %v10015_v0 = vld [vmem:[%s11108_s9 + $0xd64] ss:$16 sps:$4 sm:$0xff]  }
 0x1a0   : > { %6760 = vmatprep.subr.bf16.mxu0 %v9923_v1  ;;  %7416 = vmatprep.subr.bf16.mxu1 %v9926_v2  ;;  %v10018_v1 = vld [vmem:[%s11108_s9 + $0xd6c] ss:$16 sps:$4 sm:$0xff]   ;;  %v10013_v2 = vld [vmem:[%s11108_s9 + $0xd60] ss:$16 sps:$4 sm:$0xff]  }
 0x1a3   : > { %6761 = vmatpush1.bf16.msra.mxu0 %v9921_v3  ;;  %7417 = vmatpush1.bf16.msra.mxu1 %v9924_v4  ;;  %v10016_v3 = vld [vmem:[%s11108_s9 + $0xd68] ss:$16 sps:$4 sm:$0xff]   ;;  %v10021_v4 = vld [vmem:[%s11108_s9 + $0xd84] ss:$16 sps:$4 sm:$0xff]  }
 0x1a4   : > { %6762 = vmatprep.subr.bf16.mxu0 %v9929_v5  ;;  %7418 = vmatprep.subr.bf16.mxu1 %v9932_v6  ;;  %v10024_v5 = vld [vmem:[%s11108_s9 + $0xd8c] ss:$16 sps:$4 sm:$0xff]   ;;  %v10019_v6 = vld [vmem:[%s11108_s9 + $0xd80] ss:$16 sps:$4 sm:$0xff]  }
 0x1a7   : > { %6763 = vmatpush1.bf16.msra.mxu0 %v9927_v7  ;;  %7419 = vmatpush1.bf16.msra.mxu1 %v9930_v8  ;;  %v10022_v7 = vld [vmem:[%s11108_s9 + $0xd88] ss:$16 sps:$4 sm:$0xff]   ;;  %v10027_v8 = vld [vmem:[%s11108_s9 + $0xda4] ss:$16 sps:$4 sm:$0xff]  }
 0x1a8   : > { %6764 = vmatprep.subr.bf16.mxu0 %v9935_v9  ;;  %7420 = vmatprep.subr.bf16.mxu1 %v9938_v10  ;;  %v10030_v9 = vld [vmem:[%s11108_s9 + $0xdac] ss:$16 sps:$4 sm:$0xff]   ;;  %v10025_v10 = vld [vmem:[%s11108_s9 + $0xda0] ss:$16 sps:$4 sm:$0xff]  }
 0x1ab   : > { %6765 = vmatpush1.bf16.msra.mxu0 %v9933_v12  ;;  %7421 = vmatpush1.bf16.msra.mxu1 %v9936_v13  ;;  %v10028_v12 = vld [vmem:[%s11108_s9 + $0xda8] ss:$16 sps:$4 sm:$0xff]   ;;  %v10033_v13 = vld [vmem:[%s11108_s9 + $0xdc4] ss:$16 sps:$4 sm:$0xff]  }
 0x1ac   : > { %6766 = vmatprep.subr.bf16.mxu0 %v9941_v15  ;;  %7422 = vmatprep.subr.bf16.mxu1 %v9944_v16  ;;  %v10036_v15 = vld [vmem:[%s11108_s9 + $0xdcc] ss:$16 sps:$4 sm:$0xff]   ;;  %v10031_v16 = vld [vmem:[%s11108_s9 + $0xdc0] ss:$16 sps:$4 sm:$0xff]  }
 0x1af   : > { %6767 = vmatpush1.bf16.msra.mxu0 %v9939_v11  ;;  %7423 = vmatpush1.bf16.msra.mxu1 %v9942_v19  ;;  %v10034_v11 = vld [vmem:[%s11108_s9 + $0xdc8] ss:$16 sps:$4 sm:$0xff]   ;;  %v10039_v19 = vld [vmem:[%s11108_s9 + $0xde4] ss:$16 sps:$4 sm:$0xff]  }
 0x1b0   : > { %6777 = vmatprep.subr.bf16.mxu0 %v9949_v20  ;;  %7433 = vmatprep.subr.bf16.mxu1 %v9952_v14  ;;  %v10042_v20 = vld [vmem:[%s11108_s9 + $0xdec] ss:$16 sps:$4 sm:$0xff]   ;;  %v10037_v14 = vld [vmem:[%s11108_s9 + $0xde0] ss:$16 sps:$4 sm:$0xff]  }
 0x1b2   : > { %6769 = vmatmul.mubr.bf16.vlgmr.msra.gmra.mrb[0].mxu0 %v8142_v22  ;;  %7425 = vmatmul.mubr.bf16.vlgmr.msra.gmra.mrb[0].mxu1 %v8142_v22  ;;  %v10040_v22 = vld [vmem:[%s11108_s9 + $0xde8] ss:$16 sps:$4 sm:$0xff]  }
 0x1b3   : > { %6778 = vmatpush1.bf16.msra.mxu0 %v9947_v23  ;;  %7434 = vmatpush1.bf16.msra.mxu1 %v9950_v17  ;;  %v10047_v23 = vld [vmem:[%s11108_s9 + $0xe04] ss:$16 sps:$4 sm:$0xff]   ;;  %v10050_v17 = vld [vmem:[%s11108_s9 + $0xe0c] ss:$16 sps:$4 sm:$0xff]  }
 0x1b4   : > { %6779 = vmatprep.subr.bf16.mxu0 %v9955_v24  ;;  %7435 = vmatprep.subr.bf16.mxu1 %v9958_v25  ;;  %v11616_v24 = vld [vmem:[%s11166_s6 + $0x38] sm:$0xff]  ;;  %v8144_v25 = vcombine.low %v11545_v21, %v11545_v21  ;;  %v10051_v21 = vld [vmem:[%s11108_s9 + $0xe20] ss:$16 sps:$4 sm:$0xff]  }
 0x1b5   : > { %6809 = vmatprep.mubr.bf16.mxu0 %v8145_v26  ;;  %7465 = vmatprep.mubr.bf16.mxu1 %v8145_v26  ;;  %v10045_v26 = vld [vmem:[%s11108_s9 + $0xe00] ss:$16 sps:$4 sm:$0xff]  }
 0x1b7   : > { %6780 = vmatpush1.bf16.msra.mxu0 %v9953_v18  ;;  %7436 = vmatpush1.bf16.msra.mxu1 %v9956_v27  ;;  %v10048_v18 = vld [vmem:[%s11108_s9 + $0xe08] ss:$16 sps:$4 sm:$0xff]   ;;  %v10053_v27 = vld [vmem:[%s11108_s9 + $0xe24] ss:$16 sps:$4 sm:$0xff]  }
 0x1b8   : > { %6781 = vmatprep.subr.bf16.mxu0 %v9961_v28  ;;  %7437 = vmatprep.subr.bf16.mxu1 %v9964_v29  ;;  %v10056_v28 = vld [vmem:[%s11108_s9 + $0xe2c] ss:$16 sps:$4 sm:$0xff]   ;;  %v8147_v29 = vcombine.high %v11616_v24, %v11616_v24 }
 0x1bb   : > { %6782 = vmatpush1.bf16.msra.mxu0 %v9959_v30  ;;  %7438 = vmatpush1.bf16.msra.mxu1 %v9962_v31  ;;  %v10054_v30 = vld [vmem:[%s11108_s9 + $0xe28] ss:$16 sps:$4 sm:$0xff]   ;;  %v10059_v31 = vld [vmem:[%s11108_s9 + $0xe44] ss:$16 sps:$4 sm:$0xff]  }
 0x1bc   : > { %6783 = vmatprep.subr.bf16.mxu0 %v9967_v32  ;;  %7439 = vmatprep.subr.bf16.mxu1 %v9970_v33  ;;  %v10062_v32 = vld [vmem:[%s11108_s9 + $0xe4c] ss:$16 sps:$4 sm:$0xff]   ;;  %v10057_v33 = vld [vmem:[%s11108_s9 + $0xe40] ss:$16 sps:$4 sm:$0xff]  }
 0x1bf   : > { %6784 = vmatpush1.bf16.msra.mxu0 %v9965_v34  ;;  %7440 = vmatpush1.bf16.msra.mxu1 %v9968_v35  ;;  %v10060_v34 = vld [vmem:[%s11108_s9 + $0xe48] ss:$16 sps:$4 sm:$0xff]   ;;  %v10065_v35 = vld [vmem:[%s11108_s9 + $0xe64] ss:$16 sps:$4 sm:$0xff]  }
 0x1c0   : > { %6785 = vmatprep.subr.bf16.mxu0 %v9973_v36  ;;  %7441 = vmatprep.subr.bf16.mxu1 %v9976_v37  ;;  %v10068_v36 = vld [vmem:[%s11108_s9 + $0xe6c] ss:$16 sps:$4 sm:$0xff]   ;;  %v10063_v37 = vld [vmem:[%s11108_s9 + $0xe60] ss:$16 sps:$4 sm:$0xff]  }
 0x1c3   : > { %6786 = vmatpush1.bf16.msra.mxu0 %v9971_v38  ;;  %7442 = vmatpush1.bf16.msra.mxu1 %v9974_v39  ;;  %v10066_v38 = vld [vmem:[%s11108_s9 + $0xe68] ss:$16 sps:$4 sm:$0xff]   ;;  %v10071_v39 = vld [vmem:[%s11108_s9 + $0xe84] ss:$16 sps:$4 sm:$0xff]  }
 0x1c4   : > { %6787 = vmatprep.subr.bf16.mxu0 %v9979_v40  ;;  %7443 = vmatprep.subr.bf16.mxu1 %v9982_v41  ;;  %v10074_v40 = vld [vmem:[%s11108_s9 + $0xe8c] ss:$16 sps:$4 sm:$0xff]   ;;  %v10069_v41 = vld [vmem:[%s11108_s9 + $0xe80] ss:$16 sps:$4 sm:$0xff]  }
 0x1c7   : > { %6788 = vmatpush1.bf16.msra.mxu0 %v9977_v42  ;;  %7444 = vmatpush1.bf16.msra.mxu1 %v9980_v43  ;;  %v10072_v42 = vld [vmem:[%s11108_s9 + $0xe88] ss:$16 sps:$4 sm:$0xff]   ;;  %v10077_v43 = vld [vmem:[%s11108_s9 + $0xea4] ss:$16 sps:$4 sm:$0xff]  }
 0x1c8   : > { %6789 = vmatprep.subr.bf16.mxu0 %v9985_v44  ;;  %7445 = vmatprep.subr.bf16.mxu1 %v9988_v45  ;;  %v10080_v44 = vld [vmem:[%s11108_s9 + $0xeac] ss:$16 sps:$4 sm:$0xff]   ;;  %v10075_v45 = vld [vmem:[%s11108_s9 + $0xea0] ss:$16 sps:$4 sm:$0xff]  }
 0x1cb   : > { %6790 = vmatpush1.bf16.msra.mxu0 %v9983_v46  ;;  %7446 = vmatpush1.bf16.msra.mxu1 %v9986_v47  ;;  %v10078_v46 = vld [vmem:[%s11108_s9 + $0xea8] ss:$16 sps:$4 sm:$0xff]   ;;  %v10083_v47 = vld [vmem:[%s11108_s9 + $0xec4] ss:$16 sps:$4 sm:$0xff]  }
 0x1cc   : > { %6791 = vmatprep.subr.bf16.mxu0 %v9991_v48  ;;  %7447 = vmatprep.subr.bf16.mxu1 %v9994_v49  ;;  %v10086_v48 = vld [vmem:[%s11108_s9 + $0xecc] ss:$16 sps:$4 sm:$0xff]   ;;  %v10081_v49 = vld [vmem:[%s11108_s9 + $0xec0] ss:$16 sps:$4 sm:$0xff]  }
 0x1cf   : > { %6792 = vmatpush1.bf16.msra.mxu0 %v9989_v50  ;;  %7448 = vmatpush1.bf16.msra.mxu1 %v9992_v51  ;;  %v10084_v50 = vld [vmem:[%s11108_s9 + $0xec8] ss:$16 sps:$4 sm:$0xff]   ;;  %v10089_v51 = vld [vmem:[%s11108_s9 + $0xee4] ss:$16 sps:$4 sm:$0xff]  }
 0x1d0   : > { %6793 = vmatprep.subr.bf16.mxu0 %v9997_v52  ;;  %7449 = vmatprep.subr.bf16.mxu1 %v10000_v53  ;;  %v10092_v52 = vld [vmem:[%s11108_s9 + $0xeec] ss:$16 sps:$4 sm:$0xff]   ;;  %v10087_v53 = vld [vmem:[%s11108_s9 + $0xee0] ss:$16 sps:$4 sm:$0xff]  }
 0x1d3   : > { %6794 = vmatpush1.bf16.msra.mxu0 %v9995_v54  ;;  %7450 = vmatpush1.bf16.msra.mxu1 %v9998_v55  ;;  %v10090_v54 = vld [vmem:[%s11108_s9 + $0xee8] ss:$16 sps:$4 sm:$0xff]   ;;  %v10095_v55 = vld [vmem:[%s11108_s9 + $0xf04] ss:$16 sps:$4 sm:$0xff]  }
 0x1d4   : > { %6795 = vmatprep.subr.bf16.mxu0 %v10003_v56  ;;  %7451 = vmatprep.subr.bf16.mxu1 %v10006_v57  ;;  %v10098_v56 = vld [vmem:[%s11108_s9 + $0xf0c] ss:$16 sps:$4 sm:$0xff]   ;;  %v10093_v57 = vld [vmem:[%s11108_s9 + $0xf00] ss:$16 sps:$4 sm:$0xff]  }
 0x1d7   : > { %6796 = vmatpush1.bf16.msra.mxu0 %v10001_v58  ;;  %7452 = vmatpush1.bf16.msra.mxu1 %v10004_v59  ;;  %v10096_v58 = vld [vmem:[%s11108_s9 + $0xf08] ss:$16 sps:$4 sm:$0xff]   ;;  %v10101_v59 = vld [vmem:[%s11108_s9 + $0xf24] ss:$16 sps:$4 sm:$0xff]  }
 0x1d8   : > { %6797 = vmatprep.subr.bf16.mxu0 %v10009_v60  ;;  %7453 = vmatprep.subr.bf16.mxu1 %v10012_v61  ;;  %v10104_v60 = vld [vmem:[%s11108_s9 + $0xf2c] ss:$16 sps:$4 sm:$0xff]   ;;  %v10099_v61 = vld [vmem:[%s11108_s9 + $0xf20] ss:$16 sps:$4 sm:$0xff]  }
 0x1db   : > { %6798 = vmatpush1.bf16.msra.mxu0 %v10007_v62  ;;  %7454 = vmatpush1.bf16.msra.mxu1 %v10010_v63  ;;  %v10102_v62 = vld [vmem:[%s11108_s9 + $0xf28] ss:$16 sps:$4 sm:$0xff]   ;;  %v10107_v63 = vld [vmem:[%s11108_s9 + $0xf44] ss:$16 sps:$4 sm:$0xff]  }
 0x1dc   : > { %6799 = vmatprep.subr.bf16.mxu0 %v10015_v0  ;;  %7455 = vmatprep.subr.bf16.mxu1 %v10018_v1  ;;  %v10110_v0 = vld [vmem:[%s11108_s9 + $0xf4c] ss:$16 sps:$4 sm:$0xff]   ;;  %v10105_v1 = vld [vmem:[%s11108_s9 + $0xf40] ss:$16 sps:$4 sm:$0xff]  }
 0x1df   : > { %6800 = vmatpush1.bf16.msra.mxu0 %v10013_v2  ;;  %7456 = vmatpush1.bf16.msra.mxu1 %v10016_v3  ;;  %v10108_v2 = vld [vmem:[%s11108_s9 + $0xf48] ss:$16 sps:$4 sm:$0xff]   ;;  %v10113_v3 = vld [vmem:[%s11108_s9 + $0xf64] ss:$16 sps:$4 sm:$0xff]  }
 0x1e0   : > { %6801 = vmatprep.subr.bf16.mxu0 %v10021_v4  ;;  %7457 = vmatprep.subr.bf16.mxu1 %v10024_v5  ;;  %v10116_v4 = vld [vmem:[%s11108_s9 + $0xf6c] ss:$16 sps:$4 sm:$0xff]   ;;  %v10111_v5 = vld [vmem:[%s11108_s9 + $0xf60] ss:$16 sps:$4 sm:$0xff]  }
 0x1e3   : > { %6802 = vmatpush1.bf16.msra.mxu0 %v10019_v6  ;;  %7458 = vmatpush1.bf16.msra.mxu1 %v10022_v7  ;;  %v10114_v6 = vld [vmem:[%s11108_s9 + $0xf68] ss:$16 sps:$4 sm:$0xff]   ;;  %v10119_v7 = vld [vmem:[%s11108_s9 + $0xf84] ss:$16 sps:$4 sm:$0xff]  }
 0x1e4   : > { %6803 = vmatprep.subr.bf16.mxu0 %v10027_v8  ;;  %7459 = vmatprep.subr.bf16.mxu1 %v10030_v9  ;;  %v10122_v8 = vld [vmem:[%s11108_s9 + $0xf8c] ss:$16 sps:$4 sm:$0xff]   ;;  %v10117_v9 = vld [vmem:[%s11108_s9 + $0xf80] ss:$16 sps:$4 sm:$0xff]  }
 0x1e7   : > { %6804 = vmatpush1.bf16.msra.mxu0 %v10025_v10  ;;  %7460 = vmatpush1.bf16.msra.mxu1 %v10028_v12  ;;  %v10120_v10 = vld [vmem:[%s11108_s9 + $0xf88] ss:$16 sps:$4 sm:$0xff]   ;;  %v10125_v12 = vld [vmem:[%s11108_s9 + $0xfa4] ss:$16 sps:$4 sm:$0xff]  }
 0x1e8   : > { %6805 = vmatprep.subr.bf16.mxu0 %v10033_v13  ;;  %7461 = vmatprep.subr.bf16.mxu1 %v10036_v15  ;;  %v10128_v13 = vld [vmem:[%s11108_s9 + $0xfac] ss:$16 sps:$4 sm:$0xff]   ;;  %v10123_v15 = vld [vmem:[%s11108_s9 + $0xfa0] ss:$16 sps:$4 sm:$0xff]  }
 0x1eb   : > { %6806 = vmatpush1.bf16.msra.mxu0 %v10031_v16  ;;  %7462 = vmatpush1.bf16.msra.mxu1 %v10034_v11  ;;  %v10126_v16 = vld [vmem:[%s11108_s9 + $0xfa8] ss:$16 sps:$4 sm:$0xff]   ;;  %v10131_v11 = vld [vmem:[%s11108_s9 + $0xfc4] ss:$16 sps:$4 sm:$0xff]  }
 0x1ec   : > { %6807 = vmatprep.subr.bf16.mxu0 %v10039_v19  ;;  %7463 = vmatprep.subr.bf16.mxu1 %v10042_v20  ;;  %v10134_v19 = vld [vmem:[%s11108_s9 + $0xfcc] ss:$16 sps:$4 sm:$0xff]   ;;  %v10129_v20 = vld [vmem:[%s11108_s9 + $0xfc0] ss:$16 sps:$4 sm:$0xff]  }
 0x1ef   : > { %6808 = vmatpush1.bf16.msra.mxu0 %v10037_v14  ;;  %7464 = vmatpush1.bf16.msra.mxu1 %v10040_v22  ;;  %v10132_v14 = vld [vmem:[%s11108_s9 + $0xfc8] ss:$16 sps:$4 sm:$0xff]   ;;  %v10137_v22 = vld [vmem:[%s11108_s9 + $0xfe4] ss:$16 sps:$4 sm:$0xff]  }
 0x1f0   : > { %6818 = vmatprep.subr.bf16.mxu0 %v10047_v23  ;;  %7474 = vmatprep.subr.bf16.mxu1 %v10050_v17  ;;  %v10140_v23 = vld [vmem:[%s11108_s9 + $0xfec] ss:$16 sps:$4 sm:$0xff]   ;;  %v10135_v17 = vld [vmem:[%s11108_s9 + $0xfe0] ss:$16 sps:$4 sm:$0xff]  }
 0x1f2   : > { %6810 = vmatmul.mubr.bf16.vlgmr.msra.gmra.mrb[0].mxu0 %v8144_v25  ;;  %7466 = vmatmul.mubr.bf16.vlgmr.msra.gmra.mrb[0].mxu1 %v8144_v25  ;;  %v10138_v25 = vld [vmem:[%s11108_s9 + $0xfe8] ss:$16 sps:$4 sm:$0xff]  }
 0x1f3   : > { %6819 = vmatpush1.bf16.msra.mxu0 %v10045_v26  ;;  %7475 = vmatpush1.bf16.msra.mxu1 %v10048_v18  ;;  %v10145_v26 = vld [vmem:[%s11108_s9 + $0x1004] ss:$16 sps:$4 sm:$0xff]   ;;  %v10148_v18 = vld [vmem:[%s11108_s9 + $0x100c] ss:$16 sps:$4 sm:$0xff]  }
 0x1f4   : > { %6820 = vmatprep.subr.bf16.mxu0 %v10053_v27  ;;  %7476 = vmatprep.subr.bf16.mxu1 %v10056_v28  ;;  %v11687_v27 = vld [vmem:[%s11166_s6 + $0x40] sm:$0xff]  ;;  %v8146_v28 = vcombine.low %v11616_v24, %v11616_v24 }
 0x1f5   : > { %6850 = vmatprep.mubr.bf16.mxu0 %v8147_v29  ;;  %7506 = vmatprep.mubr.bf16.mxu1 %v8147_v29  ;;  %v10143_v29 = vld [vmem:[%s11108_s9 + $0x1000] ss:$16 sps:$4 sm:$0xff]  }
 0x1f6   : > { %v10149_v24 = vld [vmem:[%s11108_s9 + $0x1020] ss:$16 sps:$4 sm:$0xff]  }
 0x1f7   : > { %6821 = vmatpush1.bf16.msra.mxu0 %v10051_v21  ;;  %7477 = vmatpush1.bf16.msra.mxu1 %v10054_v30  ;;  %v10146_v21 = vld [vmem:[%s11108_s9 + $0x1008] ss:$16 sps:$4 sm:$0xff]   ;;  %v10151_v30 = vld [vmem:[%s11108_s9 + $0x1024] ss:$16 sps:$4 sm:$0xff]  }
 0x1f8   : > { %6822 = vmatprep.subr.bf16.mxu0 %v10059_v31  ;;  %7478 = vmatprep.subr.bf16.mxu1 %v10062_v32  ;;  %v10154_v31 = vld [vmem:[%s11108_s9 + $0x102c] ss:$16 sps:$4 sm:$0xff]   ;;  %v8149_v32 = vcombine.high %v11687_v27, %v11687_v27 }
 0x1fb   : > { %6823 = vmatpush1.bf16.msra.mxu0 %v10057_v33  ;;  %7479 = vmatpush1.bf16.msra.mxu1 %v10060_v34  ;;  %v10152_v33 = vld [vmem:[%s11108_s9 + $0x1028] ss:$16 sps:$4 sm:$0xff]   ;;  %v10157_v34 = vld [vmem:[%s11108_s9 + $0x1044] ss:$16 sps:$4 sm:$0xff]  }
 0x1fc   : > { %6824 = vmatprep.subr.bf16.mxu0 %v10065_v35  ;;  %7480 = vmatprep.subr.bf16.mxu1 %v10068_v36  ;;  %v10160_v35 = vld [vmem:[%s11108_s9 + $0x104c] ss:$16 sps:$4 sm:$0xff]   ;;  %v10155_v36 = vld [vmem:[%s11108_s9 + $0x1040] ss:$16 sps:$4 sm:$0xff]  }
 0x1ff   : > { %6825 = vmatpush1.bf16.msra.mxu0 %v10063_v37  ;;  %7481 = vmatpush1.bf16.msra.mxu1 %v10066_v38  ;;  %v10158_v37 = vld [vmem:[%s11108_s9 + $0x1048] ss:$16 sps:$4 sm:$0xff]   ;;  %v10163_v38 = vld [vmem:[%s11108_s9 + $0x1064] ss:$16 sps:$4 sm:$0xff]  }
 0x200   : > { %6826 = vmatprep.subr.bf16.mxu0 %v10071_v39  ;;  %7482 = vmatprep.subr.bf16.mxu1 %v10074_v40  ;;  %v10166_v39 = vld [vmem:[%s11108_s9 + $0x106c] ss:$16 sps:$4 sm:$0xff]   ;;  %v10161_v40 = vld [vmem:[%s11108_s9 + $0x1060] ss:$16 sps:$4 sm:$0xff]  }
 0x203   : > { %6827 = vmatpush1.bf16.msra.mxu0 %v10069_v41  ;;  %7483 = vmatpush1.bf16.msra.mxu1 %v10072_v42  ;;  %v10164_v41 = vld [vmem:[%s11108_s9 + $0x1068] ss:$16 sps:$4 sm:$0xff]   ;;  %v10169_v42 = vld [vmem:[%s11108_s9 + $0x1084] ss:$16 sps:$4 sm:$0xff]  }
 0x204   : > { %6828 = vmatprep.subr.bf16.mxu0 %v10077_v43  ;;  %7484 = vmatprep.subr.bf16.mxu1 %v10080_v44  ;;  %v10172_v43 = vld [vmem:[%s11108_s9 + $0x108c] ss:$16 sps:$4 sm:$0xff]   ;;  %v10167_v44 = vld [vmem:[%s11108_s9 + $0x1080] ss:$16 sps:$4 sm:$0xff]  }
 0x207   : > { %6829 = vmatpush1.bf16.msra.mxu0 %v10075_v45  ;;  %7485 = vmatpush1.bf16.msra.mxu1 %v10078_v46  ;;  %v10170_v45 = vld [vmem:[%s11108_s9 + $0x1088] ss:$16 sps:$4 sm:$0xff]   ;;  %v10175_v46 = vld [vmem:[%s11108_s9 + $0x10a4] ss:$16 sps:$4 sm:$0xff]  }
 0x208   : > { %6830 = vmatprep.subr.bf16.mxu0 %v10083_v47  ;;  %7486 = vmatprep.subr.bf16.mxu1 %v10086_v48  ;;  %v10178_v47 = vld [vmem:[%s11108_s9 + $0x10ac] ss:$16 sps:$4 sm:$0xff]   ;;  %v10173_v48 = vld [vmem:[%s11108_s9 + $0x10a0] ss:$16 sps:$4 sm:$0xff]  }
 0x20b   : > { %6831 = vmatpush1.bf16.msra.mxu0 %v10081_v49  ;;  %7487 = vmatpush1.bf16.msra.mxu1 %v10084_v50  ;;  %v10176_v49 = vld [vmem:[%s11108_s9 + $0x10a8] ss:$16 sps:$4 sm:$0xff]   ;;  %v10181_v50 = vld [vmem:[%s11108_s9 + $0x10c4] ss:$16 sps:$4 sm:$0xff]  }
 0x20c   : > { %6832 = vmatprep.subr.bf16.mxu0 %v10089_v51  ;;  %7488 = vmatprep.subr.bf16.mxu1 %v10092_v52  ;;  %v10184_v51 = vld [vmem:[%s11108_s9 + $0x10cc] ss:$16 sps:$4 sm:$0xff]   ;;  %v10179_v52 = vld [vmem:[%s11108_s9 + $0x10c0] ss:$16 sps:$4 sm:$0xff]  }
 0x20f   : > { %6833 = vmatpush1.bf16.msra.mxu0 %v10087_v53  ;;  %7489 = vmatpush1.bf16.msra.mxu1 %v10090_v54  ;;  %v10182_v53 = vld [vmem:[%s11108_s9 + $0x10c8] ss:$16 sps:$4 sm:$0xff]   ;;  %v10187_v54 = vld [vmem:[%s11108_s9 + $0x10e4] ss:$16 sps:$4 sm:$0xff]  }
 0x210   : > { %6834 = vmatprep.subr.bf16.mxu0 %v10095_v55  ;;  %7490 = vmatprep.subr.bf16.mxu1 %v10098_v56  ;;  %v10190_v55 = vld [vmem:[%s11108_s9 + $0x10ec] ss:$16 sps:$4 sm:$0xff]   ;;  %v10185_v56 = vld [vmem:[%s11108_s9 + $0x10e0] ss:$16 sps:$4 sm:$0xff]  }
 0x213   : > { %6835 = vmatpush1.bf16.msra.mxu0 %v10093_v57  ;;  %7491 = vmatpush1.bf16.msra.mxu1 %v10096_v58  ;;  %v10188_v57 = vld [vmem:[%s11108_s9 + $0x10e8] ss:$16 sps:$4 sm:$0xff]   ;;  %v10193_v58 = vld [vmem:[%s11108_s9 + $0x1104] ss:$16 sps:$4 sm:$0xff]  }
 0x214   : > { %6836 = vmatprep.subr.bf16.mxu0 %v10101_v59  ;;  %7492 = vmatprep.subr.bf16.mxu1 %v10104_v60  ;;  %v10196_v59 = vld [vmem:[%s11108_s9 + $0x110c] ss:$16 sps:$4 sm:$0xff]   ;;  %v10191_v60 = vld [vmem:[%s11108_s9 + $0x1100] ss:$16 sps:$4 sm:$0xff]  }
 0x217   : > { %6837 = vmatpush1.bf16.msra.mxu0 %v10099_v61  ;;  %7493 = vmatpush1.bf16.msra.mxu1 %v10102_v62  ;;  %v10194_v61 = vld [vmem:[%s11108_s9 + $0x1108] ss:$16 sps:$4 sm:$0xff]   ;;  %v10199_v62 = vld [vmem:[%s11108_s9 + $0x1124] ss:$16 sps:$4 sm:$0xff]  }
 0x218   : > { %6838 = vmatprep.subr.bf16.mxu0 %v10107_v63  ;;  %7494 = vmatprep.subr.bf16.mxu1 %v10110_v0  ;;  %v10202_v63 = vld [vmem:[%s11108_s9 + $0x112c] ss:$16 sps:$4 sm:$0xff]   ;;  %v10197_v0 = vld [vmem:[%s11108_s9 + $0x1120] ss:$16 sps:$4 sm:$0xff]  }
 0x21b   : > { %6839 = vmatpush1.bf16.msra.mxu0 %v10105_v1  ;;  %7495 = vmatpush1.bf16.msra.mxu1 %v10108_v2  ;;  %v10200_v1 = vld [vmem:[%s11108_s9 + $0x1128] ss:$16 sps:$4 sm:$0xff]   ;;  %v10205_v2 = vld [vmem:[%s11108_s9 + $0x1144] ss:$16 sps:$4 sm:$0xff]  }
 0x21c   : > { %6840 = vmatprep.subr.bf16.mxu0 %v10113_v3  ;;  %7496 = vmatprep.subr.bf16.mxu1 %v10116_v4  ;;  %v10208_v3 = vld [vmem:[%s11108_s9 + $0x114c] ss:$16 sps:$4 sm:$0xff]   ;;  %v10203_v4 = vld [vmem:[%s11108_s9 + $0x1140] ss:$16 sps:$4 sm:$0xff]  }
 0x21f   : > { %6841 = vmatpush1.bf16.msra.mxu0 %v10111_v5  ;;  %7497 = vmatpush1.bf16.msra.mxu1 %v10114_v6  ;;  %v10206_v5 = vld [vmem:[%s11108_s9 + $0x1148] ss:$16 sps:$4 sm:$0xff]   ;;  %v10211_v6 = vld [vmem:[%s11108_s9 + $0x1164] ss:$16 sps:$4 sm:$0xff]  }
 0x220   : > { %6842 = vmatprep.subr.bf16.mxu0 %v10119_v7  ;;  %7498 = vmatprep.subr.bf16.mxu1 %v10122_v8  ;;  %v10214_v7 = vld [vmem:[%s11108_s9 + $0x116c] ss:$16 sps:$4 sm:$0xff]   ;;  %v10209_v8 = vld [vmem:[%s11108_s9 + $0x1160] ss:$16 sps:$4 sm:$0xff]  }
 0x223   : > { %6843 = vmatpush1.bf16.msra.mxu0 %v10117_v9  ;;  %7499 = vmatpush1.bf16.msra.mxu1 %v10120_v10  ;;  %v10212_v9 = vld [vmem:[%s11108_s9 + $0x1168] ss:$16 sps:$4 sm:$0xff]   ;;  %v10217_v10 = vld [vmem:[%s11108_s9 + $0x1184] ss:$16 sps:$4 sm:$0xff]  }
 0x224   : > { %6844 = vmatprep.subr.bf16.mxu0 %v10125_v12  ;;  %7500 = vmatprep.subr.bf16.mxu1 %v10128_v13  ;;  %v10220_v12 = vld [vmem:[%s11108_s9 + $0x118c] ss:$16 sps:$4 sm:$0xff]   ;;  %v10215_v13 = vld [vmem:[%s11108_s9 + $0x1180] ss:$16 sps:$4 sm:$0xff]  }
 0x227   : > { %6845 = vmatpush1.bf16.msra.mxu0 %v10123_v15  ;;  %7501 = vmatpush1.bf16.msra.mxu1 %v10126_v16  ;;  %v10218_v15 = vld [vmem:[%s11108_s9 + $0x1188] ss:$16 sps:$4 sm:$0xff]   ;;  %v10223_v16 = vld [vmem:[%s11108_s9 + $0x11a4] ss:$16 sps:$4 sm:$0xff]  }
 0x228   : > { %6846 = vmatprep.subr.bf16.mxu0 %v10131_v11  ;;  %7502 = vmatprep.subr.bf16.mxu1 %v10134_v19  ;;  %v10226_v11 = vld [vmem:[%s11108_s9 + $0x11ac] ss:$16 sps:$4 sm:$0xff]   ;;  %v10221_v19 = vld [vmem:[%s11108_s9 + $0x11a0] ss:$16 sps:$4 sm:$0xff]  }
 0x22b   : > { %6847 = vmatpush1.bf16.msra.mxu0 %v10129_v20  ;;  %7503 = vmatpush1.bf16.msra.mxu1 %v10132_v14  ;;  %v10224_v20 = vld [vmem:[%s11108_s9 + $0x11a8] ss:$16 sps:$4 sm:$0xff]   ;;  %v10229_v14 = vld [vmem:[%s11108_s9 + $0x11c4] ss:$16 sps:$4 sm:$0xff]  }
 0x22c   : > { %6848 = vmatprep.subr.bf16.mxu0 %v10137_v22  ;;  %7504 = vmatprep.subr.bf16.mxu1 %v10140_v23  ;;  %v10232_v22 = vld [vmem:[%s11108_s9 + $0x11cc] ss:$16 sps:$4 sm:$0xff]   ;;  %v10227_v23 = vld [vmem:[%s11108_s9 + $0x11c0] ss:$16 sps:$4 sm:$0xff]  }
 0x22f   : > { %6849 = vmatpush1.bf16.msra.mxu0 %v10135_v17  ;;  %7505 = vmatpush1.bf16.msra.mxu1 %v10138_v25  ;;  %v10230_v17 = vld [vmem:[%s11108_s9 + $0x11c8] ss:$16 sps:$4 sm:$0xff]   ;;  %v10235_v25 = vld [vmem:[%s11108_s9 + $0x11e4] ss:$16 sps:$4 sm:$0xff]  }
 0x230   : > { %6859 = vmatprep.subr.bf16.mxu0 %v10145_v26  ;;  %7515 = vmatprep.subr.bf16.mxu1 %v10148_v18  ;;  %v10238_v26 = vld [vmem:[%s11108_s9 + $0x11ec] ss:$16 sps:$4 sm:$0xff]   ;;  %v10233_v18 = vld [vmem:[%s11108_s9 + $0x11e0] ss:$16 sps:$4 sm:$0xff]  }
 0x232   : > { %6851 = vmatmul.mubr.bf16.vlgmr.msra.gmra.mrb[0].mxu0 %v8146_v28  ;;  %7507 = vmatmul.mubr.bf16.vlgmr.msra.gmra.mrb[0].mxu1 %v8146_v28  ;;  %v10236_v28 = vld [vmem:[%s11108_s9 + $0x11e8] ss:$16 sps:$4 sm:$0xff]  }
 0x233   : > { %6860 = vmatpush1.bf16.msra.mxu0 %v10143_v29  ;;  %7516 = vmatpush1.bf16.msra.mxu1 %v10146_v21  ;;  %v10243_v29 = vld [vmem:[%s11108_s9 + $0x1204] ss:$16 sps:$4 sm:$0xff]   ;;  %v10246_v21 = vld [vmem:[%s11108_s9 + $0x120c] ss:$16 sps:$4 sm:$0xff]  }
 0x234   : > { %6861 = vmatprep.subr.bf16.mxu0 %v10151_v30  ;;  %7517 = vmatprep.subr.bf16.mxu1 %v10154_v31  ;;  %v11758_v30 = vld [vmem:[%s11166_s6 + $0x48] sm:$0xff]  ;;  %v8148_v31 = vcombine.low %v11687_v27, %v11687_v27  ;;  %v10247_v27 = vld [vmem:[%s11108_s9 + $0x1220] ss:$16 sps:$4 sm:$0xff]  }
 0x235   : > { %6891 = vmatprep.mubr.bf16.mxu0 %v8149_v32  ;;  %7547 = vmatprep.mubr.bf16.mxu1 %v8149_v32  ;;  %v10241_v32 = vld [vmem:[%s11108_s9 + $0x1200] ss:$16 sps:$4 sm:$0xff]  }
 0x237   : > { %6862 = vmatpush1.bf16.msra.mxu0 %v10149_v24  ;;  %7518 = vmatpush1.bf16.msra.mxu1 %v10152_v33  ;;  %v10244_v24 = vld [vmem:[%s11108_s9 + $0x1208] ss:$16 sps:$4 sm:$0xff]   ;;  %v10249_v33 = vld [vmem:[%s11108_s9 + $0x1224] ss:$16 sps:$4 sm:$0xff]  }
 0x238   : > { %6863 = vmatprep.subr.bf16.mxu0 %v10157_v34  ;;  %7519 = vmatprep.subr.bf16.mxu1 %v10160_v35  ;;  %v10252_v34 = vld [vmem:[%s11108_s9 + $0x122c] ss:$16 sps:$4 sm:$0xff]   ;;  %v8151_v35 = vcombine.high %v11758_v30, %v11758_v30 }
 0x23b   : > { %6864 = vmatpush1.bf16.msra.mxu0 %v10155_v36  ;;  %7520 = vmatpush1.bf16.msra.mxu1 %v10158_v37  ;;  %v10250_v36 = vld [vmem:[%s11108_s9 + $0x1228] ss:$16 sps:$4 sm:$0xff]   ;;  %v10255_v37 = vld [vmem:[%s11108_s9 + $0x1244] ss:$16 sps:$4 sm:$0xff]  }
 0x23c   : > { %6865 = vmatprep.subr.bf16.mxu0 %v10163_v38  ;;  %7521 = vmatprep.subr.bf16.mxu1 %v10166_v39  ;;  %v10258_v38 = vld [vmem:[%s11108_s9 + $0x124c] ss:$16 sps:$4 sm:$0xff]   ;;  %v10253_v39 = vld [vmem:[%s11108_s9 + $0x1240] ss:$16 sps:$4 sm:$0xff]  }
 0x23f   : > { %6866 = vmatpush1.bf16.msra.mxu0 %v10161_v40  ;;  %7522 = vmatpush1.bf16.msra.mxu1 %v10164_v41  ;;  %v10256_v40 = vld [vmem:[%s11108_s9 + $0x1248] ss:$16 sps:$4 sm:$0xff]   ;;  %v10261_v41 = vld [vmem:[%s11108_s9 + $0x1264] ss:$16 sps:$4 sm:$0xff]  }
 0x240   : > { %6867 = vmatprep.subr.bf16.mxu0 %v10169_v42  ;;  %7523 = vmatprep.subr.bf16.mxu1 %v10172_v43  ;;  %v10264_v42 = vld [vmem:[%s11108_s9 + $0x126c] ss:$16 sps:$4 sm:$0xff]   ;;  %v10259_v43 = vld [vmem:[%s11108_s9 + $0x1260] ss:$16 sps:$4 sm:$0xff]  }
 0x243   : > { %6868 = vmatpush1.bf16.msra.mxu0 %v10167_v44  ;;  %7524 = vmatpush1.bf16.msra.mxu1 %v10170_v45  ;;  %v10262_v44 = vld [vmem:[%s11108_s9 + $0x1268] ss:$16 sps:$4 sm:$0xff]   ;;  %v10267_v45 = vld [vmem:[%s11108_s9 + $0x1284] ss:$16 sps:$4 sm:$0xff]  }
 0x244   : > { %6869 = vmatprep.subr.bf16.mxu0 %v10175_v46  ;;  %7525 = vmatprep.subr.bf16.mxu1 %v10178_v47  ;;  %v10270_v46 = vld [vmem:[%s11108_s9 + $0x128c] ss:$16 sps:$4 sm:$0xff]   ;;  %v10265_v47 = vld [vmem:[%s11108_s9 + $0x1280] ss:$16 sps:$4 sm:$0xff]  }
 0x247   : > { %6870 = vmatpush1.bf16.msra.mxu0 %v10173_v48  ;;  %7526 = vmatpush1.bf16.msra.mxu1 %v10176_v49  ;;  %v10268_v48 = vld [vmem:[%s11108_s9 + $0x1288] ss:$16 sps:$4 sm:$0xff]   ;;  %v10273_v49 = vld [vmem:[%s11108_s9 + $0x12a4] ss:$16 sps:$4 sm:$0xff]  }
 0x248   : > { %6871 = vmatprep.subr.bf16.mxu0 %v10181_v50  ;;  %7527 = vmatprep.subr.bf16.mxu1 %v10184_v51  ;;  %v10276_v50 = vld [vmem:[%s11108_s9 + $0x12ac] ss:$16 sps:$4 sm:$0xff]   ;;  %v10271_v51 = vld [vmem:[%s11108_s9 + $0x12a0] ss:$16 sps:$4 sm:$0xff]  }
 0x24b   : > { %6872 = vmatpush1.bf16.msra.mxu0 %v10179_v52  ;;  %7528 = vmatpush1.bf16.msra.mxu1 %v10182_v53  ;;  %v10274_v52 = vld [vmem:[%s11108_s9 + $0x12a8] ss:$16 sps:$4 sm:$0xff]   ;;  %v10279_v53 = vld [vmem:[%s11108_s9 + $0x12c4] ss:$16 sps:$4 sm:$0xff]  }
 0x24c   : > { %6873 = vmatprep.subr.bf16.mxu0 %v10187_v54  ;;  %7529 = vmatprep.subr.bf16.mxu1 %v10190_v55  ;;  %v10282_v54 = vld [vmem:[%s11108_s9 + $0x12cc] ss:$16 sps:$4 sm:$0xff]   ;;  %v10277_v55 = vld [vmem:[%s11108_s9 + $0x12c0] ss:$16 sps:$4 sm:$0xff]  }
 0x24f   : > { %6874 = vmatpush1.bf16.msra.mxu0 %v10185_v56  ;;  %7530 = vmatpush1.bf16.msra.mxu1 %v10188_v57  ;;  %v10280_v56 = vld [vmem:[%s11108_s9 + $0x12c8] ss:$16 sps:$4 sm:$0xff]   ;;  %v10285_v57 = vld [vmem:[%s11108_s9 + $0x12e4] ss:$16 sps:$4 sm:$0xff]  }
 0x250   : > { %6875 = vmatprep.subr.bf16.mxu0 %v10193_v58  ;;  %7531 = vmatprep.subr.bf16.mxu1 %v10196_v59  ;;  %v10288_v58 = vld [vmem:[%s11108_s9 + $0x12ec] ss:$16 sps:$4 sm:$0xff]   ;;  %v10283_v59 = vld [vmem:[%s11108_s9 + $0x12e0] ss:$16 sps:$4 sm:$0xff]  }
 0x253   : > { %6876 = vmatpush1.bf16.msra.mxu0 %v10191_v60  ;;  %7532 = vmatpush1.bf16.msra.mxu1 %v10194_v61  ;;  %v10286_v60 = vld [vmem:[%s11108_s9 + $0x12e8] ss:$16 sps:$4 sm:$0xff]   ;;  %v10291_v61 = vld [vmem:[%s11108_s9 + $0x1304] ss:$16 sps:$4 sm:$0xff]  }
 0x254   : > { %6877 = vmatprep.subr.bf16.mxu0 %v10199_v62  ;;  %7533 = vmatprep.subr.bf16.mxu1 %v10202_v63  ;;  %v10294_v62 = vld [vmem:[%s11108_s9 + $0x130c] ss:$16 sps:$4 sm:$0xff]   ;;  %v10289_v63 = vld [vmem:[%s11108_s9 + $0x1300] ss:$16 sps:$4 sm:$0xff]  }
 0x257   : > { %6878 = vmatpush1.bf16.msra.mxu0 %v10197_v0  ;;  %7534 = vmatpush1.bf16.msra.mxu1 %v10200_v1  ;;  %v10292_v0 = vld [vmem:[%s11108_s9 + $0x1308] ss:$16 sps:$4 sm:$0xff]   ;;  %v10297_v1 = vld [vmem:[%s11108_s9 + $0x1324] ss:$16 sps:$4 sm:$0xff]  }
 0x258   : > { %6879 = vmatprep.subr.bf16.mxu0 %v10205_v2  ;;  %7535 = vmatprep.subr.bf16.mxu1 %v10208_v3  ;;  %v10300_v2 = vld [vmem:[%s11108_s9 + $0x132c] ss:$16 sps:$4 sm:$0xff]   ;;  %v10295_v3 = vld [vmem:[%s11108_s9 + $0x1320] ss:$16 sps:$4 sm:$0xff]  }
 0x25b   : > { %6880 = vmatpush1.bf16.msra.mxu0 %v10203_v4  ;;  %7536 = vmatpush1.bf16.msra.mxu1 %v10206_v5  ;;  %v10298_v4 = vld [vmem:[%s11108_s9 + $0x1328] ss:$16 sps:$4 sm:$0xff]   ;;  %v10303_v5 = vld [vmem:[%s11108_s9 + $0x1344] ss:$16 sps:$4 sm:$0xff]  }
 0x25c   : > { %6881 = vmatprep.subr.bf16.mxu0 %v10211_v6  ;;  %7537 = vmatprep.subr.bf16.mxu1 %v10214_v7  ;;  %v10306_v6 = vld [vmem:[%s11108_s9 + $0x134c] ss:$16 sps:$4 sm:$0xff]   ;;  %v10301_v7 = vld [vmem:[%s11108_s9 + $0x1340] ss:$16 sps:$4 sm:$0xff]  }
 0x25f   : > { %6882 = vmatpush1.bf16.msra.mxu0 %v10209_v8  ;;  %7538 = vmatpush1.bf16.msra.mxu1 %v10212_v9  ;;  %v10304_v8 = vld [vmem:[%s11108_s9 + $0x1348] ss:$16 sps:$4 sm:$0xff]   ;;  %v10309_v9 = vld [vmem:[%s11108_s9 + $0x1364] ss:$16 sps:$4 sm:$0xff]  }
 0x260   : > { %6883 = vmatprep.subr.bf16.mxu0 %v10217_v10  ;;  %7539 = vmatprep.subr.bf16.mxu1 %v10220_v12  ;;  %v10312_v10 = vld [vmem:[%s11108_s9 + $0x136c] ss:$16 sps:$4 sm:$0xff]   ;;  %v10307_v12 = vld [vmem:[%s11108_s9 + $0x1360] ss:$16 sps:$4 sm:$0xff]  }
 0x263   : > { %6884 = vmatpush1.bf16.msra.mxu0 %v10215_v13  ;;  %7540 = vmatpush1.bf16.msra.mxu1 %v10218_v15  ;;  %v10310_v13 = vld [vmem:[%s11108_s9 + $0x1368] ss:$16 sps:$4 sm:$0xff]   ;;  %v10315_v15 = vld [vmem:[%s11108_s9 + $0x1384] ss:$16 sps:$4 sm:$0xff]  }
 0x264   : > { %6885 = vmatprep.subr.bf16.mxu0 %v10223_v16  ;;  %7541 = vmatprep.subr.bf16.mxu1 %v10226_v11  ;;  %v10318_v16 = vld [vmem:[%s11108_s9 + $0x138c] ss:$16 sps:$4 sm:$0xff]   ;;  %v10313_v11 = vld [vmem:[%s11108_s9 + $0x1380] ss:$16 sps:$4 sm:$0xff]  }
 0x267   : > { %6886 = vmatpush1.bf16.msra.mxu0 %v10221_v19  ;;  %7542 = vmatpush1.bf16.msra.mxu1 %v10224_v20  ;;  %v10316_v19 = vld [vmem:[%s11108_s9 + $0x1388] ss:$16 sps:$4 sm:$0xff]   ;;  %v10321_v20 = vld [vmem:[%s11108_s9 + $0x13a4] ss:$16 sps:$4 sm:$0xff]  }
 0x268   : > { %6887 = vmatprep.subr.bf16.mxu0 %v10229_v14  ;;  %7543 = vmatprep.subr.bf16.mxu1 %v10232_v22  ;;  %v10324_v14 = vld [vmem:[%s11108_s9 + $0x13ac] ss:$16 sps:$4 sm:$0xff]   ;;  %v10319_v22 = vld [vmem:[%s11108_s9 + $0x13a0] ss:$16 sps:$4 sm:$0xff]  }
 0x26b   : > { %6888 = vmatpush1.bf16.msra.mxu0 %v10227_v23  ;;  %7544 = vmatpush1.bf16.msra.mxu1 %v10230_v17  ;;  %v10322_v23 = vld [vmem:[%s11108_s9 + $0x13a8] ss:$16 sps:$4 sm:$0xff]   ;;  %v10327_v17 = vld [vmem:[%s11108_s9 + $0x13c4] ss:$16 sps:$4 sm:$0xff]  }
 0x26c   : > { %6889 = vmatprep.subr.bf16.mxu0 %v10235_v25  ;;  %7545 = vmatprep.subr.bf16.mxu1 %v10238_v26  ;;  %v10330_v25 = vld [vmem:[%s11108_s9 + $0x13cc] ss:$16 sps:$4 sm:$0xff]   ;;  %v10325_v26 = vld [vmem:[%s11108_s9 + $0x13c0] ss:$16 sps:$4 sm:$0xff]  }
 0x26f   : > { %6890 = vmatpush1.bf16.msra.mxu0 %v10233_v18  ;;  %7546 = vmatpush1.bf16.msra.mxu1 %v10236_v28  ;;  %v10328_v18 = vld [vmem:[%s11108_s9 + $0x13c8] ss:$16 sps:$4 sm:$0xff]   ;;  %v10333_v28 = vld [vmem:[%s11108_s9 + $0x13e4] ss:$16 sps:$4 sm:$0xff]  }
 0x270   : > { %6900 = vmatprep.subr.bf16.mxu0 %v10243_v29  ;;  %7556 = vmatprep.subr.bf16.mxu1 %v10246_v21  ;;  %v10336_v29 = vld [vmem:[%s11108_s9 + $0x13ec] ss:$16 sps:$4 sm:$0xff]   ;;  %v10331_v21 = vld [vmem:[%s11108_s9 + $0x13e0] ss:$16 sps:$4 sm:$0xff]  }
 0x272   : > { %6892 = vmatmul.mubr.bf16.vlgmr.msra.gmra.mrb[0].mxu0 %v8148_v31  ;;  %7548 = vmatmul.mubr.bf16.vlgmr.msra.gmra.mrb[0].mxu1 %v8148_v31  ;;  %v10334_v31 = vld [vmem:[%s11108_s9 + $0x13e8] ss:$16 sps:$4 sm:$0xff]  }
 0x273   : > { %6901 = vmatpush1.bf16.msra.mxu0 %v10241_v32  ;;  %7557 = vmatpush1.bf16.msra.mxu1 %v10244_v24  ;;  %v10341_v32 = vld [vmem:[%s11108_s9 + $0x1404] ss:$16 sps:$4 sm:$0xff]   ;;  %v10344_v24 = vld [vmem:[%s11108_s9 + $0x140c] ss:$16 sps:$4 sm:$0xff]  }
 0x274   : > { %6902 = vmatprep.subr.bf16.mxu0 %v10249_v33  ;;  %7558 = vmatprep.subr.bf16.mxu1 %v10252_v34  ;;  %v8150_v33 = vcombine.low %v11758_v30, %v11758_v30  ;;  %v11831_v34 = vld [vmem:[%s11166_s6 + $0x50] sm:$0xff] }
 0x275   : > { %6932 = vmatprep.mubr.bf16.mxu0 %v8151_v35  ;;  %7588 = vmatprep.mubr.bf16.mxu1 %v8151_v35  ;;  %v10339_v35 = vld [vmem:[%s11108_s9 + $0x1400] ss:$16 sps:$4 sm:$0xff]  }
 0x276   : > { %v10345_v30 = vld [vmem:[%s11108_s9 + $0x1420] ss:$16 sps:$4 sm:$0xff]  }
 0x277   : > { %6903 = vmatpush1.bf16.msra.mxu0 %v10247_v27  ;;  %7559 = vmatpush1.bf16.msra.mxu1 %v10250_v36  ;;  %v10342_v27 = vld [vmem:[%s11108_s9 + $0x1408] ss:$16 sps:$4 sm:$0xff]   ;;  %v10347_v36 = vld [vmem:[%s11108_s9 + $0x1424] ss:$16 sps:$4 sm:$0xff]  }
 0x278   : > { %6904 = vmatprep.subr.bf16.mxu0 %v10255_v37  ;;  %7560 = vmatprep.subr.bf16.mxu1 %v10258_v38  ;;  %v10350_v37 = vld [vmem:[%s11108_s9 + $0x142c] ss:$16 sps:$4 sm:$0xff]   ;;  %v8153_v38 = vcombine.high %v11831_v34, %v11831_v34 }
 0x27b   : > { %6905 = vmatpush1.bf16.msra.mxu0 %v10253_v39  ;;  %7561 = vmatpush1.bf16.msra.mxu1 %v10256_v40  ;;  %v10348_v39 = vld [vmem:[%s11108_s9 + $0x1428] ss:$16 sps:$4 sm:$0xff]   ;;  %v10353_v40 = vld [vmem:[%s11108_s9 + $0x1444] ss:$16 sps:$4 sm:$0xff]  }
 0x27c   : > { %6906 = vmatprep.subr.bf16.mxu0 %v10261_v41  ;;  %7562 = vmatprep.subr.bf16.mxu1 %v10264_v42  ;;  %v10356_v41 = vld [vmem:[%s11108_s9 + $0x144c] ss:$16 sps:$4 sm:$0xff]   ;;  %v10351_v42 = vld [vmem:[%s11108_s9 + $0x1440] ss:$16 sps:$4 sm:$0xff]  }
 0x27f   : > { %6907 = vmatpush1.bf16.msra.mxu0 %v10259_v43  ;;  %7563 = vmatpush1.bf16.msra.mxu1 %v10262_v44  ;;  %v10354_v43 = vld [vmem:[%s11108_s9 + $0x1448] ss:$16 sps:$4 sm:$0xff]   ;;  %v10359_v44 = vld [vmem:[%s11108_s9 + $0x1464] ss:$16 sps:$4 sm:$0xff]  }
 0x280   : > { %6908 = vmatprep.subr.bf16.mxu0 %v10267_v45  ;;  %7564 = vmatprep.subr.bf16.mxu1 %v10270_v46  ;;  %v10362_v45 = vld [vmem:[%s11108_s9 + $0x146c] ss:$16 sps:$4 sm:$0xff]   ;;  %v10357_v46 = vld [vmem:[%s11108_s9 + $0x1460] ss:$16 sps:$4 sm:$0xff]  }
 0x283   : > { %6909 = vmatpush1.bf16.msra.mxu0 %v10265_v47  ;;  %7565 = vmatpush1.bf16.msra.mxu1 %v10268_v48  ;;  %v10360_v47 = vld [vmem:[%s11108_s9 + $0x1468] ss:$16 sps:$4 sm:$0xff]   ;;  %v10365_v48 = vld [vmem:[%s11108_s9 + $0x1484] ss:$16 sps:$4 sm:$0xff]  }
 0x284   : > { %6910 = vmatprep.subr.bf16.mxu0 %v10273_v49  ;;  %7566 = vmatprep.subr.bf16.mxu1 %v10276_v50  ;;  %v10368_v49 = vld [vmem:[%s11108_s9 + $0x148c] ss:$16 sps:$4 sm:$0xff]   ;;  %v10363_v50 = vld [vmem:[%s11108_s9 + $0x1480] ss:$16 sps:$4 sm:$0xff]  }
 0x287   : > { %6911 = vmatpush1.bf16.msra.mxu0 %v10271_v51  ;;  %7567 = vmatpush1.bf16.msra.mxu1 %v10274_v52  ;;  %v10366_v51 = vld [vmem:[%s11108_s9 + $0x1488] ss:$16 sps:$4 sm:$0xff]   ;;  %v10371_v52 = vld [vmem:[%s11108_s9 + $0x14a4] ss:$16 sps:$4 sm:$0xff]  }
 0x288   : > { %6912 = vmatprep.subr.bf16.mxu0 %v10279_v53  ;;  %7568 = vmatprep.subr.bf16.mxu1 %v10282_v54  ;;  %v10374_v53 = vld [vmem:[%s11108_s9 + $0x14ac] ss:$16 sps:$4 sm:$0xff]   ;;  %v10369_v54 = vld [vmem:[%s11108_s9 + $0x14a0] ss:$16 sps:$4 sm:$0xff]  }
 0x28b   : > { %6913 = vmatpush1.bf16.msra.mxu0 %v10277_v55  ;;  %7569 = vmatpush1.bf16.msra.mxu1 %v10280_v56  ;;  %v10372_v55 = vld [vmem:[%s11108_s9 + $0x14a8] ss:$16 sps:$4 sm:$0xff]   ;;  %v10377_v56 = vld [vmem:[%s11108_s9 + $0x14c4] ss:$16 sps:$4 sm:$0xff]  }
 0x28c   : > { %6914 = vmatprep.subr.bf16.mxu0 %v10285_v57  ;;  %7570 = vmatprep.subr.bf16.mxu1 %v10288_v58  ;;  %v10380_v57 = vld [vmem:[%s11108_s9 + $0x14cc] ss:$16 sps:$4 sm:$0xff]   ;;  %v10375_v58 = vld [vmem:[%s11108_s9 + $0x14c0] ss:$16 sps:$4 sm:$0xff]  }
 0x28f   : > { %6915 = vmatpush1.bf16.msra.mxu0 %v10283_v59  ;;  %7571 = vmatpush1.bf16.msra.mxu1 %v10286_v60  ;;  %v10378_v59 = vld [vmem:[%s11108_s9 + $0x14c8] ss:$16 sps:$4 sm:$0xff]   ;;  %v10383_v60 = vld [vmem:[%s11108_s9 + $0x14e4] ss:$16 sps:$4 sm:$0xff]  }
 0x290   : > { %6916 = vmatprep.subr.bf16.mxu0 %v10291_v61  ;;  %7572 = vmatprep.subr.bf16.mxu1 %v10294_v62  ;;  %v10386_v61 = vld [vmem:[%s11108_s9 + $0x14ec] ss:$16 sps:$4 sm:$0xff]   ;;  %v10381_v62 = vld [vmem:[%s11108_s9 + $0x14e0] ss:$16 sps:$4 sm:$0xff]  }
 0x293   : > { %6917 = vmatpush1.bf16.msra.mxu0 %v10289_v63  ;;  %7573 = vmatpush1.bf16.msra.mxu1 %v10292_v0  ;;  %v10384_v63 = vld [vmem:[%s11108_s9 + $0x14e8] ss:$16 sps:$4 sm:$0xff]   ;;  %v10389_v0 = vld [vmem:[%s11108_s9 + $0x1504] ss:$16 sps:$4 sm:$0xff]  }
 0x294   : > { %6918 = vmatprep.subr.bf16.mxu0 %v10297_v1  ;;  %7574 = vmatprep.subr.bf16.mxu1 %v10300_v2  ;;  %v10392_v1 = vld [vmem:[%s11108_s9 + $0x150c] ss:$16 sps:$4 sm:$0xff]   ;;  %v10387_v2 = vld [vmem:[%s11108_s9 + $0x1500] ss:$16 sps:$4 sm:$0xff]  }
 0x297   : > { %6919 = vmatpush1.bf16.msra.mxu0 %v10295_v3  ;;  %7575 = vmatpush1.bf16.msra.mxu1 %v10298_v4  ;;  %v10390_v3 = vld [vmem:[%s11108_s9 + $0x1508] ss:$16 sps:$4 sm:$0xff]   ;;  %v10395_v4 = vld [vmem:[%s11108_s9 + $0x1524] ss:$16 sps:$4 sm:$0xff]  }
 0x298   : > { %6920 = vmatprep.subr.bf16.mxu0 %v10303_v5  ;;  %7576 = vmatprep.subr.bf16.mxu1 %v10306_v6  ;;  %v10398_v5 = vld [vmem:[%s11108_s9 + $0x152c] ss:$16 sps:$4 sm:$0xff]   ;;  %v10393_v6 = vld [vmem:[%s11108_s9 + $0x1520] ss:$16 sps:$4 sm:$0xff]  }
 0x29b   : > { %6921 = vmatpush1.bf16.msra.mxu0 %v10301_v7  ;;  %7577 = vmatpush1.bf16.msra.mxu1 %v10304_v8  ;;  %v10396_v7 = vld [vmem:[%s11108_s9 + $0x1528] ss:$16 sps:$4 sm:$0xff]   ;;  %v10401_v8 = vld [vmem:[%s11108_s9 + $0x1544] ss:$16 sps:$4 sm:$0xff]  }
 0x29c   : > { %6922 = vmatprep.subr.bf16.mxu0 %v10309_v9  ;;  %7578 = vmatprep.subr.bf16.mxu1 %v10312_v10  ;;  %v10404_v9 = vld [vmem:[%s11108_s9 + $0x154c] ss:$16 sps:$4 sm:$0xff]   ;;  %v10399_v10 = vld [vmem:[%s11108_s9 + $0x1540] ss:$16 sps:$4 sm:$0xff]  }
 0x29f   : > { %6923 = vmatpush1.bf16.msra.mxu0 %v10307_v12  ;;  %7579 = vmatpush1.bf16.msra.mxu1 %v10310_v13  ;;  %v10402_v12 = vld [vmem:[%s11108_s9 + $0x1548] ss:$16 sps:$4 sm:$0xff]   ;;  %v10407_v13 = vld [vmem:[%s11108_s9 + $0x1564] ss:$16 sps:$4 sm:$0xff]  }
 0x2a0   : > { %6924 = vmatprep.subr.bf16.mxu0 %v10315_v15  ;;  %7580 = vmatprep.subr.bf16.mxu1 %v10318_v16  ;;  %v10410_v15 = vld [vmem:[%s11108_s9 + $0x156c] ss:$16 sps:$4 sm:$0xff]   ;;  %v10405_v16 = vld [vmem:[%s11108_s9 + $0x1560] ss:$16 sps:$4 sm:$0xff]  }
 0x2a3   : > { %6925 = vmatpush1.bf16.msra.mxu0 %v10313_v11  ;;  %7581 = vmatpush1.bf16.msra.mxu1 %v10316_v19  ;;  %v10408_v11 = vld [vmem:[%s11108_s9 + $0x1568] ss:$16 sps:$4 sm:$0xff]   ;;  %v10413_v19 = vld [vmem:[%s11108_s9 + $0x1584] ss:$16 sps:$4 sm:$0xff]  }
 0x2a4   : > { %6926 = vmatprep.subr.bf16.mxu0 %v10321_v20  ;;  %7582 = vmatprep.subr.bf16.mxu1 %v10324_v14  ;;  %v10416_v20 = vld [vmem:[%s11108_s9 + $0x158c] ss:$16 sps:$4 sm:$0xff]   ;;  %v10411_v14 = vld [vmem:[%s11108_s9 + $0x1580] ss:$16 sps:$4 sm:$0xff]  }
 0x2a7   : > { %6927 = vmatpush1.bf16.msra.mxu0 %v10319_v22  ;;  %7583 = vmatpush1.bf16.msra.mxu1 %v10322_v23  ;;  %v10414_v22 = vld [vmem:[%s11108_s9 + $0x1588] ss:$16 sps:$4 sm:$0xff]   ;;  %v10419_v23 = vld [vmem:[%s11108_s9 + $0x15a4] ss:$16 sps:$4 sm:$0xff]  }
 0x2a8   : > { %6928 = vmatprep.subr.bf16.mxu0 %v10327_v17  ;;  %7584 = vmatprep.subr.bf16.mxu1 %v10330_v25  ;;  %v10422_v17 = vld [vmem:[%s11108_s9 + $0x15ac] ss:$16 sps:$4 sm:$0xff]   ;;  %v10417_v25 = vld [vmem:[%s11108_s9 + $0x15a0] ss:$16 sps:$4 sm:$0xff]  }
 0x2ab   : > { %6929 = vmatpush1.bf16.msra.mxu0 %v10325_v26  ;;  %7585 = vmatpush1.bf16.msra.mxu1 %v10328_v18  ;;  %v10420_v26 = vld [vmem:[%s11108_s9 + $0x15a8] ss:$16 sps:$4 sm:$0xff]   ;;  %v10425_v18 = vld [vmem:[%s11108_s9 + $0x15c4] ss:$16 sps:$4 sm:$0xff]  }
 0x2ac   : > { %6930 = vmatprep.subr.bf16.mxu0 %v10333_v28  ;;  %7586 = vmatprep.subr.bf16.mxu1 %v10336_v29  ;;  %v10428_v28 = vld [vmem:[%s11108_s9 + $0x15cc] ss:$16 sps:$4 sm:$0xff]   ;;  %v10423_v29 = vld [vmem:[%s11108_s9 + $0x15c0] ss:$16 sps:$4 sm:$0xff]  }
 0x2af   : > { %6931 = vmatpush1.bf16.msra.mxu0 %v10331_v21  ;;  %7587 = vmatpush1.bf16.msra.mxu1 %v10334_v31  ;;  %v10426_v21 = vld [vmem:[%s11108_s9 + $0x15c8] ss:$16 sps:$4 sm:$0xff]   ;;  %v10431_v31 = vld [vmem:[%s11108_s9 + $0x15e4] ss:$16 sps:$4 sm:$0xff]  }
 0x2b0   : > { %6941 = vmatprep.subr.bf16.mxu0 %v10341_v32  ;;  %7597 = vmatprep.subr.bf16.mxu1 %v10344_v24  ;;  %v10434_v32 = vld [vmem:[%s11108_s9 + $0x15ec] ss:$16 sps:$4 sm:$0xff]   ;;  %v10429_v24 = vld [vmem:[%s11108_s9 + $0x15e0] ss:$16 sps:$4 sm:$0xff]  }
 0x2b2   : > { %6933 = vmatmul.mubr.bf16.vlgmr.msra.gmra.mrb[0].mxu0 %v8150_v33  ;;  %7589 = vmatmul.mubr.bf16.vlgmr.msra.gmra.mrb[0].mxu1 %v8150_v33  ;;  %v10432_v33 = vld [vmem:[%s11108_s9 + $0x15e8] ss:$16 sps:$4 sm:$0xff]  }
 0x2b3   : > { %6942 = vmatpush1.bf16.msra.mxu0 %v10339_v35  ;;  %7598 = vmatpush1.bf16.msra.mxu1 %v10342_v27  ;;  %v10439_v35 = vld [vmem:[%s11108_s9 + $0x1604] ss:$16 sps:$4 sm:$0xff]   ;;  %v10442_v27 = vld [vmem:[%s11108_s9 + $0x160c] ss:$16 sps:$4 sm:$0xff]  }
 0x2b4   : > { %6943 = vmatprep.subr.bf16.mxu0 %v10347_v36  ;;  %7599 = vmatprep.subr.bf16.mxu1 %v10350_v37  ;;  %v8152_v36 = vcombine.low %v11831_v34, %v11831_v34  ;;  %v11902_v37 = vld [vmem:[%s11166_s6 + $0x58] sm:$0xff]  ;;  %v10443_v34 = vld [vmem:[%s11108_s9 + $0x1620] ss:$16 sps:$4 sm:$0xff]  }
 0x2b5   : > { %6973 = vmatprep.mubr.bf16.mxu0 %v8153_v38  ;;  %7629 = vmatprep.mubr.bf16.mxu1 %v8153_v38  ;;  %v10437_v38 = vld [vmem:[%s11108_s9 + $0x1600] ss:$16 sps:$4 sm:$0xff]  }
 0x2b7   : > { %6944 = vmatpush1.bf16.msra.mxu0 %v10345_v30  ;;  %7600 = vmatpush1.bf16.msra.mxu1 %v10348_v39  ;;  %v10440_v30 = vld [vmem:[%s11108_s9 + $0x1608] ss:$16 sps:$4 sm:$0xff]   ;;  %v10445_v39 = vld [vmem:[%s11108_s9 + $0x1624] ss:$16 sps:$4 sm:$0xff]  }
 0x2b8   : > { %6945 = vmatprep.subr.bf16.mxu0 %v10353_v40  ;;  %7601 = vmatprep.subr.bf16.mxu1 %v10356_v41  ;;  %v10448_v40 = vld [vmem:[%s11108_s9 + $0x162c] ss:$16 sps:$4 sm:$0xff]   ;;  %v8155_v41 = vcombine.high %v11902_v37, %v11902_v37 }
 0x2bb   : > { %6946 = vmatpush1.bf16.msra.mxu0 %v10351_v42  ;;  %7602 = vmatpush1.bf16.msra.mxu1 %v10354_v43  ;;  %v10446_v42 = vld [vmem:[%s11108_s9 + $0x1628] ss:$16 sps:$4 sm:$0xff]   ;;  %v10451_v43 = vld [vmem:[%s11108_s9 + $0x1644] ss:$16 sps:$4 sm:$0xff]  }
 0x2bc   : > { %6947 = vmatprep.subr.bf16.mxu0 %v10359_v44  ;;  %7603 = vmatprep.subr.bf16.mxu1 %v10362_v45  ;;  %v10454_v44 = vld [vmem:[%s11108_s9 + $0x164c] ss:$16 sps:$4 sm:$0xff]   ;;  %v10449_v45 = vld [vmem:[%s11108_s9 + $0x1640] ss:$16 sps:$4 sm:$0xff]  }
 0x2bf   : > { %6948 = vmatpush1.bf16.msra.mxu0 %v10357_v46  ;;  %7604 = vmatpush1.bf16.msra.mxu1 %v10360_v47  ;;  %v10452_v46 = vld [vmem:[%s11108_s9 + $0x1648] ss:$16 sps:$4 sm:$0xff]   ;;  %v10457_v47 = vld [vmem:[%s11108_s9 + $0x1664] ss:$16 sps:$4 sm:$0xff]  }
 0x2c0   : > { %6949 = vmatprep.subr.bf16.mxu0 %v10365_v48  ;;  %7605 = vmatprep.subr.bf16.mxu1 %v10368_v49  ;;  %v10460_v48 = vld [vmem:[%s11108_s9 + $0x166c] ss:$16 sps:$4 sm:$0xff]   ;;  %v10455_v49 = vld [vmem:[%s11108_s9 + $0x1660] ss:$16 sps:$4 sm:$0xff]  }
 0x2c3   : > { %6950 = vmatpush1.bf16.msra.mxu0 %v10363_v50  ;;  %7606 = vmatpush1.bf16.msra.mxu1 %v10366_v51  ;;  %v10458_v50 = vld [vmem:[%s11108_s9 + $0x1668] ss:$16 sps:$4 sm:$0xff]   ;;  %v10463_v51 = vld [vmem:[%s11108_s9 + $0x1684] ss:$16 sps:$4 sm:$0xff]  }
 0x2c4   : > { %6951 = vmatprep.subr.bf16.mxu0 %v10371_v52  ;;  %7607 = vmatprep.subr.bf16.mxu1 %v10374_v53  ;;  %v10466_v52 = vld [vmem:[%s11108_s9 + $0x168c] ss:$16 sps:$4 sm:$0xff]   ;;  %v10461_v53 = vld [vmem:[%s11108_s9 + $0x1680] ss:$16 sps:$4 sm:$0xff]  }
 0x2c7   : > { %6952 = vmatpush1.bf16.msra.mxu0 %v10369_v54  ;;  %7608 = vmatpush1.bf16.msra.mxu1 %v10372_v55  ;;  %v10464_v54 = vld [vmem:[%s11108_s9 + $0x1688] ss:$16 sps:$4 sm:$0xff]   ;;  %v10469_v55 = vld [vmem:[%s11108_s9 + $0x16a4] ss:$16 sps:$4 sm:$0xff]  }
 0x2c8   : > { %6953 = vmatprep.subr.bf16.mxu0 %v10377_v56  ;;  %7609 = vmatprep.subr.bf16.mxu1 %v10380_v57  ;;  %v10472_v56 = vld [vmem:[%s11108_s9 + $0x16ac] ss:$16 sps:$4 sm:$0xff]   ;;  %v10467_v57 = vld [vmem:[%s11108_s9 + $0x16a0] ss:$16 sps:$4 sm:$0xff]  }
 0x2cb   : > { %6954 = vmatpush1.bf16.msra.mxu0 %v10375_v58  ;;  %7610 = vmatpush1.bf16.msra.mxu1 %v10378_v59  ;;  %v10470_v58 = vld [vmem:[%s11108_s9 + $0x16a8] ss:$16 sps:$4 sm:$0xff]   ;;  %v10475_v59 = vld [vmem:[%s11108_s9 + $0x16c4] ss:$16 sps:$4 sm:$0xff]  }
 0x2cc   : > { %6955 = vmatprep.subr.bf16.mxu0 %v10383_v60  ;;  %7611 = vmatprep.subr.bf16.mxu1 %v10386_v61  ;;  %v10478_v60 = vld [vmem:[%s11108_s9 + $0x16cc] ss:$16 sps:$4 sm:$0xff]   ;;  %v10473_v61 = vld [vmem:[%s11108_s9 + $0x16c0] ss:$16 sps:$4 sm:$0xff]  }
 0x2cf   : > { %6956 = vmatpush1.bf16.msra.mxu0 %v10381_v62  ;;  %7612 = vmatpush1.bf16.msra.mxu1 %v10384_v63  ;;  %v10476_v62 = vld [vmem:[%s11108_s9 + $0x16c8] ss:$16 sps:$4 sm:$0xff]   ;;  %v10481_v63 = vld [vmem:[%s11108_s9 + $0x16e4] ss:$16 sps:$4 sm:$0xff]  }
 0x2d0   : > { %6957 = vmatprep.subr.bf16.mxu0 %v10389_v0  ;;  %7613 = vmatprep.subr.bf16.mxu1 %v10392_v1  ;;  %v10484_v0 = vld [vmem:[%s11108_s9 + $0x16ec] ss:$16 sps:$4 sm:$0xff]   ;;  %v10479_v1 = vld [vmem:[%s11108_s9 + $0x16e0] ss:$16 sps:$4 sm:$0xff]  }
 0x2d3   : > { %6958 = vmatpush1.bf16.msra.mxu0 %v10387_v2  ;;  %7614 = vmatpush1.bf16.msra.mxu1 %v10390_v3  ;;  %v10482_v2 = vld [vmem:[%s11108_s9 + $0x16e8] ss:$16 sps:$4 sm:$0xff]   ;;  %v10487_v3 = vld [vmem:[%s11108_s9 + $0x1704] ss:$16 sps:$4 sm:$0xff]  }
 0x2d4   : > { %6959 = vmatprep.subr.bf16.mxu0 %v10395_v4  ;;  %7615 = vmatprep.subr.bf16.mxu1 %v10398_v5  ;;  %v10490_v4 = vld [vmem:[%s11108_s9 + $0x170c] ss:$16 sps:$4 sm:$0xff]   ;;  %v10485_v5 = vld [vmem:[%s11108_s9 + $0x1700] ss:$16 sps:$4 sm:$0xff]  }
 0x2d7   : > { %6960 = vmatpush1.bf16.msra.mxu0 %v10393_v6  ;;  %7616 = vmatpush1.bf16.msra.mxu1 %v10396_v7  ;;  %v10488_v6 = vld [vmem:[%s11108_s9 + $0x1708] ss:$16 sps:$4 sm:$0xff]   ;;  %v10493_v7 = vld [vmem:[%s11108_s9 + $0x1724] ss:$16 sps:$4 sm:$0xff]  }
 0x2d8   : > { %6961 = vmatprep.subr.bf16.mxu0 %v10401_v8  ;;  %7617 = vmatprep.subr.bf16.mxu1 %v10404_v9  ;;  %v10496_v8 = vld [vmem:[%s11108_s9 + $0x172c] ss:$16 sps:$4 sm:$0xff]   ;;  %v10491_v9 = vld [vmem:[%s11108_s9 + $0x1720] ss:$16 sps:$4 sm:$0xff]  }
 0x2db   : > { %6962 = vmatpush1.bf16.msra.mxu0 %v10399_v10  ;;  %7618 = vmatpush1.bf16.msra.mxu1 %v10402_v12  ;;  %v10494_v10 = vld [vmem:[%s11108_s9 + $0x1728] ss:$16 sps:$4 sm:$0xff]   ;;  %v10499_v12 = vld [vmem:[%s11108_s9 + $0x1744] ss:$16 sps:$4 sm:$0xff]  }
 0x2dc   : > { %6963 = vmatprep.subr.bf16.mxu0 %v10407_v13  ;;  %7619 = vmatprep.subr.bf16.mxu1 %v10410_v15  ;;  %v10502_v13 = vld [vmem:[%s11108_s9 + $0x174c] ss:$16 sps:$4 sm:$0xff]   ;;  %v10497_v15 = vld [vmem:[%s11108_s9 + $0x1740] ss:$16 sps:$4 sm:$0xff]  }
 0x2df   : > { %6964 = vmatpush1.bf16.msra.mxu0 %v10405_v16  ;;  %7620 = vmatpush1.bf16.msra.mxu1 %v10408_v11  ;;  %v10500_v16 = vld [vmem:[%s11108_s9 + $0x1748] ss:$16 sps:$4 sm:$0xff]   ;;  %v10505_v11 = vld [vmem:[%s11108_s9 + $0x1764] ss:$16 sps:$4 sm:$0xff]  }
 0x2e0   : > { %6965 = vmatprep.subr.bf16.mxu0 %v10413_v19  ;;  %7621 = vmatprep.subr.bf16.mxu1 %v10416_v20  ;;  %v10508_v19 = vld [vmem:[%s11108_s9 + $0x176c] ss:$16 sps:$4 sm:$0xff]   ;;  %v10503_v20 = vld [vmem:[%s11108_s9 + $0x1760] ss:$16 sps:$4 sm:$0xff]  }
 0x2e3   : > { %6966 = vmatpush1.bf16.msra.mxu0 %v10411_v14  ;;  %7622 = vmatpush1.bf16.msra.mxu1 %v10414_v22  ;;  %v10506_v14 = vld [vmem:[%s11108_s9 + $0x1768] ss:$16 sps:$4 sm:$0xff]   ;;  %v10511_v22 = vld [vmem:[%s11108_s9 + $0x1784] ss:$16 sps:$4 sm:$0xff]  }
 0x2e4   : > { %6967 = vmatprep.subr.bf16.mxu0 %v10419_v23  ;;  %7623 = vmatprep.subr.bf16.mxu1 %v10422_v17  ;;  %v10514_v23 = vld [vmem:[%s11108_s9 + $0x178c] ss:$16 sps:$4 sm:$0xff]   ;;  %v10509_v17 = vld [vmem:[%s11108_s9 + $0x1780] ss:$16 sps:$4 sm:$0xff]  }
 0x2e7   : > { %6968 = vmatpush1.bf16.msra.mxu0 %v10417_v25  ;;  %7624 = vmatpush1.bf16.msra.mxu1 %v10420_v26  ;;  %v10512_v25 = vld [vmem:[%s11108_s9 + $0x1788] ss:$16 sps:$4 sm:$0xff]   ;;  %v10517_v26 = vld [vmem:[%s11108_s9 + $0x17a4] ss:$16 sps:$4 sm:$0xff]  }
 0x2e8   : > { %6969 = vmatprep.subr.bf16.mxu0 %v10425_v18  ;;  %7625 = vmatprep.subr.bf16.mxu1 %v10428_v28  ;;  %v10520_v18 = vld [vmem:[%s11108_s9 + $0x17ac] ss:$16 sps:$4 sm:$0xff]   ;;  %v10515_v28 = vld [vmem:[%s11108_s9 + $0x17a0] ss:$16 sps:$4 sm:$0xff]  }
 0x2eb   : > { %6970 = vmatpush1.bf16.msra.mxu0 %v10423_v29  ;;  %7626 = vmatpush1.bf16.msra.mxu1 %v10426_v21  ;;  %v10518_v29 = vld [vmem:[%s11108_s9 + $0x17a8] ss:$16 sps:$4 sm:$0xff]   ;;  %v10523_v21 = vld [vmem:[%s11108_s9 + $0x17c4] ss:$16 sps:$4 sm:$0xff]  }
 0x2ec   : > { %6971 = vmatprep.subr.bf16.mxu0 %v10431_v31  ;;  %7627 = vmatprep.subr.bf16.mxu1 %v10434_v32  ;;  %v10526_v31 = vld [vmem:[%s11108_s9 + $0x17cc] ss:$16 sps:$4 sm:$0xff]   ;;  %v10521_v32 = vld [vmem:[%s11108_s9 + $0x17c0] ss:$16 sps:$4 sm:$0xff]  }
 0x2ef   : > { %6972 = vmatpush1.bf16.msra.mxu0 %v10429_v24  ;;  %7628 = vmatpush1.bf16.msra.mxu1 %v10432_v33  ;;  %v10524_v24 = vld [vmem:[%s11108_s9 + $0x17c8] ss:$16 sps:$4 sm:$0xff]   ;;  %v10529_v33 = vld [vmem:[%s11108_s9 + $0x17e4] ss:$16 sps:$4 sm:$0xff]  }
 0x2f0   : > { %6982 = vmatprep.subr.bf16.mxu0 %v10439_v35  ;;  %7638 = vmatprep.subr.bf16.mxu1 %v10442_v27  ;;  %v10532_v35 = vld [vmem:[%s11108_s9 + $0x17ec] ss:$16 sps:$4 sm:$0xff]   ;;  %v10527_v27 = vld [vmem:[%s11108_s9 + $0x17e0] ss:$16 sps:$4 sm:$0xff]  }
 0x2f2   : > { %6974 = vmatmul.mubr.bf16.vlgmr.msra.gmra.mrb[0].mxu0 %v8152_v36  ;;  %7630 = vmatmul.mubr.bf16.vlgmr.msra.gmra.mrb[0].mxu1 %v8152_v36  ;;  %v10530_v36 = vld [vmem:[%s11108_s9 + $0x17e8] ss:$16 sps:$4 sm:$0xff]  }
 0x2f3   : > { %6983 = vmatpush1.bf16.msra.mxu0 %v10437_v38  ;;  %7639 = vmatpush1.bf16.msra.mxu1 %v10440_v30  ;;  %v10537_v38 = vld [vmem:[%s11108_s9 + $0x1804] ss:$16 sps:$4 sm:$0xff]   ;;  %v10540_v30 = vld [vmem:[%s11108_s9 + $0x180c] ss:$16 sps:$4 sm:$0xff]  }
 0x2f4   : > { %6984 = vmatprep.subr.bf16.mxu0 %v10445_v39  ;;  %7640 = vmatprep.subr.bf16.mxu1 %v10448_v40  ;;  %v8154_v39 = vcombine.low %v11902_v37, %v11902_v37  ;;  %v11973_v40 = vld [vmem:[%s11166_s6 + $0x60] sm:$0xff] }
 0x2f5   : > { %7014 = vmatprep.mubr.bf16.mxu0 %v8155_v41  ;;  %7670 = vmatprep.mubr.bf16.mxu1 %v8155_v41  ;;  %v10535_v41 = vld [vmem:[%s11108_s9 + $0x1800] ss:$16 sps:$4 sm:$0xff]  }
 0x2f6   : > { %v10541_v37 = vld [vmem:[%s11108_s9 + $0x1820] ss:$16 sps:$4 sm:$0xff]  }
 0x2f7   : > { %6985 = vmatpush1.bf16.msra.mxu0 %v10443_v34  ;;  %7641 = vmatpush1.bf16.msra.mxu1 %v10446_v42  ;;  %v10538_v34 = vld [vmem:[%s11108_s9 + $0x1808] ss:$16 sps:$4 sm:$0xff]   ;;  %v10543_v42 = vld [vmem:[%s11108_s9 + $0x1824] ss:$16 sps:$4 sm:$0xff]  }
 0x2f8   : > { %6986 = vmatprep.subr.bf16.mxu0 %v10451_v43  ;;  %7642 = vmatprep.subr.bf16.mxu1 %v10454_v44  ;;  %v10546_v43 = vld [vmem:[%s11108_s9 + $0x182c] ss:$16 sps:$4 sm:$0xff]   ;;  %v8157_v44 = vcombine.high %v11973_v40, %v11973_v40 }
 0x2fb   : > { %6987 = vmatpush1.bf16.msra.mxu0 %v10449_v45  ;;  %7643 = vmatpush1.bf16.msra.mxu1 %v10452_v46  ;;  %v10544_v45 = vld [vmem:[%s11108_s9 + $0x1828] ss:$16 sps:$4 sm:$0xff]   ;;  %v10549_v46 = vld [vmem:[%s11108_s9 + $0x1844] ss:$16 sps:$4 sm:$0xff]  }
 0x2fc   : > { %6988 = vmatprep.subr.bf16.mxu0 %v10457_v47  ;;  %7644 = vmatprep.subr.bf16.mxu1 %v10460_v48  ;;  %v10552_v47 = vld [vmem:[%s11108_s9 + $0x184c] ss:$16 sps:$4 sm:$0xff]   ;;  %v10547_v48 = vld [vmem:[%s11108_s9 + $0x1840] ss:$16 sps:$4 sm:$0xff]  }
 0x2ff   : > { %6989 = vmatpush1.bf16.msra.mxu0 %v10455_v49  ;;  %7645 = vmatpush1.bf16.msra.mxu1 %v10458_v50  ;;  %v10550_v49 = vld [vmem:[%s11108_s9 + $0x1848] ss:$16 sps:$4 sm:$0xff]   ;;  %v10555_v50 = vld [vmem:[%s11108_s9 + $0x1864] ss:$16 sps:$4 sm:$0xff]  }
 0x300   : > { %6990 = vmatprep.subr.bf16.mxu0 %v10463_v51  ;;  %7646 = vmatprep.subr.bf16.mxu1 %v10466_v52  ;;  %v10558_v51 = vld [vmem:[%s11108_s9 + $0x186c] ss:$16 sps:$4 sm:$0xff]   ;;  %v10553_v52 = vld [vmem:[%s11108_s9 + $0x1860] ss:$16 sps:$4 sm:$0xff]  }
 0x303   : > { %6991 = vmatpush1.bf16.msra.mxu0 %v10461_v53  ;;  %7647 = vmatpush1.bf16.msra.mxu1 %v10464_v54  ;;  %v10556_v53 = vld [vmem:[%s11108_s9 + $0x1868] ss:$16 sps:$4 sm:$0xff]   ;;  %v10561_v54 = vld [vmem:[%s11108_s9 + $0x1884] ss:$16 sps:$4 sm:$0xff]  }
 0x304   : > { %6992 = vmatprep.subr.bf16.mxu0 %v10469_v55  ;;  %7648 = vmatprep.subr.bf16.mxu1 %v10472_v56  ;;  %v10564_v55 = vld [vmem:[%s11108_s9 + $0x188c] ss:$16 sps:$4 sm:$0xff]   ;;  %v10559_v56 = vld [vmem:[%s11108_s9 + $0x1880] ss:$16 sps:$4 sm:$0xff]  }
 0x307   : > { %6993 = vmatpush1.bf16.msra.mxu0 %v10467_v57  ;;  %7649 = vmatpush1.bf16.msra.mxu1 %v10470_v58  ;;  %v10562_v57 = vld [vmem:[%s11108_s9 + $0x1888] ss:$16 sps:$4 sm:$0xff]   ;;  %v10567_v58 = vld [vmem:[%s11108_s9 + $0x18a4] ss:$16 sps:$4 sm:$0xff]  }
 0x308   : > { %6994 = vmatprep.subr.bf16.mxu0 %v10475_v59  ;;  %7650 = vmatprep.subr.bf16.mxu1 %v10478_v60  ;;  %v10570_v59 = vld [vmem:[%s11108_s9 + $0x18ac] ss:$16 sps:$4 sm:$0xff]   ;;  %v10565_v60 = vld [vmem:[%s11108_s9 + $0x18a0] ss:$16 sps:$4 sm:$0xff]  }
 0x30b   : > { %6995 = vmatpush1.bf16.msra.mxu0 %v10473_v61  ;;  %7651 = vmatpush1.bf16.msra.mxu1 %v10476_v62  ;;  %v10568_v61 = vld [vmem:[%s11108_s9 + $0x18a8] ss:$16 sps:$4 sm:$0xff]   ;;  %v10573_v62 = vld [vmem:[%s11108_s9 + $0x18c4] ss:$16 sps:$4 sm:$0xff]  }
 0x30c   : > { %6996 = vmatprep.subr.bf16.mxu0 %v10481_v63  ;;  %7652 = vmatprep.subr.bf16.mxu1 %v10484_v0  ;;  %v10576_v63 = vld [vmem:[%s11108_s9 + $0x18cc] ss:$16 sps:$4 sm:$0xff]   ;;  %v10571_v0 = vld [vmem:[%s11108_s9 + $0x18c0] ss:$16 sps:$4 sm:$0xff]  }
 0x30f   : > { %6997 = vmatpush1.bf16.msra.mxu0 %v10479_v1  ;;  %7653 = vmatpush1.bf16.msra.mxu1 %v10482_v2  ;;  %v10574_v1 = vld [vmem:[%s11108_s9 + $0x18c8] ss:$16 sps:$4 sm:$0xff]   ;;  %v10579_v2 = vld [vmem:[%s11108_s9 + $0x18e4] ss:$16 sps:$4 sm:$0xff]  }
 0x310   : > { %6998 = vmatprep.subr.bf16.mxu0 %v10487_v3  ;;  %7654 = vmatprep.subr.bf16.mxu1 %v10490_v4  ;;  %v10582_v3 = vld [vmem:[%s11108_s9 + $0x18ec] ss:$16 sps:$4 sm:$0xff]   ;;  %v10577_v4 = vld [vmem:[%s11108_s9 + $0x18e0] ss:$16 sps:$4 sm:$0xff]  }
 0x313   : > { %6999 = vmatpush1.bf16.msra.mxu0 %v10485_v5  ;;  %7655 = vmatpush1.bf16.msra.mxu1 %v10488_v6  ;;  %v10580_v5 = vld [vmem:[%s11108_s9 + $0x18e8] ss:$16 sps:$4 sm:$0xff]   ;;  %v10585_v6 = vld [vmem:[%s11108_s9 + $0x1904] ss:$16 sps:$4 sm:$0xff]  }
 0x314   : > { %7000 = vmatprep.subr.bf16.mxu0 %v10493_v7  ;;  %7656 = vmatprep.subr.bf16.mxu1 %v10496_v8  ;;  %v10588_v7 = vld [vmem:[%s11108_s9 + $0x190c] ss:$16 sps:$4 sm:$0xff]   ;;  %v10583_v8 = vld [vmem:[%s11108_s9 + $0x1900] ss:$16 sps:$4 sm:$0xff]  }
 0x317   : > { %7001 = vmatpush1.bf16.msra.mxu0 %v10491_v9  ;;  %7657 = vmatpush1.bf16.msra.mxu1 %v10494_v10  ;;  %v10586_v9 = vld [vmem:[%s11108_s9 + $0x1908] ss:$16 sps:$4 sm:$0xff]   ;;  %v10591_v10 = vld [vmem:[%s11108_s9 + $0x1924] ss:$16 sps:$4 sm:$0xff]  }
 0x318   : > { %7002 = vmatprep.subr.bf16.mxu0 %v10499_v12  ;;  %7658 = vmatprep.subr.bf16.mxu1 %v10502_v13  ;;  %v10594_v12 = vld [vmem:[%s11108_s9 + $0x192c] ss:$16 sps:$4 sm:$0xff]   ;;  %v10589_v13 = vld [vmem:[%s11108_s9 + $0x1920] ss:$16 sps:$4 sm:$0xff]  }
 0x31b   : > { %7003 = vmatpush1.bf16.msra.mxu0 %v10497_v15  ;;  %7659 = vmatpush1.bf16.msra.mxu1 %v10500_v16  ;;  %v10592_v15 = vld [vmem:[%s11108_s9 + $0x1928] ss:$16 sps:$4 sm:$0xff]   ;;  %v10597_v16 = vld [vmem:[%s11108_s9 + $0x1944] ss:$16 sps:$4 sm:$0xff]  }
 0x31c   : > { %7004 = vmatprep.subr.bf16.mxu0 %v10505_v11  ;;  %7660 = vmatprep.subr.bf16.mxu1 %v10508_v19  ;;  %v10600_v11 = vld [vmem:[%s11108_s9 + $0x194c] ss:$16 sps:$4 sm:$0xff]   ;;  %v10595_v19 = vld [vmem:[%s11108_s9 + $0x1940] ss:$16 sps:$4 sm:$0xff]  }
 0x31f   : > { %7005 = vmatpush1.bf16.msra.mxu0 %v10503_v20  ;;  %7661 = vmatpush1.bf16.msra.mxu1 %v10506_v14  ;;  %v10598_v20 = vld [vmem:[%s11108_s9 + $0x1948] ss:$16 sps:$4 sm:$0xff]   ;;  %v10603_v14 = vld [vmem:[%s11108_s9 + $0x1964] ss:$16 sps:$4 sm:$0xff]  }
 0x320   : > { %7006 = vmatprep.subr.bf16.mxu0 %v10511_v22  ;;  %7662 = vmatprep.subr.bf16.mxu1 %v10514_v23  ;;  %v10606_v22 = vld [vmem:[%s11108_s9 + $0x196c] ss:$16 sps:$4 sm:$0xff]   ;;  %v10601_v23 = vld [vmem:[%s11108_s9 + $0x1960] ss:$16 sps:$4 sm:$0xff]  }
 0x323   : > { %7007 = vmatpush1.bf16.msra.mxu0 %v10509_v17  ;;  %7663 = vmatpush1.bf16.msra.mxu1 %v10512_v25  ;;  %v10604_v17 = vld [vmem:[%s11108_s9 + $0x1968] ss:$16 sps:$4 sm:$0xff]   ;;  %v10609_v25 = vld [vmem:[%s11108_s9 + $0x1984] ss:$16 sps:$4 sm:$0xff]  }
 0x324   : > { %7008 = vmatprep.subr.bf16.mxu0 %v10517_v26  ;;  %7664 = vmatprep.subr.bf16.mxu1 %v10520_v18  ;;  %v10612_v26 = vld [vmem:[%s11108_s9 + $0x198c] ss:$16 sps:$4 sm:$0xff]   ;;  %v10607_v18 = vld [vmem:[%s11108_s9 + $0x1980] ss:$16 sps:$4 sm:$0xff]  }
 0x327   : > { %7009 = vmatpush1.bf16.msra.mxu0 %v10515_v28  ;;  %7665 = vmatpush1.bf16.msra.mxu1 %v10518_v29  ;;  %v10610_v28 = vld [vmem:[%s11108_s9 + $0x1988] ss:$16 sps:$4 sm:$0xff]   ;;  %v10615_v29 = vld [vmem:[%s11108_s9 + $0x19a4] ss:$16 sps:$4 sm:$0xff]  }
 0x328   : > { %7010 = vmatprep.subr.bf16.mxu0 %v10523_v21  ;;  %7666 = vmatprep.subr.bf16.mxu1 %v10526_v31  ;;  %v10618_v21 = vld [vmem:[%s11108_s9 + $0x19ac] ss:$16 sps:$4 sm:$0xff]   ;;  %v10613_v31 = vld [vmem:[%s11108_s9 + $0x19a0] ss:$16 sps:$4 sm:$0xff]  }
 0x32b   : > { %7011 = vmatpush1.bf16.msra.mxu0 %v10521_v32  ;;  %7667 = vmatpush1.bf16.msra.mxu1 %v10524_v24  ;;  %v10616_v32 = vld [vmem:[%s11108_s9 + $0x19a8] ss:$16 sps:$4 sm:$0xff]   ;;  %v10621_v24 = vld [vmem:[%s11108_s9 + $0x19c4] ss:$16 sps:$4 sm:$0xff]  }
 0x32c   : > { %7012 = vmatprep.subr.bf16.mxu0 %v10529_v33  ;;  %7668 = vmatprep.subr.bf16.mxu1 %v10532_v35  ;;  %v10624_v33 = vld [vmem:[%s11108_s9 + $0x19cc] ss:$16 sps:$4 sm:$0xff]   ;;  %v10619_v35 = vld [vmem:[%s11108_s9 + $0x19c0] ss:$16 sps:$4 sm:$0xff]  }
 0x32f   : > { %7013 = vmatpush1.bf16.msra.mxu0 %v10527_v27  ;;  %7669 = vmatpush1.bf16.msra.mxu1 %v10530_v36  ;;  %v10622_v27 = vld [vmem:[%s11108_s9 + $0x19c8] ss:$16 sps:$4 sm:$0xff]   ;;  %v10627_v36 = vld [vmem:[%s11108_s9 + $0x19e4] ss:$16 sps:$4 sm:$0xff]  }
 0x330   : > { %7023 = vmatprep.subr.bf16.mxu0 %v10537_v38  ;;  %7679 = vmatprep.subr.bf16.mxu1 %v10540_v30  ;;  %v10630_v38 = vld [vmem:[%s11108_s9 + $0x19ec] ss:$16 sps:$4 sm:$0xff]   ;;  %v10625_v30 = vld [vmem:[%s11108_s9 + $0x19e0] ss:$16 sps:$4 sm:$0xff]  }
 0x332   : > { %7015 = vmatmul.mubr.bf16.vlgmr.msra.gmra.mrb[0].mxu0 %v8154_v39  ;;  %7671 = vmatmul.mubr.bf16.vlgmr.msra.gmra.mrb[0].mxu1 %v8154_v39  ;;  %v10628_v39 = vld [vmem:[%s11108_s9 + $0x19e8] ss:$16 sps:$4 sm:$0xff]  }
 0x333   : > { %7024 = vmatpush1.bf16.msra.mxu0 %v10535_v41  ;;  %7680 = vmatpush1.bf16.msra.mxu1 %v10538_v34  ;;  %v10635_v41 = vld [vmem:[%s11108_s9 + $0x1a04] ss:$16 sps:$4 sm:$0xff]   ;;  %v10638_v34 = vld [vmem:[%s11108_s9 + $0x1a0c] ss:$16 sps:$4 sm:$0xff]  }
 0x334   : > { %7025 = vmatprep.subr.bf16.mxu0 %v10543_v42  ;;  %7681 = vmatprep.subr.bf16.mxu1 %v10546_v43  ;;  %v8156_v42 = vcombine.low %v11973_v40, %v11973_v40  ;;  %v12044_v43 = vld [vmem:[%s11166_s6 + $0x68] sm:$0xff]  ;;  %v10639_v40 = vld [vmem:[%s11108_s9 + $0x1a20] ss:$16 sps:$4 sm:$0xff]  }
 0x335   : > { %7055 = vmatprep.mubr.bf16.mxu0 %v8157_v44  ;;  %7711 = vmatprep.mubr.bf16.mxu1 %v8157_v44  ;;  %v10633_v44 = vld [vmem:[%s11108_s9 + $0x1a00] ss:$16 sps:$4 sm:$0xff]  }
 0x337   : > { %7026 = vmatpush1.bf16.msra.mxu0 %v10541_v37  ;;  %7682 = vmatpush1.bf16.msra.mxu1 %v10544_v45  ;;  %v10636_v37 = vld [vmem:[%s11108_s9 + $0x1a08] ss:$16 sps:$4 sm:$0xff]   ;;  %v10641_v45 = vld [vmem:[%s11108_s9 + $0x1a24] ss:$16 sps:$4 sm:$0xff]  }
 0x338   : > { %7027 = vmatprep.subr.bf16.mxu0 %v10549_v46  ;;  %7683 = vmatprep.subr.bf16.mxu1 %v10552_v47  ;;  %v10644_v46 = vld [vmem:[%s11108_s9 + $0x1a2c] ss:$16 sps:$4 sm:$0xff]   ;;  %v8159_v47 = vcombine.high %v12044_v43, %v12044_v43 }
 0x33b   : > { %7028 = vmatpush1.bf16.msra.mxu0 %v10547_v48  ;;  %7684 = vmatpush1.bf16.msra.mxu1 %v10550_v49  ;;  %v10642_v48 = vld [vmem:[%s11108_s9 + $0x1a28] ss:$16 sps:$4 sm:$0xff]   ;;  %v10647_v49 = vld [vmem:[%s11108_s9 + $0x1a44] ss:$16 sps:$4 sm:$0xff]  }
 0x33c   : > { %7029 = vmatprep.subr.bf16.mxu0 %v10555_v50  ;;  %7685 = vmatprep.subr.bf16.mxu1 %v10558_v51  ;;  %v10650_v50 = vld [vmem:[%s11108_s9 + $0x1a4c] ss:$16 sps:$4 sm:$0xff]   ;;  %v10645_v51 = vld [vmem:[%s11108_s9 + $0x1a40] ss:$16 sps:$4 sm:$0xff]  }
 0x33f   : > { %7030 = vmatpush1.bf16.msra.mxu0 %v10553_v52  ;;  %7686 = vmatpush1.bf16.msra.mxu1 %v10556_v53  ;;  %v10648_v52 = vld [vmem:[%s11108_s9 + $0x1a48] ss:$16 sps:$4 sm:$0xff]   ;;  %v10653_v53 = vld [vmem:[%s11108_s9 + $0x1a64] ss:$16 sps:$4 sm:$0xff]  }
 0x340   : > { %7031 = vmatprep.subr.bf16.mxu0 %v10561_v54  ;;  %7687 = vmatprep.subr.bf16.mxu1 %v10564_v55  ;;  %v10656_v54 = vld [vmem:[%s11108_s9 + $0x1a6c] ss:$16 sps:$4 sm:$0xff]   ;;  %v10651_v55 = vld [vmem:[%s11108_s9 + $0x1a60] ss:$16 sps:$4 sm:$0xff]  }
 0x343   : > { %7032 = vmatpush1.bf16.msra.mxu0 %v10559_v56  ;;  %7688 = vmatpush1.bf16.msra.mxu1 %v10562_v57  ;;  %v10654_v56 = vld [vmem:[%s11108_s9 + $0x1a68] ss:$16 sps:$4 sm:$0xff]   ;;  %v10659_v57 = vld [vmem:[%s11108_s9 + $0x1a84] ss:$16 sps:$4 sm:$0xff]  }
 0x344   : > { %7033 = vmatprep.subr.bf16.mxu0 %v10567_v58  ;;  %7689 = vmatprep.subr.bf16.mxu1 %v10570_v59  ;;  %v10662_v58 = vld [vmem:[%s11108_s9 + $0x1a8c] ss:$16 sps:$4 sm:$0xff]   ;;  %v10657_v59 = vld [vmem:[%s11108_s9 + $0x1a80] ss:$16 sps:$4 sm:$0xff]  }
 0x347   : > { %7034 = vmatpush1.bf16.msra.mxu0 %v10565_v60  ;;  %7690 = vmatpush1.bf16.msra.mxu1 %v10568_v61  ;;  %v10660_v60 = vld [vmem:[%s11108_s9 + $0x1a88] ss:$16 sps:$4 sm:$0xff]   ;;  %v10665_v61 = vld [vmem:[%s11108_s9 + $0x1aa4] ss:$16 sps:$4 sm:$0xff]  }
 0x348   : > { %7035 = vmatprep.subr.bf16.mxu0 %v10573_v62  ;;  %7691 = vmatprep.subr.bf16.mxu1 %v10576_v63  ;;  %v10668_v62 = vld [vmem:[%s11108_s9 + $0x1aac] ss:$16 sps:$4 sm:$0xff]   ;;  %v10663_v63 = vld [vmem:[%s11108_s9 + $0x1aa0] ss:$16 sps:$4 sm:$0xff]  }
 0x34b   : > { %7036 = vmatpush1.bf16.msra.mxu0 %v10571_v0  ;;  %7692 = vmatpush1.bf16.msra.mxu1 %v10574_v1  ;;  %v10666_v0 = vld [vmem:[%s11108_s9 + $0x1aa8] ss:$16 sps:$4 sm:$0xff]   ;;  %v10671_v1 = vld [vmem:[%s11108_s9 + $0x1ac4] ss:$16 sps:$4 sm:$0xff]  }
 0x34c   : > { %7037 = vmatprep.subr.bf16.mxu0 %v10579_v2  ;;  %7693 = vmatprep.subr.bf16.mxu1 %v10582_v3  ;;  %v10674_v2 = vld [vmem:[%s11108_s9 + $0x1acc] ss:$16 sps:$4 sm:$0xff]   ;;  %v10669_v3 = vld [vmem:[%s11108_s9 + $0x1ac0] ss:$16 sps:$4 sm:$0xff]  }
 0x34f   : > { %7038 = vmatpush1.bf16.msra.mxu0 %v10577_v4  ;;  %7694 = vmatpush1.bf16.msra.mxu1 %v10580_v5  ;;  %v10672_v4 = vld [vmem:[%s11108_s9 + $0x1ac8] ss:$16 sps:$4 sm:$0xff]   ;;  %v10677_v5 = vld [vmem:[%s11108_s9 + $0x1ae4] ss:$16 sps:$4 sm:$0xff]  }
 0x350   : > { %7039 = vmatprep.subr.bf16.mxu0 %v10585_v6  ;;  %7695 = vmatprep.subr.bf16.mxu1 %v10588_v7  ;;  %v10680_v6 = vld [vmem:[%s11108_s9 + $0x1aec] ss:$16 sps:$4 sm:$0xff]   ;;  %v10675_v7 = vld [vmem:[%s11108_s9 + $0x1ae0] ss:$16 sps:$4 sm:$0xff]  }
 0x353   : > { %7040 = vmatpush1.bf16.msra.mxu0 %v10583_v8  ;;  %7696 = vmatpush1.bf16.msra.mxu1 %v10586_v9  ;;  %v10678_v8 = vld [vmem:[%s11108_s9 + $0x1ae8] ss:$16 sps:$4 sm:$0xff]   ;;  %v10683_v9 = vld [vmem:[%s11108_s9 + $0x1b04] ss:$16 sps:$4 sm:$0xff]  }
 0x354   : > { %7041 = vmatprep.subr.bf16.mxu0 %v10591_v10  ;;  %7697 = vmatprep.subr.bf16.mxu1 %v10594_v12  ;;  %v10686_v10 = vld [vmem:[%s11108_s9 + $0x1b0c] ss:$16 sps:$4 sm:$0xff]   ;;  %v10681_v12 = vld [vmem:[%s11108_s9 + $0x1b00] ss:$16 sps:$4 sm:$0xff]  }
 0x357   : > { %7042 = vmatpush1.bf16.msra.mxu0 %v10589_v13  ;;  %7698 = vmatpush1.bf16.msra.mxu1 %v10592_v15  ;;  %v10684_v13 = vld [vmem:[%s11108_s9 + $0x1b08] ss:$16 sps:$4 sm:$0xff]   ;;  %v10689_v15 = vld [vmem:[%s11108_s9 + $0x1b24] ss:$16 sps:$4 sm:$0xff]  }
 0x358   : > { %7043 = vmatprep.subr.bf16.mxu0 %v10597_v16  ;;  %7699 = vmatprep.subr.bf16.mxu1 %v10600_v11  ;;  %v10692_v16 = vld [vmem:[%s11108_s9 + $0x1b2c] ss:$16 sps:$4 sm:$0xff]   ;;  %v10687_v11 = vld [vmem:[%s11108_s9 + $0x1b20] ss:$16 sps:$4 sm:$0xff]  }
 0x35b   : > { %7044 = vmatpush1.bf16.msra.mxu0 %v10595_v19  ;;  %7700 = vmatpush1.bf16.msra.mxu1 %v10598_v20  ;;  %v10690_v19 = vld [vmem:[%s11108_s9 + $0x1b28] ss:$16 sps:$4 sm:$0xff]   ;;  %v10695_v20 = vld [vmem:[%s11108_s9 + $0x1b44] ss:$16 sps:$4 sm:$0xff]  }
 0x35c   : > { %7045 = vmatprep.subr.bf16.mxu0 %v10603_v14  ;;  %7701 = vmatprep.subr.bf16.mxu1 %v10606_v22  ;;  %v10698_v14 = vld [vmem:[%s11108_s9 + $0x1b4c] ss:$16 sps:$4 sm:$0xff]   ;;  %v10693_v22 = vld [vmem:[%s11108_s9 + $0x1b40] ss:$16 sps:$4 sm:$0xff]  }
 0x35f   : > { %7046 = vmatpush1.bf16.msra.mxu0 %v10601_v23  ;;  %7702 = vmatpush1.bf16.msra.mxu1 %v10604_v17  ;;  %v10696_v23 = vld [vmem:[%s11108_s9 + $0x1b48] ss:$16 sps:$4 sm:$0xff]   ;;  %v10701_v17 = vld [vmem:[%s11108_s9 + $0x1b64] ss:$16 sps:$4 sm:$0xff]  }
 0x360   : > { %7047 = vmatprep.subr.bf16.mxu0 %v10609_v25  ;;  %7703 = vmatprep.subr.bf16.mxu1 %v10612_v26  ;;  %v10704_v25 = vld [vmem:[%s11108_s9 + $0x1b6c] ss:$16 sps:$4 sm:$0xff]   ;;  %v10699_v26 = vld [vmem:[%s11108_s9 + $0x1b60] ss:$16 sps:$4 sm:$0xff]  }
 0x363   : > { %7048 = vmatpush1.bf16.msra.mxu0 %v10607_v18  ;;  %7704 = vmatpush1.bf16.msra.mxu1 %v10610_v28  ;;  %v10702_v18 = vld [vmem:[%s11108_s9 + $0x1b68] ss:$16 sps:$4 sm:$0xff]   ;;  %v10707_v28 = vld [vmem:[%s11108_s9 + $0x1b84] ss:$16 sps:$4 sm:$0xff]  }
 0x364   : > { %7049 = vmatprep.subr.bf16.mxu0 %v10615_v29  ;;  %7705 = vmatprep.subr.bf16.mxu1 %v10618_v21  ;;  %v10710_v29 = vld [vmem:[%s11108_s9 + $0x1b8c] ss:$16 sps:$4 sm:$0xff]   ;;  %v10705_v21 = vld [vmem:[%s11108_s9 + $0x1b80] ss:$16 sps:$4 sm:$0xff]  }
 0x367   : > { %7050 = vmatpush1.bf16.msra.mxu0 %v10613_v31  ;;  %7706 = vmatpush1.bf16.msra.mxu1 %v10616_v32  ;;  %v10708_v31 = vld [vmem:[%s11108_s9 + $0x1b88] ss:$16 sps:$4 sm:$0xff]   ;;  %v10713_v32 = vld [vmem:[%s11108_s9 + $0x1ba4] ss:$16 sps:$4 sm:$0xff]  }
 0x368   : > { %7051 = vmatprep.subr.bf16.mxu0 %v10621_v24  ;;  %7707 = vmatprep.subr.bf16.mxu1 %v10624_v33  ;;  %v10716_v24 = vld [vmem:[%s11108_s9 + $0x1bac] ss:$16 sps:$4 sm:$0xff]   ;;  %v10711_v33 = vld [vmem:[%s11108_s9 + $0x1ba0] ss:$16 sps:$4 sm:$0xff]  }
 0x36b   : > { %7052 = vmatpush1.bf16.msra.mxu0 %v10619_v35  ;;  %7708 = vmatpush1.bf16.msra.mxu1 %v10622_v27  ;;  %v10714_v35 = vld [vmem:[%s11108_s9 + $0x1ba8] ss:$16 sps:$4 sm:$0xff]   ;;  %v10719_v27 = vld [vmem:[%s11108_s9 + $0x1bc4] ss:$16 sps:$4 sm:$0xff]  }
 0x36c   : > { %7053 = vmatprep.subr.bf16.mxu0 %v10627_v36  ;;  %7709 = vmatprep.subr.bf16.mxu1 %v10630_v38  ;;  %v10722_v36 = vld [vmem:[%s11108_s9 + $0x1bcc] ss:$16 sps:$4 sm:$0xff]   ;;  %v10717_v38 = vld [vmem:[%s11108_s9 + $0x1bc0] ss:$16 sps:$4 sm:$0xff]  }
 0x36f   : > { %7054 = vmatpush1.bf16.msra.mxu0 %v10625_v30  ;;  %7710 = vmatpush1.bf16.msra.mxu1 %v10628_v39  ;;  %v10720_v30 = vld [vmem:[%s11108_s9 + $0x1bc8] ss:$16 sps:$4 sm:$0xff]   ;;  %v10725_v39 = vld [vmem:[%s11108_s9 + $0x1be4] ss:$16 sps:$4 sm:$0xff]  }
 0x370   : > { %7064 = vmatprep.subr.bf16.mxu0 %v10635_v41  ;;  %7720 = vmatprep.subr.bf16.mxu1 %v10638_v34  ;;  %v10728_v41 = vld [vmem:[%s11108_s9 + $0x1bec] ss:$16 sps:$4 sm:$0xff]   ;;  %v10723_v34 = vld [vmem:[%s11108_s9 + $0x1be0] ss:$16 sps:$4 sm:$0xff]  }
 0x372   : > { %7056 = vmatmul.mubr.bf16.vlgmr.msra.gmra.mrb[0].mxu0 %v8156_v42  ;;  %7712 = vmatmul.mubr.bf16.vlgmr.msra.gmra.mrb[0].mxu1 %v8156_v42  ;;  %v10726_v42 = vld [vmem:[%s11108_s9 + $0x1be8] ss:$16 sps:$4 sm:$0xff]  }
 0x373   : > { %7065 = vmatpush1.bf16.msra.mxu0 %v10633_v44  ;;  %7721 = vmatpush1.bf16.msra.mxu1 %v10636_v37  ;;  %v10733_v44 = vld [vmem:[%s11108_s9 + $0x1c04] ss:$16 sps:$4 sm:$0xff]   ;;  %v10736_v37 = vld [vmem:[%s11108_s9 + $0x1c0c] ss:$16 sps:$4 sm:$0xff]  }
 0x374   : > { %7066 = vmatprep.subr.bf16.mxu0 %v10641_v45  ;;  %7722 = vmatprep.subr.bf16.mxu1 %v10644_v46  ;;  %v8158_v45 = vcombine.low %v12044_v43, %v12044_v43  ;;  %v12115_v46 = vld [vmem:[%s11166_s6 + $0x70] sm:$0xff] }
 0x375   : > { %7096 = vmatprep.mubr.bf16.mxu0 %v8159_v47  ;;  %7752 = vmatprep.mubr.bf16.mxu1 %v8159_v47  ;;  %v10731_v47 = vld [vmem:[%s11108_s9 + $0x1c00] ss:$16 sps:$4 sm:$0xff]  }
 0x376   : > { %v10737_v43 = vld [vmem:[%s11108_s9 + $0x1c20] ss:$16 sps:$4 sm:$0xff]  }
 0x377   : > { %7067 = vmatpush1.bf16.msra.mxu0 %v10639_v40  ;;  %7723 = vmatpush1.bf16.msra.mxu1 %v10642_v48  ;;  %v10734_v40 = vld [vmem:[%s11108_s9 + $0x1c08] ss:$16 sps:$4 sm:$0xff]   ;;  %v10739_v48 = vld [vmem:[%s11108_s9 + $0x1c24] ss:$16 sps:$4 sm:$0xff]  }
 0x378   : > { %7068 = vmatprep.subr.bf16.mxu0 %v10647_v49  ;;  %7724 = vmatprep.subr.bf16.mxu1 %v10650_v50  ;;  %v10742_v49 = vld [vmem:[%s11108_s9 + $0x1c2c] ss:$16 sps:$4 sm:$0xff]   ;;  %v8161_v50 = vcombine.high %v12115_v46, %v12115_v46 }
 0x37b   : > { %7069 = vmatpush1.bf16.msra.mxu0 %v10645_v51  ;;  %7725 = vmatpush1.bf16.msra.mxu1 %v10648_v52  ;;  %v10740_v51 = vld [vmem:[%s11108_s9 + $0x1c28] ss:$16 sps:$4 sm:$0xff]   ;;  %v10745_v52 = vld [vmem:[%s11108_s9 + $0x1c44] ss:$16 sps:$4 sm:$0xff]  }
 0x37c   : > { %7070 = vmatprep.subr.bf16.mxu0 %v10653_v53  ;;  %7726 = vmatprep.subr.bf16.mxu1 %v10656_v54  ;;  %v10748_v53 = vld [vmem:[%s11108_s9 + $0x1c4c] ss:$16 sps:$4 sm:$0xff]   ;;  %v10743_v54 = vld [vmem:[%s11108_s9 + $0x1c40] ss:$16 sps:$4 sm:$0xff]  }
 0x37f   : > { %7071 = vmatpush1.bf16.msra.mxu0 %v10651_v55  ;;  %7727 = vmatpush1.bf16.msra.mxu1 %v10654_v56  ;;  %v10746_v55 = vld [vmem:[%s11108_s9 + $0x1c48] ss:$16 sps:$4 sm:$0xff]   ;;  %v10751_v56 = vld [vmem:[%s11108_s9 + $0x1c64] ss:$16 sps:$4 sm:$0xff]  }
 0x380   : > { %7072 = vmatprep.subr.bf16.mxu0 %v10659_v57  ;;  %7728 = vmatprep.subr.bf16.mxu1 %v10662_v58  ;;  %v10754_v57 = vld [vmem:[%s11108_s9 + $0x1c6c] ss:$16 sps:$4 sm:$0xff]   ;;  %v10749_v58 = vld [vmem:[%s11108_s9 + $0x1c60] ss:$16 sps:$4 sm:$0xff]  }
 0x383   : > { %7073 = vmatpush1.bf16.msra.mxu0 %v10657_v59  ;;  %7729 = vmatpush1.bf16.msra.mxu1 %v10660_v60  ;;  %v10752_v59 = vld [vmem:[%s11108_s9 + $0x1c68] ss:$16 sps:$4 sm:$0xff]   ;;  %v10757_v60 = vld [vmem:[%s11108_s9 + $0x1c84] ss:$16 sps:$4 sm:$0xff]  }
 0x384   : > { %7074 = vmatprep.subr.bf16.mxu0 %v10665_v61  ;;  %7730 = vmatprep.subr.bf16.mxu1 %v10668_v62  ;;  %v10760_v61 = vld [vmem:[%s11108_s9 + $0x1c8c] ss:$16 sps:$4 sm:$0xff]   ;;  %v10755_v62 = vld [vmem:[%s11108_s9 + $0x1c80] ss:$16 sps:$4 sm:$0xff]  }
 0x387   : > { %7075 = vmatpush1.bf16.msra.mxu0 %v10663_v63  ;;  %7731 = vmatpush1.bf16.msra.mxu1 %v10666_v0  ;;  %v10758_v63 = vld [vmem:[%s11108_s9 + $0x1c88] ss:$16 sps:$4 sm:$0xff]   ;;  %v10763_v0 = vld [vmem:[%s11108_s9 + $0x1ca4] ss:$16 sps:$4 sm:$0xff]  }
 0x388   : > { %7076 = vmatprep.subr.bf16.mxu0 %v10671_v1  ;;  %7732 = vmatprep.subr.bf16.mxu1 %v10674_v2  ;;  %v10766_v1 = vld [vmem:[%s11108_s9 + $0x1cac] ss:$16 sps:$4 sm:$0xff]   ;;  %v10761_v2 = vld [vmem:[%s11108_s9 + $0x1ca0] ss:$16 sps:$4 sm:$0xff]  }
 0x38b   : > { %7077 = vmatpush1.bf16.msra.mxu0 %v10669_v3  ;;  %7733 = vmatpush1.bf16.msra.mxu1 %v10672_v4  ;;  %v10764_v3 = vld [vmem:[%s11108_s9 + $0x1ca8] ss:$16 sps:$4 sm:$0xff]   ;;  %v10769_v4 = vld [vmem:[%s11108_s9 + $0x1cc4] ss:$16 sps:$4 sm:$0xff]  }
 0x38c   : > { %7078 = vmatprep.subr.bf16.mxu0 %v10677_v5  ;;  %7734 = vmatprep.subr.bf16.mxu1 %v10680_v6  ;;  %v10772_v5 = vld [vmem:[%s11108_s9 + $0x1ccc] ss:$16 sps:$4 sm:$0xff]   ;;  %v10767_v6 = vld [vmem:[%s11108_s9 + $0x1cc0] ss:$16 sps:$4 sm:$0xff]  }
 0x38f   : > { %7079 = vmatpush1.bf16.msra.mxu0 %v10675_v7  ;;  %7735 = vmatpush1.bf16.msra.mxu1 %v10678_v8  ;;  %v10770_v7 = vld [vmem:[%s11108_s9 + $0x1cc8] ss:$16 sps:$4 sm:$0xff]   ;;  %v10775_v8 = vld [vmem:[%s11108_s9 + $0x1ce4] ss:$16 sps:$4 sm:$0xff]  }
 0x390   : > { %7080 = vmatprep.subr.bf16.mxu0 %v10683_v9  ;;  %7736 = vmatprep.subr.bf16.mxu1 %v10686_v10  ;;  %v10778_v9 = vld [vmem:[%s11108_s9 + $0x1cec] ss:$16 sps:$4 sm:$0xff]   ;;  %v10773_v10 = vld [vmem:[%s11108_s9 + $0x1ce0] ss:$16 sps:$4 sm:$0xff]  }
 0x393   : > { %7081 = vmatpush1.bf16.msra.mxu0 %v10681_v12  ;;  %7737 = vmatpush1.bf16.msra.mxu1 %v10684_v13  ;;  %v10776_v12 = vld [vmem:[%s11108_s9 + $0x1ce8] ss:$16 sps:$4 sm:$0xff]   ;;  %v10781_v13 = vld [vmem:[%s11108_s9 + $0x1d04] ss:$16 sps:$4 sm:$0xff]  }
 0x394   : > { %7082 = vmatprep.subr.bf16.mxu0 %v10689_v15  ;;  %7738 = vmatprep.subr.bf16.mxu1 %v10692_v16  ;;  %v10784_v15 = vld [vmem:[%s11108_s9 + $0x1d0c] ss:$16 sps:$4 sm:$0xff]   ;;  %v10779_v16 = vld [vmem:[%s11108_s9 + $0x1d00] ss:$16 sps:$4 sm:$0xff]  }
 0x397   : > { %7083 = vmatpush1.bf16.msra.mxu0 %v10687_v11  ;;  %7739 = vmatpush1.bf16.msra.mxu1 %v10690_v19  ;;  %v10782_v11 = vld [vmem:[%s11108_s9 + $0x1d08] ss:$16 sps:$4 sm:$0xff]   ;;  %v10787_v19 = vld [vmem:[%s11108_s9 + $0x1d24] ss:$16 sps:$4 sm:$0xff]  }
 0x398   : > { %7084 = vmatprep.subr.bf16.mxu0 %v10695_v20  ;;  %7740 = vmatprep.subr.bf16.mxu1 %v10698_v14  ;;  %v10790_v20 = vld [vmem:[%s11108_s9 + $0x1d2c] ss:$16 sps:$4 sm:$0xff]   ;;  %v10785_v14 = vld [vmem:[%s11108_s9 + $0x1d20] ss:$16 sps:$4 sm:$0xff]  }
 0x39b   : > { %7085 = vmatpush1.bf16.msra.mxu0 %v10693_v22  ;;  %7741 = vmatpush1.bf16.msra.mxu1 %v10696_v23  ;;  %v10788_v22 = vld [vmem:[%s11108_s9 + $0x1d28] ss:$16 sps:$4 sm:$0xff]   ;;  %v10793_v23 = vld [vmem:[%s11108_s9 + $0x1d44] ss:$16 sps:$4 sm:$0xff]  }
 0x39c   : > { %7086 = vmatprep.subr.bf16.mxu0 %v10701_v17  ;;  %7742 = vmatprep.subr.bf16.mxu1 %v10704_v25  ;;  %v10796_v17 = vld [vmem:[%s11108_s9 + $0x1d4c] ss:$16 sps:$4 sm:$0xff]   ;;  %v10791_v25 = vld [vmem:[%s11108_s9 + $0x1d40] ss:$16 sps:$4 sm:$0xff]  }
 0x39f   : > { %7087 = vmatpush1.bf16.msra.mxu0 %v10699_v26  ;;  %7743 = vmatpush1.bf16.msra.mxu1 %v10702_v18  ;;  %v10794_v26 = vld [vmem:[%s11108_s9 + $0x1d48] ss:$16 sps:$4 sm:$0xff]   ;;  %v10799_v18 = vld [vmem:[%s11108_s9 + $0x1d64] ss:$16 sps:$4 sm:$0xff]  }
 0x3a0   : > { %7088 = vmatprep.subr.bf16.mxu0 %v10707_v28  ;;  %7744 = vmatprep.subr.bf16.mxu1 %v10710_v29  ;;  %v10802_v28 = vld [vmem:[%s11108_s9 + $0x1d6c] ss:$16 sps:$4 sm:$0xff]   ;;  %v10797_v29 = vld [vmem:[%s11108_s9 + $0x1d60] ss:$16 sps:$4 sm:$0xff]  }
 0x3a3   : > { %7089 = vmatpush1.bf16.msra.mxu0 %v10705_v21  ;;  %7745 = vmatpush1.bf16.msra.mxu1 %v10708_v31  ;;  %v10800_v21 = vld [vmem:[%s11108_s9 + $0x1d68] ss:$16 sps:$4 sm:$0xff]   ;;  %v10805_v31 = vld [vmem:[%s11108_s9 + $0x1d84] ss:$16 sps:$4 sm:$0xff]  }
 0x3a4   : > { %7090 = vmatprep.subr.bf16.mxu0 %v10713_v32  ;;  %7746 = vmatprep.subr.bf16.mxu1 %v10716_v24  ;;  %v10808_v32 = vld [vmem:[%s11108_s9 + $0x1d8c] ss:$16 sps:$4 sm:$0xff]   ;;  %v10803_v24 = vld [vmem:[%s11108_s9 + $0x1d80] ss:$16 sps:$4 sm:$0xff]  }
 0x3a7   : > { %7091 = vmatpush1.bf16.msra.mxu0 %v10711_v33  ;;  %7747 = vmatpush1.bf16.msra.mxu1 %v10714_v35  ;;  %v10806_v33 = vld [vmem:[%s11108_s9 + $0x1d88] ss:$16 sps:$4 sm:$0xff]   ;;  %v10811_v35 = vld [vmem:[%s11108_s9 + $0x1da4] ss:$16 sps:$4 sm:$0xff]  }
 0x3a8   : > { %7092 = vmatprep.subr.bf16.mxu0 %v10719_v27  ;;  %7748 = vmatprep.subr.bf16.mxu1 %v10722_v36  ;;  %v10814_v27 = vld [vmem:[%s11108_s9 + $0x1dac] ss:$16 sps:$4 sm:$0xff]   ;;  %v10809_v36 = vld [vmem:[%s11108_s9 + $0x1da0] ss:$16 sps:$4 sm:$0xff]  }
 0x3ab   : > { %7093 = vmatpush1.bf16.msra.mxu0 %v10717_v38  ;;  %7749 = vmatpush1.bf16.msra.mxu1 %v10720_v30  ;;  %v10812_v38 = vld [vmem:[%s11108_s9 + $0x1da8] ss:$16 sps:$4 sm:$0xff]   ;;  %v10817_v30 = vld [vmem:[%s11108_s9 + $0x1dc4] ss:$16 sps:$4 sm:$0xff]  }
 0x3ac   : > { %7094 = vmatprep.subr.bf16.mxu0 %v10725_v39  ;;  %7750 = vmatprep.subr.bf16.mxu1 %v10728_v41  ;;  %v10820_v39 = vld [vmem:[%s11108_s9 + $0x1dcc] ss:$16 sps:$4 sm:$0xff]   ;;  %v10815_v41 = vld [vmem:[%s11108_s9 + $0x1dc0] ss:$16 sps:$4 sm:$0xff]  }
 0x3af   : > { %7095 = vmatpush1.bf16.msra.mxu0 %v10723_v34  ;;  %7751 = vmatpush1.bf16.msra.mxu1 %v10726_v42  ;;  %v10818_v34 = vld [vmem:[%s11108_s9 + $0x1dc8] ss:$16 sps:$4 sm:$0xff]   ;;  %v10823_v42 = vld [vmem:[%s11108_s9 + $0x1de4] ss:$16 sps:$4 sm:$0xff]  }
 0x3b0   : > { %7105 = vmatprep.subr.bf16.mxu0 %v10733_v44  ;;  %7761 = vmatprep.subr.bf16.mxu1 %v10736_v37  ;;  %v10826_v44 = vld [vmem:[%s11108_s9 + $0x1dec] ss:$16 sps:$4 sm:$0xff]   ;;  %v10821_v37 = vld [vmem:[%s11108_s9 + $0x1de0] ss:$16 sps:$4 sm:$0xff]  }
 0x3b2   : > { %7097 = vmatmul.mubr.bf16.vlgmr.msra.gmra.mrb[0].mxu0 %v8158_v45  ;;  %7753 = vmatmul.mubr.bf16.vlgmr.msra.gmra.mrb[0].mxu1 %v8158_v45  ;;  %v10824_v45 = vld [vmem:[%s11108_s9 + $0x1de8] ss:$16 sps:$4 sm:$0xff]  }
 0x3b3   : > { %7106 = vmatpush1.bf16.msra.mxu0 %v10731_v47  ;;  %7762 = vmatpush1.bf16.msra.mxu1 %v10734_v40  ;;  %v10831_v47 = vld [vmem:[%s11108_s9 + $0x1e04] ss:$16 sps:$4 sm:$0xff]   ;;  %v10834_v40 = vld [vmem:[%s11108_s9 + $0x1e0c] ss:$16 sps:$4 sm:$0xff]  }
 0x3b4   : > { %7107 = vmatprep.subr.bf16.mxu0 %v10739_v48  ;;  %7763 = vmatprep.subr.bf16.mxu1 %v10742_v49  ;;  %v8160_v48 = vcombine.low %v12115_v46, %v12115_v46  ;;  %v12186_v49 = vld [vmem:[%s11166_s6 + $0x78] sm:$0xff]  ;;  %v10835_v46 = vld [vmem:[%s11108_s9 + $0x1e20] ss:$16 sps:$4 sm:$0xff]  }
 0x3b5   : > { %7137 = vmatprep.mubr.bf16.mxu0 %v8161_v50  ;;  %7793 = vmatprep.mubr.bf16.mxu1 %v8161_v50  ;;  %v10829_v50 = vld [vmem:[%s11108_s9 + $0x1e00] ss:$16 sps:$4 sm:$0xff]  }
 0x3b7   : > { %7108 = vmatpush1.bf16.msra.mxu0 %v10737_v43  ;;  %7764 = vmatpush1.bf16.msra.mxu1 %v10740_v51  ;;  %v10832_v43 = vld [vmem:[%s11108_s9 + $0x1e08] ss:$16 sps:$4 sm:$0xff]   ;;  %v10837_v51 = vld [vmem:[%s11108_s9 + $0x1e24] ss:$16 sps:$4 sm:$0xff]  }
 0x3b8   : > { %7109 = vmatprep.subr.bf16.mxu0 %v10745_v52  ;;  %7765 = vmatprep.subr.bf16.mxu1 %v10748_v53  ;;  %v10840_v52 = vld [vmem:[%s11108_s9 + $0x1e2c] ss:$16 sps:$4 sm:$0xff]   ;;  %v8163_v53 = vcombine.high %v12186_v49, %v12186_v49 }
 0x3bb   : > { %7110 = vmatpush1.bf16.msra.mxu0 %v10743_v54  ;;  %7766 = vmatpush1.bf16.msra.mxu1 %v10746_v55  ;;  %v10838_v54 = vld [vmem:[%s11108_s9 + $0x1e28] ss:$16 sps:$4 sm:$0xff]   ;;  %v10843_v55 = vld [vmem:[%s11108_s9 + $0x1e44] ss:$16 sps:$4 sm:$0xff]  }
 0x3bc   : > { %7111 = vmatprep.subr.bf16.mxu0 %v10751_v56  ;;  %7767 = vmatprep.subr.bf16.mxu1 %v10754_v57  ;;  %v10846_v56 = vld [vmem:[%s11108_s9 + $0x1e4c] ss:$16 sps:$4 sm:$0xff]   ;;  %v10841_v57 = vld [vmem:[%s11108_s9 + $0x1e40] ss:$16 sps:$4 sm:$0xff]  }
 0x3bf   : > { %7112 = vmatpush1.bf16.msra.mxu0 %v10749_v58  ;;  %7768 = vmatpush1.bf16.msra.mxu1 %v10752_v59  ;;  %v10844_v58 = vld [vmem:[%s11108_s9 + $0x1e48] ss:$16 sps:$4 sm:$0xff]   ;;  %v10849_v59 = vld [vmem:[%s11108_s9 + $0x1e64] ss:$16 sps:$4 sm:$0xff]  }
 0x3c0   : > { %7113 = vmatprep.subr.bf16.mxu0 %v10757_v60  ;;  %7769 = vmatprep.subr.bf16.mxu1 %v10760_v61  ;;  %v10852_v60 = vld [vmem:[%s11108_s9 + $0x1e6c] ss:$16 sps:$4 sm:$0xff]   ;;  %v10847_v61 = vld [vmem:[%s11108_s9 + $0x1e60] ss:$16 sps:$4 sm:$0xff]  }
 0x3c3   : > { %7114 = vmatpush1.bf16.msra.mxu0 %v10755_v62  ;;  %7770 = vmatpush1.bf16.msra.mxu1 %v10758_v63  ;;  %v10850_v62 = vld [vmem:[%s11108_s9 + $0x1e68] ss:$16 sps:$4 sm:$0xff]   ;;  %v10855_v63 = vld [vmem:[%s11108_s9 + $0x1e84] ss:$16 sps:$4 sm:$0xff]  }
 0x3c4   : > { %7115 = vmatprep.subr.bf16.mxu0 %v10763_v0  ;;  %7771 = vmatprep.subr.bf16.mxu1 %v10766_v1  ;;  %v10858_v0 = vld [vmem:[%s11108_s9 + $0x1e8c] ss:$16 sps:$4 sm:$0xff]   ;;  %v10853_v1 = vld [vmem:[%s11108_s9 + $0x1e80] ss:$16 sps:$4 sm:$0xff]  }
 0x3c7   : > { %7116 = vmatpush1.bf16.msra.mxu0 %v10761_v2  ;;  %7772 = vmatpush1.bf16.msra.mxu1 %v10764_v3  ;;  %v10856_v2 = vld [vmem:[%s11108_s9 + $0x1e88] ss:$16 sps:$4 sm:$0xff]   ;;  %v10861_v3 = vld [vmem:[%s11108_s9 + $0x1ea4] ss:$16 sps:$4 sm:$0xff]  }
 0x3c8   : > { %7117 = vmatprep.subr.bf16.mxu0 %v10769_v4  ;;  %7773 = vmatprep.subr.bf16.mxu1 %v10772_v5  ;;  %v10864_v4 = vld [vmem:[%s11108_s9 + $0x1eac] ss:$16 sps:$4 sm:$0xff]   ;;  %v10859_v5 = vld [vmem:[%s11108_s9 + $0x1ea0] ss:$16 sps:$4 sm:$0xff]  }
 0x3cb   : > { %7118 = vmatpush1.bf16.msra.mxu0 %v10767_v6  ;;  %7774 = vmatpush1.bf16.msra.mxu1 %v10770_v7  ;;  %v10862_v6 = vld [vmem:[%s11108_s9 + $0x1ea8] ss:$16 sps:$4 sm:$0xff]   ;;  %v10867_v7 = vld [vmem:[%s11108_s9 + $0x1ec4] ss:$16 sps:$4 sm:$0xff]  }
 0x3cc   : > { %7119 = vmatprep.subr.bf16.mxu0 %v10775_v8  ;;  %7775 = vmatprep.subr.bf16.mxu1 %v10778_v9  ;;  %v10870_v8 = vld [vmem:[%s11108_s9 + $0x1ecc] ss:$16 sps:$4 sm:$0xff]   ;;  %v10865_v9 = vld [vmem:[%s11108_s9 + $0x1ec0] ss:$16 sps:$4 sm:$0xff]  }
 0x3cf   : > { %7120 = vmatpush1.bf16.msra.mxu0 %v10773_v10  ;;  %7776 = vmatpush1.bf16.msra.mxu1 %v10776_v12  ;;  %v10868_v10 = vld [vmem:[%s11108_s9 + $0x1ec8] ss:$16 sps:$4 sm:$0xff]   ;;  %v10873_v12 = vld [vmem:[%s11108_s9 + $0x1ee4] ss:$16 sps:$4 sm:$0xff]  }
 0x3d0   : > { %7121 = vmatprep.subr.bf16.mxu0 %v10781_v13  ;;  %7777 = vmatprep.subr.bf16.mxu1 %v10784_v15  ;;  %v10876_v13 = vld [vmem:[%s11108_s9 + $0x1eec] ss:$16 sps:$4 sm:$0xff]   ;;  %v10871_v15 = vld [vmem:[%s11108_s9 + $0x1ee0] ss:$16 sps:$4 sm:$0xff]  }
 0x3d3   : > { %7122 = vmatpush1.bf16.msra.mxu0 %v10779_v16  ;;  %7778 = vmatpush1.bf16.msra.mxu1 %v10782_v11  ;;  %v10874_v16 = vld [vmem:[%s11108_s9 + $0x1ee8] ss:$16 sps:$4 sm:$0xff]   ;;  %v10879_v11 = vld [vmem:[%s11108_s9 + $0x1f04] ss:$16 sps:$4 sm:$0xff]  }
 0x3d4   : > { %7123 = vmatprep.subr.bf16.mxu0 %v10787_v19  ;;  %7779 = vmatprep.subr.bf16.mxu1 %v10790_v20  ;;  %v10882_v19 = vld [vmem:[%s11108_s9 + $0x1f0c] ss:$16 sps:$4 sm:$0xff]   ;;  %v10877_v20 = vld [vmem:[%s11108_s9 + $0x1f00] ss:$16 sps:$4 sm:$0xff]  }
 0x3d7   : > { %7124 = vmatpush1.bf16.msra.mxu0 %v10785_v14  ;;  %7780 = vmatpush1.bf16.msra.mxu1 %v10788_v22  ;;  %v10880_v14 = vld [vmem:[%s11108_s9 + $0x1f08] ss:$16 sps:$4 sm:$0xff]   ;;  %v10885_v22 = vld [vmem:[%s11108_s9 + $0x1f24] ss:$16 sps:$4 sm:$0xff]  }
 0x3d8   : > { %7125 = vmatprep.subr.bf16.mxu0 %v10793_v23  ;;  %7781 = vmatprep.subr.bf16.mxu1 %v10796_v17  ;;  %v10888_v23 = vld [vmem:[%s11108_s9 + $0x1f2c] ss:$16 sps:$4 sm:$0xff]   ;;  %v10883_v17 = vld [vmem:[%s11108_s9 + $0x1f20] ss:$16 sps:$4 sm:$0xff]  }
 0x3db   : > { %7126 = vmatpush1.bf16.msra.mxu0 %v10791_v25  ;;  %7782 = vmatpush1.bf16.msra.mxu1 %v10794_v26  ;;  %v10886_v25 = vld [vmem:[%s11108_s9 + $0x1f28] ss:$16 sps:$4 sm:$0xff]   ;;  %v10891_v26 = vld [vmem:[%s11108_s9 + $0x1f44] ss:$16 sps:$4 sm:$0xff]  }
 0x3dc   : > { %7127 = vmatprep.subr.bf16.mxu0 %v10799_v18  ;;  %7783 = vmatprep.subr.bf16.mxu1 %v10802_v28  ;;  %v10894_v18 = vld [vmem:[%s11108_s9 + $0x1f4c] ss:$16 sps:$4 sm:$0xff]   ;;  %v10889_v28 = vld [vmem:[%s11108_s9 + $0x1f40] ss:$16 sps:$4 sm:$0xff]  }
 0x3df   : > { %7128 = vmatpush1.bf16.msra.mxu0 %v10797_v29  ;;  %7784 = vmatpush1.bf16.msra.mxu1 %v10800_v21  ;;  %v10892_v29 = vld [vmem:[%s11108_s9 + $0x1f48] ss:$16 sps:$4 sm:$0xff]   ;;  %v10897_v21 = vld [vmem:[%s11108_s9 + $0x1f64] ss:$16 sps:$4 sm:$0xff]  }
 0x3e0   : > { %7129 = vmatprep.subr.bf16.mxu0 %v10805_v31  ;;  %7785 = vmatprep.subr.bf16.mxu1 %v10808_v32  ;;  %v10900_v31 = vld [vmem:[%s11108_s9 + $0x1f6c] ss:$16 sps:$4 sm:$0xff]   ;;  %v10895_v32 = vld [vmem:[%s11108_s9 + $0x1f60] ss:$16 sps:$4 sm:$0xff]  }
 0x3e3   : > { %7130 = vmatpush1.bf16.msra.mxu0 %v10803_v24  ;;  %7786 = vmatpush1.bf16.msra.mxu1 %v10806_v33  ;;  %v10898_v24 = vld [vmem:[%s11108_s9 + $0x1f68] ss:$16 sps:$4 sm:$0xff]   ;;  %v10903_v33 = vld [vmem:[%s11108_s9 + $0x1f84] ss:$16 sps:$4 sm:$0xff]  }
 0x3e4   : > { %7131 = vmatprep.subr.bf16.mxu0 %v10811_v35  ;;  %7787 = vmatprep.subr.bf16.mxu1 %v10814_v27  ;;  %v10906_v35 = vld [vmem:[%s11108_s9 + $0x1f8c] ss:$16 sps:$4 sm:$0xff]   ;;  %v10901_v27 = vld [vmem:[%s11108_s9 + $0x1f80] ss:$16 sps:$4 sm:$0xff]  }
 0x3e7   : > { %7132 = vmatpush1.bf16.msra.mxu0 %v10809_v36  ;;  %7788 = vmatpush1.bf16.msra.mxu1 %v10812_v38  ;;  %v10904_v36 = vld [vmem:[%s11108_s9 + $0x1f88] ss:$16 sps:$4 sm:$0xff]   ;;  %v10909_v38 = vld [vmem:[%s11108_s9 + $0x1fa4] ss:$16 sps:$4 sm:$0xff]  }
 0x3e8   : > { %7133 = vmatprep.subr.bf16.mxu0 %v10817_v30  ;;  %7789 = vmatprep.subr.bf16.mxu1 %v10820_v39  ;;  %v10912_v30 = vld [vmem:[%s11108_s9 + $0x1fac] ss:$16 sps:$4 sm:$0xff]   ;;  %v10907_v39 = vld [vmem:[%s11108_s9 + $0x1fa0] ss:$16 sps:$4 sm:$0xff]  }
 0x3eb   : > { %7134 = vmatpush1.bf16.msra.mxu0 %v10815_v41  ;;  %7790 = vmatpush1.bf16.msra.mxu1 %v10818_v34  ;;  %v10910_v41 = vld [vmem:[%s11108_s9 + $0x1fa8] ss:$16 sps:$4 sm:$0xff]   ;;  %v10915_v34 = vld [vmem:[%s11108_s9 + $0x1fc4] ss:$16 sps:$4 sm:$0xff]  }
 0x3ec   : > { %7135 = vmatprep.subr.bf16.mxu0 %v10823_v42  ;;  %7791 = vmatprep.subr.bf16.mxu1 %v10826_v44  ;;  %v10918_v42 = vld [vmem:[%s11108_s9 + $0x1fcc] ss:$16 sps:$4 sm:$0xff]   ;;  %v10913_v44 = vld [vmem:[%s11108_s9 + $0x1fc0] ss:$16 sps:$4 sm:$0xff]  }
 0x3ef   : > { %7136 = vmatpush1.bf16.msra.mxu0 %v10821_v37  ;;  %7792 = vmatpush1.bf16.msra.mxu1 %v10824_v45  ;;  %v10916_v37 = vld [vmem:[%s11108_s9 + $0x1fc8] ss:$16 sps:$4 sm:$0xff]   ;;  %v10921_v45 = vld [vmem:[%s11108_s9 + $0x1fe4] ss:$16 sps:$4 sm:$0xff]  }
 0x3f0   : > { %7146 = vmatprep.subr.bf16.mxu0 %v10831_v47  ;;  %7802 = vmatprep.subr.bf16.mxu1 %v10834_v40  ;;  %v10924_v47 = vld [vmem:[%s11108_s9 + $0x1fec] ss:$16 sps:$4 sm:$0xff]   ;;  %v10919_v40 = vld [vmem:[%s11108_s9 + $0x1fe0] ss:$16 sps:$4 sm:$0xff]  }
 0x3f2   : > { %7138 = vmatmul.mubr.bf16.vlgmr.msra.gmra.mrb[0].mxu0 %v8160_v48  ;;  %7794 = vmatmul.mubr.bf16.vlgmr.msra.gmra.mrb[0].mxu1 %v8160_v48  ;;  %v10922_v48 = vld [vmem:[%s11108_s9 + $0x1fe8] ss:$16 sps:$4 sm:$0xff]  }
 0x3f3   : > { %7147 = vmatpush1.bf16.msra.mxu0 %v10829_v50  ;;  %7803 = vmatpush1.bf16.msra.mxu1 %v10832_v43  ;;  %v8162_v50 = vcombine.low %v12186_v49, %v12186_v49  ;;  %v10996_v43 = vmov 1966171168  }
 0x3f4   : > { %7148 = vmatprep.subr.bf16.mxu0 %v10837_v51  ;;  %7804 = vmatprep.subr.bf16.mxu1 %v10840_v52  ;;  %v7878_v51 = vunpack.c.l.s4 %v10996_v43  ;;  %v7880_v52 = vlaneseq }
 0x3f5   : > { %7178 = vmatprep.mubr.bf16.mxu0 %v8163_v53  ;;  %7834 = vmatprep.mubr.bf16.mxu1 %v8163_v53 }
 0x3f6   : > { %v7879_v53 = vunpack.c.0.s8 %v7878_v51  ;;  %vm7902_vm0 = vcmp.lt.s32.totalorder %v7880_v52, 512 }
 0x3f7   : > { %7149 = vmatpush1.bf16.msra.mxu0 %v10835_v46  ;;  %7805 = vmatpush1.bf16.msra.mxu1 %v10838_v54  ;;  %v7881_v46 = vshrl.u32 %v7880_v52, 7 }
 0x3f8   : > { %7150 = vmatprep.subr.bf16.mxu0 %v10843_v55  ;;  %7806 = vmatprep.subr.bf16.mxu1 %v10846_v56 }
 0x3f9   : > { %v12258_v56 = vsub.s32 %v7879_v53, %v7881_v46 }
 0x3fb   : > { %7151 = vmatpush1.bf16.msra.mxu0 %v10841_v57  ;;  %7807 = vmatpush1.bf16.msra.mxu1 %v10844_v58 }
 0x3fc   : > { %7152 = vmatprep.subr.bf16.mxu0 %v10849_v59  ;;  %7808 = vmatprep.subr.bf16.mxu1 %v10852_v60 }
 0x3ff   : > { %7153 = vmatpush1.bf16.msra.mxu0 %v10847_v61  ;;  %7809 = vmatpush1.bf16.msra.mxu1 %v10850_v62 }
 0x400   : > { %7154 = vmatprep.subr.bf16.mxu0 %v10855_v63  ;;  %7810 = vmatprep.subr.bf16.mxu1 %v10858_v0 }
 0x403   : > { %7155 = vmatpush1.bf16.msra.mxu0 %v10853_v1  ;;  %7811 = vmatpush1.bf16.msra.mxu1 %v10856_v2 }
 0x404   : > { %7156 = vmatprep.subr.bf16.mxu0 %v10861_v3  ;;  %7812 = vmatprep.subr.bf16.mxu1 %v10864_v4 }
 0x407   : > { %7157 = vmatpush1.bf16.msra.mxu0 %v10859_v5  ;;  %7813 = vmatpush1.bf16.msra.mxu1 %v10862_v6 }
 0x408   : > { %7158 = vmatprep.subr.bf16.mxu0 %v10867_v7  ;;  %7814 = vmatprep.subr.bf16.mxu1 %v10870_v8 }
 0x40b   : > { %7159 = vmatpush1.bf16.msra.mxu0 %v10865_v9  ;;  %7815 = vmatpush1.bf16.msra.mxu1 %v10868_v10 }
 0x40c   : > { %7160 = vmatprep.subr.bf16.mxu0 %v10873_v12  ;;  %7816 = vmatprep.subr.bf16.mxu1 %v10876_v13 }
 0x40f   : > { %7161 = vmatpush1.bf16.msra.mxu0 %v10871_v15  ;;  %7817 = vmatpush1.bf16.msra.mxu1 %v10874_v16 }
 0x410   : > { %7162 = vmatprep.subr.bf16.mxu0 %v10879_v11  ;;  %7818 = vmatprep.subr.bf16.mxu1 %v10882_v19 }
 0x413   : > { %7163 = vmatpush1.bf16.msra.mxu0 %v10877_v20  ;;  %7819 = vmatpush1.bf16.msra.mxu1 %v10880_v14 }
 0x414   : > { %7164 = vmatprep.subr.bf16.mxu0 %v10885_v22  ;;  %7820 = vmatprep.subr.bf16.mxu1 %v10888_v23 }
 0x417   : > { %7165 = vmatpush1.bf16.msra.mxu0 %v10883_v17  ;;  %7821 = vmatpush1.bf16.msra.mxu1 %v10886_v25 }
 0x418   : > { %7166 = vmatprep.subr.bf16.mxu0 %v10891_v26  ;;  %7822 = vmatprep.subr.bf16.mxu1 %v10894_v18 }
 0x41b   : > { %7167 = vmatpush1.bf16.msra.mxu0 %v10889_v28  ;;  %7823 = vmatpush1.bf16.msra.mxu1 %v10892_v29 }
 0x41c   : > { %7168 = vmatprep.subr.bf16.mxu0 %v10897_v21  ;;  %7824 = vmatprep.subr.bf16.mxu1 %v10900_v31 }
 0x41f   : > { %7169 = vmatpush1.bf16.msra.mxu0 %v10895_v32  ;;  %7825 = vmatpush1.bf16.msra.mxu1 %v10898_v24 }
 0x420   : > { %7170 = vmatprep.subr.bf16.mxu0 %v10903_v33  ;;  %7826 = vmatprep.subr.bf16.mxu1 %v10906_v35 }
 0x423   : > { %7171 = vmatpush1.bf16.msra.mxu0 %v10901_v27  ;;  %7827 = vmatpush1.bf16.msra.mxu1 %v10904_v36 }
 0x424   : > { %7172 = vmatprep.subr.bf16.mxu0 %v10909_v38  ;;  %7828 = vmatprep.subr.bf16.mxu1 %v10912_v30 }
 0x427   : > { %7173 = vmatpush1.bf16.msra.mxu0 %v10907_v39  ;;  %7829 = vmatpush1.bf16.msra.mxu1 %v10910_v41 }
 0x428   : > { %7174 = vmatprep.subr.bf16.mxu0 %v10915_v34  ;;  %7830 = vmatprep.subr.bf16.mxu1 %v10918_v42 }
 0x42b   : > { %7175 = vmatpush1.bf16.msra.mxu0 %v10913_v44  ;;  %7831 = vmatpush1.bf16.msra.mxu1 %v10916_v37 }
 0x42c   : > { %7176 = vmatprep.subr.bf16.mxu0 %v10921_v45  ;;  %7832 = vmatprep.subr.bf16.mxu1 %v10924_v47 }
 0x42f   : > { %7177 = vmatpush1.bf16.msra.mxu0 %v10919_v40  ;;  %7833 = vmatpush1.bf16.msra.mxu1 %v10922_v48 }
 0x432   : > { %7179 = vmatmul.mubr.bf16.vlgmr.msra.gmra.mrb[0].mxu0 %v8162_v50  ;;  %7835 = vmatmul.mubr.bf16.vlgmr.msra.gmra.mrb[0].mxu1 %v8162_v50 }
 0x505   : > { %v7180_v54 = vpop.f32.mrb[0].mxu0  ;;  %v12256_v55 = vpop.f32.mrb[0].mxu1 }
 0x506   : > { %v7843_v57 = vmul.f32 %v7180_v54, %v7180_v54  ;;  %v7847_v58 = vrot.slane %v7180_v54, 4  ;;  %v7845_v49 = vmul.f32 %v12256_v55, %v12256_v55  ;;  %v7859_v59 = vrot.slane %v12256_v55, 4  ;;  %v7182_v60 = vpop.f32.mrb[1].mxu0  ;;  %v7838_v61 = vpop.f32.mrb[1].mxu1 }
 0x507   : > { %v7844_v62 = vmul.f32 %v7182_v60, %v7182_v60  ;;  %v7853_v63 = vrot.slane %v7182_v60, 4  ;;  %v9195_v0 = vpack.c.bf16 %v7182_v60, %v7180_v54  ;;  %v7846_v1 = vmul.f32 %v7838_v61, %v7838_v61  ;;  %v7184_v2 = vpop.f32.mrb[2].mxu0  ;;  %v7840_v3 = vpop.f32.mrb[2].mxu1 }
 0x508   : > { %v7848_v4 = vadd.f32 %v7847_v58, %v7180_v54  ;;  %v7905_v5 = vrot.slane %v7843_v57, 4  ;;  %v7860_v6 = vadd.f32 %v7859_v59, %v12256_v55  ;;  %v7917_v7 = vrot.slane %v7845_v49, 4  ;;  %v7185_v8 = vpop.f32.mrb[3].mxu0  ;;  %v7841_v9 = vpop.f32.mrb[3].mxu1 }
 0x509   : > { %v7854_v10 = vadd.f32 %v7853_v63, %v7182_v60  ;;  %v7911_v12 = vrot.slane %v7844_v62, 4  ;;  %7975 = vst [vmem:[%s12266_s11] sm:$0xff] %v9195_v0  ;;  %v7865_v13 = vrot.slane %v7838_v61, 4  ;;  %v7923_v15 = vrot.slane %v7846_v1, 4 }
 0x50a   : > { %v7849_v16 = vrot.slane %v7848_v4, 2  ;;  %v7906_v11 = vadd.f32 %v7905_v5, %v7843_v57  ;;  %v7861_v19 = vrot.slane %v7860_v6, 2  ;;  %v7918_v20 = vadd.f32 %v7917_v7, %v7845_v49 }
 0x50b   : > { %v7855_v14 = vrot.slane %v7854_v10, 2  ;;  %v7912_v22 = vadd.f32 %v7911_v12, %v7844_v62  ;;  %v7866_v23 = vadd.f32 %v7865_v13, %v7838_v61  ;;  %v7924_v17 = vadd.f32 %v7923_v15, %v7846_v1 }
 0x50c   : > { %v7850_v25 = vadd.f32 %v7849_v16, %v7848_v4  ;;  %v7907_v26 = vrot.slane %v7906_v11, 2  ;;  %v7862_v18 = vadd.f32 %v7861_v19, %v7860_v6  ;;  %v7919_v28 = vrot.slane %v7918_v20, 2 }
 0x50d   : > { %v7856_v29 = vadd.f32 %v7855_v14, %v7854_v10  ;;  %v7913_v21 = vrot.slane %v7912_v22, 2  ;;  %v7867_v31 = vrot.slane %v7866_v23, 2  ;;  %v7925_v32 = vrot.slane %v7924_v17, 2 }
 0x50e   : > { %v7851_v24 = vrot.slane %v7850_v25, 1  ;;  %v7908_v33 = vadd.f32 %v7907_v26, %v7906_v11  ;;  %v7863_v35 = vrot.slane %v7862_v18, 1  ;;  %v7920_v27 = vadd.f32 %v7919_v28, %v7918_v20 }
 0x50f   : > { %v7857_v36 = vrot.slane %v7856_v29, 1  ;;  %v7914_v38 = vadd.f32 %v7913_v21, %v7912_v22  ;;  %v7868_v30 = vadd.f32 %v7867_v31, %v7866_v23  ;;  %v7926_v39 = vadd.f32 %v7925_v32, %v7924_v17 }
 0x510   : > { %v7852_v41 = vadd.f32 %v7851_v24, %v7850_v25  ;;  %v7909_v34 = vrot.slane %v7908_v33, 1  ;;  %v7864_v42 = vadd.f32 %v7863_v35, %v7862_v18  ;;  %v7921_v44 = vrot.slane %v7920_v27, 1 }
 0x511   : > { %v7858_v37 = vadd.f32 %v7857_v36, %v7856_v29  ;;  %v7915_v45 = vrot.slane %v7914_v38, 1  ;;  %v7869_v47 = vrot.slane %v7868_v30, 1  ;;  %v7927_v40 = vrot.slane %v7926_v39, 1 }
 0x512   : > { %v7910_v48 = vadd.f32 %v7909_v34, %v7908_v33  ;;  %v7922_v50 = vadd.f32 %v7921_v44, %v7920_v27  ;;  %v9196_v43 = vpack.c.bf16 %v7838_v61, %v12256_v55 }
 0x513   : > { %v7875_v51 = vcombine.low %v7852_v41, %v7858_v37  ;;  %v7916_v53 = vadd.f32 %v7915_v45, %v7914_v38  ;;  %v7870_v46 = vadd.f32 %v7869_v47, %v7868_v30  ;;  %v7928_v54 = vadd.f32 %v7927_v40, %v7926_v39 }
 0x514   : > { %7976 = vst [vmem:[%s12266_s11 + $0x8] sm:$0xff] %v9196_v43 }
 0x515   : > { %v7883_v57 = vrot.slane %v7875_v51, %v12258_v56  ;;  %v7933_v58 = vcombine.low %v7910_v48, %v7916_v53  ;;  %v7876_v49 = vcombine.low %v7864_v42, %v7870_v46  ;;  %v7934_v59 = vcombine.low %v7922_v50, %v7928_v54 }
 0x517   : > { %v7941_v60 = vrot.slane %v7933_v58, %v12258_v56  ;;  %v7890_v62 = vrot.slane %v7876_v49, %v12258_v56  ;;  %v7948_v63 = vrot.slane %v7934_v59, %v12258_v56 }
 0x519   : > { %v7891_v0 = vcombine.low %v7883_v57, %v7890_v62  ;;  %v7949_v1 = vcombine.low %v7941_v60, %v7948_v63 }
 0x51b   : > { %v7898_v55 = vrot.slane %v7891_v0, %v12258_v56  ;;  %v7956_v61 = vrot.slane %v7949_v1, %v12258_v56 }
 0x51d   : > { %7904 = vst.msk [vmem:[%s254_s15] sm:$0xf] %vm7902_vm0, %v7898_v55  ;;  %7958 = vst.msk [vmem:[%s258_s25] sm:$0xf] %vm7902_vm0, %v7956_v61 }
 0x51e PF: > { %p15_p8 = scmp.ge.s32.totalorder %s11044_s20, 6   ;;  %s12307_s15 = smov %s10983_s16 }
 0x51f   : > { %s12308_s16 = smov %s10987_s17  ;;  %s12309_s17 = smov %s11054_s23 }
 0x520   : > { %s12310_s18 = smov %s11044_s20  ;;  %17 = sbr.rel (!%p15_p8) target bundleno = 3 (0x3), region = 95 }
 0x527   :  { %8026 = vsyncpa [#allocation3], 1 }
 0x528   :  { %8028 = vsyncpa [#allocation3 + $0x1], 1 }

// kernel: decoder_pre_forward.8
= control target key start
LH: loop header
LB: loop body
LE: loop exit
PB: predicated region body
PF: predicated region fallthrough
CT: control target
= control target key end

     0   :  { %s2220_s15 = smov 0   ;;  %s2851_s0 = inlined_call_operand.vmem [shape: bf16[4,512,256], index: 0, kind: input, shape index: {}]   ;;  %s2852_s1 = inlined_call_operand.vmem [shape: bf16[4,256,16], index: 1, kind: input, shape index: {}]   ;;  %s2853_s2 = inlined_call_operand.vmem [shape: bf16[4,512,16], index: 2, kind: output, shape index: {0}]   ;;  %s2854_s3 = inlined_call_operand.vmem [shape: f32[4,1,16], index: 3, kind: output, shape index: {1}]   ;;  %s2855_s4 = inlined_call_operand.vmem [shape: f32[4,1,16], index: 4, kind: output, shape index: {2}]  }
   0x1 LB: > { %s1809_s16 = sadd.s32 4294967295, %s2192_s15   ;;  %p1813_p0 = scmp.ge.s32.totalorder %s2192_s15, 1  ;;  %s2192_s15 = sphi %s2220_s15, %s15_s15  }
   0x2   : > { %p177_p1 = scmp.lt.s32.totalorder %s2192_s15, 5 }
   0x4   : > { %p178_p2 = pnand %p1813_p0, %p177_p1 }
   0x5   : > { %p214_p3 = scmp.lt.s32.totalorder (!%p178_p2), %s1809_s16, 3  ;;  %v2194_v0 = vmov (!%p178_p2), 0   ;;  %vm1101_vm0 = vcmask (!%p178_p2), 130048   ;;  %vm1627_vm1 = vcmask (!%p178_p2), 125952   ;;  %vm1235_vm2 = vcmask (!%p178_p2), 122880  }
   0x6   : > { %181 = sbr.rel (%p178_p2) target bundleno = 496 (0x1f0), region = 28  ;;  %748 = vmatprep.subr.bf16.mxu0 (!%p178_p2), %v2194_v0  ;;  %2033 = vmatprep.subr.bf16.mxu1 (!%p178_p2), %v2194_v0 }
   0xd   : > { %s2857_s16 = smov (!%p214_p3, %s1809_s16), 3 }
   0xe   : > { %s1967_s17 = sshll.u32 %s2857_s16, 7  ;;  %s1966_s21 = sshll.u32 %s2857_s16, 9 }
   0xf   : > { %s2236_s20 = scalar_lea.vmem %s2852_s1, %s1967_s17  ;;  %s2253_s24 = scalar_lea.vmem %s2851_s0, %s1966_s21 }
  0x10   : > { %v2074_v1 = vld [vmem:[%s2236_s20] sm:$0xff]   ;;  %v2075_v2 = vld [vmem:[%s2236_s20 + $0x8] sm:$0xff]   ;;  %v2076_v3 = vld [vmem:[%s2236_s20 + $0x10] sm:$0xff]   ;;  %s1968_s25 = sshll.u32 %s2857_s16, 8  ;;  %s231_s5 = scalar_lea.vmem %s2854_s3, %s2857_s16 }
  0x11   : > { %749 = vmatpush1.bf16.msra.mxu0 %v2074_v1  ;;  %2049 = vmatpush1.bf16.msra.mxu1 %v2074_v1  ;;  %v2077_v4 = vld [vmem:[%s2236_s20 + $0x18] sm:$0xff]   ;;  %v2078_v5 = vld [vmem:[%s2236_s20 + $0x20] sm:$0xff]   ;;  %v2079_v7 = vld [vmem:[%s2236_s20 + $0x28] sm:$0xff]   ;;  %s2358_s28 = scalar_lea.vmem %s2853_s2, %s1968_s25  ;;  %s234_s8 = scalar_lea.vmem %s2855_s4, %s2857_s16 }
  0x12   : > { %750 = vmatprep.subr.bf16.mxu0 %v2194_v0  ;;  %2034 = vmatprep.subr.bf16.mxu1 %v2194_v0  ;;  %v2092_v6 = vld [vmem:[%s2253_s24 + $0x4] ss:$8 sps:$4 sm:$0xff]   ;;  %v2080_v8 = vld [vmem:[%s2236_s20 + $0x30] sm:$0xff]   ;;  %v2081_v9 = vld [vmem:[%s2236_s20 + $0x38] sm:$0xff]  }
  0x13   : > { %780 = vmatprep.mubr.bf16.mxu0 %v2092_v6  ;;  %v2116_v10 = vld [vmem:[%s2253_s24 + $0x104] ss:$8 sps:$4 sm:$0xff]   ;;  %v2084_v13 = vld [vmem:[%s2236_s20 + $0x50] sm:$0xff]   ;;  %v2085_v14 = vld [vmem:[%s2236_s20 + $0x58] sm:$0xff]  }
  0x14   : > { %908 = vmatprep.mubr.bf16.mxu1 %v2116_v10  ;;  %v2082_v11 = vld [vmem:[%s2236_s20 + $0x40] sm:$0xff]   ;;  %v2083_v12 = vld [vmem:[%s2236_s20 + $0x48] sm:$0xff]   ;;  %v2088_v17 = vld [vmem:[%s2236_s20 + $0x70] sm:$0xff]  }
  0x15   : > { %751 = vmatpush1.bf16.msra.mxu0 %v2075_v2  ;;  %2050 = vmatpush1.bf16.msra.mxu1 %v2075_v2  ;;  %v2086_v15 = vld [vmem:[%s2236_s20 + $0x60] sm:$0xff]   ;;  %v2087_v16 = vld [vmem:[%s2236_s20 + $0x68] sm:$0xff]   ;;  %v2089_v18 = vld [vmem:[%s2236_s20 + $0x78] sm:$0xff]  }
  0x16   : > { %752 = vmatprep.subr.bf16.mxu0 %v2194_v0  ;;  %2035 = vmatprep.subr.bf16.mxu1 %v2194_v0  ;;  %v2090_v19 = vld [vmem:[%s2253_s24] ss:$8 sps:$4 sm:$0xff]   ;;  %v2093_v21 = vld [vmem:[%s2253_s24 + $0x14] ss:$8 sps:$4 sm:$0xff]   ;;  %v2095_v23 = vld [vmem:[%s2253_s24 + $0x10] ss:$8 sps:$4 sm:$0xff]  }
  0x17   : > { %v2114_v20 = vld [vmem:[%s2253_s24 + $0x100] ss:$8 sps:$4 sm:$0xff]   ;;  %v2120_v22 = vld [vmem:[%s2253_s24 + $0x114] ss:$8 sps:$4 sm:$0xff]   ;;  %v2122_v24 = vld [vmem:[%s2253_s24 + $0x110] ss:$8 sps:$4 sm:$0xff]  }
  0x18   : > { %v2096_v25 = vld [vmem:[%s2253_s24 + $0x24] ss:$8 sps:$4 sm:$0xff]   ;;  %v2098_v27 = vld [vmem:[%s2253_s24 + $0x20] ss:$8 sps:$4 sm:$0xff]   ;;  %v2099_v29 = vld [vmem:[%s2253_s24 + $0x34] ss:$8 sps:$4 sm:$0xff]  }
  0x19   : > { %753 = vmatpush1.bf16.msra.mxu0 %v2076_v3  ;;  %2051 = vmatpush1.bf16.msra.mxu1 %v2076_v3  ;;  %v2126_v26 = vld [vmem:[%s2253_s24 + $0x124] ss:$8 sps:$4 sm:$0xff]   ;;  %v2128_v28 = vld [vmem:[%s2253_s24 + $0x120] ss:$8 sps:$4 sm:$0xff]   ;;  %v2132_v30 = vld [vmem:[%s2253_s24 + $0x134] ss:$8 sps:$4 sm:$0xff]  }
  0x1a   : > { %754 = vmatprep.subr.bf16.mxu0 %v2194_v0  ;;  %2036 = vmatprep.subr.bf16.mxu1 %v2194_v0  ;;  %v2101_v31 = vld [vmem:[%s2253_s24 + $0x30] ss:$8 sps:$4 sm:$0xff]   ;;  %v2102_v33 = vld [vmem:[%s2253_s24 + $0x44] ss:$8 sps:$4 sm:$0xff]   ;;  %v2104_v35 = vld [vmem:[%s2253_s24 + $0x40] ss:$8 sps:$4 sm:$0xff]  }
  0x1b   : > { %v2134_v32 = vld [vmem:[%s2253_s24 + $0x130] ss:$8 sps:$4 sm:$0xff]   ;;  %v2138_v34 = vld [vmem:[%s2253_s24 + $0x144] ss:$8 sps:$4 sm:$0xff]   ;;  %v2140_v36 = vld [vmem:[%s2253_s24 + $0x140] ss:$8 sps:$4 sm:$0xff]  }
  0x1c   : > { %v2105_v37 = vld [vmem:[%s2253_s24 + $0x54] ss:$8 sps:$4 sm:$0xff]   ;;  %v2107_v39 = vld [vmem:[%s2253_s24 + $0x50] ss:$8 sps:$4 sm:$0xff]   ;;  %v2108_v41 = vld [vmem:[%s2253_s24 + $0x64] ss:$8 sps:$4 sm:$0xff]  }
  0x1d   : > { %755 = vmatpush1.bf16.msra.mxu0 %v2077_v4  ;;  %2052 = vmatpush1.bf16.msra.mxu1 %v2077_v4  ;;  %v2144_v38 = vld [vmem:[%s2253_s24 + $0x154] ss:$8 sps:$4 sm:$0xff]   ;;  %v2146_v40 = vld [vmem:[%s2253_s24 + $0x150] ss:$8 sps:$4 sm:$0xff]   ;;  %v2150_v42 = vld [vmem:[%s2253_s24 + $0x164] ss:$8 sps:$4 sm:$0xff]  }
  0x1e   : > { %756 = vmatprep.subr.bf16.mxu0 %v2194_v0  ;;  %2037 = vmatprep.subr.bf16.mxu1 %v2194_v0  ;;  %v2110_v43 = vld [vmem:[%s2253_s24 + $0x60] ss:$8 sps:$4 sm:$0xff]   ;;  %v2111_v45 = vld [vmem:[%s2253_s24 + $0x74] ss:$8 sps:$4 sm:$0xff]   ;;  %v2113_v47 = vld [vmem:[%s2253_s24 + $0x70] ss:$8 sps:$4 sm:$0xff]  }
  0x1f   : > { %v2152_v44 = vld [vmem:[%s2253_s24 + $0x160] ss:$8 sps:$4 sm:$0xff]   ;;  %v2156_v46 = vld [vmem:[%s2253_s24 + $0x174] ss:$8 sps:$4 sm:$0xff]   ;;  %v2158_v48 = vld [vmem:[%s2253_s24 + $0x170] ss:$8 sps:$4 sm:$0xff]  }
  0x20   : > { %v2117_v49 = vld [vmem:[%s2253_s24 + $0x84] ss:$8 sps:$4 sm:$0xff]   ;;  %v2119_v51 = vld [vmem:[%s2253_s24 + $0x80] ss:$8 sps:$4 sm:$0xff]   ;;  %v2123_v53 = vld [vmem:[%s2253_s24 + $0x94] ss:$8 sps:$4 sm:$0xff]  }
  0x21   : > { %757 = vmatpush1.bf16.msra.mxu0 %v2078_v5  ;;  %2053 = vmatpush1.bf16.msra.mxu1 %v2078_v5  ;;  %v2162_v50 = vld [vmem:[%s2253_s24 + $0x184] ss:$8 sps:$4 sm:$0xff]   ;;  %v2164_v52 = vld [vmem:[%s2253_s24 + $0x180] ss:$8 sps:$4 sm:$0xff]   ;;  %v2165_v54 = vld [vmem:[%s2253_s24 + $0x194] ss:$8 sps:$4 sm:$0xff]  }
  0x22   : > { %758 = vmatprep.subr.bf16.mxu0 %v2194_v0  ;;  %2038 = vmatprep.subr.bf16.mxu1 %v2194_v0  ;;  %v2125_v55 = vld [vmem:[%s2253_s24 + $0x90] ss:$8 sps:$4 sm:$0xff]   ;;  %v2129_v57 = vld [vmem:[%s2253_s24 + $0xa4] ss:$8 sps:$4 sm:$0xff]   ;;  %v2131_v59 = vld [vmem:[%s2253_s24 + $0xa0] ss:$8 sps:$4 sm:$0xff]  }
  0x23   : > { %v2167_v56 = vld [vmem:[%s2253_s24 + $0x190] ss:$8 sps:$4 sm:$0xff]   ;;  %v2168_v58 = vld [vmem:[%s2253_s24 + $0x1a4] ss:$8 sps:$4 sm:$0xff]   ;;  %v2170_v60 = vld [vmem:[%s2253_s24 + $0x1a0] ss:$8 sps:$4 sm:$0xff]  }
  0x24   : > { %v2135_v61 = vld [vmem:[%s2253_s24 + $0xb4] ss:$8 sps:$4 sm:$0xff]   ;;  %v2137_v63 = vld [vmem:[%s2253_s24 + $0xb0] ss:$8 sps:$4 sm:$0xff]   ;;  %v2141_v1 = vld [vmem:[%s2253_s24 + $0xc4] ss:$8 sps:$4 sm:$0xff]  }
  0x25   : > { %759 = vmatpush1.bf16.msra.mxu0 %v2079_v7  ;;  %2054 = vmatpush1.bf16.msra.mxu1 %v2079_v7  ;;  %v2171_v62 = vld [vmem:[%s2253_s24 + $0x1b4] ss:$8 sps:$4 sm:$0xff]   ;;  %v2174_v2 = vld [vmem:[%s2253_s24 + $0x1c4] ss:$8 sps:$4 sm:$0xff]   ;;  %v2143_v3 = vld [vmem:[%s2253_s24 + $0xc0] ss:$8 sps:$4 sm:$0xff]  }
  0x26   : > { %760 = vmatprep.subr.bf16.mxu0 %v2194_v0  ;;  %2039 = vmatprep.subr.bf16.mxu1 %v2194_v0  ;;  %v2176_v4 = vld [vmem:[%s2253_s24 + $0x1c0] ss:$8 sps:$4 sm:$0xff]   ;;  %v2147_v5 = vld [vmem:[%s2253_s24 + $0xd4] ss:$8 sps:$4 sm:$0xff]   ;;  %v2149_v7 = vld [vmem:[%s2253_s24 + $0xd0] ss:$8 sps:$4 sm:$0xff]  }
  0x27   : > { %v2177_v6 = vld [vmem:[%s2253_s24 + $0x1d4] ss:$8 sps:$4 sm:$0xff]   ;;  %v2180_v10 = vld [vmem:[%s2253_s24 + $0x1e4] ss:$8 sps:$4 sm:$0xff]  }
  0x29   : > { %761 = vmatpush1.bf16.msra.mxu0 %v2080_v8  ;;  %2055 = vmatpush1.bf16.msra.mxu1 %v2080_v8  ;;  %v2179_v8 = vld [vmem:[%s2253_s24 + $0x1d0] ss:$8 sps:$4 sm:$0xff]  }
  0x2a   : > { %762 = vmatprep.subr.bf16.mxu0 %v2194_v0  ;;  %2040 = vmatprep.subr.bf16.mxu1 %v2194_v0 }
  0x2d   : > { %763 = vmatpush1.bf16.msra.mxu0 %v2081_v9  ;;  %2056 = vmatpush1.bf16.msra.mxu1 %v2081_v9  ;;  %v2153_v9 = vld [vmem:[%s2253_s24 + $0xe4] ss:$8 sps:$4 sm:$0xff]  }
  0x2e   : > { %764 = vmatprep.subr.bf16.mxu0 %v2194_v0  ;;  %2041 = vmatprep.subr.bf16.mxu1 %v2194_v0 }
  0x31   : > { %765 = vmatpush1.bf16.msra.mxu0 %v2082_v11  ;;  %2057 = vmatpush1.bf16.msra.mxu1 %v2082_v11  ;;  %v2155_v11 = vld [vmem:[%s2253_s24 + $0xe0] ss:$8 sps:$4 sm:$0xff]  }
  0x32   : > { %766 = vmatprep.subr.bf16.mxu0 %v2194_v0  ;;  %2042 = vmatprep.subr.bf16.mxu1 %v2194_v0 }
  0x35   : > { %767 = vmatpush1.bf16.msra.mxu0 %v2083_v12  ;;  %2058 = vmatpush1.bf16.msra.mxu1 %v2083_v12  ;;  %v2182_v12 = vld [vmem:[%s2253_s24 + $0x1e0] ss:$8 sps:$4 sm:$0xff]  }
  0x36   : > { %768 = vmatprep.subr.bf16.mxu0 %v2194_v0  ;;  %2043 = vmatprep.subr.bf16.mxu1 %v2194_v0 }
  0x39   : > { %769 = vmatpush1.bf16.msra.mxu0 %v2084_v13  ;;  %2059 = vmatpush1.bf16.msra.mxu1 %v2084_v13  ;;  %v2159_v13 = vld [vmem:[%s2253_s24 + $0xf4] ss:$8 sps:$4 sm:$0xff]  }
  0x3a   : > { %770 = vmatprep.subr.bf16.mxu0 %v2194_v0  ;;  %2044 = vmatprep.subr.bf16.mxu1 %v2194_v0 }
  0x3d   : > { %771 = vmatpush1.bf16.msra.mxu0 %v2085_v14  ;;  %2060 = vmatpush1.bf16.msra.mxu1 %v2085_v14  ;;  %v2183_v14 = vld [vmem:[%s2253_s24 + $0x1f4] ss:$8 sps:$4 sm:$0xff]  }
  0x3e   : > { %772 = vmatprep.subr.bf16.mxu0 %v2194_v0  ;;  %2045 = vmatprep.subr.bf16.mxu1 %v2194_v0 }
  0x41   : > { %773 = vmatpush1.bf16.msra.mxu0 %v2086_v15  ;;  %2061 = vmatpush1.bf16.msra.mxu1 %v2086_v15  ;;  %v2161_v15 = vld [vmem:[%s2253_s24 + $0xf0] ss:$8 sps:$4 sm:$0xff]  }
  0x42   : > { %774 = vmatprep.subr.bf16.mxu0 %v2194_v0  ;;  %2046 = vmatprep.subr.bf16.mxu1 %v2194_v0 }
  0x45   : > { %775 = vmatpush1.bf16.msra.mxu0 %v2087_v16  ;;  %2062 = vmatpush1.bf16.msra.mxu1 %v2087_v16  ;;  %v2185_v16 = vld [vmem:[%s2253_s24 + $0x1f0] ss:$8 sps:$4 sm:$0xff]  }
  0x46   : > { %776 = vmatprep.subr.bf16.mxu0 %v2194_v0  ;;  %2047 = vmatprep.subr.bf16.mxu1 %v2194_v0 }
  0x49   : > { %777 = vmatpush1.bf16.msra.mxu0 %v2088_v17  ;;  %2063 = vmatpush1.bf16.msra.mxu1 %v2088_v17 }
  0x4a   : > { %778 = vmatprep.subr.bf16.mxu0 %v2194_v0  ;;  %2048 = vmatprep.subr.bf16.mxu1 %v2194_v0  ;;  %v2173_v0 = vld [vmem:[%s2253_s24 + $0x1b0] ss:$8 sps:$4 sm:$0xff]  }
  0x4d   : > { %779 = vmatpush1.bf16.msra.mxu0 %v2089_v18  ;;  %2064 = vmatpush1.bf16.msra.mxu1 %v2089_v18 }
  0x50   : > { %781 = vmatmul.mubr.bf16.vlgmr.msra.gmra.mrb[0].mxu0 %v2090_v19  ;;  %909 = vmatmul.mubr.bf16.vlgmr.msra.gmra.mrb[0].mxu1 %v2114_v20 }
  0x51   : > { %788 = vmatprep.mubr.bf16.mxu0 %v2093_v21  ;;  %916 = vmatprep.mubr.bf16.mxu1 %v2120_v22 }
  0x58   : > { %789 = vmatmul.mubr.bf16.gmra.mrb[4].mxu0 %v2095_v23  ;;  %917 = vmatmul.mubr.bf16.gmra.mrb[4].mxu1 %v2122_v24 }
  0x59   : > { %796 = vmatprep.mubr.bf16.mxu0 %v2096_v25  ;;  %924 = vmatprep.mubr.bf16.mxu1 %v2126_v26 }
  0x60   : > { %797 = vmatmul.mubr.bf16.gmra.mrb[8].mxu0 %v2098_v27  ;;  %925 = vmatmul.mubr.bf16.gmra.mrb[8].mxu1 %v2128_v28 }
  0x61   : > { %804 = vmatprep.mubr.bf16.mxu0 %v2099_v29  ;;  %932 = vmatprep.mubr.bf16.mxu1 %v2132_v30 }
  0x68   : > { %805 = vmatmul.mubr.bf16.gmra.mrb[12].mxu0 %v2101_v31  ;;  %933 = vmatmul.mubr.bf16.gmra.mrb[12].mxu1 %v2134_v32 }
  0x69   : > { %812 = vmatprep.mubr.bf16.mxu0 %v2102_v33  ;;  %940 = vmatprep.mubr.bf16.mxu1 %v2138_v34 }
  0x70   : > { %813 = vmatmul.mubr.bf16.gmra.mrb[16].mxu0 %v2104_v35  ;;  %941 = vmatmul.mubr.bf16.gmra.mrb[16].mxu1 %v2140_v36 }
  0x71   : > { %820 = vmatprep.mubr.bf16.mxu0 %v2105_v37  ;;  %948 = vmatprep.mubr.bf16.mxu1 %v2144_v38 }
  0x78   : > { %821 = vmatmul.mubr.bf16.gmra.mrb[20].mxu0 %v2107_v39  ;;  %949 = vmatmul.mubr.bf16.gmra.mrb[20].mxu1 %v2146_v40 }
  0x79   : > { %828 = vmatprep.mubr.bf16.mxu0 %v2108_v41  ;;  %956 = vmatprep.mubr.bf16.mxu1 %v2150_v42 }
  0x80   : > { %829 = vmatmul.mubr.bf16.gmra.mrb[24].mxu0 %v2110_v43  ;;  %957 = vmatmul.mubr.bf16.gmra.mrb[24].mxu1 %v2152_v44 }
  0x81   : > { %836 = vmatprep.mubr.bf16.mxu0 %v2111_v45  ;;  %964 = vmatprep.mubr.bf16.mxu1 %v2156_v46 }
  0x88   : > { %837 = vmatmul.mubr.bf16.gmra.mrb[28].mxu0 %v2113_v47  ;;  %965 = vmatmul.mubr.bf16.gmra.mrb[28].mxu1 %v2158_v48 }
  0x89   : > { %844 = vmatprep.mubr.bf16.mxu0 %v2117_v49  ;;  %972 = vmatprep.mubr.bf16.mxu1 %v2162_v50 }
  0x90   : > { %845 = vmatmul.mubr.bf16.gmra.mrb[32].mxu0 %v2119_v51  ;;  %973 = vmatmul.mubr.bf16.gmra.mrb[32].mxu1 %v2164_v52 }
  0x91   : > { %852 = vmatprep.mubr.bf16.mxu0 %v2123_v53  ;;  %980 = vmatprep.mubr.bf16.mxu1 %v2165_v54 }
  0x98   : > { %853 = vmatmul.mubr.bf16.gmra.mrb[36].mxu0 %v2125_v55  ;;  %981 = vmatmul.mubr.bf16.gmra.mrb[36].mxu1 %v2167_v56 }
  0x99   : > { %860 = vmatprep.mubr.bf16.mxu0 %v2129_v57  ;;  %988 = vmatprep.mubr.bf16.mxu1 %v2168_v58 }
  0xa0   : > { %861 = vmatmul.mubr.bf16.gmra.mrb[40].mxu0 %v2131_v59  ;;  %989 = vmatmul.mubr.bf16.gmra.mrb[40].mxu1 %v2170_v60 }
  0xa1   : > { %868 = vmatprep.mubr.bf16.mxu0 %v2135_v61  ;;  %996 = vmatprep.mubr.bf16.mxu1 %v2171_v62 }
  0xa8   : > { %869 = vmatmul.mubr.bf16.gmra.mrb[44].mxu0 %v2137_v63  ;;  %997 = vmatmul.mubr.bf16.gmra.mrb[44].mxu1 %v2173_v0 }
  0xa9   : > { %876 = vmatprep.mubr.bf16.mxu0 %v2141_v1  ;;  %1004 = vmatprep.mubr.bf16.mxu1 %v2174_v2 }
  0xb0   : > { %877 = vmatmul.mubr.bf16.gmra.mrb[48].mxu0 %v2143_v3  ;;  %1005 = vmatmul.mubr.bf16.gmra.mrb[48].mxu1 %v2176_v4 }
  0xb1   : > { %884 = vmatprep.mubr.bf16.mxu0 %v2147_v5  ;;  %1012 = vmatprep.mubr.bf16.mxu1 %v2177_v6 }
  0xb8   : > { %885 = vmatmul.mubr.bf16.gmra.mrb[52].mxu0 %v2149_v7  ;;  %1013 = vmatmul.mubr.bf16.gmra.mrb[52].mxu1 %v2179_v8 }
  0xb9   : > { %892 = vmatprep.mubr.bf16.mxu0 %v2153_v9  ;;  %1020 = vmatprep.mubr.bf16.mxu1 %v2180_v10 }
  0xc0   : > { %893 = vmatmul.mubr.bf16.gmra.mrb[56].mxu0 %v2155_v11  ;;  %1021 = vmatmul.mubr.bf16.gmra.mrb[56].mxu1 %v2182_v12 }
  0xc1   : > { %900 = vmatprep.mubr.bf16.mxu0 %v2159_v13  ;;  %1028 = vmatprep.mubr.bf16.mxu1 %v2183_v14 }
  0xc8   : > { %901 = vmatmul.mubr.bf16.gmra.mrb[60].mxu0 %v2161_v15  ;;  %1029 = vmatmul.mubr.bf16.gmra.mrb[60].mxu1 %v2185_v16 }
 0x123   : > { %v782_v17 = vpop.f32.mrb[0].mxu0  ;;  %v2360_v18 = vpop.f32.mrb[0].mxu1 }
 0x124   : > { %v1037_v19 = vmul.f32 %v782_v17, %v782_v17  ;;  %v1969_v20 = vpack.c.bf16 %v782_v17, %v782_v17  ;;  %v784_v21 = vpop.f32.mrb[1].mxu0  ;;  %v912_v22 = vpop.f32.mrb[1].mxu1  ;;  %v2001_v24 = vpack.c.bf16 %v2360_v18, %v2360_v18  ;;  %v1102_v26 = vsel %vm1101_vm0, %v782_v17, 0.0 }
 0x125   : > { %v785_v23 = vpop.f32.mrb[2].mxu0  ;;  %v2364_v25 = vpop.f32.mrb[2].mxu1 }
 0x126   : > { %1628 = vst.msk [vmem:[%s2358_s28] sm:$0xf] %vm1627_vm1, %v1969_v20  ;;  %v1038_v27 = vmul.f32 %v785_v23, %v785_v23  ;;  %v1103_v28 = vsel %vm1101_vm0, %v785_v23, 0.0  ;;  %v1970_v29 = vpack.c.bf16 %v785_v23, %v785_v23  ;;  %v787_v30 = vpop.f32.mrb[3].mxu0  ;;  %v915_v31 = vpop.f32.mrb[3].mxu1  ;;  %v1237_v33 = vsel %vm1101_vm0, %v1037_v19, 0.0 }
 0x127   : > { %v1104_v32 = vadd.f32 %v1103_v28, %v1102_v26  ;;  %1660 = vst.msk [vmem:[%s2358_s28 + $0x80] sm:$0xf] %vm1627_vm1, %v2001_v24  ;;  %v2002_v35 = vpack.c.bf16 %v2364_v25, %v2364_v25 }
 0x128   : > { %v1238_v34 = vsel %vm1101_vm0, %v1038_v27, 0.0  ;;  %1629 = vst.msk [vmem:[%s2358_s28 + $0x4] sm:$0xf] %vm1627_vm1, %v1970_v29 }
 0x129   : > { %v1239_v36 = vadd.f32 %v1238_v34, %v1237_v33  ;;  %1661 = vst.msk [vmem:[%s2358_s28 + $0x84] sm:$0xf] %vm1627_vm1, %v2002_v35 }
 0x12b   : > { %v790_v37 = vpop.f32.mrb[4].mxu0  ;;  %v2380_v38 = vpop.f32.mrb[4].mxu1 }
 0x12c   : > { %v1039_v39 = vmul.f32 %v790_v37, %v790_v37  ;;  %v1105_v40 = vsel %vm1101_vm0, %v790_v37, 0.0  ;;  %v1971_v41 = vpack.c.bf16 %v790_v37, %v790_v37  ;;  %v792_v42 = vpop.f32.mrb[5].mxu0  ;;  %v920_v43 = vpop.f32.mrb[5].mxu1  ;;  %v2003_v46 = vpack.c.bf16 %v2380_v38, %v2380_v38 }
 0x12d   : > { %v1106_v44 = vadd.f32 %v1105_v40, %v1104_v32  ;;  %v793_v45 = vpop.f32.mrb[6].mxu0  ;;  %v2385_v47 = vpop.f32.mrb[6].mxu1 }
 0x12e   : > { %v1240_v48 = vsel %vm1101_vm0, %v1039_v39, 0.0  ;;  %1630 = vst.msk [vmem:[%s2358_s28 + $0x8] sm:$0xf] %vm1627_vm1, %v1971_v41  ;;  %v1040_v49 = vmul.f32 %v793_v45, %v793_v45  ;;  %v1107_v50 = vsel %vm1101_vm0, %v793_v45, 0.0  ;;  %v1972_v51 = vpack.c.bf16 %v793_v45, %v793_v45  ;;  %v795_v52 = vpop.f32.mrb[7].mxu0  ;;  %v923_v53 = vpop.f32.mrb[7].mxu1 }
 0x12f   : > { %v1241_v54 = vadd.f32 %v1240_v48, %v1239_v36  ;;  %v1108_v55 = vadd.f32 %v1107_v50, %v1106_v44  ;;  %1662 = vst.msk [vmem:[%s2358_s28 + $0x88] sm:$0xf] %vm1627_vm1, %v2003_v46  ;;  %v2004_v57 = vpack.c.bf16 %v2385_v47, %v2385_v47 }
 0x130   : > { %v1242_v56 = vsel %vm1101_vm0, %v1040_v49, 0.0  ;;  %1631 = vst.msk [vmem:[%s2358_s28 + $0xc] sm:$0xf] %vm1627_vm1, %v1972_v51 }
 0x131   : > { %v1243_v58 = vadd.f32 %v1242_v56, %v1241_v54  ;;  %1663 = vst.msk [vmem:[%s2358_s28 + $0x8c] sm:$0xf] %vm1627_vm1, %v2004_v57 }
 0x133   : > { %v798_v59 = vpop.f32.mrb[8].mxu0  ;;  %v2400_v60 = vpop.f32.mrb[8].mxu1 }
 0x134   : > { %v1041_v61 = vmul.f32 %v798_v59, %v798_v59  ;;  %v1109_v62 = vsel %vm1101_vm0, %v798_v59, 0.0  ;;  %v1973_v63 = vpack.c.bf16 %v798_v59, %v798_v59  ;;  %v800_v0 = vpop.f32.mrb[9].mxu0  ;;  %v928_v1 = vpop.f32.mrb[9].mxu1  ;;  %v2005_v4 = vpack.c.bf16 %v2400_v60, %v2400_v60 }
 0x135   : > { %v1110_v2 = vadd.f32 %v1109_v62, %v1108_v55  ;;  %v801_v3 = vpop.f32.mrb[10].mxu0  ;;  %v2405_v5 = vpop.f32.mrb[10].mxu1 }
 0x136   : > { %v1244_v6 = vsel %vm1101_vm0, %v1041_v61, 0.0  ;;  %1632 = vst.msk [vmem:[%s2358_s28 + $0x10] sm:$0xf] %vm1627_vm1, %v1973_v63  ;;  %v1042_v7 = vmul.f32 %v801_v3, %v801_v3  ;;  %v1111_v8 = vsel %vm1101_vm0, %v801_v3, 0.0  ;;  %v1974_v9 = vpack.c.bf16 %v801_v3, %v801_v3  ;;  %v803_v10 = vpop.f32.mrb[11].mxu0  ;;  %v931_v11 = vpop.f32.mrb[11].mxu1 }
 0x137   : > { %v1245_v12 = vadd.f32 %v1244_v6, %v1243_v58  ;;  %v1112_v13 = vadd.f32 %v1111_v8, %v1110_v2  ;;  %1664 = vst.msk [vmem:[%s2358_s28 + $0x90] sm:$0xf] %vm1627_vm1, %v2005_v4  ;;  %v2006_v15 = vpack.c.bf16 %v2405_v5, %v2405_v5 }
 0x138   : > { %v1246_v14 = vsel %vm1101_vm0, %v1042_v7, 0.0  ;;  %1633 = vst.msk [vmem:[%s2358_s28 + $0x14] sm:$0xf] %vm1627_vm1, %v1974_v9 }
 0x139   : > { %v1247_v16 = vadd.f32 %v1246_v14, %v1245_v12  ;;  %1665 = vst.msk [vmem:[%s2358_s28 + $0x94] sm:$0xf] %vm1627_vm1, %v2006_v15 }
 0x13b   : > { %v806_v17 = vpop.f32.mrb[12].mxu0  ;;  %v2420_v19 = vpop.f32.mrb[12].mxu1 }
 0x13c   : > { %v1043_v20 = vmul.f32 %v806_v17, %v806_v17  ;;  %v1113_v21 = vsel %vm1101_vm0, %v806_v17, 0.0  ;;  %v1975_v22 = vpack.c.bf16 %v806_v17, %v806_v17  ;;  %v808_v23 = vpop.f32.mrb[13].mxu0  ;;  %v936_v24 = vpop.f32.mrb[13].mxu1  ;;  %v2007_v28 = vpack.c.bf16 %v2420_v19, %v2420_v19 }
 0x13d   : > { %v1114_v26 = vadd.f32 %v1113_v21, %v1112_v13  ;;  %v809_v27 = vpop.f32.mrb[14].mxu0  ;;  %v2425_v29 = vpop.f32.mrb[14].mxu1 }
 0x13e   : > { %v1248_v30 = vsel %vm1101_vm0, %v1043_v20, 0.0  ;;  %1634 = vst.msk [vmem:[%s2358_s28 + $0x18] sm:$0xf] %vm1627_vm1, %v1975_v22  ;;  %v1044_v31 = vmul.f32 %v809_v27, %v809_v27  ;;  %v1115_v32 = vsel %vm1101_vm0, %v809_v27, 0.0  ;;  %v1976_v33 = vpack.c.bf16 %v809_v27, %v809_v27  ;;  %v811_v34 = vpop.f32.mrb[15].mxu0  ;;  %v939_v35 = vpop.f32.mrb[15].mxu1 }
 0x13f   : > { %v1249_v36 = vadd.f32 %v1248_v30, %v1247_v16  ;;  %v1116_v37 = vadd.f32 %v1115_v32, %v1114_v26  ;;  %1666 = vst.msk [vmem:[%s2358_s28 + $0x98] sm:$0xf] %vm1627_vm1, %v2007_v28  ;;  %v2008_v40 = vpack.c.bf16 %v2425_v29, %v2425_v29 }
 0x140   : > { %v1250_v39 = vsel %vm1101_vm0, %v1044_v31, 0.0  ;;  %1635 = vst.msk [vmem:[%s2358_s28 + $0x1c] sm:$0xf] %vm1627_vm1, %v1976_v33 }
 0x141   : > { %v1251_v41 = vadd.f32 %v1250_v39, %v1249_v36  ;;  %1667 = vst.msk [vmem:[%s2358_s28 + $0x9c] sm:$0xf] %vm1627_vm1, %v2008_v40 }
 0x143   : > { %v814_v42 = vpop.f32.mrb[16].mxu0  ;;  %v2440_v43 = vpop.f32.mrb[16].mxu1 }
 0x144   : > { %v1045_v44 = vmul.f32 %v814_v42, %v814_v42  ;;  %v1117_v45 = vsel %vm1101_vm0, %v814_v42, 0.0  ;;  %v1977_v46 = vpack.c.bf16 %v814_v42, %v814_v42  ;;  %v816_v48 = vpop.f32.mrb[17].mxu0  ;;  %v944_v49 = vpop.f32.mrb[17].mxu1  ;;  %v2009_v52 = vpack.c.bf16 %v2440_v43, %v2440_v43 }
 0x145   : > { %v1118_v50 = vadd.f32 %v1117_v45, %v1116_v37  ;;  %v817_v51 = vpop.f32.mrb[18].mxu0  ;;  %v2445_v53 = vpop.f32.mrb[18].mxu1 }
 0x146   : > { %v1252_v54 = vsel %vm1101_vm0, %v1045_v44, 0.0  ;;  %1636 = vst.msk [vmem:[%s2358_s28 + $0x20] sm:$0xf] %vm1627_vm1, %v1977_v46  ;;  %v1046_v55 = vmul.f32 %v817_v51, %v817_v51  ;;  %v1119_v56 = vsel %vm1101_vm0, %v817_v51, 0.0  ;;  %v1978_v57 = vpack.c.bf16 %v817_v51, %v817_v51  ;;  %v819_v58 = vpop.f32.mrb[19].mxu0  ;;  %v947_v59 = vpop.f32.mrb[19].mxu1 }
 0x147   : > { %v1253_v61 = vadd.f32 %v1252_v54, %v1251_v41  ;;  %v1120_v62 = vadd.f32 %v1119_v56, %v1118_v50  ;;  %1668 = vst.msk [vmem:[%s2358_s28 + $0xa0] sm:$0xf] %vm1627_vm1, %v2009_v52  ;;  %v2010_v0 = vpack.c.bf16 %v2445_v53, %v2445_v53 }
 0x148   : > { %v1254_v63 = vsel %vm1101_vm0, %v1046_v55, 0.0  ;;  %1637 = vst.msk [vmem:[%s2358_s28 + $0x24] sm:$0xf] %vm1627_vm1, %v1978_v57 }
 0x149   : > { %v1255_v1 = vadd.f32 %v1254_v63, %v1253_v61  ;;  %1669 = vst.msk [vmem:[%s2358_s28 + $0xa4] sm:$0xf] %vm1627_vm1, %v2010_v0 }
 0x14b   : > { %v822_v2 = vpop.f32.mrb[20].mxu0  ;;  %v2460_v3 = vpop.f32.mrb[20].mxu1 }
 0x14c   : > { %v1047_v4 = vmul.f32 %v822_v2, %v822_v2  ;;  %v1121_v6 = vsel %vm1101_vm0, %v822_v2, 0.0  ;;  %v1979_v7 = vpack.c.bf16 %v822_v2, %v822_v2  ;;  %v824_v8 = vpop.f32.mrb[21].mxu0  ;;  %v952_v9 = vpop.f32.mrb[21].mxu1  ;;  %v2011_v12 = vpack.c.bf16 %v2460_v3, %v2460_v3 }
 0x14d   : > { %v1122_v10 = vadd.f32 %v1121_v6, %v1120_v62  ;;  %v825_v11 = vpop.f32.mrb[22].mxu0  ;;  %v2465_v13 = vpop.f32.mrb[22].mxu1 }
 0x14e   : > { %v1256_v14 = vsel %vm1101_vm0, %v1047_v4, 0.0  ;;  %1638 = vst.msk [vmem:[%s2358_s28 + $0x28] sm:$0xf] %vm1627_vm1, %v1979_v7  ;;  %v1048_v15 = vmul.f32 %v825_v11, %v825_v11  ;;  %v1123_v16 = vsel %vm1101_vm0, %v825_v11, 0.0  ;;  %v1980_v17 = vpack.c.bf16 %v825_v11, %v825_v11  ;;  %v827_v20 = vpop.f32.mrb[23].mxu0  ;;  %v955_v21 = vpop.f32.mrb[23].mxu1 }
 0x14f   : > { %v1257_v22 = vadd.f32 %v1256_v14, %v1255_v1  ;;  %v1124_v23 = vadd.f32 %v1123_v16, %v1122_v10  ;;  %1670 = vst.msk [vmem:[%s2358_s28 + $0xa8] sm:$0xf] %vm1627_vm1, %v2011_v12  ;;  %v2012_v26 = vpack.c.bf16 %v2465_v13, %v2465_v13 }
 0x150   : > { %v1258_v24 = vsel %vm1101_vm0, %v1048_v15, 0.0  ;;  %1639 = vst.msk [vmem:[%s2358_s28 + $0x2c] sm:$0xf] %vm1627_vm1, %v1980_v17 }
 0x151   : > { %v1259_v27 = vadd.f32 %v1258_v24, %v1257_v22  ;;  %1671 = vst.msk [vmem:[%s2358_s28 + $0xac] sm:$0xf] %vm1627_vm1, %v2012_v26 }
 0x153   : > { %v830_v28 = vpop.f32.mrb[24].mxu0  ;;  %v2480_v30 = vpop.f32.mrb[24].mxu1 }
 0x154   : > { %v1049_v31 = vmul.f32 %v830_v28, %v830_v28  ;;  %v1125_v32 = vsel %vm1101_vm0, %v830_v28, 0.0  ;;  %v1981_v33 = vpack.c.bf16 %v830_v28, %v830_v28  ;;  %v832_v34 = vpop.f32.mrb[25].mxu0  ;;  %v960_v35 = vpop.f32.mrb[25].mxu1  ;;  %v2013_v39 = vpack.c.bf16 %v2480_v30, %v2480_v30 }
 0x155   : > { %v1126_v36 = vadd.f32 %v1125_v32, %v1124_v23  ;;  %v833_v37 = vpop.f32.mrb[26].mxu0  ;;  %v2485_v40 = vpop.f32.mrb[26].mxu1 }
 0x156   : > { %v1260_v41 = vsel %vm1101_vm0, %v1049_v31, 0.0  ;;  %1640 = vst.msk [vmem:[%s2358_s28 + $0x30] sm:$0xf] %vm1627_vm1, %v1981_v33  ;;  %v1050_v42 = vmul.f32 %v833_v37, %v833_v37  ;;  %v1127_v44 = vsel %vm1101_vm0, %v833_v37, 0.0  ;;  %v1982_v45 = vpack.c.bf16 %v833_v37, %v833_v37  ;;  %v835_v46 = vpop.f32.mrb[27].mxu0  ;;  %v963_v48 = vpop.f32.mrb[27].mxu1 }
 0x157   : > { %v1261_v49 = vadd.f32 %v1260_v41, %v1259_v27  ;;  %v1128_v50 = vadd.f32 %v1127_v44, %v1126_v36  ;;  %1672 = vst.msk [vmem:[%s2358_s28 + $0xb0] sm:$0xf] %vm1627_vm1, %v2013_v39  ;;  %v2014_v52 = vpack.c.bf16 %v2485_v40, %v2485_v40 }
 0x158   : > { %v1262_v51 = vsel %vm1101_vm0, %v1050_v42, 0.0  ;;  %1641 = vst.msk [vmem:[%s2358_s28 + $0x34] sm:$0xf] %vm1627_vm1, %v1982_v45 }
 0x159   : > { %v1263_v54 = vadd.f32 %v1262_v51, %v1261_v49  ;;  %1673 = vst.msk [vmem:[%s2358_s28 + $0xb4] sm:$0xf] %vm1627_vm1, %v2014_v52 }
 0x15b   : > { %v838_v55 = vpop.f32.mrb[28].mxu0  ;;  %v2500_v56 = vpop.f32.mrb[28].mxu1 }
 0x15c   : > { %v1051_v57 = vmul.f32 %v838_v55, %v838_v55  ;;  %v1129_v58 = vsel %vm1101_vm0, %v838_v55, 0.0  ;;  %v1983_v59 = vpack.c.bf16 %v838_v55, %v838_v55  ;;  %v840_v61 = vpop.f32.mrb[29].mxu0  ;;  %v968_v62 = vpop.f32.mrb[29].mxu1  ;;  %v2015_v1 = vpack.c.bf16 %v2500_v56, %v2500_v56 }
 0x15d   : > { %v1130_v63 = vadd.f32 %v1129_v58, %v1128_v50  ;;  %v841_v0 = vpop.f32.mrb[30].mxu0  ;;  %v2505_v2 = vpop.f32.mrb[30].mxu1 }
 0x15e   : > { %v1264_v4 = vsel %vm1101_vm0, %v1051_v57, 0.0  ;;  %1642 = vst.msk [vmem:[%s2358_s28 + $0x38] sm:$0xf] %vm1627_vm1, %v1983_v59  ;;  %v1052_v6 = vmul.f32 %v841_v0, %v841_v0  ;;  %v1131_v7 = vsel %vm1101_vm0, %v841_v0, 0.0  ;;  %v1984_v8 = vpack.c.bf16 %v841_v0, %v841_v0  ;;  %v843_v9 = vpop.f32.mrb[31].mxu0  ;;  %v971_v10 = vpop.f32.mrb[31].mxu1 }
 0x15f   : > { %v1265_v11 = vadd.f32 %v1264_v4, %v1263_v54  ;;  %v1132_v12 = vadd.f32 %v1131_v7, %v1130_v63  ;;  %1674 = vst.msk [vmem:[%s2358_s28 + $0xb8] sm:$0xf] %vm1627_vm1, %v2015_v1  ;;  %v2016_v15 = vpack.c.bf16 %v2505_v2, %v2505_v2 }
 0x160   : > { %v1266_v14 = vsel %vm1101_vm0, %v1052_v6, 0.0  ;;  %1643 = vst.msk [vmem:[%s2358_s28 + $0x3c] sm:$0xf] %vm1627_vm1, %v1984_v8 }
 0x161   : > { %v1267_v16 = vadd.f32 %v1266_v14, %v1265_v11  ;;  %1675 = vst.msk [vmem:[%s2358_s28 + $0xbc] sm:$0xf] %vm1627_vm1, %v2016_v15 }
 0x163   : > { %v846_v17 = vpop.f32.mrb[32].mxu0  ;;  %v2520_v20 = vpop.f32.mrb[32].mxu1 }
 0x164   : > { %v1053_v21 = vmul.f32 %v846_v17, %v846_v17  ;;  %v1133_v22 = vsel %vm1101_vm0, %v846_v17, 0.0  ;;  %v1985_v23 = vpack.c.bf16 %v846_v17, %v846_v17  ;;  %v848_v24 = vpop.f32.mrb[33].mxu0  ;;  %v976_v26 = vpop.f32.mrb[33].mxu1  ;;  %v2017_v31 = vpack.c.bf16 %v2520_v20, %v2520_v20 }
 0x165   : > { %v1134_v27 = vadd.f32 %v1133_v22, %v1132_v12  ;;  %v849_v28 = vpop.f32.mrb[34].mxu0  ;;  %v2525_v32 = vpop.f32.mrb[34].mxu1 }
 0x166   : > { %v1268_v33 = vsel %vm1101_vm0, %v1053_v21, 0.0  ;;  %1644 = vst.msk [vmem:[%s2358_s28 + $0x40] sm:$0xf] %vm1627_vm1, %v1985_v23  ;;  %v1054_v34 = vmul.f32 %v849_v28, %v849_v28  ;;  %v1135_v35 = vsel %vm1101_vm0, %v849_v28, 0.0  ;;  %v1986_v36 = vpack.c.bf16 %v849_v28, %v849_v28  ;;  %v851_v37 = vpop.f32.mrb[35].mxu0  ;;  %v979_v39 = vpop.f32.mrb[35].mxu1 }
 0x167   : > { %v1269_v41 = vadd.f32 %v1268_v33, %v1267_v16  ;;  %v1136_v42 = vadd.f32 %v1135_v35, %v1134_v27  ;;  %1676 = vst.msk [vmem:[%s2358_s28 + $0xc0] sm:$0xf] %vm1627_vm1, %v2017_v31  ;;  %v2018_v45 = vpack.c.bf16 %v2525_v32, %v2525_v32 }
 0x168   : > { %v1270_v44 = vsel %vm1101_vm0, %v1054_v34, 0.0  ;;  %1645 = vst.msk [vmem:[%s2358_s28 + $0x44] sm:$0xf] %vm1627_vm1, %v1986_v36 }
 0x169   : > { %v1271_v46 = vadd.f32 %v1270_v44, %v1269_v41  ;;  %1677 = vst.msk [vmem:[%s2358_s28 + $0xc4] sm:$0xf] %vm1627_vm1, %v2018_v45 }
 0x16b   : > { %v854_v48 = vpop.f32.mrb[36].mxu0  ;;  %v2540_v49 = vpop.f32.mrb[36].mxu1 }
 0x16c   : > { %v1055_v50 = vmul.f32 %v854_v48, %v854_v48  ;;  %v1137_v51 = vsel %vm1101_vm0, %v854_v48, 0.0  ;;  %v1987_v52 = vpack.c.bf16 %v854_v48, %v854_v48  ;;  %v856_v54 = vpop.f32.mrb[37].mxu0  ;;  %v984_v55 = vpop.f32.mrb[37].mxu1  ;;  %v2019_v59 = vpack.c.bf16 %v2540_v49, %v2540_v49 }
 0x16d   : > { %v1138_v57 = vadd.f32 %v1137_v51, %v1136_v42  ;;  %v857_v58 = vpop.f32.mrb[38].mxu0  ;;  %v2545_v61 = vpop.f32.mrb[38].mxu1 }
 0x16e   : > { %v1272_v62 = vsel %vm1101_vm0, %v1055_v50, 0.0  ;;  %1646 = vst.msk [vmem:[%s2358_s28 + $0x48] sm:$0xf] %vm1627_vm1, %v1987_v52  ;;  %v1056_v63 = vmul.f32 %v857_v58, %v857_v58  ;;  %v1139_v0 = vsel %vm1101_vm0, %v857_v58, 0.0  ;;  %v1988_v1 = vpack.c.bf16 %v857_v58, %v857_v58  ;;  %v859_v4 = vpop.f32.mrb[39].mxu0  ;;  %v987_v6 = vpop.f32.mrb[39].mxu1 }
 0x16f   : > { %v1273_v7 = vadd.f32 %v1272_v62, %v1271_v46  ;;  %v1140_v8 = vadd.f32 %v1139_v0, %v1138_v57  ;;  %1678 = vst.msk [vmem:[%s2358_s28 + $0xc8] sm:$0xf] %vm1627_vm1, %v2019_v59  ;;  %v2020_v10 = vpack.c.bf16 %v2545_v61, %v2545_v61 }
 0x170   : > { %v1274_v9 = vsel %vm1101_vm0, %v1056_v63, 0.0  ;;  %1647 = vst.msk [vmem:[%s2358_s28 + $0x4c] sm:$0xf] %vm1627_vm1, %v1988_v1 }
 0x171   : > { %v1275_v11 = vadd.f32 %v1274_v9, %v1273_v7  ;;  %1679 = vst.msk [vmem:[%s2358_s28 + $0xcc] sm:$0xf] %vm1627_vm1, %v2020_v10 }
 0x173   : > { %v862_v12 = vpop.f32.mrb[40].mxu0  ;;  %v2560_v14 = vpop.f32.mrb[40].mxu1 }
 0x174   : > { %v1057_v15 = vmul.f32 %v862_v12, %v862_v12  ;;  %v1141_v16 = vsel %vm1101_vm0, %v862_v12, 0.0  ;;  %v1989_v17 = vpack.c.bf16 %v862_v12, %v862_v12  ;;  %v864_v21 = vpop.f32.mrb[41].mxu0  ;;  %v992_v22 = vpop.f32.mrb[41].mxu1  ;;  %v2021_v26 = vpack.c.bf16 %v2560_v14, %v2560_v14 }
 0x175   : > { %v1142_v23 = vadd.f32 %v1141_v16, %v1140_v8  ;;  %v865_v24 = vpop.f32.mrb[42].mxu0  ;;  %v2565_v27 = vpop.f32.mrb[42].mxu1 }
 0x176   : > { %v1276_v28 = vsel %vm1101_vm0, %v1057_v15, 0.0  ;;  %1648 = vst.msk [vmem:[%s2358_s28 + $0x50] sm:$0xf] %vm1627_vm1, %v1989_v17  ;;  %v1058_v31 = vmul.f32 %v865_v24, %v865_v24  ;;  %v1143_v33 = vsel %vm1101_vm0, %v865_v24, 0.0  ;;  %v1990_v34 = vpack.c.bf16 %v865_v24, %v865_v24  ;;  %v867_v35 = vpop.f32.mrb[43].mxu0  ;;  %v995_v36 = vpop.f32.mrb[43].mxu1 }
 0x177   : > { %v1277_v37 = vadd.f32 %v1276_v28, %v1275_v11  ;;  %v1144_v39 = vadd.f32 %v1143_v33, %v1142_v23  ;;  %1680 = vst.msk [vmem:[%s2358_s28 + $0xd0] sm:$0xf] %vm1627_vm1, %v2021_v26  ;;  %v2022_v42 = vpack.c.bf16 %v2565_v27, %v2565_v27 }
 0x178   : > { %v1278_v41 = vsel %vm1101_vm0, %v1058_v31, 0.0  ;;  %1649 = vst.msk [vmem:[%s2358_s28 + $0x54] sm:$0xf] %vm1627_vm1, %v1990_v34 }
 0x179   : > { %v1279_v44 = vadd.f32 %v1278_v41, %v1277_v37  ;;  %1681 = vst.msk [vmem:[%s2358_s28 + $0xd4] sm:$0xf] %vm1627_vm1, %v2022_v42 }
 0x17b   : > { %v870_v45 = vpop.f32.mrb[44].mxu0  ;;  %v2580_v46 = vpop.f32.mrb[44].mxu1 }
 0x17c   : > { %v1059_v48 = vmul.f32 %v870_v45, %v870_v45  ;;  %v1145_v50 = vsel %vm1101_vm0, %v870_v45, 0.0  ;;  %v1991_v51 = vpack.c.bf16 %v870_v45, %v870_v45  ;;  %v872_v52 = vpop.f32.mrb[45].mxu0  ;;  %v1000_v54 = vpop.f32.mrb[45].mxu1  ;;  %v2023_v58 = vpack.c.bf16 %v2580_v46, %v2580_v46 }
 0x17d   : > { %v1146_v55 = vadd.f32 %v1145_v50, %v1144_v39  ;;  %v873_v57 = vpop.f32.mrb[46].mxu0  ;;  %v2585_v59 = vpop.f32.mrb[46].mxu1 }
 0x17e   : > { %v1280_v62 = vsel %vm1101_vm0, %v1059_v48, 0.0  ;;  %1650 = vst.msk [vmem:[%s2358_s28 + $0x58] sm:$0xf] %vm1627_vm1, %v1991_v51  ;;  %v1060_v63 = vmul.f32 %v873_v57, %v873_v57  ;;  %v1147_v0 = vsel %vm1101_vm0, %v873_v57, 0.0  ;;  %v1992_v1 = vpack.c.bf16 %v873_v57, %v873_v57  ;;  %v875_v4 = vpop.f32.mrb[47].mxu0  ;;  %v1003_v6 = vpop.f32.mrb[47].mxu1 }
 0x17f   : > { %v1281_v7 = vadd.f32 %v1280_v62, %v1279_v44  ;;  %v1148_v8 = vadd.f32 %v1147_v0, %v1146_v55  ;;  %1682 = vst.msk [vmem:[%s2358_s28 + $0xd8] sm:$0xf] %vm1627_vm1, %v2023_v58  ;;  %v2024_v10 = vpack.c.bf16 %v2585_v59, %v2585_v59 }
 0x180   : > { %v1282_v9 = vsel %vm1101_vm0, %v1060_v63, 0.0  ;;  %1651 = vst.msk [vmem:[%s2358_s28 + $0x5c] sm:$0xf] %vm1627_vm1, %v1992_v1 }
 0x181   : > { %v1283_v11 = vadd.f32 %v1282_v9, %v1281_v7  ;;  %1683 = vst.msk [vmem:[%s2358_s28 + $0xdc] sm:$0xf] %vm1627_vm1, %v2024_v10 }
 0x183   : > { %v878_v12 = vpop.f32.mrb[48].mxu0  ;;  %v2600_v15 = vpop.f32.mrb[48].mxu1 }
 0x184   : > { %v1061_v16 = vmul.f32 %v878_v12, %v878_v12  ;;  %v1149_v17 = vsel %vm1101_vm0, %v878_v12, 0.0  ;;  %v1993_v21 = vpack.c.bf16 %v878_v12, %v878_v12  ;;  %v880_v22 = vpop.f32.mrb[49].mxu0  ;;  %v1008_v23 = vpop.f32.mrb[49].mxu1  ;;  %v2025_v28 = vpack.c.bf16 %v2600_v15, %v2600_v15 }
 0x185   : > { %v1150_v24 = vadd.f32 %v1149_v17, %v1148_v8  ;;  %v881_v26 = vpop.f32.mrb[50].mxu0  ;;  %v2605_v31 = vpop.f32.mrb[50].mxu1 }
 0x186   : > { %v1284_v33 = vsel %vm1101_vm0, %v1061_v16, 0.0  ;;  %1652 = vst.msk [vmem:[%s2358_s28 + $0x60] sm:$0xf] %vm1627_vm1, %v1993_v21  ;;  %v1062_v34 = vmul.f32 %v881_v26, %v881_v26  ;;  %v1151_v35 = vsel %vm1101_vm0, %v881_v26, 0.0  ;;  %v1994_v36 = vpack.c.bf16 %v881_v26, %v881_v26  ;;  %v883_v37 = vpop.f32.mrb[51].mxu0  ;;  %v1011_v39 = vpop.f32.mrb[51].mxu1 }
 0x187   : > { %v1285_v41 = vadd.f32 %v1284_v33, %v1283_v11  ;;  %v1152_v42 = vadd.f32 %v1151_v35, %v1150_v24  ;;  %1684 = vst.msk [vmem:[%s2358_s28 + $0xe0] sm:$0xf] %vm1627_vm1, %v2025_v28  ;;  %v2026_v45 = vpack.c.bf16 %v2605_v31, %v2605_v31 }
 0x188   : > { %v1286_v44 = vsel %vm1101_vm0, %v1062_v34, 0.0  ;;  %1653 = vst.msk [vmem:[%s2358_s28 + $0x64] sm:$0xf] %vm1627_vm1, %v1994_v36 }
 0x189   : > { %v1287_v48 = vadd.f32 %v1286_v44, %v1285_v41  ;;  %1685 = vst.msk [vmem:[%s2358_s28 + $0xe4] sm:$0xf] %vm1627_vm1, %v2026_v45 }
 0x18b   : > { %v886_v50 = vpop.f32.mrb[52].mxu0  ;;  %v2620_v51 = vpop.f32.mrb[52].mxu1 }
 0x18c   : > { %v1063_v52 = vmul.f32 %v886_v50, %v886_v50  ;;  %v1153_v54 = vsel %vm1101_vm0, %v886_v50, 0.0  ;;  %v1995_v55 = vpack.c.bf16 %v886_v50, %v886_v50  ;;  %v888_v57 = vpop.f32.mrb[53].mxu0  ;;  %v1016_v58 = vpop.f32.mrb[53].mxu1  ;;  %v2027_v0 = vpack.c.bf16 %v2620_v51, %v2620_v51 }
 0x18d   : > { %v1154_v62 = vadd.f32 %v1153_v54, %v1152_v42  ;;  %v889_v63 = vpop.f32.mrb[54].mxu0  ;;  %v2625_v1 = vpop.f32.mrb[54].mxu1 }
 0x18e   : > { %v1288_v4 = vsel %vm1101_vm0, %v1063_v52, 0.0  ;;  %1654 = vst.msk [vmem:[%s2358_s28 + $0x68] sm:$0xf] %vm1627_vm1, %v1995_v55  ;;  %v1064_v6 = vmul.f32 %v889_v63, %v889_v63  ;;  %v1155_v7 = vsel %vm1101_vm0, %v889_v63, 0.0  ;;  %v1996_v8 = vpack.c.bf16 %v889_v63, %v889_v63  ;;  %v891_v9 = vpop.f32.mrb[55].mxu0  ;;  %v1019_v10 = vpop.f32.mrb[55].mxu1 }
 0x18f   : > { %v1289_v11 = vadd.f32 %v1288_v4, %v1287_v48  ;;  %v1156_v12 = vadd.f32 %v1155_v7, %v1154_v62  ;;  %1686 = vst.msk [vmem:[%s2358_s28 + $0xe8] sm:$0xf] %vm1627_vm1, %v2027_v0  ;;  %v2028_v17 = vpack.c.bf16 %v2625_v1, %v2625_v1  ;;  %v1069_v9 = vmul.f32 %v2360_v18, %v2360_v18 }
 0x190   : > { %v1290_v16 = vsel %vm1101_vm0, %v1064_v6, 0.0  ;;  %1655 = vst.msk [vmem:[%s2358_s28 + $0x6c] sm:$0xf] %vm1627_vm1, %v1996_v8 }
 0x191   : > { %v1291_v21 = vadd.f32 %v1290_v16, %v1289_v11  ;;  %1687 = vst.msk [vmem:[%s2358_s28 + $0xec] sm:$0xf] %vm1627_vm1, %v2028_v17 }
 0x193   : > { %v894_v22 = vpop.f32.mrb[56].mxu0  ;;  %v2640_v23 = vpop.f32.mrb[56].mxu1 }
 0x194   : > { %v1065_v24 = vmul.f32 %v894_v22, %v894_v22  ;;  %v1157_v26 = vsel %vm1101_vm0, %v894_v22, 0.0  ;;  %v1997_v28 = vpack.c.bf16 %v894_v22, %v894_v22  ;;  %v896_v33 = vpop.f32.mrb[57].mxu0  ;;  %v1024_v34 = vpop.f32.mrb[57].mxu1  ;;  %v2029_v37 = vpack.c.bf16 %v2640_v23, %v2640_v23 }
 0x195   : > { %v1158_v35 = vadd.f32 %v1157_v26, %v1156_v12  ;;  %v897_v36 = vpop.f32.mrb[58].mxu0  ;;  %v2645_v39 = vpop.f32.mrb[58].mxu1 }
 0x196   : > { %v1292_v41 = vsel %vm1101_vm0, %v1065_v24, 0.0  ;;  %1656 = vst.msk [vmem:[%s2358_s28 + $0x70] sm:$0xf] %vm1627_vm1, %v1997_v28  ;;  %v1066_v42 = vmul.f32 %v897_v36, %v897_v36  ;;  %v1159_v44 = vsel %vm1101_vm0, %v897_v36, 0.0  ;;  %v1998_v45 = vpack.c.bf16 %v897_v36, %v897_v36  ;;  %v899_v48 = vpop.f32.mrb[59].mxu0  ;;  %v1027_v50 = vpop.f32.mrb[59].mxu1 }
 0x197   : > { %v1293_v52 = vadd.f32 %v1292_v41, %v1291_v21  ;;  %v1160_v54 = vadd.f32 %v1159_v44, %v1158_v35  ;;  %1688 = vst.msk [vmem:[%s2358_s28 + $0xf0] sm:$0xf] %vm1627_vm1, %v2029_v37  ;;  %v2030_v57 = vpack.c.bf16 %v2645_v39, %v2645_v39  ;;  %v1165_v35 = vsel %vm1101_vm0, %v2360_v18, 0.0 }
 0x198   : > { %v1294_v55 = vsel %vm1101_vm0, %v1066_v42, 0.0  ;;  %1657 = vst.msk [vmem:[%s2358_s28 + $0x74] sm:$0xf] %vm1627_vm1, %v1998_v45  ;;  %v1070_v36 = vmul.f32 %v2364_v25, %v2364_v25  ;;  %v1300_v45 = vsel %vm1101_vm0, %v1069_v9, 0.0  ;;  %v1167_v48 = vsel %vm1101_vm0, %v2364_v25, 0.0 }
 0x199   : > { %v1295_v58 = vadd.f32 %v1294_v55, %v1293_v52  ;;  %1689 = vst.msk [vmem:[%s2358_s28 + $0xf4] sm:$0xf] %vm1627_vm1, %v2030_v57  ;;  %v1071_v18 = vmul.f32 %v2380_v38, %v2380_v38  ;;  %v1169_v55 = vsel %vm1101_vm0, %v2380_v38, 0.0  ;;  %v1072_v57 = vmul.f32 %v2385_v47, %v2385_v47 }
 0x19a   : > { %v1171_v25 = vsel %vm1101_vm0, %v2385_v47, 0.0  ;;  %v1173_v38 = vsel %vm1101_vm0, %v2400_v60, 0.0  ;;  %v1074_v9 = vmul.f32 %v2405_v5, %v2405_v5  ;;  %v1175_v47 = vsel %vm1101_vm0, %v2405_v5, 0.0 }
 0x19b   : > { %v902_v62 = vpop.f32.mrb[60].mxu0  ;;  %v2660_v63 = vpop.f32.mrb[60].mxu1  ;;  %v1179_v5 = vsel %vm1101_vm0, %v2425_v29, 0.0 }
 0x19c   : > { %v1067_v0 = vmul.f32 %v902_v62, %v902_v62  ;;  %v1161_v4 = vsel %vm1101_vm0, %v902_v62, 0.0  ;;  %v1999_v6 = vpack.c.bf16 %v902_v62, %v902_v62  ;;  %v904_v7 = vpop.f32.mrb[61].mxu0  ;;  %v1032_v8 = vpop.f32.mrb[61].mxu1  ;;  %v2031_v12 = vpack.c.bf16 %v2660_v63, %v2660_v63 }
 0x19d   : > { %v1162_v10 = vadd.f32 %v1161_v4, %v1160_v54  ;;  %v905_v11 = vpop.f32.mrb[62].mxu0  ;;  %v2667_v16 = vpop.f32.mrb[62].mxu1  ;;  %v1302_v54 = vsel %vm1101_vm0, %v1070_v36, 0.0  ;;  %v1073_v4 = vmul.f32 %v2400_v60, %v2400_v60  ;;  %v1306_v8 = vsel %vm1101_vm0, %v1072_v57, 0.0 }
 0x19e   : > { %v1296_v17 = vsel %vm1101_vm0, %v1067_v0, 0.0  ;;  %1658 = vst.msk [vmem:[%s2358_s28 + $0x78] sm:$0xf] %vm1627_vm1, %v1999_v6  ;;  %v1068_v21 = vmul.f32 %v905_v11, %v905_v11  ;;  %v1163_v22 = vsel %vm1101_vm0, %v905_v11, 0.0  ;;  %v2000_v24 = vpack.c.bf16 %v905_v11, %v905_v11  ;;  %v907_v26 = vpop.f32.mrb[63].mxu0  ;;  %v1035_v28 = vpop.f32.mrb[63].mxu1 }
 0x19f   : > { %v1297_v33 = vadd.f32 %v1296_v17, %v1295_v58  ;;  %v1164_v34 = vadd.f32 %v1163_v22, %v1162_v10  ;;  %1690 = vst.msk [vmem:[%s2358_s28 + $0xf8] sm:$0xf] %vm1627_vm1, %v2031_v12  ;;  %v2032_v41 = vpack.c.bf16 %v2667_v16, %v2667_v16  ;;  %v1304_v0 = vsel %vm1101_vm0, %v1071_v18, 0.0 }
 0x1a0   : > { %v1298_v37 = vsel %vm1101_vm0, %v1068_v21, 0.0  ;;  %1659 = vst.msk [vmem:[%s2358_s28 + $0x7c] sm:$0xf] %vm1627_vm1, %v2000_v24  ;;  %v1308_v12 = vsel %vm1101_vm0, %v1073_v4, 0.0  ;;  %v1075_v17 = vmul.f32 %v2420_v19, %v2420_v19  ;;  %v1310_v24 = vsel %vm1101_vm0, %v1074_v9, 0.0 }
 0x1a1   : > { %v1166_v42 = vadd.f32 %v1165_v35, %v1164_v34  ;;  %v1299_v44 = vadd.f32 %v1298_v37, %v1297_v33  ;;  %1691 = vst.msk [vmem:[%s2358_s28 + $0xfc] sm:$0xf] %vm1627_vm1, %v2032_v41  ;;  %v1177_v60 = vsel %vm1101_vm0, %v2420_v19, 0.0  ;;  %v1076_v26 = vmul.f32 %v2425_v29, %v2425_v29 }
 0x1a2   : > { %v1312_v34 = vsel %vm1101_vm0, %v1075_v17, 0.0  ;;  %v1077_v35 = vmul.f32 %v2440_v43, %v2440_v43  ;;  %v1181_v19 = vsel %vm1101_vm0, %v2440_v43, 0.0  ;;  %v1183_v29 = vsel %vm1101_vm0, %v2445_v53, 0.0 }
 0x1a3   : > { %v1168_v50 = vadd.f32 %v1167_v48, %v1166_v42  ;;  %v1301_v52 = vadd.f32 %v1300_v45, %v1299_v44  ;;  %v1314_v41 = vsel %vm1101_vm0, %v1076_v26, 0.0  ;;  %v1078_v42 = vmul.f32 %v2445_v53, %v2445_v53 }
 0x1a4   : > { %v1316_v48 = vsel %vm1101_vm0, %v1077_v35, 0.0  ;;  %v1079_v18 = vmul.f32 %v2460_v3, %v2460_v3  ;;  %v1185_v43 = vsel %vm1101_vm0, %v2460_v3, 0.0  ;;  %v1187_v53 = vsel %vm1101_vm0, %v2465_v13, 0.0 }
 0x1a5   : > { %v1170_v58 = vadd.f32 %v1169_v55, %v1168_v50  ;;  %v1303_v62 = vadd.f32 %v1302_v54, %v1301_v52  ;;  %v1318_v54 = vsel %vm1101_vm0, %v1078_v42, 0.0  ;;  %v1080_v55 = vmul.f32 %v2465_v13, %v2465_v13 }
 0x1a6   : > { %v1189_v3 = vsel %vm1101_vm0, %v2480_v30, 0.0  ;;  %v1191_v13 = vsel %vm1101_vm0, %v2485_v40, 0.0  ;;  %v1084_v17 = vmul.f32 %v2505_v2, %v2505_v2 }
 0x1a7   : > { %v1172_v6 = vadd.f32 %v1171_v25, %v1170_v58  ;;  %v1305_v7 = vadd.f32 %v1304_v0, %v1303_v62  ;;  %v1320_v62 = vsel %vm1101_vm0, %v1079_v18, 0.0  ;;  %v1081_v0 = vmul.f32 %v2480_v30, %v2480_v30 }
 0x1a8   : > { %v1193_v30 = vsel %vm1101_vm0, %v2500_v56, 0.0  ;;  %v1089_v18 = vmul.f32 %v2560_v14, %v2560_v14 }
 0x1a9   : > { %v1174_v10 = vadd.f32 %v1173_v38, %v1172_v6  ;;  %v1307_v11 = vadd.f32 %v1306_v8, %v1305_v7  ;;  %v1322_v6 = vsel %vm1101_vm0, %v1080_v55, 0.0  ;;  %v1082_v7 = vmul.f32 %v2485_v40, %v2485_v40 }
 0x1aa   : > { %v1324_v9 = vsel %vm1101_vm0, %v1081_v0, 0.0  ;;  %v1195_v40 = vsel %vm1101_vm0, %v2505_v2, 0.0  ;;  %v1199_v2 = vsel %vm1101_vm0, %v2525_v32, 0.0 }
 0x1ab   : > { %v1176_v21 = vadd.f32 %v1175_v47, %v1174_v10  ;;  %v1309_v22 = vadd.f32 %v1308_v12, %v1307_v11  ;;  %v1083_v10 = vmul.f32 %v2500_v56, %v2500_v56  ;;  %v1326_v47 = vsel %vm1101_vm0, %v1082_v7, 0.0 }
 0x1ac   : > { %v1197_v56 = vsel %vm1101_vm0, %v2520_v20, 0.0 }
 0x1ad   : > { %v1178_v28 = vadd.f32 %v1177_v60, %v1176_v21  ;;  %v1311_v33 = vadd.f32 %v1310_v24, %v1309_v22  ;;  %v1328_v24 = vsel %vm1101_vm0, %v1083_v10, 0.0  ;;  %v1085_v60 = vmul.f32 %v2520_v20, %v2520_v20 }
 0x1ae   : > { %v1201_v20 = vsel %vm1101_vm0, %v2540_v49, 0.0  ;;  %v1094_v10 = vmul.f32 %v2605_v31, %v2605_v31 }
 0x1af   : > { %v1180_v36 = vadd.f32 %v1179_v5, %v1178_v28  ;;  %v1313_v37 = vadd.f32 %v1312_v34, %v1311_v33  ;;  %v1330_v33 = vsel %vm1101_vm0, %v1084_v17, 0.0  ;;  %v1086_v34 = vmul.f32 %v2525_v32, %v2525_v32 }
 0x1b0   : > { %v1203_v32 = vsel %vm1101_vm0, %v2545_v61, 0.0 }
 0x1b1   : > { %v1315_v44 = vadd.f32 %v1314_v41, %v1313_v37  ;;  %v1182_v45 = vadd.f32 %v1181_v19, %v1180_v36  ;;  %v1332_v36 = vsel %vm1101_vm0, %v1085_v60, 0.0  ;;  %v1087_v37 = vmul.f32 %v2540_v49, %v2540_v49 }
 0x1b2   : > { %v1334_v42 = vsel %vm1101_vm0, %v1086_v34, 0.0  ;;  %v1205_v49 = vsel %vm1101_vm0, %v2560_v14, 0.0  ;;  %v1209_v14 = vsel %vm1101_vm0, %v2580_v46, 0.0 }
 0x1b3   : > { %v1184_v50 = vadd.f32 %v1183_v29, %v1182_v45  ;;  %v1317_v52 = vadd.f32 %v1316_v48, %v1315_v44  ;;  %v1088_v44 = vmul.f32 %v2545_v61, %v2545_v61  ;;  %v1336_v29 = vsel %vm1101_vm0, %v1087_v37, 0.0 }
 0x1b4   : > { %v1207_v61 = vsel %vm1101_vm0, %v2565_v27, 0.0  ;;  %v1223_v37 = vsel %vm1101_vm0, %v2645_v39, 0.0 }
 0x1b5   : > { %v1186_v57 = vadd.f32 %v1185_v43, %v1184_v50  ;;  %v1319_v58 = vadd.f32 %v1318_v54, %v1317_v52  ;;  %v1338_v54 = vsel %vm1101_vm0, %v1088_v44, 0.0  ;;  %v1090_v43 = vmul.f32 %v2565_v27, %v2565_v27 }
 0x1b6   : > { %v1211_v27 = vsel %vm1101_vm0, %v2585_v59, 0.0  ;;  %v1100_v44 = vmul.f32 %v2667_v16, %v2667_v16 }
 0x1b7   : > { %v1188_v25 = vadd.f32 %v1187_v53, %v1186_v57  ;;  %v1321_v4 = vadd.f32 %v1320_v62, %v1319_v58  ;;  %v1340_v58 = vsel %vm1101_vm0, %v1089_v18, 0.0  ;;  %v1091_v62 = vmul.f32 %v2580_v46, %v2580_v46 }
 0x1b8   : > { %v1213_v46 = vsel %vm1101_vm0, %v2600_v15, 0.0 }
 0x1b9   : > { %v1190_v8 = vadd.f32 %v1189_v3, %v1188_v25  ;;  %v1323_v38 = vadd.f32 %v1322_v6, %v1321_v4  ;;  %v1342_v25 = vsel %vm1101_vm0, %v1090_v43, 0.0  ;;  %v1092_v4 = vmul.f32 %v2585_v59, %v2585_v59 }
 0x1ba   : > { %v1344_v7 = vsel %vm1101_vm0, %v1091_v62, 0.0  ;;  %v1215_v59 = vsel %vm1101_vm0, %v2605_v31, 0.0  ;;  %v1219_v31 = vsel %vm1101_vm0, %v2625_v1, 0.0 }
 0x1bb   : > { %v1192_v11 = vadd.f32 %v1191_v13, %v1190_v8  ;;  %v1325_v12 = vadd.f32 %v1324_v9, %v1323_v38  ;;  %v1093_v8 = vmul.f32 %v2600_v15, %v2600_v15  ;;  %v1346_v13 = vsel %vm1101_vm0, %v1092_v4, 0.0 }
 0x1bc   : > { %v1217_v15 = vsel %vm1101_vm0, %v2620_v51, 0.0 }
 0x1bd   : > { %v1194_v21 = vadd.f32 %v1193_v30, %v1192_v11  ;;  %v1327_v22 = vadd.f32 %v1326_v47, %v1325_v12  ;;  %v1348_v47 = vsel %vm1101_vm0, %v1093_v8, 0.0  ;;  %v1095_v30 = vmul.f32 %v2620_v51, %v2620_v51 }
 0x1be   : > { %v1221_v51 = vsel %vm1101_vm0, %v2640_v23, 0.0 }
 0x1bf   : > { %v1196_v26 = vadd.f32 %v1195_v40, %v1194_v21  ;;  %v1329_v28 = vadd.f32 %v1328_v24, %v1327_v22  ;;  %v1350_v22 = vsel %vm1101_vm0, %v1094_v10, 0.0  ;;  %v1096_v24 = vmul.f32 %v2625_v1, %v2625_v1 }
 0x1c1   : > { %v1198_v5 = vadd.f32 %v1197_v56, %v1196_v26  ;;  %v1331_v35 = vadd.f32 %v1330_v33, %v1329_v28  ;;  %v1352_v26 = vsel %vm1101_vm0, %v1095_v30, 0.0  ;;  %v1097_v28 = vmul.f32 %v2640_v23, %v2640_v23 }
 0x1c2   : > { %v1354_v34 = vsel %vm1101_vm0, %v1096_v24, 0.0 }
 0x1c3   : > { %v1333_v41 = vadd.f32 %v1332_v36, %v1331_v35  ;;  %v1200_v19 = vadd.f32 %v1199_v2, %v1198_v5  ;;  %v1098_v5 = vmul.f32 %v2645_v39, %v2645_v39  ;;  %v1099_v35 = vmul.f32 %v2660_v63, %v2660_v63 }
 0x1c4   : > { %v1356_v1 = vsel %vm1101_vm0, %v1097_v28, 0.0 }
 0x1c5   : > { %v1335_v45 = vadd.f32 %v1334_v42, %v1333_v41  ;;  %v1202_v48 = vadd.f32 %v1201_v20, %v1200_v19  ;;  %v1225_v41 = vsel %vm1101_vm0, %v2660_v63, 0.0  ;;  %v1358_v23 = vsel %vm1101_vm0, %v1098_v5, 0.0 }
 0x1c6   : > { %v1360_v20 = vsel %vm1101_vm0, %v1099_v35, 0.0  ;;  %v1362_v63 = vsel %vm1101_vm0, %v1100_v44, 0.0 }
 0x1c7   : > { %v1337_v50 = vadd.f32 %v1336_v29, %v1335_v45  ;;  %v1204_v52 = vadd.f32 %v1203_v32, %v1202_v48  ;;  %v1227_v29 = vsel %vm1101_vm0, %v2667_v16, 0.0 }
 0x1c9   : > { %v1339_v55 = vadd.f32 %v1338_v54, %v1337_v50  ;;  %v1206_v57 = vadd.f32 %v1205_v49, %v1204_v52 }
 0x1cb   : > { %v1341_v53 = vadd.f32 %v1340_v58, %v1339_v55  ;;  %v1208_v0 = vadd.f32 %v1207_v61, %v1206_v57 }
 0x1cd   : > { %v1343_v6 = vadd.f32 %v1342_v25, %v1341_v53  ;;  %v1210_v3 = vadd.f32 %v1209_v14, %v1208_v0 }
 0x1cf   : > { %v1345_v38 = vadd.f32 %v1344_v7, %v1343_v6  ;;  %v1212_v9 = vadd.f32 %v1211_v27, %v1210_v3 }
 0x1d1   : > { %v1347_v11 = vadd.f32 %v1346_v13, %v1345_v38  ;;  %v1214_v12 = vadd.f32 %v1213_v46, %v1212_v9 }
 0x1d3   : > { %v1349_v17 = vadd.f32 %v1348_v47, %v1347_v11  ;;  %v1216_v21 = vadd.f32 %v1215_v59, %v1214_v12 }
 0x1d5   : > { %v1351_v40 = vadd.f32 %v1350_v22, %v1349_v17  ;;  %v1218_v60 = vadd.f32 %v1217_v15, %v1216_v21 }
 0x1d7   : > { %v1353_v33 = vadd.f32 %v1352_v26, %v1351_v40  ;;  %v1220_v56 = vadd.f32 %v1219_v31, %v1218_v60 }
 0x1d9   : > { %v1355_v36 = vadd.f32 %v1354_v34, %v1353_v33  ;;  %v1222_v2 = vadd.f32 %v1221_v51, %v1220_v56 }
 0x1db   : > { %v1357_v19 = vadd.f32 %v1356_v1, %v1355_v36  ;;  %v1224_v42 = vadd.f32 %v1223_v37, %v1222_v2 }
 0x1dd   : > { %v1359_v45 = vadd.f32 %v1358_v23, %v1357_v19  ;;  %v1226_v48 = vadd.f32 %v1225_v41, %v1224_v42 }
 0x1df   : > { %v1361_v32 = vadd.f32 %v1360_v20, %v1359_v45  ;;  %v1228_v39 = vadd.f32 %v1227_v29, %v1226_v48 }
 0x1e1   : > { %v1229_v18 = vrot.slane %v1228_v39, 4  ;;  %v1363_v50 = vadd.f32 %v1362_v63, %v1361_v32 }
 0x1e3   : > { %v1230_v52 = vadd.f32 %v1229_v18, %v1228_v39  ;;  %v1364_v54 = vrot.slane %v1363_v50, 4 }
 0x1e5   : > { %v1231_v49 = vrot.slane %v1230_v52, 2  ;;  %v1365_v43 = vadd.f32 %v1364_v54, %v1363_v50 }
 0x1e7   : > { %v1232_v55 = vadd.f32 %v1231_v49, %v1230_v52  ;;  %v1366_v57 = vrot.slane %v1365_v43, 2 }
 0x1e9   : > { %v1233_v58 = vrot.slane %v1232_v55, 1  ;;  %v1367_v61 = vadd.f32 %v1366_v57, %v1365_v43 }
 0x1eb   : > { %v1234_v16 = vadd.f32 %v1233_v58, %v1232_v55  ;;  %v1368_v62 = vrot.slane %v1367_v61, 1 }
 0x1ed   : > { %1236 = vst.msk [vmem:[%s231_s5] sm:$0x1] %vm1235_vm2, %v1234_v16  ;;  %v1369_v53 = vadd.f32 %v1368_v62, %v1367_v61 }
 0x1ef   : > { %1370 = vst.msk [vmem:[%s234_s8] sm:$0x1] %vm1235_vm2, %v1369_v53 }
 0x1f0 PF: > { %s15_s15 = sadd.s32 1, %s2192_s15  }
 0x1f1   : > { %p12_p4 = scmp.ge.s32.totalorder %s15_s15, 6  }
 0x1f3   :  { %14 = sbr.rel (!%p12_p4) target bundleno = 1 (0x1), region = 85 }

// kernel: decoder_pre_forward.9
= control target key start
LH: loop header
LB: loop body
LE: loop exit
PB: predicated region body
PF: predicated region fallthrough
CT: control target
= control target key end

     0   :  { %s6518_s9 = smov 0   ;;  %s8044_s0 = inlined_call_operand.vmem [shape: bf16[4,2048,64], index: 0, kind: input, shape index: {}]   ;;  %s8045_s1 = inlined_call_operand.vmem [shape: bf16[4,64,1], index: 1, kind: input, shape index: {}]   ;;  %s8046_s2 = inlined_call_operand.vmem [shape: f32[4,2048,1], index: 2, kind: output, shape index: {}]  }
   0x1 LB: > { %s4395_s10 = sadd.s32 4294967295, %s6501_s9   ;;  %p4399_p0 = scmp.ge.s32.totalorder %s6501_s9, 1  ;;  %s6501_s9 = sphi %s6518_s9, %s12_s9  }
   0x2   : > { %p122_p1 = scmp.lt.s32.totalorder %s6501_s9, 5 }
   0x4   : > { %p123_p2 = pnand %p4399_p0, %p122_p1 }
   0x6   : > { %126 = sbr.rel (%p123_p2) target bundleno = 779 (0x30b), region = 28 }
   0xd   : > { %p149_p3 = scmp.lt.s32.totalorder %s4395_s10, 3  ;;  %vm1093_vm0 = vcmask 523264   ;;  %vm4071_vm1 = vcmask 7168  }
   0xf   : > { %s8138_s10 = smov (!%p149_p3, %s4395_s10), 3 }
  0x10   : > { %s4924_s11 = sshll.u32 %s8138_s10, 10  ;;  %s4925_s12 = sshll.u32 %s8138_s10, 5 }
  0x11   : > { %s158_s15 = scalar_lea.vmem %s8045_s1, %s4925_s12  ;;  %s6536_s18 = scalar_lea.vmem %s8044_s0, %s4924_s11 }
  0x12   : > { %v5339_v0 = vld [vmem:[%s158_s15] sm:$0xff]   ;;  %v5340_v1 = vld [vmem:[%s158_s15 + $0x8] sm:$0xff]   ;;  %v5341_v2 = vld [vmem:[%s158_s15 + $0x10] sm:$0xff]   ;;  %s4926_s19 = sshll.u32 %s8138_s10, 11 }
  0x13   : > { %5059 = vmatprep.subr.bf16.mxu0 %v5339_v0  ;;  %5323 = vmatprep.subr.bf16.mxu1 %v5339_v0  ;;  %v5343_v3 = vld [vmem:[%s6536_s18] sm:$0xff]   ;;  %v5342_v5 = vld [vmem:[%s158_s15 + $0x18] sm:$0xff]   ;;  %v5345_v6 = vld [vmem:[%s6536_s18 + $0x8] sm:$0xff]   ;;  %s6808_s22 = scalar_lea.vmem %s8046_s2, %s4926_s19 }
  0x14   : > { %5060 = vmatpush3.bf16.msra.mxu0 %v5339_v0  ;;  %5327 = vmatpush3.bf16.msra.mxu1 %v5339_v0  ;;  %v5344_v4 = vld [vmem:[%s6536_s18 + $0x200] sm:$0xff]   ;;  %v5346_v7 = vld [vmem:[%s6536_s18 + $0x208] sm:$0xff]   ;;  %v5347_v8 = vld [vmem:[%s6536_s18 + $0x10] sm:$0xff]  }
  0x15   : > { %5061 = vmatprep.subr.bf16.mxu0 %v5340_v1  ;;  %5324 = vmatprep.subr.bf16.mxu1 %v5340_v1  ;;  %v5348_v9 = vld [vmem:[%s6536_s18 + $0x210] sm:$0xff]   ;;  %v5349_v10 = vld [vmem:[%s6536_s18 + $0x18] sm:$0xff]   ;;  %v5351_v12 = vld [vmem:[%s6536_s18 + $0x20] sm:$0xff]  }
  0x16   : > { %5067 = vmatprep.mubr.msk.bf16.mxu0 %vm1093_vm0, %v5343_v3  ;;  %5195 = vmatprep.mubr.msk.bf16.mxu1 %vm1093_vm0, %v5344_v4  ;;  %v5350_v11 = vld [vmem:[%s6536_s18 + $0x218] sm:$0xff]   ;;  %v5352_v13 = vld [vmem:[%s6536_s18 + $0x220] sm:$0xff]   ;;  %v5353_v14 = vld [vmem:[%s6536_s18 + $0x28] sm:$0xff]  }
  0x17   : > { %v5354_v15 = vld [vmem:[%s6536_s18 + $0x228] sm:$0xff]   ;;  %v5355_v16 = vld [vmem:[%s6536_s18 + $0x30] sm:$0xff]   ;;  %v5357_v18 = vld [vmem:[%s6536_s18 + $0x38] sm:$0xff]  }
  0x18   : > { %5062 = vmatpush3.bf16.msra.mxu0 %v5340_v1  ;;  %5328 = vmatpush3.bf16.msra.mxu1 %v5340_v1  ;;  %v5356_v17 = vld [vmem:[%s6536_s18 + $0x230] sm:$0xff]   ;;  %v5358_v19 = vld [vmem:[%s6536_s18 + $0x238] sm:$0xff]   ;;  %v5359_v20 = vld [vmem:[%s6536_s18 + $0x40] sm:$0xff]  }
  0x19   : > { %5063 = vmatprep.subr.bf16.mxu0 %v5341_v2  ;;  %5325 = vmatprep.subr.bf16.mxu1 %v5341_v2  ;;  %v5360_v21 = vld [vmem:[%s6536_s18 + $0x240] sm:$0xff]   ;;  %v5361_v22 = vld [vmem:[%s6536_s18 + $0x48] sm:$0xff]   ;;  %v5363_v24 = vld [vmem:[%s6536_s18 + $0x50] sm:$0xff]  }
  0x1a   : > { %v5362_v23 = vld [vmem:[%s6536_s18 + $0x248] sm:$0xff]   ;;  %v5364_v25 = vld [vmem:[%s6536_s18 + $0x250] sm:$0xff]   ;;  %v5365_v26 = vld [vmem:[%s6536_s18 + $0x58] sm:$0xff]  }
  0x1b   : > { %v5366_v27 = vld [vmem:[%s6536_s18 + $0x258] sm:$0xff]   ;;  %v5367_v28 = vld [vmem:[%s6536_s18 + $0x60] sm:$0xff]   ;;  %v5369_v30 = vld [vmem:[%s6536_s18 + $0x68] sm:$0xff]  }
  0x1c   : > { %5064 = vmatpush3.bf16.msra.mxu0 %v5341_v2  ;;  %5329 = vmatpush3.bf16.msra.mxu1 %v5341_v2  ;;  %v5368_v29 = vld [vmem:[%s6536_s18 + $0x260] sm:$0xff]   ;;  %v5370_v31 = vld [vmem:[%s6536_s18 + $0x268] sm:$0xff]   ;;  %v5371_v32 = vld [vmem:[%s6536_s18 + $0x70] sm:$0xff]  }
  0x1d   : > { %5065 = vmatprep.subr.bf16.mxu0 %v5342_v5  ;;  %5326 = vmatprep.subr.bf16.mxu1 %v5342_v5  ;;  %v5372_v33 = vld [vmem:[%s6536_s18 + $0x270] sm:$0xff]   ;;  %v5373_v34 = vld [vmem:[%s6536_s18 + $0x78] sm:$0xff]   ;;  %v5375_v36 = vld [vmem:[%s6536_s18 + $0x80] sm:$0xff]  }
  0x1e   : > { %v5374_v35 = vld [vmem:[%s6536_s18 + $0x278] sm:$0xff]   ;;  %v5376_v37 = vld [vmem:[%s6536_s18 + $0x280] sm:$0xff]   ;;  %v5377_v38 = vld [vmem:[%s6536_s18 + $0x88] sm:$0xff]  }
  0x1f   : > { %v5378_v39 = vld [vmem:[%s6536_s18 + $0x288] sm:$0xff]   ;;  %v5379_v40 = vld [vmem:[%s6536_s18 + $0x90] sm:$0xff]   ;;  %v5381_v42 = vld [vmem:[%s6536_s18 + $0x98] sm:$0xff]  }
  0x20   : > { %5066 = vmatpush3.bf16.msra.mxu0 %v5342_v5  ;;  %5330 = vmatpush3.bf16.msra.mxu1 %v5342_v5  ;;  %v5380_v41 = vld [vmem:[%s6536_s18 + $0x290] sm:$0xff]   ;;  %v5382_v43 = vld [vmem:[%s6536_s18 + $0x298] sm:$0xff]   ;;  %v5383_v44 = vld [vmem:[%s6536_s18 + $0xa0] sm:$0xff]  }
  0x21   : > { %v5384_v45 = vld [vmem:[%s6536_s18 + $0x2a0] sm:$0xff]   ;;  %v5385_v46 = vld [vmem:[%s6536_s18 + $0xa8] sm:$0xff]   ;;  %v5387_v48 = vld [vmem:[%s6536_s18 + $0xb0] sm:$0xff]  }
  0x22   : > { %v5386_v47 = vld [vmem:[%s6536_s18 + $0x2a8] sm:$0xff]   ;;  %v5388_v49 = vld [vmem:[%s6536_s18 + $0x2b0] sm:$0xff]   ;;  %v5389_v50 = vld [vmem:[%s6536_s18 + $0xb8] sm:$0xff]  }
  0x23   : > { %5068 = vmatmul.mubr.msk.bf16.vlgmr.msra.gmra.mrb[0].mxu0 %vm1093_vm0, %v5345_v6  ;;  %5196 = vmatmul.mubr.msk.bf16.vlgmr.msra.gmra.mrb[0].mxu1 %vm1093_vm0, %v5346_v7  ;;  %v5390_v51 = vld [vmem:[%s6536_s18 + $0x2b8] sm:$0xff]   ;;  %v5391_v52 = vld [vmem:[%s6536_s18 + $0xc0] sm:$0xff]   ;;  %v5393_v54 = vld [vmem:[%s6536_s18 + $0xc8] sm:$0xff]  }
  0x24   : > { %5071 = vmatprep.mubr.msk.bf16.mxu0 %vm1093_vm0, %v5347_v8  ;;  %5199 = vmatprep.mubr.msk.bf16.mxu1 %vm1093_vm0, %v5348_v9  ;;  %v5392_v53 = vld [vmem:[%s6536_s18 + $0x2c0] sm:$0xff]   ;;  %v5394_v55 = vld [vmem:[%s6536_s18 + $0x2c8] sm:$0xff]   ;;  %v5395_v56 = vld [vmem:[%s6536_s18 + $0xd0] sm:$0xff]  }
  0x25   : > { %v5396_v57 = vld [vmem:[%s6536_s18 + $0x2d0] sm:$0xff]   ;;  %v5397_v58 = vld [vmem:[%s6536_s18 + $0xd8] sm:$0xff]   ;;  %v5399_v60 = vld [vmem:[%s6536_s18 + $0xe0] sm:$0xff]  }
  0x26   : > { %v5398_v59 = vld [vmem:[%s6536_s18 + $0x2d8] sm:$0xff]   ;;  %v5400_v61 = vld [vmem:[%s6536_s18 + $0x2e0] sm:$0xff]   ;;  %v5401_v62 = vld [vmem:[%s6536_s18 + $0xe8] sm:$0xff]  }
  0x27   : > { %v5402_v63 = vld [vmem:[%s6536_s18 + $0x2e8] sm:$0xff]   ;;  %v5403_v0 = vld [vmem:[%s6536_s18 + $0xf0] sm:$0xff]   ;;  %v5405_v2 = vld [vmem:[%s6536_s18 + $0xf8] sm:$0xff]  }
  0x28   : > { %v5404_v1 = vld [vmem:[%s6536_s18 + $0x2f0] sm:$0xff]   ;;  %v5406_v3 = vld [vmem:[%s6536_s18 + $0x2f8] sm:$0xff]   ;;  %v5407_v4 = vld [vmem:[%s6536_s18 + $0x100] sm:$0xff]  }
  0x29   : > { %v5408_v5 = vld [vmem:[%s6536_s18 + $0x300] sm:$0xff]   ;;  %v5409_v6 = vld [vmem:[%s6536_s18 + $0x108] sm:$0xff]   ;;  %v5411_v8 = vld [vmem:[%s6536_s18 + $0x110] sm:$0xff]  }
  0x2a   : > { %v5410_v7 = vld [vmem:[%s6536_s18 + $0x308] sm:$0xff]   ;;  %v5412_v9 = vld [vmem:[%s6536_s18 + $0x310] sm:$0xff]  }
  0x2b   : > { %5072 = vmatmul.mubr.msk.bf16.gmra.mrb[4].mxu0 %vm1093_vm0, %v5349_v10  ;;  %5200 = vmatmul.mubr.msk.bf16.gmra.mrb[4].mxu1 %vm1093_vm0, %v5350_v11  ;;  %v5413_v10 = vld [vmem:[%s6536_s18 + $0x118] sm:$0xff]  }
  0x2c   : > { %5075 = vmatprep.mubr.msk.bf16.mxu0 %vm1093_vm0, %v5351_v12  ;;  %5203 = vmatprep.mubr.msk.bf16.mxu1 %vm1093_vm0, %v5352_v13  ;;  %v5414_v11 = vld [vmem:[%s6536_s18 + $0x318] sm:$0xff]   ;;  %v5415_v12 = vld [vmem:[%s6536_s18 + $0x120] sm:$0xff]  }
  0x2d   : > { %v5416_v13 = vld [vmem:[%s6536_s18 + $0x320] sm:$0xff]  }
  0x33   : > { %5076 = vmatmul.mubr.msk.bf16.gmra.mrb[8].mxu0 %vm1093_vm0, %v5353_v14  ;;  %5204 = vmatmul.mubr.msk.bf16.gmra.mrb[8].mxu1 %vm1093_vm0, %v5354_v15  ;;  %v5417_v14 = vld [vmem:[%s6536_s18 + $0x128] sm:$0xff]  }
  0x34   : > { %5079 = vmatprep.mubr.msk.bf16.mxu0 %vm1093_vm0, %v5355_v16  ;;  %5207 = vmatprep.mubr.msk.bf16.mxu1 %vm1093_vm0, %v5356_v17  ;;  %v5418_v15 = vld [vmem:[%s6536_s18 + $0x328] sm:$0xff]   ;;  %v5419_v16 = vld [vmem:[%s6536_s18 + $0x130] sm:$0xff]  }
  0x35   : > { %v5420_v17 = vld [vmem:[%s6536_s18 + $0x330] sm:$0xff]  }
  0x3b   : > { %5080 = vmatmul.mubr.msk.bf16.gmra.mrb[12].mxu0 %vm1093_vm0, %v5357_v18  ;;  %5208 = vmatmul.mubr.msk.bf16.gmra.mrb[12].mxu1 %vm1093_vm0, %v5358_v19  ;;  %v5421_v18 = vld [vmem:[%s6536_s18 + $0x138] sm:$0xff]  }
  0x3c   : > { %5083 = vmatprep.mubr.msk.bf16.mxu0 %vm1093_vm0, %v5359_v20  ;;  %5211 = vmatprep.mubr.msk.bf16.mxu1 %vm1093_vm0, %v5360_v21  ;;  %v5422_v19 = vld [vmem:[%s6536_s18 + $0x338] sm:$0xff]   ;;  %v5423_v20 = vld [vmem:[%s6536_s18 + $0x140] sm:$0xff]  }
  0x3d   : > { %v5424_v21 = vld [vmem:[%s6536_s18 + $0x340] sm:$0xff]  }
  0x43   : > { %5084 = vmatmul.mubr.msk.bf16.gmra.mrb[16].mxu0 %vm1093_vm0, %v5361_v22  ;;  %5212 = vmatmul.mubr.msk.bf16.gmra.mrb[16].mxu1 %vm1093_vm0, %v5362_v23  ;;  %v5425_v22 = vld [vmem:[%s6536_s18 + $0x148] sm:$0xff]  }
  0x44   : > { %5087 = vmatprep.mubr.msk.bf16.mxu0 %vm1093_vm0, %v5363_v24  ;;  %5215 = vmatprep.mubr.msk.bf16.mxu1 %vm1093_vm0, %v5364_v25  ;;  %v5426_v23 = vld [vmem:[%s6536_s18 + $0x348] sm:$0xff]   ;;  %v5427_v24 = vld [vmem:[%s6536_s18 + $0x150] sm:$0xff]  }
  0x45   : > { %v5428_v25 = vld [vmem:[%s6536_s18 + $0x350] sm:$0xff]  }
  0x4b   : > { %5088 = vmatmul.mubr.msk.bf16.gmra.mrb[20].mxu0 %vm1093_vm0, %v5365_v26  ;;  %5216 = vmatmul.mubr.msk.bf16.gmra.mrb[20].mxu1 %vm1093_vm0, %v5366_v27  ;;  %v5429_v26 = vld [vmem:[%s6536_s18 + $0x158] sm:$0xff]  }
  0x4c   : > { %5091 = vmatprep.mubr.msk.bf16.mxu0 %vm1093_vm0, %v5367_v28  ;;  %5219 = vmatprep.mubr.msk.bf16.mxu1 %vm1093_vm0, %v5368_v29  ;;  %v5430_v27 = vld [vmem:[%s6536_s18 + $0x358] sm:$0xff]   ;;  %v5431_v28 = vld [vmem:[%s6536_s18 + $0x160] sm:$0xff]  }
  0x4d   : > { %v5432_v29 = vld [vmem:[%s6536_s18 + $0x360] sm:$0xff]  }
  0x53   : > { %5092 = vmatmul.mubr.msk.bf16.gmra.mrb[24].mxu0 %vm1093_vm0, %v5369_v30  ;;  %5220 = vmatmul.mubr.msk.bf16.gmra.mrb[24].mxu1 %vm1093_vm0, %v5370_v31  ;;  %v5433_v30 = vld [vmem:[%s6536_s18 + $0x168] sm:$0xff]  }
  0x54   : > { %5095 = vmatprep.mubr.msk.bf16.mxu0 %vm1093_vm0, %v5371_v32  ;;  %5223 = vmatprep.mubr.msk.bf16.mxu1 %vm1093_vm0, %v5372_v33  ;;  %v5434_v31 = vld [vmem:[%s6536_s18 + $0x368] sm:$0xff]   ;;  %v5435_v32 = vld [vmem:[%s6536_s18 + $0x170] sm:$0xff]  }
  0x55   : > { %v5436_v33 = vld [vmem:[%s6536_s18 + $0x370] sm:$0xff]  }
  0x5b   : > { %5096 = vmatmul.mubr.msk.bf16.gmra.mrb[28].mxu0 %vm1093_vm0, %v5373_v34  ;;  %5224 = vmatmul.mubr.msk.bf16.gmra.mrb[28].mxu1 %vm1093_vm0, %v5374_v35  ;;  %v5437_v34 = vld [vmem:[%s6536_s18 + $0x178] sm:$0xff]  }
  0x5c   : > { %5099 = vmatprep.mubr.msk.bf16.mxu0 %vm1093_vm0, %v5375_v36  ;;  %5227 = vmatprep.mubr.msk.bf16.mxu1 %vm1093_vm0, %v5376_v37  ;;  %v5438_v35 = vld [vmem:[%s6536_s18 + $0x378] sm:$0xff]   ;;  %v5439_v36 = vld [vmem:[%s6536_s18 + $0x180] sm:$0xff]  }
  0x5d   : > { %v5440_v37 = vld [vmem:[%s6536_s18 + $0x380] sm:$0xff]  }
  0x63   : > { %5100 = vmatmul.mubr.msk.bf16.gmra.mrb[32].mxu0 %vm1093_vm0, %v5377_v38  ;;  %5228 = vmatmul.mubr.msk.bf16.gmra.mrb[32].mxu1 %vm1093_vm0, %v5378_v39  ;;  %v5441_v38 = vld [vmem:[%s6536_s18 + $0x188] sm:$0xff]  }
  0x64   : > { %5103 = vmatprep.mubr.msk.bf16.mxu0 %vm1093_vm0, %v5379_v40  ;;  %5231 = vmatprep.mubr.msk.bf16.mxu1 %vm1093_vm0, %v5380_v41  ;;  %v5442_v39 = vld [vmem:[%s6536_s18 + $0x388] sm:$0xff]   ;;  %v5443_v40 = vld [vmem:[%s6536_s18 + $0x190] sm:$0xff]  }
  0x65   : > { %v5444_v41 = vld [vmem:[%s6536_s18 + $0x390] sm:$0xff]  }
  0x6b   : > { %5104 = vmatmul.mubr.msk.bf16.gmra.mrb[36].mxu0 %vm1093_vm0, %v5381_v42  ;;  %5232 = vmatmul.mubr.msk.bf16.gmra.mrb[36].mxu1 %vm1093_vm0, %v5382_v43  ;;  %v5445_v42 = vld [vmem:[%s6536_s18 + $0x198] sm:$0xff]  }
  0x6c   : > { %5107 = vmatprep.mubr.msk.bf16.mxu0 %vm1093_vm0, %v5383_v44  ;;  %5235 = vmatprep.mubr.msk.bf16.mxu1 %vm1093_vm0, %v5384_v45  ;;  %v5446_v43 = vld [vmem:[%s6536_s18 + $0x398] sm:$0xff]   ;;  %v5447_v44 = vld [vmem:[%s6536_s18 + $0x1a0] sm:$0xff]  }
  0x6d   : > { %v5448_v45 = vld [vmem:[%s6536_s18 + $0x3a0] sm:$0xff]  }
  0x73   : > { %5108 = vmatmul.mubr.msk.bf16.gmra.mrb[40].mxu0 %vm1093_vm0, %v5385_v46  ;;  %5236 = vmatmul.mubr.msk.bf16.gmra.mrb[40].mxu1 %vm1093_vm0, %v5386_v47  ;;  %v5449_v46 = vld [vmem:[%s6536_s18 + $0x1a8] sm:$0xff]  }
  0x74   : > { %5111 = vmatprep.mubr.msk.bf16.mxu0 %vm1093_vm0, %v5387_v48  ;;  %5239 = vmatprep.mubr.msk.bf16.mxu1 %vm1093_vm0, %v5388_v49  ;;  %v5450_v47 = vld [vmem:[%s6536_s18 + $0x3a8] sm:$0xff]   ;;  %v5451_v48 = vld [vmem:[%s6536_s18 + $0x1b0] sm:$0xff]  }
  0x75   : > { %v5452_v49 = vld [vmem:[%s6536_s18 + $0x3b0] sm:$0xff]  }
  0x7b   : > { %5112 = vmatmul.mubr.msk.bf16.gmra.mrb[44].mxu0 %vm1093_vm0, %v5389_v50  ;;  %5240 = vmatmul.mubr.msk.bf16.gmra.mrb[44].mxu1 %vm1093_vm0, %v5390_v51  ;;  %v5453_v50 = vld [vmem:[%s6536_s18 + $0x1b8] sm:$0xff]  }
  0x7c   : > { %5115 = vmatprep.mubr.msk.bf16.mxu0 %vm1093_vm0, %v5391_v52  ;;  %5243 = vmatprep.mubr.msk.bf16.mxu1 %vm1093_vm0, %v5392_v53  ;;  %v5454_v53 = vld [vmem:[%s6536_s18 + $0x3b8] sm:$0xff]  }
  0x83   : > { %5116 = vmatmul.mubr.msk.bf16.gmra.mrb[48].mxu0 %vm1093_vm0, %v5393_v54  ;;  %5244 = vmatmul.mubr.msk.bf16.gmra.mrb[48].mxu1 %vm1093_vm0, %v5394_v55  ;;  %v5455_v54 = vld [vmem:[%s6536_s18 + $0x1c0] sm:$0xff]  }
  0x84   : > { %5119 = vmatprep.mubr.msk.bf16.mxu0 %vm1093_vm0, %v5395_v56  ;;  %5247 = vmatprep.mubr.msk.bf16.mxu1 %vm1093_vm0, %v5396_v57  ;;  %v5456_v55 = vld [vmem:[%s6536_s18 + $0x3c0] sm:$0xff]  }
  0x8b   : > { %5120 = vmatmul.mubr.msk.bf16.gmra.mrb[52].mxu0 %vm1093_vm0, %v5397_v58  ;;  %5248 = vmatmul.mubr.msk.bf16.gmra.mrb[52].mxu1 %vm1093_vm0, %v5398_v59 }
  0x8c   : > { %5123 = vmatprep.mubr.msk.bf16.mxu0 %vm1093_vm0, %v5399_v60  ;;  %5251 = vmatprep.mubr.msk.bf16.mxu1 %vm1093_vm0, %v5400_v61 }
  0x93   : > { %5124 = vmatmul.mubr.msk.bf16.gmra.mrb[56].mxu0 %vm1093_vm0, %v5401_v62  ;;  %5252 = vmatmul.mubr.msk.bf16.gmra.mrb[56].mxu1 %vm1093_vm0, %v5402_v63 }
  0x94   : > { %5127 = vmatprep.mubr.msk.bf16.mxu0 %vm1093_vm0, %v5403_v0  ;;  %5255 = vmatprep.mubr.msk.bf16.mxu1 %vm1093_vm0, %v5404_v1 }
  0x9b   : > { %5128 = vmatmul.mubr.msk.bf16.gmra.mrb[60].mxu0 %vm1093_vm0, %v5405_v2  ;;  %5256 = vmatmul.mubr.msk.bf16.gmra.mrb[60].mxu1 %vm1093_vm0, %v5406_v3 }
  0x9c   : > { %5131 = vmatprep.mubr.msk.bf16.mxu0 %vm1093_vm0, %v5407_v4  ;;  %5259 = vmatprep.mubr.msk.bf16.mxu1 %vm1093_vm0, %v5408_v5 }
  0xa3   : > { %5132 = vmatmul.mubr.msk.bf16.gmra.mrb[64].mxu0 %vm1093_vm0, %v5409_v6  ;;  %5260 = vmatmul.mubr.msk.bf16.gmra.mrb[64].mxu1 %vm1093_vm0, %v5410_v7  ;;  %v5457_v6 = vld [vmem:[%s6536_s18 + $0x1c8] sm:$0xff]  }
  0xa4   : > { %5135 = vmatprep.mubr.msk.bf16.mxu0 %vm1093_vm0, %v5411_v8  ;;  %5263 = vmatprep.mubr.msk.bf16.mxu1 %vm1093_vm0, %v5412_v9  ;;  %v5458_v9 = vld [vmem:[%s6536_s18 + $0x3c8] sm:$0xff]  }
  0xab   : > { %5136 = vmatmul.mubr.msk.bf16.gmra.mrb[68].mxu0 %vm1093_vm0, %v5413_v10  ;;  %5264 = vmatmul.mubr.msk.bf16.gmra.mrb[68].mxu1 %vm1093_vm0, %v5414_v11  ;;  %v5459_v10 = vld [vmem:[%s6536_s18 + $0x1d0] sm:$0xff]  }
  0xac   : > { %5139 = vmatprep.mubr.msk.bf16.mxu0 %vm1093_vm0, %v5415_v12  ;;  %5267 = vmatprep.mubr.msk.bf16.mxu1 %vm1093_vm0, %v5416_v13  ;;  %v5460_v11 = vld [vmem:[%s6536_s18 + $0x3d0] sm:$0xff]  }
  0xb3   : > { %5140 = vmatmul.mubr.msk.bf16.gmra.mrb[72].mxu0 %vm1093_vm0, %v5417_v14  ;;  %5268 = vmatmul.mubr.msk.bf16.gmra.mrb[72].mxu1 %vm1093_vm0, %v5418_v15 }
  0xb4   : > { %5143 = vmatprep.mubr.msk.bf16.mxu0 %vm1093_vm0, %v5419_v16  ;;  %5271 = vmatprep.mubr.msk.bf16.mxu1 %vm1093_vm0, %v5420_v17 }
  0xbb   : > { %5144 = vmatmul.mubr.msk.bf16.gmra.mrb[76].mxu0 %vm1093_vm0, %v5421_v18  ;;  %5272 = vmatmul.mubr.msk.bf16.gmra.mrb[76].mxu1 %vm1093_vm0, %v5422_v19 }
  0xbc   : > { %5147 = vmatprep.mubr.msk.bf16.mxu0 %vm1093_vm0, %v5423_v20  ;;  %5275 = vmatprep.mubr.msk.bf16.mxu1 %vm1093_vm0, %v5424_v21 }
  0xc3   : > { %5148 = vmatmul.mubr.msk.bf16.gmra.mrb[80].mxu0 %vm1093_vm0, %v5425_v22  ;;  %5276 = vmatmul.mubr.msk.bf16.gmra.mrb[80].mxu1 %vm1093_vm0, %v5426_v23 }
  0xc4   : > { %5151 = vmatprep.mubr.msk.bf16.mxu0 %vm1093_vm0, %v5427_v24  ;;  %5279 = vmatprep.mubr.msk.bf16.mxu1 %vm1093_vm0, %v5428_v25 }
  0xcb   : > { %5152 = vmatmul.mubr.msk.bf16.gmra.mrb[84].mxu0 %vm1093_vm0, %v5429_v26  ;;  %5280 = vmatmul.mubr.msk.bf16.gmra.mrb[84].mxu1 %vm1093_vm0, %v5430_v27 }
  0xcc   : > { %5155 = vmatprep.mubr.msk.bf16.mxu0 %vm1093_vm0, %v5431_v28  ;;  %5283 = vmatprep.mubr.msk.bf16.mxu1 %vm1093_vm0, %v5432_v29 }
  0xd3   : > { %5156 = vmatmul.mubr.msk.bf16.gmra.mrb[88].mxu0 %vm1093_vm0, %v5433_v30  ;;  %5284 = vmatmul.mubr.msk.bf16.gmra.mrb[88].mxu1 %vm1093_vm0, %v5434_v31 }
  0xd4   : > { %5159 = vmatprep.mubr.msk.bf16.mxu0 %vm1093_vm0, %v5435_v32  ;;  %5287 = vmatprep.mubr.msk.bf16.mxu1 %vm1093_vm0, %v5436_v33 }
  0xdb   : > { %5160 = vmatmul.mubr.msk.bf16.gmra.mrb[92].mxu0 %vm1093_vm0, %v5437_v34  ;;  %5288 = vmatmul.mubr.msk.bf16.gmra.mrb[92].mxu1 %vm1093_vm0, %v5438_v35  ;;  %v5461_v35 = vld [vmem:[%s6536_s18 + $0x1d8] sm:$0xff]  }
  0xdc   : > { %5163 = vmatprep.mubr.msk.bf16.mxu0 %vm1093_vm0, %v5439_v36  ;;  %5291 = vmatprep.mubr.msk.bf16.mxu1 %vm1093_vm0, %v5440_v37  ;;  %v5462_v36 = vld [vmem:[%s6536_s18 + $0x3d8] sm:$0xff]  }
  0xe3   : > { %5164 = vmatmul.mubr.msk.bf16.gmra.mrb[96].mxu0 %vm1093_vm0, %v5441_v38  ;;  %5292 = vmatmul.mubr.msk.bf16.gmra.mrb[96].mxu1 %vm1093_vm0, %v5442_v39 }
  0xe4   : > { %5167 = vmatprep.mubr.msk.bf16.mxu0 %vm1093_vm0, %v5443_v40  ;;  %5295 = vmatprep.mubr.msk.bf16.mxu1 %vm1093_vm0, %v5444_v41  ;;  %v5463_v41 = vld [vmem:[%s6536_s18 + $0x1e0] sm:$0xff]  }
  0xeb   : > { %5168 = vmatmul.mubr.msk.bf16.gmra.mrb[100].mxu0 %vm1093_vm0, %v5445_v42  ;;  %5296 = vmatmul.mubr.msk.bf16.gmra.mrb[100].mxu1 %vm1093_vm0, %v5446_v43  ;;  %v5464_v42 = vld [vmem:[%s6536_s18 + $0x3e0] sm:$0xff]  }
  0xec   : > { %5171 = vmatprep.mubr.msk.bf16.mxu0 %vm1093_vm0, %v5447_v44  ;;  %5299 = vmatprep.mubr.msk.bf16.mxu1 %vm1093_vm0, %v5448_v45 }
  0xf3   : > { %5172 = vmatmul.mubr.msk.bf16.gmra.mrb[104].mxu0 %vm1093_vm0, %v5449_v46  ;;  %5300 = vmatmul.mubr.msk.bf16.gmra.mrb[104].mxu1 %vm1093_vm0, %v5450_v47 }
  0xf4   : > { %5175 = vmatprep.mubr.msk.bf16.mxu0 %vm1093_vm0, %v5451_v48  ;;  %5303 = vmatprep.mubr.msk.bf16.mxu1 %vm1093_vm0, %v5452_v49 }
  0xf6   : > { %v5069_v51 = vpop.f32.mrb[0].mxu0  ;;  %v5197_v52 = vpop.f32.mrb[0].mxu1 }
  0xf7   : > { %v4668_v56 = vmul.f32 -1.442695, %v5069_v51  ;;  %v4796_v57 = vmul.f32 -1.442695, %v5197_v52  ;;  %v1512_v58 = vpop.f32.mrb[1].mxu0  ;;  %v2024_v59 = vpop.f32.mrb[1].mxu1 }
  0xf8   : > { %v4666_v60 = vmul.f32 -1.442695, %v1512_v58  ;;  %v4794_v61 = vmul.f32 -1.442695, %v2024_v59  ;;  %v5070_v62 = vpop.f32.mrb[2].mxu0  ;;  %v5198_v63 = vpop.f32.mrb[2].mxu1 }
  0xf9   : > { %5471 = vpow2.f32 %v4668_v56  ;;  %v4669_v0 = vmul.f32 -1.442695, %v5070_v62  ;;  %v1515_v1 = vpop.f32.mrb[3].mxu0  ;;  %v2027_v2 = vpop.f32.mrb[3].mxu1  ;;  %v4797_v3 = vmul.f32 -1.442695, %v5198_v63 }
  0xfa   : > { %5473 = vpow2.f32 %v4796_v57  ;;  %v4667_v4 = vmul.f32 -1.442695, %v1515_v1  ;;  %v4795_v5 = vmul.f32 -1.442695, %v2027_v2  ;;  %v5466_v1 = vld [vmem:[%s6536_s18 + $0x3e8] sm:$0xff]   ;;  %v5467_v2 = vld [vmem:[%s6536_s18 + $0x1f0] sm:$0xff]  }
  0xfb   : > { %5475 = vpow2.f32 %v4666_v60  ;;  %5176 = vmatmul.mubr.msk.bf16.gmra.mrb[108].mxu0 %vm1093_vm0, %v5453_v50  ;;  %5304 = vmatmul.mubr.msk.bf16.gmra.mrb[108].mxu1 %vm1093_vm0, %v5454_v53  ;;  %v5465_v60 = vld [vmem:[%s6536_s18 + $0x1e8] sm:$0xff]  }
  0xfc   : > { %5477 = vpow2.f32 %v4794_v61  ;;  %5179 = vmatprep.mubr.msk.bf16.mxu0 %vm1093_vm0, %v5455_v54  ;;  %5307 = vmatprep.mubr.msk.bf16.mxu1 %vm1093_vm0, %v5456_v55 }
  0xfd   : > { %5479 = vpow2.f32 %v4669_v0 }
  0xfe   : > { %5481 = vpow2.f32 %v4797_v3  ;;  %v5073_v7 = vpop.f32.mrb[4].mxu0  ;;  %v5201_v8 = vpop.f32.mrb[4].mxu1 }
  0xff   : > { %5483 = vpow2.f32 %v4667_v4  ;;  %v4672_v12 = vmul.f32 -1.442695, %v5073_v7  ;;  %v4800_v13 = vmul.f32 -1.442695, %v5201_v8  ;;  %v1528_v14 = vpop.f32.mrb[5].mxu0  ;;  %v2040_v15 = vpop.f32.mrb[5].mxu1 }
 0x100   : > { %5485 = vpow2.f32 %v4795_v5  ;;  %v4670_v16 = vmul.f32 -1.442695, %v1528_v14  ;;  %v4798_v17 = vmul.f32 -1.442695, %v2040_v15  ;;  %v5074_v18 = vpop.f32.mrb[6].mxu0  ;;  %v6770_v19 = vpop.f32.mrb[6].mxu1 }
 0x101   : > { %5487 = vpow2.f32 %v4672_v12  ;;  %v4673_v20 = vmul.f32 -1.442695, %v5074_v18  ;;  %v6772_v21 = vpop.f32.mrb[7].mxu0  ;;  %v6774_v22 = vpop.f32.mrb[7].mxu1  ;;  %v4801_v63 = vmul.f32 -1.442695, %v6770_v19 }
 0x102   : > { %5489 = vpow2.f32 %v4800_v13  ;;  %v4671_v5 = vmul.f32 -1.442695, %v6772_v21  ;;  %v5468_v8 = vld [vmem:[%s6536_s18 + $0x3f0] sm:$0xff]  }
 0x103   : > { %v5472_v23 = vpop.eup %5471  ;;  %5491 = vpow2.f32 %v4670_v16  ;;  %5180 = vmatmul.mubr.msk.bf16.gmra.mrb[112].mxu0 %vm1093_vm0, %v5457_v6  ;;  %5308 = vmatmul.mubr.msk.bf16.gmra.mrb[112].mxu1 %vm1093_vm0, %v5458_v9 }
 0x104   : > { %v5474_v24 = vpop.eup %5473  ;;  %v3305_v25 = vadd.f32 1.0, %v5472_v23  ;;  %5493 = vpow2.f32 %v4798_v17  ;;  %5183 = vmatprep.mubr.msk.bf16.mxu0 %vm1093_vm0, %v5459_v10  ;;  %5311 = vmatprep.mubr.msk.bf16.mxu1 %vm1093_vm0, %v5460_v11  ;;  %v4799_v10 = vmul.f32 -1.442695, %v6774_v22 }
 0x105   : > { %v5476_v26 = vpop.eup %5475  ;;  %v3433_v27 = vadd.f32 1.0, %v5474_v24  ;;  %5495 = vpow2.f32 %v4673_v20 }
 0x106   : > { %v5478_v28 = vpop.eup %5477  ;;  %5497 = vrcp.f32 %v3305_v25  ;;  %v3303_v29 = vadd.f32 1.0, %v5476_v26  ;;  %v6780_v30 = vpop.f32.mrb[8].mxu0 }
 0x107   : > { %v6782_v31 = vpop.f32.mrb[8].mxu1  ;;  %v5480_v32 = vpop.eup %5479  ;;  %5499 = vrcp.f32 %v3433_v27  ;;  %v3431_v33 = vadd.f32 1.0, %v5478_v28  ;;  %v4676_v14 = vmul.f32 -1.442695, %v6780_v30  ;;  %v5469_v30 = vld [vmem:[%s6536_s18 + $0x1f8] sm:$0xff]  }
 0x108   : > { %v6784_v34 = vpop.f32.mrb[9].mxu0  ;;  %v5482_v37 = vpop.eup %5481  ;;  %5501 = vrcp.f32 %v3303_v29  ;;  %v3306_v38 = vadd.f32 1.0, %v5480_v32  ;;  %v4804_v17 = vmul.f32 -1.442695, %v6782_v31  ;;  %v5470_v31 = vld [vmem:[%s6536_s18 + $0x3f8] sm:$0xff]  }
 0x109   : > { %v6788_v39 = vpop.f32.mrb[9].mxu1  ;;  %v6790_v40 = vpop.f32.mrb[10].mxu0  ;;  %5503 = vrcp.f32 %v3431_v33  ;;  %v3434_v44 = vadd.f32 1.0, %v5482_v37  ;;  %v4674_v19 = vmul.f32 -1.442695, %v6784_v34 }
 0x10a   : > { %v5484_v43 = vpop.eup %5483  ;;  %v6794_v45 = vpop.f32.mrb[10].mxu1  ;;  %5505 = vrcp.f32 %v3306_v38  ;;  %v4802_v21 = vmul.f32 -1.442695, %v6788_v39  ;;  %v4677_v23 = vmul.f32 -1.442695, %v6790_v40 }
 0x10b   : > { %v5486_v46 = vpop.eup %5485  ;;  %v3304_v47 = vadd.f32 1.0, %v5484_v43  ;;  %v6796_v48 = vpop.f32.mrb[11].mxu0  ;;  %5507 = vrcp.f32 %v3434_v44  ;;  %5184 = vmatmul.mubr.msk.bf16.gmra.mrb[116].mxu0 %vm1093_vm0, %v5461_v35  ;;  %5312 = vmatmul.mubr.msk.bf16.gmra.mrb[116].mxu1 %vm1093_vm0, %v5462_v36  ;;  %v4805_v27 = vmul.f32 -1.442695, %v6794_v45 }
 0x10c   : > { %v6798_v49 = vpop.f32.mrb[11].mxu1  ;;  %v5488_v50 = vpop.eup %5487  ;;  %v3432_v51 = vadd.f32 1.0, %v5486_v46  ;;  %5187 = vmatprep.mubr.msk.bf16.mxu0 %vm1093_vm0, %v5463_v41  ;;  %5315 = vmatprep.mubr.msk.bf16.mxu1 %vm1093_vm0, %v5464_v42  ;;  %v4675_v33 = vmul.f32 -1.442695, %v6796_v48 }
 0x10d   : > { %v5490_v52 = vpop.eup %5489  ;;  %5509 = vrcp.f32 %v3304_v47  ;;  %v3309_v53 = vadd.f32 1.0, %v5488_v50  ;;  %v4803_v37 = vmul.f32 -1.442695, %v6798_v49 }
 0x10e   : > { %v5492_v54 = vpop.eup %5491  ;;  %5511 = vrcp.f32 %v3432_v51  ;;  %v3437_v55 = vadd.f32 1.0, %v5490_v52  ;;  %v6810_v58 = vpop.f32.mrb[12].mxu0 }
 0x10f   : > { %v5494_v56 = vpop.eup %5493  ;;  %5513 = vrcp.f32 %v3309_v53  ;;  %v3307_v57 = vadd.f32 1.0, %v5492_v54  ;;  %v6812_v59 = vpop.f32.mrb[12].mxu1  ;;  %v4680_v41 = vmul.f32 -1.442695, %v6810_v58 }
 0x110   : > { %v5496_v61 = vpop.eup %5495  ;;  %5515 = vrcp.f32 %v3437_v55  ;;  %v3435_v62 = vadd.f32 1.0, %v5494_v56  ;;  %v6816_v0 = vpop.f32.mrb[13].mxu0  ;;  %v4808_v43 = vmul.f32 -1.442695, %v6812_v59 }
 0x111   : > { %v5498_v3 = vpop.eup %5497  ;;  %5517 = vrcp.f32 %v3307_v57  ;;  %v3310_v4 = vadd.f32 1.0, %v5496_v61  ;;  %v6821_v6 = vpop.f32.mrb[13].mxu1 }
 0x112   : > { %v6823_v7 = vpop.f32.mrb[14].mxu0  ;;  %v5500_v9 = vpop.eup %5499  ;;  %4074 = vst.msk [vmem:[%s6808_s22 + $0x10] sm:$0xff] %vm4071_vm1, %v5498_v3  ;;  %5519 = vrcp.f32 %v3435_v62 }
 0x113   : > { %v6829_v11 = vpop.f32.mrb[14].mxu1  ;;  %v6831_v12 = vpop.f32.mrb[15].mxu0  ;;  %4202 = vst.msk [vmem:[%s6808_s22 + $0x410] sm:$0xff] %vm4071_vm1, %v5500_v9  ;;  %5521 = vrcp.f32 %v3310_v4  ;;  %5188 = vmatmul.mubr.msk.bf16.gmra.mrb[120].mxu0 %vm1093_vm0, %v5465_v60  ;;  %5316 = vmatmul.mubr.msk.bf16.gmra.mrb[120].mxu1 %vm1093_vm0, %v5466_v1 }
 0x114   : > { %v5502_v13 = vpop.eup %5501  ;;  %v6836_v15 = vpop.f32.mrb[15].mxu1  ;;  %5523 = vpow2.f32 %v4801_v63  ;;  %5191 = vmatprep.mubr.msk.bf16.mxu0 %vm1093_vm0, %v5467_v2  ;;  %5319 = vmatprep.mubr.msk.bf16.mxu1 %vm1093_vm0, %v5468_v8 }
 0x115   : > { %v5504_v16 = vpop.eup %5503  ;;  %4072 = vst.msk [vmem:[%s6808_s22] sm:$0xff] %vm4071_vm1, %v5502_v13  ;;  %5525 = vpow2.f32 %v4671_v5 }
 0x116   : > { %v5506_v18 = vpop.eup %5505  ;;  %4200 = vst.msk [vmem:[%s6808_s22 + $0x400] sm:$0xff] %vm4071_vm1, %v5504_v16  ;;  %5527 = vpow2.f32 %v4799_v10  ;;  %v6854_v24 = vpop.f32.mrb[16].mxu0 }
 0x117   : > { %v5508_v20 = vpop.eup %5507  ;;  %4075 = vst.msk [vmem:[%s6808_s22 + $0x18] sm:$0xff] %vm4071_vm1, %v5506_v18  ;;  %5529 = vpow2.f32 %v4676_v14  ;;  %v6856_v25 = vpop.f32.mrb[16].mxu1 }
 0x118   : > { %v5510_v22 = vpop.eup %5509  ;;  %4203 = vst.msk [vmem:[%s6808_s22 + $0x418] sm:$0xff] %vm4071_vm1, %v5508_v20  ;;  %5531 = vpow2.f32 %v4804_v17  ;;  %v6861_v28 = vpop.f32.mrb[17].mxu0 }
 0x119   : > { %v5512_v26 = vpop.eup %5511  ;;  %4073 = vst.msk [vmem:[%s6808_s22 + $0x8] sm:$0xff] %vm4071_vm1, %v5510_v22  ;;  %v6863_v29 = vpop.f32.mrb[17].mxu1  ;;  %5533 = vpow2.f32 %v4674_v19 }
 0x11a   : > { %v5514_v32 = vpop.eup %5513  ;;  %4201 = vst.msk [vmem:[%s6808_s22 + $0x408] sm:$0xff] %vm4071_vm1, %v5512_v26  ;;  %v6870_v34 = vpop.f32.mrb[18].mxu0  ;;  %5535 = vpow2.f32 %v4802_v21 }
 0x11b   : > { %v6872_v35 = vpop.f32.mrb[18].mxu1  ;;  %v5516_v36 = vpop.eup %5515  ;;  %4078 = vst.msk [vmem:[%s6808_s22 + $0x30] sm:$0xff] %vm4071_vm1, %v5514_v32  ;;  %5537 = vpow2.f32 %v4677_v23  ;;  %5192 = vmatmul.mubr.msk.bf16.gmra.mrb[124].mxu0 %vm1093_vm0, %v5469_v30  ;;  %5320 = vmatmul.mubr.msk.bf16.gmra.mrb[124].mxu1 %vm1093_vm0, %v5470_v31 }
 0x11c   : > { %v6877_v38 = vpop.f32.mrb[19].mxu0  ;;  %v6879_v39 = vpop.f32.mrb[19].mxu1  ;;  %4206 = vst.msk [vmem:[%s6808_s22 + $0x430] sm:$0xff] %vm4071_vm1, %v5516_v36  ;;  %5539 = vpow2.f32 %v4805_v27  ;;  %v4678_v27 = vmul.f32 -1.442695, %v6816_v0 }
 0x11d   : > { %v5518_v40 = vpop.eup %5517  ;;  %5541 = vpow2.f32 %v4675_v33  ;;  %v4806_v33 = vmul.f32 -1.442695, %v6821_v6  ;;  %v4679_v6 = vmul.f32 -1.442695, %v6831_v12 }
 0x11e   : > { %v5520_v42 = vpop.eup %5519  ;;  %4076 = vst.msk [vmem:[%s6808_s22 + $0x20] sm:$0xff] %vm4071_vm1, %v5518_v40  ;;  %5543 = vpow2.f32 %v4803_v37  ;;  %v6893_v48 = vpop.f32.mrb[20].mxu0 }
 0x11f   : > { %v5522_v44 = vpop.eup %5521  ;;  %4204 = vst.msk [vmem:[%s6808_s22 + $0x420] sm:$0xff] %vm4071_vm1, %v5520_v42  ;;  %5545 = vpow2.f32 %v4680_v41  ;;  %v6895_v49 = vpop.f32.mrb[20].mxu1  ;;  %v4681_v41 = vmul.f32 -1.442695, %v6823_v7  ;;  %v4809_v42 = vmul.f32 -1.442695, %v6829_v11 }
 0x120   : > { %v5524_v45 = vpop.eup %5523  ;;  %4079 = vst.msk [vmem:[%s6808_s22 + $0x38] sm:$0xff] %vm4071_vm1, %v5522_v44  ;;  %5547 = vpow2.f32 %v4808_v43  ;;  %v6897_v52 = vpop.f32.mrb[21].mxu0  ;;  %v4807_v7 = vmul.f32 -1.442695, %v6836_v15  ;;  %v4684_v11 = vmul.f32 -1.442695, %v6854_v24 }
 0x121   : > { %v5526_v46 = vpop.eup %5525  ;;  %v3438_v47 = vadd.f32 1.0, %v5524_v45  ;;  %v6899_v55 = vpop.f32.mrb[21].mxu1  ;;  %v4812_v15 = vmul.f32 -1.442695, %v6856_v25  ;;  %v4682_v24 = vmul.f32 -1.442695, %v6861_v28 }
 0x122   : > { %v5528_v50 = vpop.eup %5527  ;;  %v3308_v51 = vadd.f32 1.0, %v5526_v46  ;;  %v6901_v56 = vpop.f32.mrb[22].mxu0  ;;  %v4810_v25 = vmul.f32 -1.442695, %v6863_v29 }
 0x123   : > { %v5530_v53 = vpop.eup %5529  ;;  %5549 = vrcp.f32 %v3438_v47  ;;  %v3436_v54 = vadd.f32 1.0, %v5528_v50  ;;  %v6903_v59 = vpop.f32.mrb[22].mxu1 }
 0x124   : > { %v5532_v57 = vpop.eup %5531  ;;  %5551 = vrcp.f32 %v3308_v51  ;;  %v3313_v58 = vadd.f32 1.0, %v5530_v53  ;;  %v6905_v62 = vpop.f32.mrb[23].mxu0 }
 0x125   : > { %v5534_v60 = vpop.eup %5533  ;;  %5553 = vrcp.f32 %v3436_v54  ;;  %v3441_v61 = vadd.f32 1.0, %v5532_v57  ;;  %v6907_v63 = vpop.f32.mrb[23].mxu1 }
 0x126   : > { %v5536_v1 = vpop.eup %5535  ;;  %5555 = vrcp.f32 %v3313_v58  ;;  %v3311_v2 = vadd.f32 1.0, %v5534_v60  ;;  %v6909_v13 = vpop.f32.mrb[24].mxu0 }
 0x127   : > { %v5538_v3 = vpop.eup %5537  ;;  %5557 = vrcp.f32 %v3441_v61  ;;  %v3439_v4 = vadd.f32 1.0, %v5536_v1  ;;  %v6911_v14 = vpop.f32.mrb[24].mxu1 }
 0x128   : > { %v5540_v5 = vpop.eup %5539  ;;  %5559 = vrcp.f32 %v3311_v2  ;;  %v3314_v8 = vadd.f32 1.0, %v5538_v3  ;;  %v6913_v18 = vpop.f32.mrb[25].mxu0  ;;  %v4685_v2 = vmul.f32 -1.442695, %v6870_v34  ;;  %v4813_v3 = vmul.f32 -1.442695, %v6872_v35 }
 0x129   : > { %v5542_v9 = vpop.eup %5541  ;;  %5561 = vrcp.f32 %v3439_v4  ;;  %v3442_v10 = vadd.f32 1.0, %v5540_v5  ;;  %v6915_v21 = vpop.f32.mrb[25].mxu1  ;;  %v4683_v5 = vmul.f32 -1.442695, %v6877_v38 }
 0x12a   : > { %v5544_v16 = vpop.eup %5543  ;;  %5563 = vrcp.f32 %v3314_v8  ;;  %v3312_v17 = vadd.f32 1.0, %v5542_v9  ;;  %v6917_v22 = vpop.f32.mrb[26].mxu0 }
 0x12b   : > { %v5546_v19 = vpop.eup %5545  ;;  %5565 = vrcp.f32 %v3442_v10  ;;  %v3440_v20 = vadd.f32 1.0, %v5544_v16  ;;  %v6920_v30 = vpop.f32.mrb[26].mxu1 }
 0x12c   : > { %v5548_v23 = vpop.eup %5547  ;;  %5567 = vrcp.f32 %v3312_v17  ;;  %v3317_v26 = vadd.f32 1.0, %v5546_v19  ;;  %v6923_v36 = vpop.f32.mrb[27].mxu0 }
 0x12d   : > { %v5550_v31 = vpop.eup %5549  ;;  %5569 = vrcp.f32 %v3440_v20  ;;  %v3445_v32 = vadd.f32 1.0, %v5548_v23  ;;  %v6925_v37 = vpop.f32.mrb[27].mxu1 }
 0x12e   : > { %v5552_v40 = vpop.eup %5551  ;;  %4207 = vst.msk [vmem:[%s6808_s22 + $0x438] sm:$0xff] %vm4071_vm1, %v5550_v31  ;;  %5571 = vrcp.f32 %v3317_v26  ;;  %v6939_v45 = vpop.f32.mrb[28].mxu0 }
 0x12f   : > { %v5554_v0 = vpop.eup %5553  ;;  %4077 = vst.msk [vmem:[%s6808_s22 + $0x28] sm:$0xff] %vm4071_vm1, %v5552_v40  ;;  %5573 = vrcp.f32 %v3445_v32  ;;  %v6941_v46 = vpop.f32.mrb[28].mxu1 }
 0x130   : > { %v5556_v43 = vpop.eup %5555  ;;  %4205 = vst.msk [vmem:[%s6808_s22 + $0x428] sm:$0xff] %vm4071_vm1, %v5554_v0  ;;  %5575 = vpow2.f32 %v4678_v27  ;;  %v6946_v50 = vpop.f32.mrb[29].mxu0 }
 0x131   : > { %v5558_v44 = vpop.eup %5557  ;;  %4082 = vst.msk [vmem:[%s6808_s22 + $0x50] sm:$0xff] %vm4071_vm1, %v5556_v43  ;;  %5577 = vpow2.f32 %v4806_v33  ;;  %v6948_v12 = vpop.f32.mrb[29].mxu1 }
 0x132   : > { %v5560_v47 = vpop.eup %5559  ;;  %4210 = vst.msk [vmem:[%s6808_s22 + $0x450] sm:$0xff] %vm4071_vm1, %v5558_v44  ;;  %5579 = vpow2.f32 %v4681_v41  ;;  %v6953_v53 = vpop.f32.mrb[30].mxu0 }
 0x133   : > { %v5562_v51 = vpop.eup %5561  ;;  %4080 = vst.msk [vmem:[%s6808_s22 + $0x40] sm:$0xff] %vm4071_vm1, %v5560_v47  ;;  %5581 = vpow2.f32 %v4809_v42  ;;  %v6955_v54 = vpop.f32.mrb[30].mxu1 }
 0x134   : > { %v5564_v57 = vpop.eup %5563  ;;  %4208 = vst.msk [vmem:[%s6808_s22 + $0x440] sm:$0xff] %vm4071_vm1, %v5562_v51  ;;  %5583 = vpow2.f32 %v4679_v6  ;;  %v6960_v58 = vpop.f32.mrb[31].mxu0 }
 0x135   : > { %v6962_v60 = vpop.f32.mrb[31].mxu1  ;;  %v5566_v61 = vpop.eup %5565  ;;  %4083 = vst.msk [vmem:[%s6808_s22 + $0x58] sm:$0xff] %vm4071_vm1, %v5564_v57  ;;  %5585 = vpow2.f32 %v4807_v7 }
 0x136   : > { %v5568_v1 = vpop.eup %5567  ;;  %4211 = vst.msk [vmem:[%s6808_s22 + $0x458] sm:$0xff] %vm4071_vm1, %v5566_v61  ;;  %5587 = vpow2.f32 %v4684_v11  ;;  %v6978_v8 = vpop.f32.mrb[32].mxu0 }
 0x137   : > { %v5570_v28 = vpop.eup %5569  ;;  %4081 = vst.msk [vmem:[%s6808_s22 + $0x48] sm:$0xff] %vm4071_vm1, %v5568_v1  ;;  %5589 = vpow2.f32 %v4812_v15  ;;  %v6980_v9 = vpop.f32.mrb[32].mxu1 }
 0x138   : > { %v5572_v4 = vpop.eup %5571  ;;  %4209 = vst.msk [vmem:[%s6808_s22 + $0x448] sm:$0xff] %vm4071_vm1, %v5570_v28  ;;  %5591 = vpow2.f32 %v4682_v24  ;;  %v6984_v10 = vpop.f32.mrb[33].mxu0 }
 0x139   : > { %v5574_v29 = vpop.eup %5573  ;;  %4086 = vst.msk [vmem:[%s6808_s22 + $0x70] sm:$0xff] %vm4071_vm1, %v5572_v4  ;;  %5593 = vpow2.f32 %v4810_v25  ;;  %v6986_v35 = vpop.f32.mrb[33].mxu1 }
 0x13a   : > { %v5576_v34 = vpop.eup %5575  ;;  %4214 = vst.msk [vmem:[%s6808_s22 + $0x470] sm:$0xff] %vm4071_vm1, %v5574_v29  ;;  %5595 = vpow2.f32 %v4685_v2  ;;  %v6988_v38 = vpop.f32.mrb[34].mxu0 }
 0x13b   : > { %v5578_v16 = vpop.eup %5577  ;;  %v3315_v17 = vadd.f32 1.0, %v5576_v34  ;;  %5597 = vpow2.f32 %v4813_v3  ;;  %v6990_v23 = vpop.f32.mrb[34].mxu1 }
 0x13c   : > { %v5580_v19 = vpop.eup %5579  ;;  %v3443_v20 = vadd.f32 1.0, %v5578_v16  ;;  %5599 = vpow2.f32 %v4683_v5  ;;  %v6992_v26 = vpop.f32.mrb[35].mxu0 }
 0x13d   : > { %v5582_v27 = vpop.eup %5581  ;;  %5601 = vrcp.f32 %v3315_v17  ;;  %v3318_v31 = vadd.f32 1.0, %v5580_v19  ;;  %v6994_v32 = vpop.f32.mrb[35].mxu1  ;;  %v4811_v17 = vmul.f32 -1.442695, %v6879_v39 }
 0x13e   : > { %v5584_v33 = vpop.eup %5583  ;;  %5603 = vrcp.f32 %v3443_v20  ;;  %v3446_v40 = vadd.f32 1.0, %v5582_v27  ;;  %v6996_v7 = vpop.f32.mrb[36].mxu0  ;;  %v4688_v27 = vmul.f32 -1.442695, %v6893_v48  ;;  %v4814_v48 = vmul.f32 -1.442695, %v6899_v55 }
 0x13f   : > { %v5586_v41 = vpop.eup %5585  ;;  %5605 = vrcp.f32 %v3318_v31  ;;  %v3316_v0 = vadd.f32 1.0, %v5584_v33  ;;  %v6998_v47 = vpop.f32.mrb[36].mxu1  ;;  %v4816_v33 = vmul.f32 -1.442695, %v6895_v49  ;;  %v4817_v55 = vmul.f32 -1.442695, %v6903_v59 }
 0x140   : > { %v5588_v42 = vpop.eup %5587  ;;  %5607 = vrcp.f32 %v3446_v40  ;;  %v3444_v43 = vadd.f32 1.0, %v5586_v41  ;;  %v7000_v15 = vpop.f32.mrb[37].mxu0  ;;  %v4686_v41 = vmul.f32 -1.442695, %v6897_v52  ;;  %v4689_v52 = vmul.f32 -1.442695, %v6901_v56 }
 0x141   : > { %v5590_v6 = vpop.eup %5589  ;;  %5609 = vrcp.f32 %v3316_v0  ;;  %v3321_v44 = vadd.f32 1.0, %v5588_v42  ;;  %v7002_v61 = vpop.f32.mrb[37].mxu1  ;;  %v4687_v56 = vmul.f32 -1.442695, %v6905_v62  ;;  %v4820_v62 = vmul.f32 -1.442695, %v6911_v14 }
 0x142   : > { %v5592_v11 = vpop.eup %5591  ;;  %5611 = vrcp.f32 %v3444_v43  ;;  %v3449_v51 = vadd.f32 1.0, %v5590_v6  ;;  %v7004_v25 = vpop.f32.mrb[38].mxu0 }
 0x143   : > { %v5594_v57 = vpop.eup %5593  ;;  %5613 = vrcp.f32 %v3321_v44  ;;  %v3319_v24 = vadd.f32 1.0, %v5592_v11  ;;  %v7006_v28 = vpop.f32.mrb[38].mxu1 }
 0x144   : > { %v5596_v1 = vpop.eup %5595  ;;  %5615 = vrcp.f32 %v3449_v51  ;;  %v3447_v2 = vadd.f32 1.0, %v5594_v57  ;;  %v7008_v5 = vpop.f32.mrb[39].mxu0 }
 0x145   : > { %v5598_v3 = vpop.eup %5597  ;;  %5617 = vrcp.f32 %v3319_v24  ;;  %v3322_v4 = vadd.f32 1.0, %v5596_v1  ;;  %v7010_v29 = vpop.f32.mrb[39].mxu1 }
 0x146   : > { %v5600_v34 = vpop.eup %5599  ;;  %5619 = vrcp.f32 %v3447_v2  ;;  %v3450_v16 = vadd.f32 1.0, %v5598_v3  ;;  %v7020_v39 = vpop.f32.mrb[40].mxu0  ;;  %v4815_v3 = vmul.f32 -1.442695, %v6907_v63  ;;  %v4690_v63 = vmul.f32 -1.442695, %v6913_v18 }
 0x147   : > { %v5602_v19 = vpop.eup %5601  ;;  %5621 = vrcp.f32 %v3322_v4  ;;  %v3320_v20 = vadd.f32 1.0, %v5600_v34  ;;  %v7022_v0 = vpop.f32.mrb[40].mxu1  ;;  %v4692_v4 = vmul.f32 -1.442695, %v6909_v13  ;;  %v4818_v13 = vmul.f32 -1.442695, %v6915_v21 }
 0x148   : > { %v5604_v31 = vpop.eup %5603  ;;  %4084 = vst.msk [vmem:[%s6808_s22 + $0x60] sm:$0xff] %vm4071_vm1, %v5602_v19  ;;  %5623 = vrcp.f32 %v3450_v16  ;;  %v7027_v43 = vpop.f32.mrb[41].mxu0 }
 0x149   : > { %v5606_v40 = vpop.eup %5605  ;;  %4212 = vst.msk [vmem:[%s6808_s22 + $0x460] sm:$0xff] %vm4071_vm1, %v5604_v31  ;;  %5625 = vrcp.f32 %v3320_v20  ;;  %v7029_v49 = vpop.f32.mrb[41].mxu1 }
 0x14a   : > { %v5608_v42 = vpop.eup %5607  ;;  %4087 = vst.msk [vmem:[%s6808_s22 + $0x78] sm:$0xff] %vm4071_vm1, %v5606_v40  ;;  %5627 = vpow2.f32 %v4811_v17  ;;  %v7034_v44 = vpop.f32.mrb[42].mxu0 }
 0x14b   : > { %v5610_v6 = vpop.eup %5609  ;;  %4215 = vst.msk [vmem:[%s6808_s22 + $0x478] sm:$0xff] %vm4071_vm1, %v5608_v42  ;;  %5629 = vpow2.f32 %v4688_v27  ;;  %v7036_v11 = vpop.f32.mrb[42].mxu1 }
 0x14c   : > { %v5612_v51 = vpop.eup %5611  ;;  %4085 = vst.msk [vmem:[%s6808_s22 + $0x68] sm:$0xff] %vm4071_vm1, %v5610_v6  ;;  %5631 = vpow2.f32 %v4816_v33  ;;  %v7041_v57 = vpop.f32.mrb[43].mxu0 }
 0x14d   : > { %v7043_v24 = vpop.f32.mrb[43].mxu1  ;;  %v5614_v1 = vpop.eup %5613  ;;  %4213 = vst.msk [vmem:[%s6808_s22 + $0x468] sm:$0xff] %vm4071_vm1, %v5612_v51  ;;  %5633 = vpow2.f32 %v4686_v41 }
 0x14e   : > { %v5616_v2 = vpop.eup %5615  ;;  %4090 = vst.msk [vmem:[%s6808_s22 + $0x90] sm:$0xff] %vm4071_vm1, %v5614_v1  ;;  %5635 = vpow2.f32 %v4814_v48  ;;  %v7060_v17 = vpop.f32.mrb[44].mxu0 }
 0x14f   : > { %v5618_v59 = vpop.eup %5617  ;;  %4218 = vst.msk [vmem:[%s6808_s22 + $0x490] sm:$0xff] %vm4071_vm1, %v5616_v2  ;;  %5637 = vpow2.f32 %v4689_v52  ;;  %v7062_v19 = vpop.f32.mrb[44].mxu1 }
 0x150   : > { %v5620_v34 = vpop.eup %5619  ;;  %4088 = vst.msk [vmem:[%s6808_s22 + $0x80] sm:$0xff] %vm4071_vm1, %v5618_v59  ;;  %5639 = vpow2.f32 %v4817_v55  ;;  %v7067_v27 = vpop.f32.mrb[45].mxu0 }
 0x151   : > { %v5622_v16 = vpop.eup %5621  ;;  %4216 = vst.msk [vmem:[%s6808_s22 + $0x480] sm:$0xff] %vm4071_vm1, %v5620_v34  ;;  %5641 = vpow2.f32 %v4687_v56  ;;  %v7069_v14 = vpop.f32.mrb[45].mxu1 }
 0x152   : > { %v5624_v20 = vpop.eup %5623  ;;  %4091 = vst.msk [vmem:[%s6808_s22 + $0x98] sm:$0xff] %vm4071_vm1, %v5622_v16  ;;  %5643 = vpow2.f32 %v4815_v3  ;;  %v7073_v33 = vpop.f32.mrb[46].mxu0 }
 0x153   : > { %v5626_v31 = vpop.eup %5625  ;;  %4219 = vst.msk [vmem:[%s6808_s22 + $0x498] sm:$0xff] %vm4071_vm1, %v5624_v20  ;;  %5645 = vpow2.f32 %v4692_v4  ;;  %v7075_v18 = vpop.f32.mrb[46].mxu1 }
 0x154   : > { %v5628_v40 = vpop.eup %5627  ;;  %4089 = vst.msk [vmem:[%s6808_s22 + $0x88] sm:$0xff] %vm4071_vm1, %v5626_v31  ;;  %5647 = vpow2.f32 %v4820_v62  ;;  %v7079_v41 = vpop.f32.mrb[47].mxu0 }
 0x155   : > { %v7081_v42 = vpop.f32.mrb[47].mxu1  ;;  %v5630_v21 = vpop.eup %5629  ;;  %v3448_v48 = vadd.f32 1.0, %v5628_v40  ;;  %5649 = vpow2.f32 %v4690_v63 }
 0x156   : > { %v5632_v6 = vpop.eup %5631  ;;  %v3325_v52 = vadd.f32 1.0, %v5630_v21  ;;  %5651 = vpow2.f32 %v4818_v13  ;;  %v7083_v59 = vpop.f32.mrb[48].mxu0 }
 0x157   : > { %v5634_v51 = vpop.eup %5633  ;;  %5653 = vrcp.f32 %v3448_v48  ;;  %v3453_v55 = vadd.f32 1.0, %v5632_v6  ;;  %v7085_v4 = vpop.f32.mrb[48].mxu1 }
 0x158   : > { %v5636_v1 = vpop.eup %5635  ;;  %5655 = vrcp.f32 %v3325_v52  ;;  %v3323_v56 = vadd.f32 1.0, %v5634_v51  ;;  %v7087_v16 = vpop.f32.mrb[49].mxu0 }
 0x159   : > { %v5638_v2 = vpop.eup %5637  ;;  %5657 = vrcp.f32 %v3453_v55  ;;  %v3451_v3 = vadd.f32 1.0, %v5636_v1  ;;  %v7089_v13 = vpop.f32.mrb[49].mxu1 }
 0x15a   : > { %v5640_v34 = vpop.eup %5639  ;;  %5659 = vrcp.f32 %v3323_v56  ;;  %v3326_v62 = vadd.f32 1.0, %v5638_v2  ;;  %v7091_v31 = vpop.f32.mrb[50].mxu0 }
 0x15b   : > { %v5642_v63 = vpop.eup %5641  ;;  %5661 = vrcp.f32 %v3451_v3  ;;  %v3454_v20 = vadd.f32 1.0, %v5640_v34  ;;  %v7093_v48 = vpop.f32.mrb[50].mxu1 }
 0x15c   : > { %v5644_v40 = vpop.eup %5643  ;;  %5663 = vrcp.f32 %v3326_v62  ;;  %v3324_v21 = vadd.f32 1.0, %v5642_v63  ;;  %8047 = vst [vmem:[#allocation2_spill] sm:$0xff] %v7093_v48  ;;  %v7095_v51 = vpop.f32.mrb[51].mxu0  ;;  %v4693_v63 = vmul.f32 -1.442695, %v6917_v22 }
 0x15d   : > { %v5646_v6 = vpop.eup %5645  ;;  %5665 = vrcp.f32 %v3454_v20  ;;  %v3452_v52 = vadd.f32 1.0, %v5644_v40  ;;  %v7097_v55 = vpop.f32.mrb[51].mxu1  ;;  %v4821_v40 = vmul.f32 -1.442695, %v6920_v30  ;;  %v4819_v30 = vmul.f32 -1.442695, %v6925_v37 }
 0x15e   : > { %8048 = vst [vmem:[#allocation3_spill] sm:$0xff] %v7097_v55  ;;  %v5648_v1 = vpop.eup %5647  ;;  %5667 = vrcp.f32 %v3324_v21  ;;  %v3329_v56 = vadd.f32 1.0, %v5646_v6  ;;  %v7101_v55 = vpop.f32.mrb[52].mxu0  ;;  %v4824_v37 = vmul.f32 -1.442695, %v6941_v46 }
 0x15f   : > { %v5650_v2 = vpop.eup %5649  ;;  %5669 = vrcp.f32 %v3452_v52  ;;  %v3457_v3 = vadd.f32 1.0, %v5648_v1  ;;  %v7103_v21 = vpop.f32.mrb[52].mxu1  ;;  %v4691_v52 = vmul.f32 -1.442695, %v6923_v36  ;;  %v4696_v36 = vmul.f32 -1.442695, %v6939_v45 }
 0x160   : > { %v5652_v34 = vpop.eup %5651  ;;  %5671 = vrcp.f32 %v3329_v56  ;;  %v3327_v62 = vadd.f32 1.0, %v5650_v2  ;;  %v7108_v1 = vpop.f32.mrb[53].mxu0  ;;  %v4697_v46 = vmul.f32 -1.442695, %v6953_v53 }
 0x161   : > { %v5654_v48 = vpop.eup %5653  ;;  %5673 = vrcp.f32 %v3457_v3  ;;  %v3455_v20 = vadd.f32 1.0, %v5652_v34  ;;  %v7110_v22 = vpop.f32.mrb[53].mxu1 }
 0x162   : > { %v5656_v6 = vpop.eup %5655  ;;  %4217 = vst.msk [vmem:[%s6808_s22 + $0x488] sm:$0xff] %vm4071_vm1, %v5654_v48  ;;  %5675 = vrcp.f32 %v3327_v62  ;;  %v7115_v2 = vpop.f32.mrb[54].mxu0 }
 0x163   : > { %v5658_v56 = vpop.eup %5657  ;;  %4094 = vst.msk [vmem:[%s6808_s22 + $0xb0] sm:$0xff] %vm4071_vm1, %v5656_v6  ;;  %5677 = vrcp.f32 %v3455_v20  ;;  %v7117_v3 = vpop.f32.mrb[54].mxu1 }
 0x164   : > { %v5660_v48 = vpop.eup %5659  ;;  %4222 = vst.msk [vmem:[%s6808_s22 + $0x4b0] sm:$0xff] %vm4071_vm1, %v5658_v56  ;;  %5679 = vpow2.f32 %v4693_v63  ;;  %v7122_v34 = vpop.f32.mrb[55].mxu0  ;;  %v4694_v63 = vmul.f32 -1.442695, %v6946_v50  ;;  %v4822_v56 = vmul.f32 -1.442695, %v6948_v12 }
 0x165   : > { %v7124_v62 = vpop.f32.mrb[55].mxu1  ;;  %v5662_v6 = vpop.eup %5661  ;;  %4092 = vst.msk [vmem:[%s6808_s22 + $0xa0] sm:$0xff] %vm4071_vm1, %v5660_v48  ;;  %5681 = vpow2.f32 %v4821_v40  ;;  %v4825_v50 = vmul.f32 -1.442695, %v6955_v54  ;;  %v4695_v12 = vmul.f32 -1.442695, %v6960_v58 }
 0x166   : > { %8049 = vst [vmem:[#allocation4_spill] sm:$0xff] %v7124_v62  ;;  %v5664_v20 = vpop.eup %5663  ;;  %4220 = vst.msk [vmem:[%s6808_s22 + $0x4a0] sm:$0xff] %vm4071_vm1, %v5662_v6  ;;  %5683 = vpow2.f32 %v4691_v52  ;;  %v7141_v52 = vpop.f32.mrb[56].mxu0  ;;  %v4823_v54 = vmul.f32 -1.442695, %v6962_v60 }
 0x167   : > { %v5666_v45 = vpop.eup %5665  ;;  %4095 = vst.msk [vmem:[%s6808_s22 + $0xb8] sm:$0xff] %vm4071_vm1, %v5664_v20  ;;  %5685 = vpow2.f32 %v4819_v30  ;;  %v7143_v48 = vpop.f32.mrb[56].mxu1  ;;  %v4700_v58 = vmul.f32 -1.442695, %v6978_v8 }
 0x168   : > { %v5668_v62 = vpop.eup %5667  ;;  %4223 = vst.msk [vmem:[%s6808_s22 + $0x4b8] sm:$0xff] %vm4071_vm1, %v5666_v45  ;;  %5687 = vpow2.f32 %v4696_v36  ;;  %v7148_v36 = vpop.f32.mrb[57].mxu0 }
 0x169   : > { %v5670_v40 = vpop.eup %5669  ;;  %4093 = vst.msk [vmem:[%s6808_s22 + $0xa8] sm:$0xff] %vm4071_vm1, %v5668_v62  ;;  %5689 = vpow2.f32 %v4824_v37  ;;  %v7150_v53 = vpop.f32.mrb[57].mxu1 }
 0x16a   : > { %v5672_v30 = vpop.eup %5671  ;;  %4221 = vst.msk [vmem:[%s6808_s22 + $0x4a8] sm:$0xff] %vm4071_vm1, %v5670_v40  ;;  %5691 = vpow2.f32 %v4694_v63  ;;  %v7155_v6 = vpop.f32.mrb[58].mxu0 }
 0x16b   : > { %v5674_v62 = vpop.eup %5673  ;;  %4098 = vst.msk [vmem:[%s6808_s22 + $0xd0] sm:$0xff] %vm4071_vm1, %v5672_v30  ;;  %5693 = vpow2.f32 %v4822_v56  ;;  %8050 = vst [vmem:[#allocation5_spill] sm:$0xff] %v7155_v6  ;;  %v7157_v37 = vpop.f32.mrb[58].mxu1 }
 0x16c   : > { %8051 = vst [vmem:[#allocation6_spill] sm:$0xff] %v7157_v37  ;;  %v5676_v20 = vpop.eup %5675  ;;  %4226 = vst.msk [vmem:[%s6808_s22 + $0x4d0] sm:$0xff] %vm4071_vm1, %v5674_v62  ;;  %5695 = vpow2.f32 %v4697_v46  ;;  %v7162_v63 = vpop.f32.mrb[59].mxu0 }
 0x16d   : > { %8052 = vst [vmem:[#allocation7_spill] sm:$0xff] %v7162_v63  ;;  %v7164_v45 = vpop.f32.mrb[59].mxu1  ;;  %v5678_v40 = vpop.eup %5677  ;;  %4096 = vst.msk [vmem:[%s6808_s22 + $0xc0] sm:$0xff] %vm4071_vm1, %v5676_v20  ;;  %5697 = vpow2.f32 %v4825_v50 }
 0x16e   : > { %8053 = vst [vmem:[#allocation8_spill] sm:$0xff] %v7164_v45  ;;  %v5680_v56 = vpop.eup %5679  ;;  %4224 = vst.msk [vmem:[%s6808_s22 + $0x4c0] sm:$0xff] %vm4071_vm1, %v5678_v40  ;;  %5699 = vpow2.f32 %v4695_v12  ;;  %v7170_v63 = vpop.f32.mrb[60].mxu0 }
 0x16f   : > { %v5682_v60 = vpop.eup %5681  ;;  %v3330_v30 = vadd.f32 1.0, %v5680_v56  ;;  %5701 = vpow2.f32 %v4823_v54  ;;  %8054 = vst [vmem:[#allocation9_spill] sm:$0xff] %v7170_v63  ;;  %v7172_v45 = vpop.f32.mrb[60].mxu1 }
 0x170   : > { %v5684_v37 = vpop.eup %5683  ;;  %v3458_v62 = vadd.f32 1.0, %v5682_v60  ;;  %5703 = vpow2.f32 %v4700_v58  ;;  %8055 = vst [vmem:[#allocation10_spill] sm:$0xff] %v7172_v45  ;;  %v7174_v20 = vpop.f32.mrb[61].mxu0 }
 0x171   : > { %v5686_v46 = vpop.eup %5685  ;;  %5705 = vrcp.f32 %v3330_v30  ;;  %v3328_v8 = vadd.f32 1.0, %v5684_v37  ;;  %8056 = vst [vmem:[#allocation11_spill] sm:$0xff] %v7174_v20  ;;  %v7176_v56 = vpop.f32.mrb[61].mxu1 }
 0x172   : > { %v5688_v6 = vpop.eup %5687  ;;  %5707 = vrcp.f32 %v3458_v62  ;;  %v3456_v50 = vadd.f32 1.0, %v5686_v46  ;;  %8057 = vst [vmem:[#allocation12_spill] sm:$0xff] %v7176_v56  ;;  %v7178_v54 = vpop.f32.mrb[62].mxu0 }
 0x173   : > { %v5690_v40 = vpop.eup %5689  ;;  %5709 = vrcp.f32 %v3328_v8  ;;  %v3333_v12 = vadd.f32 1.0, %v5688_v6  ;;  %8058 = vst [vmem:[#allocation13_spill] sm:$0xff] %v7178_v54  ;;  %v7180_v37 = vpop.f32.mrb[62].mxu1 }
 0x174   : > { %v5692_v58 = vpop.eup %5691  ;;  %5711 = vrcp.f32 %v3456_v50  ;;  %v3461_v60 = vadd.f32 1.0, %v5690_v40  ;;  %8059 = vst [vmem:[#allocation14_spill] sm:$0xff] %v7180_v37  ;;  %v7182_v63 = vpop.f32.mrb[63].mxu0 }
 0x175   : > { %v5694_v30 = vpop.eup %5693  ;;  %5713 = vrcp.f32 %v3333_v12  ;;  %v3331_v45 = vadd.f32 1.0, %v5692_v58  ;;  %v7184_v62 = vpop.f32.mrb[63].mxu1 }
 0x176   : > { %8060 = vst [vmem:[#allocation15_spill] sm:$0xff] %v7184_v62  ;;  %v5696_v46 = vpop.eup %5695  ;;  %5715 = vrcp.f32 %v3461_v60  ;;  %v3459_v8 = vadd.f32 1.0, %v5694_v30  ;;  %v7186_v37 = vpop.f32.mrb[64].mxu0  ;;  %v4828_v60 = vmul.f32 -1.442695, %v6980_v9 }
 0x177   : > { %v5698_v6 = vpop.eup %5697  ;;  %5717 = vrcp.f32 %v3331_v45  ;;  %v3334_v56 = vadd.f32 1.0, %v5696_v46  ;;  %v7188_v12 = vpop.f32.mrb[64].mxu1  ;;  %v4701_v9 = vmul.f32 -1.442695, %v6988_v38 }
 0x178   : > { %v5700_v20 = vpop.eup %5699  ;;  %5719 = vrcp.f32 %v3459_v8  ;;  %v3462_v54 = vadd.f32 1.0, %v5698_v6  ;;  %v7191_v45 = vpop.f32.mrb[65].mxu0  ;;  %v4826_v8 = vmul.f32 -1.442695, %v6986_v35  ;;  %v4699_v35 = vmul.f32 -1.442695, %v6992_v26 }
 0x179   : > { %v5702_v50 = vpop.eup %5701  ;;  %5721 = vrcp.f32 %v3334_v56  ;;  %v3332_v40 = vadd.f32 1.0, %v5700_v20  ;;  %v4698_v56 = vmul.f32 -1.442695, %v6984_v10  ;;  %v4829_v10 = vmul.f32 -1.442695, %v6990_v23 }
 0x17a   : > { %v5704_v58 = vpop.eup %5703  ;;  %5723 = vrcp.f32 %v3462_v54  ;;  %v3460_v62 = vadd.f32 1.0, %v5702_v50  ;;  %v7200_v54 = vpop.f32.mrb[65].mxu1 }
 0x17b   : > { %v5706_v30 = vpop.eup %5705  ;;  %5725 = vrcp.f32 %v3332_v40  ;;  %v3337_v46 = vadd.f32 1.0, %v5704_v58  ;;  %v7210_v58 = vpop.f32.mrb[66].mxu1 }
 0x17c   : > { %v5708_v20 = vpop.eup %5707  ;;  %4099 = vst.msk [vmem:[%s6808_s22 + $0xd8] sm:$0xff] %vm4071_vm1, %v5706_v30  ;;  %5727 = vrcp.f32 %v3460_v62  ;;  %v7208_v62 = vpop.f32.mrb[66].mxu0  ;;  %v4704_v30 = vmul.f32 -1.442695, %v6996_v7 }
 0x17d   : > { %v5710_v6 = vpop.eup %5709  ;;  %4227 = vst.msk [vmem:[%s6808_s22 + $0x4d8] sm:$0xff] %vm4071_vm1, %v5708_v20  ;;  %5729 = vrcp.f32 %v3337_v46  ;;  %v7218_v26 = vpop.f32.mrb[67].mxu0  ;;  %v4832_v20 = vmul.f32 -1.442695, %v6998_v47  ;;  %v4705_v47 = vmul.f32 -1.442695, %v7004_v25 }
 0x17e   : > { %v5712_v50 = vpop.eup %5711  ;;  %4097 = vst.msk [vmem:[%s6808_s22 + $0xc8] sm:$0xff] %vm4071_vm1, %v5710_v6  ;;  %5731 = vpow2.f32 %v4828_v60  ;;  %v4827_v60 = vmul.f32 -1.442695, %v6994_v32  ;;  %v7220_v46 = vpop.f32.mrb[67].mxu1  ;;  %v4830_v6 = vmul.f32 -1.442695, %v7002_v61 }
 0x17f   : > { %v5714_v40 = vpop.eup %5713  ;;  %4225 = vst.msk [vmem:[%s6808_s22 + $0x4c8] sm:$0xff] %vm4071_vm1, %v5712_v50  ;;  %5733 = vpow2.f32 %v4698_v56 }
 0x180   : > { %v5716_v38 = vpop.eup %5715  ;;  %4102 = vst.msk [vmem:[%s6808_s22 + $0xf0] sm:$0xff] %vm4071_vm1, %v5714_v40  ;;  %5735 = vpow2.f32 %v4826_v8  ;;  %v4702_v8 = vmul.f32 -1.442695, %v7000_v15  ;;  %v7239_v40 = vpop.f32.mrb[68].mxu0 }
 0x181   : > { %v5718_v23 = vpop.eup %5717  ;;  %4230 = vst.msk [vmem:[%s6808_s22 + $0x4f0] sm:$0xff] %vm4071_vm1, %v5716_v38  ;;  %5737 = vpow2.f32 %v4701_v9  ;;  %v7245_v38 = vpop.f32.mrb[69].mxu0 }
 0x182   : > { %v5720_v56 = vpop.eup %5719  ;;  %4100 = vst.msk [vmem:[%s6808_s22 + $0xe0] sm:$0xff] %vm4071_vm1, %v5718_v23  ;;  %5739 = vpow2.f32 %v4829_v10  ;;  %v4833_v10 = vmul.f32 -1.442695, %v7006_v28  ;;  %v7249_v28 = vpop.f32.mrb[70].mxu0 }
 0x183   : > { %v5722_v32 = vpop.eup %5721  ;;  %4228 = vst.msk [vmem:[%s6808_s22 + $0x4e0] sm:$0xff] %vm4071_vm1, %v5720_v56  ;;  %5741 = vpow2.f32 %v4699_v35  ;;  %v7241_v35 = vpop.f32.mrb[68].mxu1  ;;  %8062 = vst [vmem:[#allocation17_spill] sm:$0xff] %v7249_v28 }
 0x184   : > { %v5724_v7 = vpop.eup %5723  ;;  %4103 = vst.msk [vmem:[%s6808_s22 + $0xf8] sm:$0xff] %vm4071_vm1, %v5722_v32  ;;  %5743 = vpow2.f32 %v4827_v60  ;;  %v7247_v25 = vpop.f32.mrb[69].mxu1 }
 0x185   : > { %v5726_v9 = vpop.eup %5725  ;;  %4231 = vst.msk [vmem:[%s6808_s22 + $0x4f8] sm:$0xff] %vm4071_vm1, %v5724_v7  ;;  %5745 = vpow2.f32 %v4704_v30  ;;  %8061 = vst [vmem:[#allocation16_spill] sm:$0xff] %v7247_v25  ;;  %v7253_v32 = vpop.f32.mrb[71].mxu0 }
 0x186   : > { %v5728_v50 = vpop.eup %5727  ;;  %4101 = vst.msk [vmem:[%s6808_s22 + $0xe8] sm:$0xff] %vm4071_vm1, %v5726_v9  ;;  %5747 = vpow2.f32 %v4832_v20  ;;  %v7251_v20 = vpop.f32.mrb[70].mxu1  ;;  %8064 = vst [vmem:[#allocation19_spill] sm:$0xff] %v7253_v32 }
 0x187   : > { %v5730_v15 = vpop.eup %5729  ;;  %4229 = vst.msk [vmem:[%s6808_s22 + $0x4e8] sm:$0xff] %vm4071_vm1, %v5728_v50  ;;  %5749 = vpow2.f32 %v4702_v8  ;;  %8063 = vst [vmem:[#allocation18_spill] sm:$0xff] %v7251_v20 }
 0x188   : > { %v5732_v61 = vpop.eup %5731  ;;  %4106 = vst.msk [vmem:[%s6808_s22 + $0x110] sm:$0xff] %vm4071_vm1, %v5730_v15  ;;  %5751 = vpow2.f32 %v4830_v6  ;;  %v7255_v6 = vpop.f32.mrb[71].mxu1 }
 0x189   : > { %v5734_v60 = vpop.eup %5733  ;;  %v3465_v23 = vadd.f32 1.0, %v5732_v61  ;;  %5753 = vpow2.f32 %v4705_v47 }
 0x18a   : > { %v5736_v30 = vpop.eup %5735  ;;  %v3335_v56 = vadd.f32 1.0, %v5734_v60  ;;  %5755 = vpow2.f32 %v4833_v10 }
 0x18b   : > { %v5738_v8 = vpop.eup %5737  ;;  %5757 = vrcp.f32 %v3465_v23  ;;  %v3463_v7 = vadd.f32 1.0, %v5736_v30 }
 0x18c   : > { %v5740_v9 = vpop.eup %5739  ;;  %5759 = vrcp.f32 %v3335_v56  ;;  %v3338_v50 = vadd.f32 1.0, %v5738_v8 }
 0x18d   : > { %v5742_v15 = vpop.eup %5741  ;;  %5761 = vrcp.f32 %v3463_v7  ;;  %v3466_v47 = vadd.f32 1.0, %v5740_v9 }
 0x18e   : > { %v5744_v61 = vpop.eup %5743  ;;  %5763 = vrcp.f32 %v3338_v50  ;;  %v3336_v28 = vadd.f32 1.0, %v5742_v15  ;;  %v4703_v15 = vmul.f32 -1.442695, %v7008_v5  ;;  %v4836_v5 = vmul.f32 -1.442695, %v7022_v0 }
 0x18f   : > { %v5746_v60 = vpop.eup %5745  ;;  %5765 = vrcp.f32 %v3466_v47  ;;  %v3464_v10 = vadd.f32 1.0, %v5744_v61  ;;  %v4709_v0 = vmul.f32 -1.442695, %v7034_v44  ;;  %v4835_v44 = vmul.f32 -1.442695, %v7043_v24 }
 0x190   : > { %v5748_v20 = vpop.eup %5747  ;;  %5767 = vrcp.f32 %v3336_v28  ;;  %v3341_v32 = vadd.f32 1.0, %v5746_v60  ;;  %v4840_v24 = vmul.f32 -1.442695, %v7062_v19 }
 0x191   : > { %v5750_v25 = vpop.eup %5749  ;;  %5769 = vrcp.f32 %v3464_v10  ;;  %v3469_v23 = vadd.f32 1.0, %v5748_v20  ;;  %v4831_v20 = vmul.f32 -1.442695, %v7010_v29  ;;  %v4706_v29 = vmul.f32 -1.442695, %v7027_v43 }
 0x192   : > { %v5752_v30 = vpop.eup %5751  ;;  %5771 = vrcp.f32 %v3341_v32  ;;  %v3339_v56 = vadd.f32 1.0, %v5750_v25  ;;  %v4708_v25 = vmul.f32 -1.442695, %v7020_v39  ;;  %v4834_v39 = vmul.f32 -1.442695, %v7029_v49 }
 0x193   : > { %v5754_v8 = vpop.eup %5753  ;;  %5773 = vrcp.f32 %v3469_v23  ;;  %v3467_v7 = vadd.f32 1.0, %v5752_v30  ;;  %v4837_v43 = vmul.f32 -1.442695, %v7036_v11  ;;  %v4707_v49 = vmul.f32 -1.442695, %v7041_v57 }
 0x194   : > { %v5756_v9 = vpop.eup %5755  ;;  %5775 = vrcp.f32 %v3339_v56  ;;  %v3342_v50 = vadd.f32 1.0, %v5754_v8  ;;  %v7280_v8 = vpop.f32.mrb[72].mxu0  ;;  %v4712_v57 = vmul.f32 -1.442695, %v7060_v17  ;;  %v4710_v17 = vmul.f32 -1.442695, %v7067_v27 }
 0x195   : > { %v5758_v47 = vpop.eup %5757  ;;  %5777 = vrcp.f32 %v3467_v7  ;;  %v3470_v28 = vadd.f32 1.0, %v5756_v9  ;;  %v7282_v7 = vpop.f32.mrb[72].mxu1 }
 0x196   : > { %v5760_v61 = vpop.eup %5759  ;;  %4234 = vst.msk [vmem:[%s6808_s22 + $0x510] sm:$0xff] %vm4071_vm1, %v5758_v47  ;;  %5779 = vrcp.f32 %v3342_v50  ;;  %v7287_v50 = vpop.f32.mrb[73].mxu0 }
 0x197   : > { %v5762_v32 = vpop.eup %5761  ;;  %4104 = vst.msk [vmem:[%s6808_s22 + $0x100] sm:$0xff] %vm4071_vm1, %v5760_v61  ;;  %5781 = vrcp.f32 %v3470_v28  ;;  %v7289_v11 = vpop.f32.mrb[73].mxu1 }
 0x198   : > { %v5764_v60 = vpop.eup %5763  ;;  %4232 = vst.msk [vmem:[%s6808_s22 + $0x500] sm:$0xff] %vm4071_vm1, %v5762_v32  ;;  %5783 = vpow2.f32 %v4703_v15  ;;  %v7294_v47 = vpop.f32.mrb[74].mxu0 }
 0x199   : > { %v5766_v10 = vpop.eup %5765  ;;  %4107 = vst.msk [vmem:[%s6808_s22 + $0x118] sm:$0xff] %vm4071_vm1, %v5764_v60  ;;  %5785 = vpow2.f32 %v4831_v20  ;;  %v7296_v28 = vpop.f32.mrb[74].mxu1 }
 0x19a   : > { %v5768_v23 = vpop.eup %5767  ;;  %4235 = vst.msk [vmem:[%s6808_s22 + $0x518] sm:$0xff] %vm4071_vm1, %v5766_v10  ;;  %5787 = vpow2.f32 %v4708_v25  ;;  %v7301_v61 = vpop.f32.mrb[75].mxu0 }
 0x19b   : > { %v5770_v30 = vpop.eup %5769  ;;  %4105 = vst.msk [vmem:[%s6808_s22 + $0x108] sm:$0xff] %vm4071_vm1, %v5768_v23  ;;  %5789 = vpow2.f32 %v4836_v5  ;;  %v7303_v25 = vpop.f32.mrb[75].mxu1 }
 0x19c   : > { %v5772_v56 = vpop.eup %5771  ;;  %4233 = vst.msk [vmem:[%s6808_s22 + $0x508] sm:$0xff] %vm4071_vm1, %v5770_v30  ;;  %5791 = vpow2.f32 %v4706_v29  ;;  %v7312_v23 = vpop.f32.mrb[76].mxu0 }
 0x19d   : > { %v5774_v9 = vpop.eup %5773  ;;  %4110 = vst.msk [vmem:[%s6808_s22 + $0x130] sm:$0xff] %vm4071_vm1, %v5772_v56  ;;  %5793 = vpow2.f32 %v4834_v39 }
 0x19e   : > { %v5776_v15 = vpop.eup %5775  ;;  %4238 = vst.msk [vmem:[%s6808_s22 + $0x530] sm:$0xff] %vm4071_vm1, %v5774_v9  ;;  %5795 = vpow2.f32 %v4709_v0  ;;  %v7314_v0 = vpop.f32.mrb[76].mxu1 }
 0x19f   : > { %v5778_v20 = vpop.eup %5777  ;;  %4108 = vst.msk [vmem:[%s6808_s22 + $0x120] sm:$0xff] %vm4071_vm1, %v5776_v15  ;;  %5797 = vpow2.f32 %v4837_v43  ;;  %v7316_v43 = vpop.f32.mrb[77].mxu0 }
 0x1a0   : > { %v5780_v32 = vpop.eup %5779  ;;  %4236 = vst.msk [vmem:[%s6808_s22 + $0x520] sm:$0xff] %vm4071_vm1, %v5778_v20  ;;  %5799 = vpow2.f32 %v4707_v49  ;;  %v7318_v9 = vpop.f32.mrb[77].mxu1 }
 0x1a1   : > { %v5782_v5 = vpop.eup %5781  ;;  %4111 = vst.msk [vmem:[%s6808_s22 + $0x138] sm:$0xff] %vm4071_vm1, %v5780_v32  ;;  %5801 = vpow2.f32 %v4835_v44  ;;  %v7320_v44 = vpop.f32.mrb[78].mxu0 }
 0x1a2   : > { %v5784_v60 = vpop.eup %5783  ;;  %4239 = vst.msk [vmem:[%s6808_s22 + $0x538] sm:$0xff] %vm4071_vm1, %v5782_v5  ;;  %5803 = vpow2.f32 %v4712_v57 }
 0x1a3   : > { %v5786_v29 = vpop.eup %5785  ;;  %v3340_v19 = vadd.f32 1.0, %v5784_v60  ;;  %5805 = vpow2.f32 %v4840_v24 }
 0x1a4   : > { %v5788_v10 = vpop.eup %5787  ;;  %v3468_v39 = vadd.f32 1.0, %v5786_v29  ;;  %5807 = vpow2.f32 %v4710_v17 }
 0x1a5   : > { %v5790_v30 = vpop.eup %5789  ;;  %5809 = vrcp.f32 %v3340_v19  ;;  %v3345_v27 = vadd.f32 1.0, %v5788_v10 }
 0x1a6   : > { %v5792_v56 = vpop.eup %5791  ;;  %5811 = vrcp.f32 %v3468_v39  ;;  %v3473_v49 = vadd.f32 1.0, %v5790_v30 }
 0x1a7   : > { %v5794_v15 = vpop.eup %5793  ;;  %5813 = vrcp.f32 %v3345_v27  ;;  %v3343_v57 = vadd.f32 1.0, %v5792_v56 }
 0x1a8   : > { %v5796_v20 = vpop.eup %5795  ;;  %5815 = vrcp.f32 %v3473_v49  ;;  %v3471_v24 = vadd.f32 1.0, %v5794_v15  ;;  %v4838_v15 = vmul.f32 -1.442695, %v7069_v14  ;;  %v7330_v14 = vpop.f32.mrb[78].mxu1 }
 0x1a9   : > { %v5798_v32 = vpop.eup %5797  ;;  %5817 = vrcp.f32 %v3343_v57  ;;  %v3346_v17 = vadd.f32 1.0, %v5796_v20 }
 0x1aa   : > { %v5800_v5 = vpop.eup %5799  ;;  %5819 = vrcp.f32 %v3471_v24  ;;  %v3474_v60 = vadd.f32 1.0, %v5798_v32  ;;  %v4713_v24 = vmul.f32 -1.442695, %v7073_v33  ;;  %v4839_v33 = vmul.f32 -1.442695, %v7081_v42 }
 0x1ab   : > { %v5802_v29 = vpop.eup %5801  ;;  %5821 = vrcp.f32 %v3346_v17  ;;  %v3344_v19 = vadd.f32 1.0, %v5800_v5  ;;  %v4841_v17 = vmul.f32 -1.442695, %v7075_v18  ;;  %v4716_v18 = vmul.f32 -1.442695, %v7083_v59 }
 0x1ac   : > { %v5804_v10 = vpop.eup %5803  ;;  %5823 = vrcp.f32 %v3474_v60  ;;  %v3472_v39 = vadd.f32 1.0, %v5802_v29  ;;  %v4711_v60 = vmul.f32 -1.442695, %v7079_v41  ;;  %v7340_v41 = vpop.f32.mrb[79].mxu1 }
 0x1ad   : > { %v5806_v30 = vpop.eup %5805  ;;  %5825 = vrcp.f32 %v3344_v19  ;;  %v3349_v27 = vadd.f32 1.0, %v5804_v10  ;;  %v7338_v10 = vpop.f32.mrb[79].mxu0 }
 0x1ae   : > { %v5808_v56 = vpop.eup %5807  ;;  %5827 = vrcp.f32 %v3472_v39  ;;  %v3477_v49 = vadd.f32 1.0, %v5806_v30  ;;  %v4844_v30 = vmul.f32 -1.442695, %v7085_v4  ;;  %v4717_v4 = vmul.f32 -1.442695, %v7091_v31  ;;  %v8066_v31 = vld [vmem:[#allocation3_spill] sm:$0xff] }
 0x1af   : > { %v5810_v57 = vpop.eup %5809  ;;  %5829 = vrcp.f32 %v3349_v27  ;;  %v3347_v20 = vadd.f32 1.0, %v5808_v56  ;;  %v4714_v27 = vmul.f32 -1.442695, %v7087_v16  ;;  %v4842_v56 = vmul.f32 -1.442695, %v7089_v13 }
 0x1b0   : > { %v5812_v32 = vpop.eup %5811  ;;  %4109 = vst.msk [vmem:[%s6808_s22 + $0x128] sm:$0xff] %vm4071_vm1, %v5810_v57  ;;  %5831 = vrcp.f32 %v3477_v49  ;;  %v8065_v57 = vld [vmem:[#allocation2_spill] sm:$0xff]  ;;  %v4715_v13 = vmul.f32 -1.442695, %v7095_v51 }
 0x1b1   : > { %v5814_v5 = vpop.eup %5813  ;;  %4237 = vst.msk [vmem:[%s6808_s22 + $0x528] sm:$0xff] %vm4071_vm1, %v5812_v32  ;;  %5833 = vrcp.f32 %v3347_v20  ;;  %v4845_v16 = vmul.f32 -1.442695, %v8065_v57  ;;  %v7362_v32 = vpop.f32.mrb[80].mxu1 }
 0x1b2   : > { %v5816_v29 = vpop.eup %5815  ;;  %4114 = vst.msk [vmem:[%s6808_s22 + $0x150] sm:$0xff] %vm4071_vm1, %v5814_v5  ;;  %5835 = vpow2.f32 %v4838_v15  ;;  %v4843_v5 = vmul.f32 -1.442695, %v8066_v31 }
 0x1b3   : > { %v5818_v19 = vpop.eup %5817  ;;  %4242 = vst.msk [vmem:[%s6808_s22 + $0x550] sm:$0xff] %vm4071_vm1, %v5816_v29  ;;  %5837 = vpow2.f32 %v4713_v24  ;;  %v7360_v24 = vpop.f32.mrb[80].mxu0 }
 0x1b4   : > { %v5820_v39 = vpop.eup %5819  ;;  %4112 = vst.msk [vmem:[%s6808_s22 + $0x140] sm:$0xff] %vm4071_vm1, %v5818_v19  ;;  %5839 = vpow2.f32 %v4841_v17  ;;  %v7369_v29 = vpop.f32.mrb[81].mxu1 }
 0x1b5   : > { %v5822_v42 = vpop.eup %5821  ;;  %4240 = vst.msk [vmem:[%s6808_s22 + $0x540] sm:$0xff] %vm4071_vm1, %v5820_v39  ;;  %5841 = vpow2.f32 %v4711_v60  ;;  %v7367_v60 = vpop.f32.mrb[81].mxu0 }
 0x1b6   : > { %v5824_v59 = vpop.eup %5823  ;;  %4115 = vst.msk [vmem:[%s6808_s22 + $0x158] sm:$0xff] %vm4071_vm1, %v5822_v42  ;;  %5843 = vpow2.f32 %v4839_v33  ;;  %v7373_v19 = vpop.f32.mrb[82].mxu0 }
 0x1b7   : > { %v5826_v49 = vpop.eup %5825  ;;  %4243 = vst.msk [vmem:[%s6808_s22 + $0x558] sm:$0xff] %vm4071_vm1, %v5824_v59  ;;  %5845 = vpow2.f32 %v4716_v18  ;;  %v7375_v51 = vpop.f32.mrb[82].mxu1 }
 0x1b8   : > { %v5828_v15 = vpop.eup %5827  ;;  %4113 = vst.msk [vmem:[%s6808_s22 + $0x148] sm:$0xff] %vm4071_vm1, %v5826_v49  ;;  %5847 = vpow2.f32 %v4844_v30  ;;  %v7379_v39 = vpop.f32.mrb[83].mxu0 }
 0x1b9   : > { %v5830_v20 = vpop.eup %5829  ;;  %4241 = vst.msk [vmem:[%s6808_s22 + $0x548] sm:$0xff] %vm4071_vm1, %v5828_v15  ;;  %5849 = vpow2.f32 %v4714_v27  ;;  %v7381_v30 = vpop.f32.mrb[83].mxu1 }
 0x1ba   : > { %v5832_v17 = vpop.eup %5831  ;;  %4118 = vst.msk [vmem:[%s6808_s22 + $0x170] sm:$0xff] %vm4071_vm1, %v5830_v20  ;;  %5851 = vpow2.f32 %v4842_v56  ;;  %v7385_v31 = vpop.f32.mrb[84].mxu1 }
 0x1bb   : > { %v5834_v33 = vpop.eup %5833  ;;  %4246 = vst.msk [vmem:[%s6808_s22 + $0x570] sm:$0xff] %vm4071_vm1, %v5832_v17  ;;  %5853 = vpow2.f32 %v4717_v4  ;;  %8068 = vst [vmem:[#allocation3_spill] sm:$0xff] %v7385_v31 }
 0x1bc   : > { %v5836_v18 = vpop.eup %5835  ;;  %4116 = vst.msk [vmem:[%s6808_s22 + $0x160] sm:$0xff] %vm4071_vm1, %v5834_v33  ;;  %5855 = vpow2.f32 %v4845_v16  ;;  %v7383_v16 = vpop.f32.mrb[84].mxu0 }
 0x1bd   : > { %v5838_v42 = vpop.eup %5837  ;;  %v3475_v27 = vadd.f32 1.0, %v5836_v18  ;;  %5857 = vpow2.f32 %v4715_v13  ;;  %8067 = vst [vmem:[#allocation2_spill] sm:$0xff] %v7383_v16 }
 0x1be   : > { %v5840_v59 = vpop.eup %5839  ;;  %v3350_v56 = vadd.f32 1.0, %v5838_v42  ;;  %5859 = vpow2.f32 %v4843_v5 }
 0x1bf   : > { %v5842_v49 = vpop.eup %5841  ;;  %5861 = vrcp.f32 %v3475_v27  ;;  %v3478_v4 = vadd.f32 1.0, %v5840_v59 }
 0x1c0   : > { %v5844_v15 = vpop.eup %5843  ;;  %5863 = vrcp.f32 %v3350_v56  ;;  %v3348_v57 = vadd.f32 1.0, %v5842_v49 }
 0x1c1   : > { %v5846_v20 = vpop.eup %5845  ;;  %5865 = vrcp.f32 %v3478_v4  ;;  %v3476_v17 = vadd.f32 1.0, %v5844_v15 }
 0x1c2   : > { %v5848_v33 = vpop.eup %5847  ;;  %5867 = vrcp.f32 %v3348_v57  ;;  %v3353_v18 = vadd.f32 1.0, %v5846_v20  ;;  %v4720_v20 = vmul.f32 -1.442695, %v7101_v55 }
 0x1c3   : > { %v5850_v13 = vpop.eup %5849  ;;  %5869 = vrcp.f32 %v3476_v17  ;;  %v3481_v42 = vadd.f32 1.0, %v5848_v33 }
 0x1c4   : > { %v5852_v5 = vpop.eup %5851  ;;  %5871 = vrcp.f32 %v3353_v18  ;;  %v3351_v27 = vadd.f32 1.0, %v5850_v13  ;;  %v4848_v18 = vmul.f32 -1.442695, %v7103_v21  ;;  %v4721_v21 = vmul.f32 -1.442695, %v7115_v2 }
 0x1c5   : > { %v5854_v59 = vpop.eup %5853  ;;  %5873 = vrcp.f32 %v3481_v42  ;;  %v3479_v56 = vadd.f32 1.0, %v5852_v5  ;;  %v4718_v42 = vmul.f32 -1.442695, %v7108_v1 }
 0x1c6   : > { %v5856_v49 = vpop.eup %5855  ;;  %5875 = vrcp.f32 %v3351_v27  ;;  %v3354_v4 = vadd.f32 1.0, %v5854_v59  ;;  %v4846_v27 = vmul.f32 -1.442695, %v7110_v22  ;;  %v4849_v59 = vmul.f32 -1.442695, %v7117_v3 }
 0x1c7   : > { %v5858_v15 = vpop.eup %5857  ;;  %5877 = vrcp.f32 %v3479_v56  ;;  %v3482_v31 = vadd.f32 1.0, %v5856_v49  ;;  %v4719_v22 = vmul.f32 -1.442695, %v7122_v34 }
 0x1c8   : > { %v5860_v16 = vpop.eup %5859  ;;  %5879 = vrcp.f32 %v3354_v4  ;;  %v3352_v57 = vadd.f32 1.0, %v5858_v15  ;;  %v8069_v15 = vld [vmem:[#allocation4_spill] sm:$0xff] }
 0x1c9   : > { %v5862_v17 = vpop.eup %5861  ;;  %5881 = vrcp.f32 %v3482_v31  ;;  %v3480_v33 = vadd.f32 1.0, %v5860_v16  ;;  %v7398_v16 = vpop.f32.mrb[85].mxu0 }
 0x1ca   : > { %v5864_v13 = vpop.eup %5863  ;;  %4244 = vst.msk [vmem:[%s6808_s22 + $0x560] sm:$0xff] %vm4071_vm1, %v5862_v17  ;;  %5883 = vrcp.f32 %v3352_v57  ;;  %v7400_v31 = vpop.f32.mrb[85].mxu1  ;;  %v4847_v57 = vmul.f32 -1.442695, %v8069_v15 }
 0x1cb   : > { %v5866_v5 = vpop.eup %5865  ;;  %4119 = vst.msk [vmem:[%s6808_s22 + $0x178] sm:$0xff] %vm4071_vm1, %v5864_v13  ;;  %5885 = vrcp.f32 %v3480_v33  ;;  %v7408_v49 = vpop.f32.mrb[86].mxu0 }
 0x1cc   : > { %v5868_v55 = vpop.eup %5867  ;;  %4247 = vst.msk [vmem:[%s6808_s22 + $0x578] sm:$0xff] %vm4071_vm1, %v5866_v5  ;;  %5887 = vpow2.f32 %v4720_v20  ;;  %v7410_v2 = vpop.f32.mrb[86].mxu1  ;;  %v4724_v20 = vmul.f32 -1.442695, %v7141_v52  ;;  %v4850_v5 = vmul.f32 -1.442695, %v7150_v53 }
 0x1cd   : > { %v5870_v1 = vpop.eup %5869  ;;  %4117 = vst.msk [vmem:[%s6808_s22 + $0x168] sm:$0xff] %vm4071_vm1, %v5868_v55  ;;  %5889 = vpow2.f32 %v4848_v18  ;;  %v7418_v34 = vpop.f32.mrb[87].mxu0  ;;  %v4852_v18 = vmul.f32 -1.442695, %v7143_v48  ;;  %v8070_v55 = vld [vmem:[#allocation5_spill] sm:$0xff] }
 0x1ce   : > { %v5872_v56 = vpop.eup %5871  ;;  %4245 = vst.msk [vmem:[%s6808_s22 + $0x568] sm:$0xff] %vm4071_vm1, %v5870_v1  ;;  %5891 = vpow2.f32 %v4718_v42  ;;  %v7420_v17 = vpop.f32.mrb[87].mxu1  ;;  %v4722_v42 = vmul.f32 -1.442695, %v7148_v36 }
 0x1cf   : > { %v5874_v4 = vpop.eup %5873  ;;  %4122 = vst.msk [vmem:[%s6808_s22 + $0x190] sm:$0xff] %vm4071_vm1, %v5872_v56  ;;  %5893 = vpow2.f32 %v4846_v27  ;;  %v7438_v36 = vpop.f32.mrb[88].mxu0 }
 0x1d0   : > { %v5876_v3 = vpop.eup %5875  ;;  %4250 = vst.msk [vmem:[%s6808_s22 + $0x590] sm:$0xff] %vm4071_vm1, %v5874_v4  ;;  %5895 = vpow2.f32 %v4721_v21  ;;  %v4725_v21 = vmul.f32 -1.442695, %v8070_v55 }
 0x1d1   : > { %v5878_v33 = vpop.eup %5877  ;;  %4120 = vst.msk [vmem:[%s6808_s22 + $0x180] sm:$0xff] %vm4071_vm1, %v5876_v3  ;;  %5897 = vpow2.f32 %v4849_v59  ;;  %v7440_v59 = vpop.f32.mrb[88].mxu1 }
 0x1d2   : > { %v5880_v13 = vpop.eup %5879  ;;  %4248 = vst.msk [vmem:[%s6808_s22 + $0x580] sm:$0xff] %vm4071_vm1, %v5878_v33  ;;  %5899 = vpow2.f32 %v4719_v22  ;;  %v7442_v22 = vpop.f32.mrb[89].mxu0 }
 0x1d3   : > { %v5882_v52 = vpop.eup %5881  ;;  %4123 = vst.msk [vmem:[%s6808_s22 + $0x198] sm:$0xff] %vm4071_vm1, %v5880_v13  ;;  %5901 = vpow2.f32 %v4847_v57  ;;  %v7444_v57 = vpop.f32.mrb[89].mxu1 }
 0x1d4   : > { %v5884_v27 = vpop.eup %5883  ;;  %4251 = vst.msk [vmem:[%s6808_s22 + $0x598] sm:$0xff] %vm4071_vm1, %v5882_v52  ;;  %5903 = vpow2.f32 %v4724_v20  ;;  %v7446_v3 = vpop.f32.mrb[90].mxu0 }
 0x1d5   : > { %v5886_v48 = vpop.eup %5885  ;;  %4121 = vst.msk [vmem:[%s6808_s22 + $0x188] sm:$0xff] %vm4071_vm1, %v5884_v27  ;;  %5905 = vpow2.f32 %v4852_v18  ;;  %v7448_v18 = vpop.f32.mrb[90].mxu1 }
 0x1d6   : > { %v5888_v1 = vpop.eup %5887  ;;  %4249 = vst.msk [vmem:[%s6808_s22 + $0x588] sm:$0xff] %vm4071_vm1, %v5886_v48  ;;  %5907 = vpow2.f32 %v4722_v42  ;;  %8071 = vst [vmem:[#allocation4_spill] sm:$0xff] %v7448_v18  ;;  %v7450_v52 = vpop.f32.mrb[91].mxu0 }
 0x1d7   : > { %v5890_v56 = vpop.eup %5889  ;;  %v3357_v53 = vadd.f32 1.0, %v5888_v1  ;;  %5909 = vpow2.f32 %v4850_v5  ;;  %8072 = vst [vmem:[#allocation5_spill] sm:$0xff] %v7450_v52 }
 0x1d8   : > { %v5892_v4 = vpop.eup %5891  ;;  %v3485_v15 = vadd.f32 1.0, %v5890_v56  ;;  %5911 = vpow2.f32 %v4725_v21 }
 0x1d9   : > { %v5894_v20 = vpop.eup %5893  ;;  %5913 = vrcp.f32 %v3357_v53  ;;  %v3355_v33 = vadd.f32 1.0, %v5892_v4 }
 0x1da   : > { %v5896_v13 = vpop.eup %5895  ;;  %5915 = vrcp.f32 %v3485_v15  ;;  %v3483_v42 = vadd.f32 1.0, %v5894_v20 }
 0x1db   : > { %v5898_v5 = vpop.eup %5897  ;;  %5917 = vrcp.f32 %v3355_v33  ;;  %v3358_v27 = vadd.f32 1.0, %v5896_v13 }
 0x1dc   : > { %v5900_v55 = vpop.eup %5899  ;;  %5919 = vrcp.f32 %v3483_v42  ;;  %v3486_v21 = vadd.f32 1.0, %v5898_v5  ;;  %v8073_v5 = vld [vmem:[#allocation6_spill] sm:$0xff] }
 0x1dd   : > { %v5902_v48 = vpop.eup %5901  ;;  %5921 = vrcp.f32 %v3358_v27  ;;  %v3356_v1 = vadd.f32 1.0, %v5900_v55  ;;  %v4853_v27 = vmul.f32 -1.442695, %v8073_v5 }
 0x1de   : > { %v5904_v56 = vpop.eup %5903  ;;  %5923 = vrcp.f32 %v3486_v21  ;;  %v3484_v53 = vadd.f32 1.0, %v5902_v48  ;;  %v8074_v48 = vld [vmem:[#allocation7_spill] sm:$0xff] }
 0x1df   : > { %v5906_v4 = vpop.eup %5905  ;;  %5925 = vrcp.f32 %v3356_v1  ;;  %v3361_v18 = vadd.f32 1.0, %v5904_v56  ;;  %v4723_v1 = vmul.f32 -1.442695, %v8074_v48 }
 0x1e0   : > { %v5908_v15 = vpop.eup %5907  ;;  %5927 = vrcp.f32 %v3484_v53  ;;  %v3489_v20 = vadd.f32 1.0, %v5906_v4  ;;  %v8075_v53 = vld [vmem:[#allocation8_spill] sm:$0xff] }
 0x1e1   : > { %v5910_v52 = vpop.eup %5909  ;;  %5929 = vrcp.f32 %v3361_v18  ;;  %v3359_v33 = vadd.f32 1.0, %v5908_v15  ;;  %v4851_v18 = vmul.f32 -1.442695, %v8075_v53 }
 0x1e2   : > { %v5912_v13 = vpop.eup %5911  ;;  %5931 = vrcp.f32 %v3489_v20  ;;  %v3487_v42 = vadd.f32 1.0, %v5910_v52  ;;  %v8076_v52 = vld [vmem:[#allocation9_spill] sm:$0xff]  ;;  %v7460_v20 = vpop.f32.mrb[91].mxu1 }
 0x1e3   : > { %v5914_v55 = vpop.eup %5913  ;;  %5933 = vrcp.f32 %v3359_v33  ;;  %v3362_v21 = vadd.f32 1.0, %v5912_v13  ;;  %v4728_v15 = vmul.f32 -1.442695, %v8076_v52  ;;  %v8077_v13 = vld [vmem:[#allocation10_spill] sm:$0xff] }
 0x1e4   : > { %v5916_v56 = vpop.eup %5915  ;;  %4126 = vst.msk [vmem:[%s6808_s22 + $0x1b0] sm:$0xff] %vm4071_vm1, %v5914_v55  ;;  %5935 = vrcp.f32 %v3487_v42  ;;  %v4856_v5 = vmul.f32 -1.442695, %v8077_v13  ;;  %v8078_v55 = vld [vmem:[#allocation11_spill] sm:$0xff] }
 0x1e5   : > { %v5918_v4 = vpop.eup %5917  ;;  %4254 = vst.msk [vmem:[%s6808_s22 + $0x5b0] sm:$0xff] %vm4071_vm1, %v5916_v56  ;;  %5937 = vrcp.f32 %v3362_v21  ;;  %v4726_v48 = vmul.f32 -1.442695, %v8078_v55  ;;  %v8079_v56 = vld [vmem:[#allocation12_spill] sm:$0xff] }
 0x1e6   : > { %v5920_v33 = vpop.eup %5919  ;;  %4124 = vst.msk [vmem:[%s6808_s22 + $0x1a0] sm:$0xff] %vm4071_vm1, %v5918_v4  ;;  %5939 = vpow2.f32 %v4853_v27  ;;  %v4854_v53 = vmul.f32 -1.442695, %v8079_v56  ;;  %v8080_v27 = vld [vmem:[#allocation13_spill] sm:$0xff]  ;;  %v8082_v56 = vld [vmem:[#allocation15_spill] sm:$0xff] }
 0x1e7   : > { %v5922_v42 = vpop.eup %5921  ;;  %4252 = vst.msk [vmem:[%s6808_s22 + $0x5a0] sm:$0xff] %vm4071_vm1, %v5920_v33  ;;  %5941 = vpow2.f32 %v4723_v1  ;;  %v4729_v4 = vmul.f32 -1.442695, %v8080_v27  ;;  %v8081_v1 = vld [vmem:[#allocation14_spill] sm:$0xff] }
 0x1e8   : > { %v5924_v21 = vpop.eup %5923  ;;  %4127 = vst.msk [vmem:[%s6808_s22 + $0x1b8] sm:$0xff] %vm4071_vm1, %v5922_v42  ;;  %5943 = vpow2.f32 %v4851_v18  ;;  %v4857_v33 = vmul.f32 -1.442695, %v8081_v1  ;;  %v4727_v18 = vmul.f32 -1.442695, %v7182_v63  ;;  %v7480_v42 = vpop.f32.mrb[92].mxu0 }
 0x1e9   : > { %v5926_v52 = vpop.eup %5925  ;;  %4255 = vst.msk [vmem:[%s6808_s22 + $0x5b8] sm:$0xff] %vm4071_vm1, %v5924_v21  ;;  %5945 = vpow2.f32 %v4728_v15  ;;  %v7482_v21 = vpop.f32.mrb[92].mxu1  ;;  %v4732_v63 = vmul.f32 -1.442695, %v7186_v37 }
 0x1ea   : > { %v5928_v13 = vpop.eup %5927  ;;  %4125 = vst.msk [vmem:[%s6808_s22 + $0x1a8] sm:$0xff] %vm4071_vm1, %v5926_v52  ;;  %5947 = vpow2.f32 %v4856_v5  ;;  %v4855_v52 = vmul.f32 -1.442695, %v8082_v56  ;;  %v7487_v5 = vpop.f32.mrb[93].mxu0 }
 0x1eb   : > { %v5930_v55 = vpop.eup %5929  ;;  %4253 = vst.msk [vmem:[%s6808_s22 + $0x5a8] sm:$0xff] %vm4071_vm1, %v5928_v13  ;;  %5949 = vpow2.f32 %v4726_v48  ;;  %8083 = vst [vmem:[#allocation6_spill] sm:$0xff] %v7487_v5  ;;  %v7489_v27 = vpop.f32.mrb[93].mxu1 }
 0x1ec   : > { %v5932_v15 = vpop.eup %5931  ;;  %4130 = vst.msk [vmem:[%s6808_s22 + $0x1d0] sm:$0xff] %vm4071_vm1, %v5930_v55  ;;  %5951 = vpow2.f32 %v4854_v53  ;;  %8084 = vst [vmem:[#allocation7_spill] sm:$0xff] %v7489_v27  ;;  %v7494_v48 = vpop.f32.mrb[94].mxu0  ;;  %v4860_v53 = vmul.f32 -1.442695, %v7188_v12 }
 0x1ed   : > { %v5934_v13 = vpop.eup %5933  ;;  %4258 = vst.msk [vmem:[%s6808_s22 + $0x5d0] sm:$0xff] %vm4071_vm1, %v5932_v15  ;;  %5953 = vpow2.f32 %v4729_v4  ;;  %8085 = vst [vmem:[#allocation8_spill] sm:$0xff] %v7494_v48  ;;  %v7496_v1 = vpop.f32.mrb[94].mxu1 }
 0x1ee   : > { %8086 = vst [vmem:[#allocation9_spill] sm:$0xff] %v7496_v1  ;;  %v5936_v55 = vpop.eup %5935  ;;  %4128 = vst.msk [vmem:[%s6808_s22 + $0x1c0] sm:$0xff] %vm4071_vm1, %v5934_v13  ;;  %5955 = vpow2.f32 %v4857_v33  ;;  %v7501_v56 = vpop.f32.mrb[95].mxu0 }
 0x1ef   : > { %8087 = vst [vmem:[#allocation10_spill] sm:$0xff] %v7501_v56  ;;  %v7503_v27 = vpop.f32.mrb[95].mxu1  ;;  %v5938_v5 = vpop.eup %5937  ;;  %4256 = vst.msk [vmem:[%s6808_s22 + $0x5c0] sm:$0xff] %vm4071_vm1, %v5936_v55  ;;  %5957 = vpow2.f32 %v4727_v18 }
 0x1f0   : > { %8088 = vst [vmem:[#allocation11_spill] sm:$0xff] %v7503_v27  ;;  %v5940_v4 = vpop.eup %5939  ;;  %4131 = vst.msk [vmem:[%s6808_s22 + $0x1d8] sm:$0xff] %vm4071_vm1, %v5938_v5  ;;  %5959 = vpow2.f32 %v4855_v52  ;;  %v7509_v56 = vpop.f32.mrb[96].mxu0 }
 0x1f1   : > { %v5942_v37 = vpop.eup %5941  ;;  %v3490_v15 = vadd.f32 1.0, %v5940_v4  ;;  %5961 = vpow2.f32 %v4732_v63  ;;  %8089 = vst [vmem:[#allocation12_spill] sm:$0xff] %v7509_v56  ;;  %v7511_v27 = vpop.f32.mrb[96].mxu1 }
 0x1f2   : > { %v5944_v1 = vpop.eup %5943  ;;  %v3360_v13 = vadd.f32 1.0, %v5942_v37  ;;  %5963 = vpow2.f32 %v4860_v53  ;;  %8090 = vst [vmem:[#allocation13_spill] sm:$0xff] %v7511_v27  ;;  %v7513_v55 = vpop.f32.mrb[97].mxu0 }
 0x1f3   : > { %v5946_v33 = vpop.eup %5945  ;;  %5965 = vrcp.f32 %v3490_v15  ;;  %v3488_v12 = vadd.f32 1.0, %v5944_v1  ;;  %8091 = vst [vmem:[#allocation14_spill] sm:$0xff] %v7513_v55  ;;  %v7515_v4 = vpop.f32.mrb[97].mxu1 }
 0x1f4   : > { %v5948_v48 = vpop.eup %5947  ;;  %5967 = vrcp.f32 %v3360_v13  ;;  %v3365_v18 = vadd.f32 1.0, %v5946_v33  ;;  %8092 = vst [vmem:[#allocation15_spill] sm:$0xff] %v7515_v4 }
 0x1f5   : > { %v5950_v5 = vpop.eup %5949  ;;  %5969 = vrcp.f32 %v3488_v12  ;;  %v3493_v52 = vadd.f32 1.0, %v5948_v48 }
 0x1f6   : > { %v5952_v63 = vpop.eup %5951  ;;  %5971 = vrcp.f32 %v3365_v18  ;;  %v3363_v53 = vadd.f32 1.0, %v5950_v5  ;;  %v4730_v5 = vmul.f32 -1.442695, %v7191_v45 }
 0x1f7   : > { %v5954_v37 = vpop.eup %5953  ;;  %5973 = vrcp.f32 %v3493_v52  ;;  %v3491_v1 = vadd.f32 1.0, %v5952_v63 }
 0x1f8   : > { %v5956_v15 = vpop.eup %5955  ;;  %5975 = vrcp.f32 %v3363_v53  ;;  %v3366_v56 = vadd.f32 1.0, %v5954_v37  ;;  %v4858_v53 = vmul.f32 -1.442695, %v7200_v54  ;;  %v4731_v54 = vmul.f32 -1.442695, %v7218_v26 }
 0x1f9   : > { %v5958_v27 = vpop.eup %5957  ;;  %5977 = vrcp.f32 %v3491_v1  ;;  %v3494_v13 = vadd.f32 1.0, %v5956_v15  ;;  %v7530_v1 = vpop.f32.mrb[98].mxu1  ;;  %v4859_v15 = vmul.f32 -1.442695, %v7220_v46 }
 0x1fa   : > { %v5960_v33 = vpop.eup %5959  ;;  %5979 = vrcp.f32 %v3366_v56  ;;  %v3364_v55 = vadd.f32 1.0, %v5958_v27  ;;  %v4733_v27 = vmul.f32 -1.442695, %v7208_v62 }
 0x1fb   : > { %v5962_v12 = vpop.eup %5961  ;;  %5981 = vrcp.f32 %v3494_v13  ;;  %v3492_v48 = vadd.f32 1.0, %v5960_v33  ;;  %v4736_v13 = vmul.f32 -1.442695, %v7239_v40  ;;  %v7540_v33 = vpop.f32.mrb[99].mxu1 }
 0x1fc   : > { %v5964_v4 = vpop.eup %5963  ;;  %5983 = vrcp.f32 %v3364_v55  ;;  %v3369_v18 = vadd.f32 1.0, %v5962_v12  ;;  %v4861_v55 = vmul.f32 -1.442695, %v7210_v58 }
 0x1fd   : > { %v5966_v52 = vpop.eup %5965  ;;  %5985 = vrcp.f32 %v3492_v48  ;;  %v3497_v63 = vadd.f32 1.0, %v5964_v4  ;;  %v7528_v4 = vpop.f32.mrb[98].mxu0  ;;  %v4864_v48 = vmul.f32 -1.442695, %v7241_v35 }
 0x1fe   : > { %v5968_v37 = vpop.eup %5967  ;;  %4259 = vst.msk [vmem:[%s6808_s22 + $0x5d8] sm:$0xff] %vm4071_vm1, %v5966_v52  ;;  %5987 = vrcp.f32 %v3369_v18  ;;  %v7538_v26 = vpop.f32.mrb[99].mxu0  ;;  %v4734_v18 = vmul.f32 -1.442695, %v7245_v38 }
 0x1ff   : > { %v5970_v56 = vpop.eup %5969  ;;  %4129 = vst.msk [vmem:[%s6808_s22 + $0x1c8] sm:$0xff] %vm4071_vm1, %v5968_v37  ;;  %5989 = vrcp.f32 %v3497_v63 }
 0x200   : > { %v5972_v45 = vpop.eup %5971  ;;  %4257 = vst.msk [vmem:[%s6808_s22 + $0x5c8] sm:$0xff] %vm4071_vm1, %v5970_v56  ;;  %5991 = vpow2.f32 %v4730_v5  ;;  %v8093_v5 = vld [vmem:[#allocation16_spill] sm:$0xff] }
 0x201   : > { %v5974_v62 = vpop.eup %5973  ;;  %4134 = vst.msk [vmem:[%s6808_s22 + $0x1f0] sm:$0xff] %vm4071_vm1, %v5972_v45  ;;  %5993 = vpow2.f32 %v4858_v53  ;;  %v4862_v52 = vmul.f32 -1.442695, %v8093_v5  ;;  %v8094_v53 = vld [vmem:[#allocation17_spill] sm:$0xff] }
 0x202   : > { %v5976_v58 = vpop.eup %5975  ;;  %4262 = vst.msk [vmem:[%s6808_s22 + $0x5f0] sm:$0xff] %vm4071_vm1, %v5974_v62  ;;  %5995 = vpow2.f32 %v4733_v27  ;;  %v4737_v35 = vmul.f32 -1.442695, %v8094_v53  ;;  %v8095_v27 = vld [vmem:[#allocation18_spill] sm:$0xff]  ;;  %v7562_v62 = vpop.f32.mrb[100].mxu1 }
 0x203   : > { %v5978_v12 = vpop.eup %5977  ;;  %4132 = vst.msk [vmem:[%s6808_s22 + $0x1e0] sm:$0xff] %vm4071_vm1, %v5976_v58  ;;  %5997 = vpow2.f32 %v4861_v55  ;;  %v4865_v38 = vmul.f32 -1.442695, %v8095_v27  ;;  %v8096_v55 = vld [vmem:[#allocation19_spill] sm:$0xff] }
 0x204   : > { %v5980_v46 = vpop.eup %5979  ;;  %4260 = vst.msk [vmem:[%s6808_s22 + $0x5e0] sm:$0xff] %vm4071_vm1, %v5978_v12  ;;  %5999 = vpow2.f32 %v4731_v54  ;;  %v4735_v45 = vmul.f32 -1.442695, %v8096_v55  ;;  %v7560_v54 = vpop.f32.mrb[100].mxu0 }
 0x205   : > { %v5982_v40 = vpop.eup %5981  ;;  %4135 = vst.msk [vmem:[%s6808_s22 + $0x1f8] sm:$0xff] %vm4071_vm1, %v5980_v46  ;;  %6001 = vpow2.f32 %v4859_v15  ;;  %v7566_v58 = vpop.f32.mrb[101].mxu0 }
 0x206   : > { %v5984_v63 = vpop.eup %5983  ;;  %4263 = vst.msk [vmem:[%s6808_s22 + $0x5f8] sm:$0xff] %vm4071_vm1, %v5982_v40  ;;  %6003 = vpow2.f32 %v4736_v13  ;;  %v7568_v13 = vpop.f32.mrb[101].mxu1 }
 0x207   : > { %v5986_v37 = vpop.eup %5985  ;;  %4133 = vst.msk [vmem:[%s6808_s22 + $0x1e8] sm:$0xff] %vm4071_vm1, %v5984_v63  ;;  %6005 = vpow2.f32 %v4864_v48  ;;  %v7572_v48 = vpop.f32.mrb[102].mxu0 }
 0x208   : > { %v5988_v56 = vpop.eup %5987  ;;  %4261 = vst.msk [vmem:[%s6808_s22 + $0x5e8] sm:$0xff] %vm4071_vm1, %v5986_v37  ;;  %6007 = vpow2.f32 %v4734_v18  ;;  %8097 = vst [vmem:[#allocation16_spill] sm:$0xff] %v7572_v48  ;;  %v7574_v46 = vpop.f32.mrb[102].mxu1 }
 0x209   : > { %v5990_v15 = vpop.eup %5989  ;;  %4138 = vst.msk [vmem:[%s6808_s22 + $0x210] sm:$0xff] %vm4071_vm1, %v5988_v56  ;;  %6009 = vpow2.f32 %v4862_v52  ;;  %8098 = vst [vmem:[#allocation17_spill] sm:$0xff] %v7574_v46  ;;  %v7576_v5 = vpop.f32.mrb[103].mxu0 }
 0x20a   : > { %v5992_v12 = vpop.eup %5991  ;;  %4266 = vst.msk [vmem:[%s6808_s22 + $0x610] sm:$0xff] %vm4071_vm1, %v5990_v15  ;;  %6011 = vpow2.f32 %v4737_v35  ;;  %8099 = vst [vmem:[#allocation18_spill] sm:$0xff] %v7576_v5  ;;  %v7578_v52 = vpop.f32.mrb[103].mxu1 }
 0x20b   : > { %v5994_v18 = vpop.eup %5993  ;;  %v3367_v40 = vadd.f32 1.0, %v5992_v12  ;;  %6013 = vpow2.f32 %v4865_v38  ;;  %8100 = vst [vmem:[#allocation19_spill] sm:$0xff] %v7578_v52  ;;  %v7580_v38 = vpop.f32.mrb[104].mxu0 }
 0x20c   : > { %v5996_v63 = vpop.eup %5995  ;;  %v3495_v53 = vadd.f32 1.0, %v5994_v18  ;;  %6015 = vpow2.f32 %v4735_v45 }
 0x20d   : > { %v5998_v37 = vpop.eup %5997  ;;  %6017 = vrcp.f32 %v3367_v40  ;;  %v3370_v27 = vadd.f32 1.0, %v5996_v63 }
 0x20e   : > { %v6000_v56 = vpop.eup %5999  ;;  %6019 = vrcp.f32 %v3495_v53  ;;  %v3498_v35 = vadd.f32 1.0, %v5998_v37 }
 0x20f   : > { %v6002_v55 = vpop.eup %6001  ;;  %6021 = vrcp.f32 %v3370_v27  ;;  %v3368_v15 = vadd.f32 1.0, %v6000_v56 }
 0x210   : > { %v6004_v46 = vpop.eup %6003  ;;  %6023 = vrcp.f32 %v3498_v35  ;;  %v3496_v12 = vadd.f32 1.0, %v6002_v55 }
 0x211   : > { %v6006_v5 = vpop.eup %6005  ;;  %6025 = vrcp.f32 %v3368_v15  ;;  %v3373_v18 = vadd.f32 1.0, %v6004_v46  ;;  %v4863_v46 = vmul.f32 -1.442695, %v7255_v6  ;;  %v4740_v15 = vmul.f32 -1.442695, %v7280_v8  ;;  %v7590_v6 = vpop.f32.mrb[104].mxu1 }
 0x212   : > { %v6008_v45 = vpop.eup %6007  ;;  %6027 = vrcp.f32 %v3496_v12  ;;  %v3501_v52 = vadd.f32 1.0, %v6006_v5  ;;  %v4866_v8 = vmul.f32 -1.442695, %v7289_v11  ;;  %v4739_v11 = vmul.f32 -1.442695, %v7301_v61 }
 0x213   : > { %v6010_v48 = vpop.eup %6009  ;;  %6029 = vrcp.f32 %v3373_v18  ;;  %v3371_v40 = vadd.f32 1.0, %v6008_v45  ;;  %v4738_v18 = vmul.f32 -1.442695, %v7287_v50 }
 0x214   : > { %v6012_v63 = vpop.eup %6011  ;;  %6031 = vrcp.f32 %v3501_v52  ;;  %v3499_v53 = vadd.f32 1.0, %v6010_v48  ;;  %v4868_v48 = vmul.f32 -1.442695, %v7282_v7  ;;  %v4741_v7 = vmul.f32 -1.442695, %v7294_v47 }
 0x215   : > { %v6014_v37 = vpop.eup %6013  ;;  %6033 = vrcp.f32 %v3371_v40  ;;  %v3374_v27 = vadd.f32 1.0, %v6012_v63  ;;  %v7598_v63 = vpop.f32.mrb[105].mxu0 }
 0x216   : > { %v6016_v56 = vpop.eup %6015  ;;  %6035 = vrcp.f32 %v3499_v53  ;;  %v3502_v35 = vadd.f32 1.0, %v6014_v37  ;;  %v7600_v53 = vpop.f32.mrb[105].mxu1  ;;  %v4869_v37 = vmul.f32 -1.442695, %v7296_v28 }
 0x217   : > { %v6018_v55 = vpop.eup %6017  ;;  %6037 = vrcp.f32 %v3374_v27  ;;  %v3372_v5 = vadd.f32 1.0, %v6016_v56  ;;  %v7608_v56 = vpop.f32.mrb[106].mxu0 }
 0x218   : > { %v6020_v12 = vpop.eup %6019  ;;  %4136 = vst.msk [vmem:[%s6808_s22 + $0x200] sm:$0xff] %vm4071_vm1, %v6018_v55  ;;  %6039 = vrcp.f32 %v3502_v35  ;;  %v7610_v47 = vpop.f32.mrb[106].mxu1  ;;  %v4744_v55 = vmul.f32 -1.442695, %v7312_v23  ;;  %v4870_v23 = vmul.f32 -1.442695, %v7318_v9 }
 0x219   : > { %v6022_v52 = vpop.eup %6021  ;;  %4264 = vst.msk [vmem:[%s6808_s22 + $0x600] sm:$0xff] %vm4071_vm1, %v6020_v12  ;;  %6041 = vrcp.f32 %v3372_v5  ;;  %v7618_v61 = vpop.f32.mrb[107].mxu0  ;;  %v4872_v12 = vmul.f32 -1.442695, %v7314_v0 }
 0x21a   : > { %v6024_v45 = vpop.eup %6023  ;;  %4139 = vst.msk [vmem:[%s6808_s22 + $0x218] sm:$0xff] %vm4071_vm1, %v6022_v52  ;;  %6043 = vpow2.f32 %v4863_v46  ;;  %v4867_v46 = vmul.f32 -1.442695, %v7303_v25  ;;  %v7620_v5 = vpop.f32.mrb[107].mxu1 }
 0x21b   : > { %v6026_v40 = vpop.eup %6025  ;;  %4267 = vst.msk [vmem:[%s6808_s22 + $0x618] sm:$0xff] %vm4071_vm1, %v6024_v45  ;;  %6045 = vpow2.f32 %v4740_v15 }
 0x21c   : > { %v6028_v50 = vpop.eup %6027  ;;  %4137 = vst.msk [vmem:[%s6808_s22 + $0x208] sm:$0xff] %vm4071_vm1, %v6026_v40  ;;  %6047 = vpow2.f32 %v4868_v48  ;;  %v4742_v48 = vmul.f32 -1.442695, %v7316_v43  ;;  %v7635_v40 = vpop.f32.mrb[108].mxu0 }
 0x21d   : > { %v6030_v27 = vpop.eup %6029  ;;  %4265 = vst.msk [vmem:[%s6808_s22 + $0x608] sm:$0xff] %vm4071_vm1, %v6028_v50  ;;  %6049 = vpow2.f32 %v4738_v18  ;;  %v7637_v43 = vpop.f32.mrb[108].mxu1 }
 0x21e   : > { %v6032_v35 = vpop.eup %6031  ;;  %4142 = vst.msk [vmem:[%s6808_s22 + $0x230] sm:$0xff] %vm4071_vm1, %v6030_v27  ;;  %6051 = vpow2.f32 %v4866_v8 }
 0x21f   : > { %v6034_v28 = vpop.eup %6033  ;;  %4270 = vst.msk [vmem:[%s6808_s22 + $0x630] sm:$0xff] %vm4071_vm1, %v6032_v35  ;;  %6053 = vpow2.f32 %v4741_v7 }
 0x220   : > { %v6036_v15 = vpop.eup %6035  ;;  %4140 = vst.msk [vmem:[%s6808_s22 + $0x220] sm:$0xff] %vm4071_vm1, %v6034_v28  ;;  %6055 = vpow2.f32 %v4869_v37  ;;  %v7639_v37 = vpop.f32.mrb[109].mxu0 }
 0x221   : > { %v6038_v25 = vpop.eup %6037  ;;  %4268 = vst.msk [vmem:[%s6808_s22 + $0x620] sm:$0xff] %vm4071_vm1, %v6036_v15  ;;  %6057 = vpow2.f32 %v4739_v11  ;;  %v7641_v11 = vpop.f32.mrb[109].mxu1 }
 0x222   : > { %v6040_v52 = vpop.eup %6039  ;;  %4143 = vst.msk [vmem:[%s6808_s22 + $0x238] sm:$0xff] %vm4071_vm1, %v6038_v25  ;;  %6059 = vpow2.f32 %v4867_v46  ;;  %v7643_v35 = vpop.f32.mrb[110].mxu0 }
 0x223   : > { %v6042_v18 = vpop.eup %6041  ;;  %4271 = vst.msk [vmem:[%s6808_s22 + $0x638] sm:$0xff] %vm4071_vm1, %v6040_v52  ;;  %6061 = vpow2.f32 %v4744_v55  ;;  %v7645_v55 = vpop.f32.mrb[110].mxu1 }
 0x224   : > { %v6044_v45 = vpop.eup %6043  ;;  %4141 = vst.msk [vmem:[%s6808_s22 + $0x228] sm:$0xff] %vm4071_vm1, %v6042_v18  ;;  %6063 = vpow2.f32 %v4872_v12 }
 0x225   : > { %v6046_v0 = vpop.eup %6045  ;;  %v3500_v8 = vadd.f32 1.0, %v6044_v45  ;;  %6065 = vpow2.f32 %v4742_v48 }
 0x226   : > { %v6048_v7 = vpop.eup %6047  ;;  %v3377_v50 = vadd.f32 1.0, %v6046_v0  ;;  %6067 = vpow2.f32 %v4870_v23 }
 0x227   : > { %v6050_v9 = vpop.eup %6049  ;;  %6069 = vrcp.f32 %v3500_v8  ;;  %v3505_v27 = vadd.f32 1.0, %v6048_v7 }
 0x228   : > { %v6052_v46 = vpop.eup %6051  ;;  %6071 = vrcp.f32 %v3377_v50  ;;  %v3375_v28 = vadd.f32 1.0, %v6050_v9 }
 0x229   : > { %v6054_v15 = vpop.eup %6053  ;;  %6073 = vrcp.f32 %v3505_v27  ;;  %v3503_v12 = vadd.f32 1.0, %v6052_v46 }
 0x22a   : > { %v6056_v25 = vpop.eup %6055  ;;  %6075 = vrcp.f32 %v3375_v28  ;;  %v3378_v48 = vadd.f32 1.0, %v6054_v15  ;;  %v4745_v15 = vmul.f32 -1.442695, %v7320_v44 }
 0x22b   : > { %v6058_v52 = vpop.eup %6057  ;;  %6077 = vrcp.f32 %v3503_v12  ;;  %v3506_v23 = vadd.f32 1.0, %v6056_v25 }
 0x22c   : > { %v6060_v18 = vpop.eup %6059  ;;  %6079 = vrcp.f32 %v3378_v48  ;;  %v3376_v45 = vadd.f32 1.0, %v6058_v52  ;;  %v4873_v48 = vmul.f32 -1.442695, %v7330_v14  ;;  %v4748_v14 = vmul.f32 -1.442695, %v7360_v24 }
 0x22d   : > { %v6062_v0 = vpop.eup %6061  ;;  %6081 = vrcp.f32 %v3506_v23  ;;  %v3504_v8 = vadd.f32 1.0, %v6060_v18  ;;  %v4743_v23 = vmul.f32 -1.442695, %v7338_v10 }
 0x22e   : > { %v6064_v7 = vpop.eup %6063  ;;  %6083 = vrcp.f32 %v3376_v45  ;;  %v3381_v50 = vadd.f32 1.0, %v6062_v0  ;;  %v4871_v45 = vmul.f32 -1.442695, %v7340_v41  ;;  %v7658_v0 = vpop.f32.mrb[111].mxu0 }
 0x22f   : > { %v6066_v9 = vpop.eup %6065  ;;  %6085 = vrcp.f32 %v3504_v8  ;;  %v3509_v27 = vadd.f32 1.0, %v6064_v7  ;;  %v7660_v8 = vpop.f32.mrb[111].mxu1  ;;  %v4876_v7 = vmul.f32 -1.442695, %v7362_v32  ;;  %v4749_v32 = vmul.f32 -1.442695, %v7373_v19 }
 0x230   : > { %v6068_v46 = vpop.eup %6067  ;;  %6087 = vrcp.f32 %v3381_v50  ;;  %v3379_v28 = vadd.f32 1.0, %v6066_v9  ;;  %v4746_v50 = vmul.f32 -1.442695, %v7367_v60  ;;  %v4874_v9 = vmul.f32 -1.442695, %v7369_v29 }
 0x231   : > { %v6070_v12 = vpop.eup %6069  ;;  %6089 = vrcp.f32 %v3509_v27  ;;  %v3507_v25 = vadd.f32 1.0, %v6068_v46  ;;  %v4877_v60 = vmul.f32 -1.442695, %v7375_v51  ;;  %v4747_v29 = vmul.f32 -1.442695, %v7379_v39  ;;  %v8101_v39 = vld [vmem:[#allocation2_spill] sm:$0xff] }
 0x232   : > { %v6072_v52 = vpop.eup %6071  ;;  %4269 = vst.msk [vmem:[%s6808_s22 + $0x628] sm:$0xff] %vm4071_vm1, %v6070_v12  ;;  %6091 = vrcp.f32 %v3379_v28  ;;  %v7682_v12 = vpop.f32.mrb[112].mxu1  ;;  %v4875_v19 = vmul.f32 -1.442695, %v7381_v30 }
 0x233   : > { %v6074_v18 = vpop.eup %6073  ;;  %4146 = vst.msk [vmem:[%s6808_s22 + $0x250] sm:$0xff] %vm4071_vm1, %v6072_v52  ;;  %6093 = vrcp.f32 %v3507_v25  ;;  %v7689_v51 = vpop.f32.mrb[113].mxu1 }
 0x234   : > { %v6076_v44 = vpop.eup %6075  ;;  %4274 = vst.msk [vmem:[%s6808_s22 + $0x650] sm:$0xff] %vm4071_vm1, %v6074_v18  ;;  %6095 = vpow2.f32 %v4745_v15  ;;  %v7680_v15 = vpop.f32.mrb[112].mxu0 }
 0x235   : > { %v6078_v10 = vpop.eup %6077  ;;  %4144 = vst.msk [vmem:[%s6808_s22 + $0x240] sm:$0xff] %vm4071_vm1, %v6076_v44  ;;  %6097 = vpow2.f32 %v4873_v48  ;;  %v7687_v48 = vpop.f32.mrb[113].mxu0 }
 0x236   : > { %v6080_v41 = vpop.eup %6079  ;;  %4272 = vst.msk [vmem:[%s6808_s22 + $0x640] sm:$0xff] %vm4071_vm1, %v6078_v10  ;;  %6099 = vpow2.f32 %v4743_v23  ;;  %v4752_v23 = vmul.f32 -1.442695, %v8101_v39  ;;  %v7694_v18 = vpop.f32.mrb[114].mxu0 }
 0x237   : > { %v6082_v24 = vpop.eup %6081  ;;  %4147 = vst.msk [vmem:[%s6808_s22 + $0x258] sm:$0xff] %vm4071_vm1, %v6080_v41  ;;  %6101 = vpow2.f32 %v4871_v45  ;;  %v7696_v45 = vpop.f32.mrb[114].mxu1 }
 0x238   : > { %v6084_v27 = vpop.eup %6083  ;;  %4275 = vst.msk [vmem:[%s6808_s22 + $0x658] sm:$0xff] %vm4071_vm1, %v6082_v24  ;;  %6103 = vpow2.f32 %v4748_v14  ;;  %v7700_v14 = vpop.f32.mrb[115].mxu0 }
 0x239   : > { %v6086_v46 = vpop.eup %6085  ;;  %4145 = vst.msk [vmem:[%s6808_s22 + $0x248] sm:$0xff] %vm4071_vm1, %v6084_v27  ;;  %6105 = vpow2.f32 %v4876_v7  ;;  %v7702_v30 = vpop.f32.mrb[115].mxu1 }
 0x23a   : > { %v6088_v28 = vpop.eup %6087  ;;  %4273 = vst.msk [vmem:[%s6808_s22 + $0x648] sm:$0xff] %vm4071_vm1, %v6086_v46  ;;  %6107 = vpow2.f32 %v4746_v50 }
 0x23b   : > { %v6090_v25 = vpop.eup %6089  ;;  %4150 = vst.msk [vmem:[%s6808_s22 + $0x270] sm:$0xff] %vm4071_vm1, %v6088_v28  ;;  %6109 = vpow2.f32 %v4874_v9  ;;  %v7708_v28 = vpop.f32.mrb[116].mxu1 }
 0x23c   : > { %v6092_v52 = vpop.eup %6091  ;;  %4278 = vst.msk [vmem:[%s6808_s22 + $0x670] sm:$0xff] %vm4071_vm1, %v6090_v25  ;;  %6111 = vpow2.f32 %v4749_v32 }
 0x23d   : > { %v6094_v44 = vpop.eup %6093  ;;  %4148 = vst.msk [vmem:[%s6808_s22 + $0x260] sm:$0xff] %vm4071_vm1, %v6092_v52  ;;  %6113 = vpow2.f32 %v4877_v60  ;;  %v7706_v60 = vpop.f32.mrb[116].mxu0 }
 0x23e   : > { %v6096_v10 = vpop.eup %6095  ;;  %4276 = vst.msk [vmem:[%s6808_s22 + $0x660] sm:$0xff] %vm4071_vm1, %v6094_v44  ;;  %6115 = vpow2.f32 %v4747_v29  ;;  %v7710_v29 = vpop.f32.mrb[117].mxu0 }
 0x23f   : > { %v6098_v7 = vpop.eup %6097  ;;  %v3382_v41 = vadd.f32 1.0, %v6096_v10  ;;  %6117 = vpow2.f32 %v4875_v19  ;;  %8102 = vst [vmem:[#allocation2_spill] sm:$0xff] %v7710_v29 }
 0x240   : > { %v6100_v50 = vpop.eup %6099  ;;  %v3510_v24 = vadd.f32 1.0, %v6098_v7  ;;  %6119 = vpow2.f32 %v4752_v23 }
 0x241   : > { %v6102_v9 = vpop.eup %6101  ;;  %6121 = vrcp.f32 %v3382_v41  ;;  %v3380_v27 = vadd.f32 1.0, %v6100_v50 }
 0x242   : > { %v6104_v32 = vpop.eup %6103  ;;  %6123 = vrcp.f32 %v3510_v24  ;;  %v3508_v46 = vadd.f32 1.0, %v6102_v9 }
 0x243   : > { %v6106_v25 = vpop.eup %6105  ;;  %6125 = vrcp.f32 %v3380_v27  ;;  %v3385_v52 = vadd.f32 1.0, %v6104_v32 }
 0x244   : > { %v6108_v39 = vpop.eup %6107  ;;  %6127 = vrcp.f32 %v3508_v46  ;;  %v3513_v19 = vadd.f32 1.0, %v6106_v25  ;;  %v8103_v25 = vld [vmem:[#allocation3_spill] sm:$0xff] }
 0x245   : > { %v6110_v44 = vpop.eup %6109  ;;  %6129 = vrcp.f32 %v3385_v52  ;;  %v3383_v23 = vadd.f32 1.0, %v6108_v39  ;;  %v4880_v52 = vmul.f32 -1.442695, %v8103_v25 }
 0x246   : > { %v6112_v10 = vpop.eup %6111  ;;  %6131 = vrcp.f32 %v3513_v19  ;;  %v3511_v7 = vadd.f32 1.0, %v6110_v44  ;;  %v4750_v44 = vmul.f32 -1.442695, %v7398_v16  ;;  %v4881_v16 = vmul.f32 -1.442695, %v7410_v2 }
 0x247   : > { %v6114_v41 = vpop.eup %6113  ;;  %6133 = vrcp.f32 %v3383_v23  ;;  %v3386_v50 = vadd.f32 1.0, %v6112_v10  ;;  %v4878_v10 = vmul.f32 -1.442695, %v7400_v31  ;;  %v4751_v31 = vmul.f32 -1.442695, %v7418_v34 }
 0x248   : > { %v6116_v24 = vpop.eup %6115  ;;  %6135 = vrcp.f32 %v3511_v7  ;;  %v3514_v9 = vadd.f32 1.0, %v6114_v41  ;;  %v4753_v41 = vmul.f32 -1.442695, %v7408_v49 }
 0x249   : > { %v6118_v27 = vpop.eup %6117  ;;  %6137 = vrcp.f32 %v3386_v50  ;;  %v3384_v32 = vadd.f32 1.0, %v6116_v24  ;;  %v7720_v50 = vpop.f32.mrb[117].mxu1 }
 0x24a   : > { %v6120_v29 = vpop.eup %6119  ;;  %6139 = vrcp.f32 %v3514_v9  ;;  %v3512_v46 = vadd.f32 1.0, %v6118_v27  ;;  %v7728_v9 = vpop.f32.mrb[118].mxu0 }
 0x24b   : > { %v6122_v39 = vpop.eup %6121  ;;  %6141 = vrcp.f32 %v3384_v32  ;;  %v3389_v19 = vadd.f32 1.0, %v6120_v29  ;;  %v7730_v27 = vpop.f32.mrb[118].mxu1  ;;  %v4879_v32 = vmul.f32 -1.442695, %v7420_v17 }
 0x24c   : > { %v6124_v23 = vpop.eup %6123  ;;  %4151 = vst.msk [vmem:[%s6808_s22 + $0x278] sm:$0xff] %vm4071_vm1, %v6122_v39  ;;  %6143 = vrcp.f32 %v3512_v46  ;;  %v4756_v46 = vmul.f32 -1.442695, %v7438_v36  ;;  %v7738_v34 = vpop.f32.mrb[119].mxu0  ;;  %v4884_v39 = vmul.f32 -1.442695, %v7440_v59 }
 0x24d   : > { %v6126_v7 = vpop.eup %6125  ;;  %4279 = vst.msk [vmem:[%s6808_s22 + $0x678] sm:$0xff] %vm4071_vm1, %v6124_v23  ;;  %6145 = vrcp.f32 %v3389_v19  ;;  %v7740_v25 = vpop.f32.mrb[119].mxu1  ;;  %v4754_v19 = vmul.f32 -1.442695, %v7442_v22  ;;  %v4757_v59 = vmul.f32 -1.442695, %v7446_v3 }
 0x24e   : > { %v6128_v29 = vpop.eup %6127  ;;  %4149 = vst.msk [vmem:[%s6808_s22 + $0x268] sm:$0xff] %vm4071_vm1, %v6126_v7  ;;  %6147 = vpow2.f32 %v4880_v52  ;;  %v8104_v7 = vld [vmem:[#allocation4_spill] sm:$0xff] }
 0x24f   : > { %v6130_v24 = vpop.eup %6129  ;;  %4277 = vst.msk [vmem:[%s6808_s22 + $0x668] sm:$0xff] %vm4071_vm1, %v6128_v29  ;;  %6149 = vpow2.f32 %v4750_v44  ;;  %v4882_v44 = vmul.f32 -1.442695, %v7444_v57  ;;  %v7759_v29 = vpop.f32.mrb[120].mxu0 }
 0x250   : > { %v6132_v49 = vpop.eup %6131  ;;  %4154 = vst.msk [vmem:[%s6808_s22 + $0x290] sm:$0xff] %vm4071_vm1, %v6130_v24  ;;  %6151 = vpow2.f32 %v4878_v10  ;;  %v7765_v24 = vpop.f32.mrb[121].mxu0 }
 0x251   : > { %v6134_v2 = vpop.eup %6133  ;;  %4282 = vst.msk [vmem:[%s6808_s22 + $0x690] sm:$0xff] %vm4071_vm1, %v6132_v49  ;;  %6153 = vpow2.f32 %v4753_v41  ;;  %v4885_v41 = vmul.f32 -1.442695, %v8104_v7 }
 0x252   : > { %v6136_v52 = vpop.eup %6135  ;;  %4152 = vst.msk [vmem:[%s6808_s22 + $0x280] sm:$0xff] %vm4071_vm1, %v6134_v2  ;;  %6155 = vpow2.f32 %v4881_v16  ;;  %v7761_v16 = vpop.f32.mrb[120].mxu1 }
 0x253   : > { %v6138_v17 = vpop.eup %6137  ;;  %4280 = vst.msk [vmem:[%s6808_s22 + $0x680] sm:$0xff] %vm4071_vm1, %v6136_v52  ;;  %6157 = vpow2.f32 %v4751_v31  ;;  %v7767_v3 = vpop.f32.mrb[121].mxu1 }
 0x254   : > { %v6140_v36 = vpop.eup %6139  ;;  %4155 = vst.msk [vmem:[%s6808_s22 + $0x298] sm:$0xff] %vm4071_vm1, %v6138_v17  ;;  %6159 = vpow2.f32 %v4879_v32  ;;  %v7769_v32 = vpop.f32.mrb[122].mxu0 }
 0x255   : > { %v6142_v23 = vpop.eup %6141  ;;  %4283 = vst.msk [vmem:[%s6808_s22 + $0x698] sm:$0xff] %vm4071_vm1, %v6140_v36  ;;  %6161 = vpow2.f32 %v4756_v46  ;;  %v7771_v52 = vpop.f32.mrb[122].mxu1 }
 0x256   : > { %v6144_v10 = vpop.eup %6143  ;;  %4153 = vst.msk [vmem:[%s6808_s22 + $0x288] sm:$0xff] %vm4071_vm1, %v6142_v23  ;;  %6163 = vpow2.f32 %v4884_v39  ;;  %8105 = vst [vmem:[#allocation3_spill] sm:$0xff] %v7771_v52  ;;  %v7773_v39 = vpop.f32.mrb[123].mxu0 }
 0x257   : > { %v6146_v22 = vpop.eup %6145  ;;  %4281 = vst.msk [vmem:[%s6808_s22 + $0x688] sm:$0xff] %vm4071_vm1, %v6144_v10  ;;  %6165 = vpow2.f32 %v4754_v19  ;;  %8106 = vst [vmem:[#allocation4_spill] sm:$0xff] %v7773_v39  ;;  %v7775_v36 = vpop.f32.mrb[123].mxu1 }
 0x258   : > { %v6148_v57 = vpop.eup %6147  ;;  %4158 = vst.msk [vmem:[%s6808_s22 + $0x2b0] sm:$0xff] %vm4071_vm1, %v6146_v22  ;;  %6167 = vpow2.f32 %v4882_v44 }
 0x259   : > { %v6150_v31 = vpop.eup %6149  ;;  %v3517_v49 = vadd.f32 1.0, %v6148_v57  ;;  %6169 = vpow2.f32 %v4757_v59 }
 0x25a   : > { %v6152_v2 = vpop.eup %6151  ;;  %v3387_v46 = vadd.f32 1.0, %v6150_v31  ;;  %6171 = vpow2.f32 %v4885_v41 }
 0x25b   : > { %v6154_v17 = vpop.eup %6153  ;;  %6173 = vrcp.f32 %v3517_v49  ;;  %v3515_v19 = vadd.f32 1.0, %v6152_v2 }
 0x25c   : > { %v6156_v44 = vpop.eup %6155  ;;  %6175 = vrcp.f32 %v3387_v46  ;;  %v3390_v23 = vadd.f32 1.0, %v6154_v17 }
 0x25d   : > { %v6158_v10 = vpop.eup %6157  ;;  %6177 = vrcp.f32 %v3515_v19  ;;  %v3518_v59 = vadd.f32 1.0, %v6156_v44 }
 0x25e   : > { %v6160_v7 = vpop.eup %6159  ;;  %6179 = vrcp.f32 %v3390_v23  ;;  %v3388_v22 = vadd.f32 1.0, %v6158_v10  ;;  %v8107_v10 = vld [vmem:[#allocation5_spill] sm:$0xff] }
 0x25f   : > { %v6162_v57 = vpop.eup %6161  ;;  %6181 = vrcp.f32 %v3518_v59  ;;  %v3516_v41 = vadd.f32 1.0, %v6160_v7  ;;  %v4755_v59 = vmul.f32 -1.442695, %v8107_v10  ;;  %v8111_v10 = vld [vmem:[#allocation9_spill] sm:$0xff] }
 0x260   : > { %v6164_v31 = vpop.eup %6163  ;;  %6183 = vrcp.f32 %v3388_v22  ;;  %v3393_v39 = vadd.f32 1.0, %v6162_v57  ;;  %v4883_v57 = vmul.f32 -1.442695, %v7460_v20  ;;  %v8108_v20 = vld [vmem:[#allocation6_spill] sm:$0xff] }
 0x261   : > { %v6166_v52 = vpop.eup %6165  ;;  %6185 = vrcp.f32 %v3516_v41  ;;  %v3521_v49 = vadd.f32 1.0, %v6164_v31  ;;  %v4888_v31 = vmul.f32 -1.442695, %v7482_v21 }
 0x262   : > { %v6168_v2 = vpop.eup %6167  ;;  %6187 = vrcp.f32 %v3393_v39  ;;  %v3391_v46 = vadd.f32 1.0, %v6166_v52  ;;  %v4760_v52 = vmul.f32 -1.442695, %v7480_v42 }
 0x263   : > { %v6170_v17 = vpop.eup %6169  ;;  %6189 = vrcp.f32 %v3521_v49  ;;  %v3519_v19 = vadd.f32 1.0, %v6168_v2  ;;  %v4758_v2 = vmul.f32 -1.442695, %v8108_v20 }
 0x264   : > { %v6172_v44 = vpop.eup %6171  ;;  %6191 = vrcp.f32 %v3391_v46  ;;  %v3394_v23 = vadd.f32 1.0, %v6170_v17  ;;  %v8109_v17 = vld [vmem:[#allocation7_spill] sm:$0xff] }
 0x265   : > { %v6174_v7 = vpop.eup %6173  ;;  %6193 = vrcp.f32 %v3519_v19  ;;  %v3522_v22 = vadd.f32 1.0, %v6172_v44  ;;  %v4886_v42 = vmul.f32 -1.442695, %v8109_v17  ;;  %v8110_v44 = vld [vmem:[#allocation8_spill] sm:$0xff] }
 0x266   : > { %v6176_v41 = vpop.eup %6175  ;;  %4286 = vst.msk [vmem:[%s6808_s22 + $0x6b0] sm:$0xff] %vm4071_vm1, %v6174_v7  ;;  %6195 = vrcp.f32 %v3394_v23  ;;  %v4761_v21 = vmul.f32 -1.442695, %v8110_v44 }
 0x267   : > { %v6178_v39 = vpop.eup %6177  ;;  %4156 = vst.msk [vmem:[%s6808_s22 + $0x2a0] sm:$0xff] %vm4071_vm1, %v6176_v41  ;;  %6197 = vrcp.f32 %v3522_v22  ;;  %v8112_v22 = vld [vmem:[#allocation10_spill] sm:$0xff]  ;;  %v7800_v41 = vpop.f32.mrb[124].mxu0 }
 0x268   : > { %v6180_v49 = vpop.eup %6179  ;;  %4284 = vst.msk [vmem:[%s6808_s22 + $0x6a0] sm:$0xff] %vm4071_vm1, %v6178_v39  ;;  %6199 = vpow2.f32 %v4755_v59  ;;  %v4889_v59 = vmul.f32 -1.442695, %v8111_v10  ;;  %v7802_v39 = vpop.f32.mrb[124].mxu1  ;;  %v8119_v10 = vld [vmem:[#allocation13_spill] sm:$0xff] }
 0x269   : > { %v6182_v46 = vpop.eup %6181  ;;  %4159 = vst.msk [vmem:[%s6808_s22 + $0x2b8] sm:$0xff] %vm4071_vm1, %v6180_v49  ;;  %6201 = vpow2.f32 %v4883_v57  ;;  %v4759_v57 = vmul.f32 -1.442695, %v8112_v22  ;;  %v8113_v49 = vld [vmem:[#allocation11_spill] sm:$0xff] }
 0x26a   : > { %v6184_v19 = vpop.eup %6183  ;;  %4287 = vst.msk [vmem:[%s6808_s22 + $0x6b8] sm:$0xff] %vm4071_vm1, %v6182_v46  ;;  %6203 = vpow2.f32 %v4760_v52  ;;  %v4887_v20 = vmul.f32 -1.442695, %v8113_v49  ;;  %v7809_v46 = vpop.f32.mrb[125].mxu1 }
 0x26b   : > { %v6186_v23 = vpop.eup %6185  ;;  %4157 = vst.msk [vmem:[%s6808_s22 + $0x2a8] sm:$0xff] %vm4071_vm1, %v6184_v19  ;;  %6205 = vpow2.f32 %v4888_v31  ;;  %v7807_v31 = vpop.f32.mrb[125].mxu0  ;;  %8115 = vst [vmem:[#allocation6_spill] sm:$0xff] %v7809_v46 }
 0x26c   : > { %v6188_v7 = vpop.eup %6187  ;;  %4285 = vst.msk [vmem:[%s6808_s22 + $0x6a8] sm:$0xff] %vm4071_vm1, %v6186_v23  ;;  %6207 = vpow2.f32 %v4758_v2  ;;  %8114 = vst [vmem:[#allocation5_spill] sm:$0xff] %v7807_v31  ;;  %v8116_v2 = vld [vmem:[#allocation12_spill] sm:$0xff]  ;;  %v7814_v44 = vpop.f32.mrb[126].mxu0 }
 0x26d   : > { %v6190_v52 = vpop.eup %6189  ;;  %4162 = vst.msk [vmem:[%s6808_s22 + $0x2d0] sm:$0xff] %vm4071_vm1, %v6188_v7  ;;  %6209 = vpow2.f32 %v4886_v42  ;;  %v4764_v19 = vmul.f32 -1.442695, %v8116_v2  ;;  %8117 = vst [vmem:[#allocation7_spill] sm:$0xff] %v7814_v44  ;;  %v7816_v23 = vpop.f32.mrb[126].mxu1 }
 0x26e   : > { %v6192_v17 = vpop.eup %6191  ;;  %4290 = vst.msk [vmem:[%s6808_s22 + $0x6d0] sm:$0xff] %vm4071_vm1, %v6190_v52  ;;  %6211 = vpow2.f32 %v4761_v21  ;;  %8118 = vst [vmem:[#allocation8_spill] sm:$0xff] %v7816_v23  ;;  %v4892_v7 = vmul.f32 -1.442695, %v8119_v10  ;;  %v7821_v22 = vpop.f32.mrb[127].mxu0  ;;  %v8122_v21 = vld [vmem:[#allocation14_spill] sm:$0xff] }
 0x26f   : > { %v6194_v42 = vpop.eup %6193  ;;  %4160 = vst.msk [vmem:[%s6808_s22 + $0x2c0] sm:$0xff] %vm4071_vm1, %v6192_v17  ;;  %6213 = vpow2.f32 %v4889_v59  ;;  %8120 = vst [vmem:[#allocation9_spill] sm:$0xff] %v7821_v22  ;;  %v7823_v49 = vpop.f32.mrb[127].mxu1  ;;  %v4762_v2 = vmul.f32 -1.442695, %v8122_v21 }
 0x270   : > { %8121 = vst [vmem:[#allocation10_spill] sm:$0xff] %v7823_v49  ;;  %v6196_v52 = vpop.eup %6195  ;;  %4288 = vst.msk [vmem:[%s6808_s22 + $0x6c0] sm:$0xff] %vm4071_vm1, %v6194_v42  ;;  %6215 = vpow2.f32 %v4759_v57 }
 0x271   : > { %v6198_v44 = vpop.eup %6197  ;;  %4163 = vst.msk [vmem:[%s6808_s22 + $0x2d8] sm:$0xff] %vm4071_vm1, %v6196_v52  ;;  %6217 = vpow2.f32 %v4887_v20 }
 0x272   : > { %v6200_v23 = vpop.eup %6199  ;;  %4291 = vst.msk [vmem:[%s6808_s22 + $0x6d8] sm:$0xff] %vm4071_vm1, %v6198_v44  ;;  %6219 = vpow2.f32 %v4764_v19 }
 0x273   : > { %v6202_v59 = vpop.eup %6201  ;;  %v3392_v17 = vadd.f32 1.0, %v6200_v23  ;;  %6221 = vpow2.f32 %v4892_v7 }
 0x274   : > { %v6204_v10 = vpop.eup %6203  ;;  %v3520_v22 = vadd.f32 1.0, %v6202_v59  ;;  %6223 = vpow2.f32 %v4762_v2 }
 0x275   : > { %v6206_v49 = vpop.eup %6205  ;;  %6225 = vrcp.f32 %v3392_v17  ;;  %v3397_v42 = vadd.f32 1.0, %v6204_v10 }
 0x276   : > { %v6208_v57 = vpop.eup %6207  ;;  %6227 = vrcp.f32 %v3520_v22  ;;  %v3525_v21 = vadd.f32 1.0, %v6206_v49 }
 0x277   : > { %v6210_v46 = vpop.eup %6209  ;;  %6229 = vrcp.f32 %v3397_v42  ;;  %v3395_v52 = vadd.f32 1.0, %v6208_v57  ;;  %v8123_v57 = vld [vmem:[#allocation15_spill] sm:$0xff] }
 0x278   : > { %v6212_v20 = vpop.eup %6211  ;;  %6231 = vrcp.f32 %v3525_v21  ;;  %v3523_v31 = vadd.f32 1.0, %v6210_v46  ;;  %v4890_v21 = vmul.f32 -1.442695, %v8123_v57 }
 0x279   : > { %v6214_v44 = vpop.eup %6213  ;;  %6233 = vrcp.f32 %v3395_v52  ;;  %v3398_v19 = vadd.f32 1.0, %v6212_v20  ;;  %v4765_v20 = vmul.f32 -1.442695, %v7528_v4  ;;  %v4891_v4 = vmul.f32 -1.442695, %v7540_v33 }
 0x27a   : > { %v6216_v23 = vpop.eup %6215  ;;  %6235 = vrcp.f32 %v3523_v31  ;;  %v3526_v7 = vadd.f32 1.0, %v6214_v44  ;;  %v4766_v33 = vmul.f32 -1.442695, %v7566_v58  ;;  %v8125_v58 = vld [vmem:[#allocation17_spill] sm:$0xff] }
 0x27b   : > { %v6218_v59 = vpop.eup %6217  ;;  %6237 = vrcp.f32 %v3398_v19  ;;  %v3396_v2 = vadd.f32 1.0, %v6216_v23  ;;  %v4893_v19 = vmul.f32 -1.442695, %v7530_v1  ;;  %v4768_v1 = vmul.f32 -1.442695, %v7560_v54 }
 0x27c   : > { %v6220_v17 = vpop.eup %6219  ;;  %6239 = vrcp.f32 %v3526_v7  ;;  %v3524_v22 = vadd.f32 1.0, %v6218_v59  ;;  %v4763_v7 = vmul.f32 -1.442695, %v7538_v26  ;;  %v4896_v26 = vmul.f32 -1.442695, %v7562_v62  ;;  %v8124_v62 = vld [vmem:[#allocation16_spill] sm:$0xff] }
 0x27d   : > { %v6222_v49 = vpop.eup %6221  ;;  %6241 = vrcp.f32 %v3396_v2  ;;  %v3401_v10 = vadd.f32 1.0, %v6220_v17  ;;  %v4894_v54 = vmul.f32 -1.442695, %v7568_v13  ;;  %v4897_v57 = vmul.f32 -1.442695, %v8125_v58 }
 0x27e   : > { %v6224_v42 = vpop.eup %6223  ;;  %6243 = vrcp.f32 %v3524_v22  ;;  %v3529_v46 = vadd.f32 1.0, %v6222_v49 }
 0x27f   : > { %v6226_v52 = vpop.eup %6225  ;;  %6245 = vrcp.f32 %v3401_v10  ;;  %v3399_v31 = vadd.f32 1.0, %v6224_v42  ;;  %v4769_v42 = vmul.f32 -1.442695, %v8124_v62 }
 0x280   : > { %v6228_v44 = vpop.eup %6227  ;;  %4161 = vst.msk [vmem:[%s6808_s22 + $0x2c8] sm:$0xff] %vm4071_vm1, %v6226_v52  ;;  %6247 = vrcp.f32 %v3529_v46  ;;  %v8126_v52 = vld [vmem:[#allocation18_spill] sm:$0xff] }
 0x281   : > { %v6230_v23 = vpop.eup %6229  ;;  %4289 = vst.msk [vmem:[%s6808_s22 + $0x6c8] sm:$0xff] %vm4071_vm1, %v6228_v44  ;;  %6249 = vrcp.f32 %v3399_v31  ;;  %v4767_v13 = vmul.f32 -1.442695, %v8126_v52 }
 0x282   : > { %v6232_v59 = vpop.eup %6231  ;;  %4166 = vst.msk [vmem:[%s6808_s22 + $0x2f0] sm:$0xff] %vm4071_vm1, %v6230_v23  ;;  %6251 = vpow2.f32 %v4890_v21 }
 0x283   : > { %v6234_v2 = vpop.eup %6233  ;;  %4294 = vst.msk [vmem:[%s6808_s22 + $0x6f0] sm:$0xff] %vm4071_vm1, %v6232_v59  ;;  %6253 = vpow2.f32 %v4765_v20  ;;  %v8127_v20 = vld [vmem:[#allocation19_spill] sm:$0xff] }
 0x284   : > { %v6236_v17 = vpop.eup %6235  ;;  %4164 = vst.msk [vmem:[%s6808_s22 + $0x2e0] sm:$0xff] %vm4071_vm1, %v6234_v2  ;;  %6255 = vpow2.f32 %v4893_v19  ;;  %v4895_v44 = vmul.f32 -1.442695, %v8127_v20 }
 0x285   : > { %v6238_v22 = vpop.eup %6237  ;;  %4292 = vst.msk [vmem:[%s6808_s22 + $0x6e0] sm:$0xff] %vm4071_vm1, %v6236_v17  ;;  %6257 = vpow2.f32 %v4763_v7 }
 0x286   : > { %v6240_v49 = vpop.eup %6239  ;;  %4167 = vst.msk [vmem:[%s6808_s22 + $0x2f8] sm:$0xff] %vm4071_vm1, %v6238_v22  ;;  %6259 = vpow2.f32 %v4891_v4 }
 0x287   : > { %v6242_v10 = vpop.eup %6241  ;;  %4295 = vst.msk [vmem:[%s6808_s22 + $0x6f8] sm:$0xff] %vm4071_vm1, %v6240_v49  ;;  %6261 = vpow2.f32 %v4768_v1 }
 0x288   : > { %v6244_v46 = vpop.eup %6243  ;;  %4165 = vst.msk [vmem:[%s6808_s22 + $0x2e8] sm:$0xff] %vm4071_vm1, %v6242_v10  ;;  %6263 = vpow2.f32 %v4896_v26 }
 0x289   : > { %v6246_v21 = vpop.eup %6245  ;;  %4293 = vst.msk [vmem:[%s6808_s22 + $0x6e8] sm:$0xff] %vm4071_vm1, %v6244_v46  ;;  %6265 = vpow2.f32 %v4766_v33 }
 0x28a   : > { %v6248_v31 = vpop.eup %6247  ;;  %4170 = vst.msk [vmem:[%s6808_s22 + $0x310] sm:$0xff] %vm4071_vm1, %v6246_v21  ;;  %6267 = vpow2.f32 %v4894_v54 }
 0x28b   : > { %v6250_v19 = vpop.eup %6249  ;;  %4298 = vst.msk [vmem:[%s6808_s22 + $0x710] sm:$0xff] %vm4071_vm1, %v6248_v31  ;;  %6269 = vpow2.f32 %v4769_v42 }
 0x28c   : > { %v6252_v23 = vpop.eup %6251  ;;  %4168 = vst.msk [vmem:[%s6808_s22 + $0x300] sm:$0xff] %vm4071_vm1, %v6250_v19  ;;  %6271 = vpow2.f32 %v4897_v57 }
 0x28d   : > { %v6254_v7 = vpop.eup %6253  ;;  %v3527_v59 = vadd.f32 1.0, %v6252_v23  ;;  %6273 = vpow2.f32 %v4767_v13  ;;  %v4772_v23 = vmul.f32 -1.442695, %v7580_v38  ;;  %v4898_v38 = vmul.f32 -1.442695, %v7600_v53 }
 0x28e   : > { %v6256_v4 = vpop.eup %6255  ;;  %v3402_v2 = vadd.f32 1.0, %v6254_v7  ;;  %6275 = vpow2.f32 %v4895_v44  ;;  %v4771_v53 = vmul.f32 -1.442695, %v7618_v61  ;;  %v4904_v61 = vmul.f32 -1.442695, %v7637_v43 }
 0x28f   : > { %v6258_v1 = vpop.eup %6257  ;;  %6277 = vrcp.f32 %v3527_v59  ;;  %v3530_v17 = vadd.f32 1.0, %v6256_v4  ;;  %v4900_v4 = vmul.f32 -1.442695, %v7590_v6  ;;  %v4773_v6 = vmul.f32 -1.442695, %v7608_v56 }
 0x290   : > { %v6260_v26 = vpop.eup %6259  ;;  %6279 = vrcp.f32 %v3402_v2  ;;  %v3400_v22 = vadd.f32 1.0, %v6258_v1  ;;  %v4770_v1 = vmul.f32 -1.442695, %v7598_v63  ;;  %v4901_v63 = vmul.f32 -1.442695, %v7610_v47 }
 0x291   : > { %v6262_v33 = vpop.eup %6261  ;;  %6281 = vrcp.f32 %v3530_v17  ;;  %v3528_v49 = vadd.f32 1.0, %v6260_v26  ;;  %v4899_v56 = vmul.f32 -1.442695, %v7620_v5  ;;  %v4776_v47 = vmul.f32 -1.442695, %v7635_v40 }
 0x292   : > { %v6264_v54 = vpop.eup %6263  ;;  %6283 = vrcp.f32 %v3400_v22  ;;  %v3405_v10 = vadd.f32 1.0, %v6262_v33  ;;  %v4774_v5 = vmul.f32 -1.442695, %v7639_v37  ;;  %v4902_v40 = vmul.f32 -1.442695, %v7641_v11 }
 0x293   : > { %v6266_v62 = vpop.eup %6265  ;;  %6285 = vrcp.f32 %v3528_v49  ;;  %v3533_v42 = vadd.f32 1.0, %v6264_v54 }
 0x294   : > { %v6268_v46 = vpop.eup %6267  ;;  %6287 = vrcp.f32 %v3405_v10  ;;  %v3403_v58 = vadd.f32 1.0, %v6266_v62 }
 0x295   : > { %v6270_v57 = vpop.eup %6269  ;;  %6289 = vrcp.f32 %v3533_v42  ;;  %v3531_v21 = vadd.f32 1.0, %v6268_v46 }
 0x296   : > { %v6272_v52 = vpop.eup %6271  ;;  %6291 = vrcp.f32 %v3403_v58  ;;  %v3406_v13 = vadd.f32 1.0, %v6270_v57  ;;  %v4777_v58 = vmul.f32 -1.442695, %v7643_v35 }
 0x297   : > { %v6274_v31 = vpop.eup %6273  ;;  %6293 = vrcp.f32 %v3531_v21  ;;  %v3534_v20 = vadd.f32 1.0, %v6272_v52 }
 0x298   : > { %v6276_v44 = vpop.eup %6275  ;;  %6295 = vrcp.f32 %v3406_v13  ;;  %v3404_v19 = vadd.f32 1.0, %v6274_v31 }
 0x299   : > { %v6278_v7 = vpop.eup %6277  ;;  %6297 = vrcp.f32 %v3534_v20  ;;  %v3532_v59 = vadd.f32 1.0, %v6276_v44 }
 0x29a   : > { %v6280_v2 = vpop.eup %6279  ;;  %4296 = vst.msk [vmem:[%s6808_s22 + $0x700] sm:$0xff] %vm4071_vm1, %v6278_v7  ;;  %6299 = vrcp.f32 %v3404_v19 }
 0x29b   : > { %v6282_v17 = vpop.eup %6281  ;;  %4171 = vst.msk [vmem:[%s6808_s22 + $0x318] sm:$0xff] %vm4071_vm1, %v6280_v2  ;;  %6301 = vrcp.f32 %v3532_v59 }
 0x29c   : > { %v6284_v26 = vpop.eup %6283  ;;  %4299 = vst.msk [vmem:[%s6808_s22 + $0x718] sm:$0xff] %vm4071_vm1, %v6282_v17  ;;  %6303 = vpow2.f32 %v4772_v23 }
 0x29d   : > { %v6286_v22 = vpop.eup %6285  ;;  %4169 = vst.msk [vmem:[%s6808_s22 + $0x308] sm:$0xff] %vm4071_vm1, %v6284_v26  ;;  %6305 = vpow2.f32 %v4900_v4 }
 0x29e   : > { %v6288_v33 = vpop.eup %6287  ;;  %4297 = vst.msk [vmem:[%s6808_s22 + $0x708] sm:$0xff] %vm4071_vm1, %v6286_v22  ;;  %6307 = vpow2.f32 %v4770_v1 }
 0x29f   : > { %v6290_v49 = vpop.eup %6289  ;;  %4174 = vst.msk [vmem:[%s6808_s22 + $0x330] sm:$0xff] %vm4071_vm1, %v6288_v33  ;;  %6309 = vpow2.f32 %v4898_v38 }
 0x2a0   : > { %v6292_v54 = vpop.eup %6291  ;;  %4302 = vst.msk [vmem:[%s6808_s22 + $0x730] sm:$0xff] %vm4071_vm1, %v6290_v49  ;;  %6311 = vpow2.f32 %v4773_v6  ;;  %v4905_v49 = vmul.f32 -1.442695, %v7645_v55  ;;  %v4780_v55 = vmul.f32 -1.442695, %v7680_v15 }
 0x2a1   : > { %v6294_v10 = vpop.eup %6293  ;;  %4172 = vst.msk [vmem:[%s6808_s22 + $0x320] sm:$0xff] %vm4071_vm1, %v6292_v54  ;;  %6313 = vpow2.f32 %v4901_v63  ;;  %v4906_v15 = vmul.f32 -1.442695, %v7689_v51  ;;  %v4779_v51 = vmul.f32 -1.442695, %v7700_v14 }
 0x2a2   : > { %v6296_v62 = vpop.eup %6295  ;;  %4300 = vst.msk [vmem:[%s6808_s22 + $0x720] sm:$0xff] %vm4071_vm1, %v6294_v10  ;;  %6315 = vpow2.f32 %v4771_v53 }
 0x2a3   : > { %v6298_v42 = vpop.eup %6297  ;;  %4175 = vst.msk [vmem:[%s6808_s22 + $0x338] sm:$0xff] %vm4071_vm1, %v6296_v62  ;;  %6317 = vpow2.f32 %v4899_v56 }
 0x2a4   : > { %v6300_v46 = vpop.eup %6299  ;;  %4303 = vst.msk [vmem:[%s6808_s22 + $0x738] sm:$0xff] %vm4071_vm1, %v6298_v42  ;;  %6319 = vpow2.f32 %v4776_v47  ;;  %v4775_v47 = vmul.f32 -1.442695, %v7658_v0  ;;  %v4908_v0 = vmul.f32 -1.442695, %v7682_v12 }
 0x2a5   : > { %v6302_v43 = vpop.eup %6301  ;;  %4173 = vst.msk [vmem:[%s6808_s22 + $0x328] sm:$0xff] %vm4071_vm1, %v6300_v46  ;;  %6321 = vpow2.f32 %v4904_v61  ;;  %v4903_v61 = vmul.f32 -1.442695, %v7660_v8  ;;  %v4778_v8 = vmul.f32 -1.442695, %v7687_v48 }
 0x2a6   : > { %v6304_v57 = vpop.eup %6303  ;;  %4301 = vst.msk [vmem:[%s6808_s22 + $0x728] sm:$0xff] %vm4071_vm1, %v6302_v43  ;;  %6323 = vpow2.f32 %v4774_v5  ;;  %v4781_v12 = vmul.f32 -1.442695, %v7694_v18  ;;  %v4909_v48 = vmul.f32 -1.442695, %v7696_v45 }
 0x2a7   : > { %v6306_v37 = vpop.eup %6305  ;;  %v3409_v21 = vadd.f32 1.0, %v6304_v57  ;;  %6325 = vpow2.f32 %v4902_v40  ;;  %v4907_v18 = vmul.f32 -1.442695, %v7702_v30  ;;  %v4784_v45 = vmul.f32 -1.442695, %v7706_v60 }
 0x2a8   : > { %v6308_v52 = vpop.eup %6307  ;;  %v3537_v13 = vadd.f32 1.0, %v6306_v37  ;;  %6327 = vpow2.f32 %v4777_v58 }
 0x2a9   : > { %v6310_v11 = vpop.eup %6309  ;;  %6329 = vrcp.f32 %v3409_v21  ;;  %v3407_v31 = vadd.f32 1.0, %v6308_v52  ;;  %v4912_v52 = vmul.f32 -1.442695, %v7708_v28 }
 0x2aa   : > { %v6312_v20 = vpop.eup %6311  ;;  %6331 = vrcp.f32 %v3537_v13  ;;  %v3535_v35 = vadd.f32 1.0, %v6310_v11 }
 0x2ab   : > { %v6314_v44 = vpop.eup %6313  ;;  %6333 = vrcp.f32 %v3407_v31  ;;  %v3410_v19 = vadd.f32 1.0, %v6312_v20 }
 0x2ac   : > { %v6316_v23 = vpop.eup %6315  ;;  %6335 = vrcp.f32 %v3535_v35  ;;  %v3538_v7 = vadd.f32 1.0, %v6314_v44 }
 0x2ad   : > { %v6318_v59 = vpop.eup %6317  ;;  %6337 = vrcp.f32 %v3410_v19  ;;  %v3408_v4 = vadd.f32 1.0, %v6316_v23 }
 0x2ae   : > { %v6320_v2 = vpop.eup %6319  ;;  %6339 = vrcp.f32 %v3538_v7  ;;  %v3536_v1 = vadd.f32 1.0, %v6318_v59 }
 0x2af   : > { %v6322_v17 = vpop.eup %6321  ;;  %6341 = vrcp.f32 %v3408_v4  ;;  %v3413_v38 = vadd.f32 1.0, %v6320_v2 }
 0x2b0   : > { %v6324_v26 = vpop.eup %6323  ;;  %6343 = vrcp.f32 %v3536_v1  ;;  %v3541_v6 = vadd.f32 1.0, %v6322_v17 }
 0x2b1   : > { %v6326_v22 = vpop.eup %6325  ;;  %6345 = vrcp.f32 %v3413_v38  ;;  %v3411_v63 = vadd.f32 1.0, %v6324_v26 }
 0x2b2   : > { %v6328_v33 = vpop.eup %6327  ;;  %6347 = vrcp.f32 %v3541_v6  ;;  %v3539_v53 = vadd.f32 1.0, %v6326_v22 }
 0x2b3   : > { %v6330_v56 = vpop.eup %6329  ;;  %6349 = vrcp.f32 %v3411_v63  ;;  %v3414_v54 = vadd.f32 1.0, %v6328_v33 }
 0x2b4   : > { %v6332_v10 = vpop.eup %6331  ;;  %4178 = vst.msk [vmem:[%s6808_s22 + $0x350] sm:$0xff] %vm4071_vm1, %v6330_v56  ;;  %6351 = vrcp.f32 %v3539_v53  ;;  %v8128_v56 = vld [vmem:[#allocation2_spill] sm:$0xff] }
 0x2b5   : > { %v6334_v62 = vpop.eup %6333  ;;  %4306 = vst.msk [vmem:[%s6808_s22 + $0x750] sm:$0xff] %vm4071_vm1, %v6332_v10  ;;  %6353 = vrcp.f32 %v3414_v54  ;;  %v4782_v54 = vmul.f32 -1.442695, %v8128_v56 }
 0x2b6   : > { %v6336_v5 = vpop.eup %6335  ;;  %4176 = vst.msk [vmem:[%s6808_s22 + $0x340] sm:$0xff] %vm4071_vm1, %v6334_v62  ;;  %6355 = vpow2.f32 %v4905_v49 }
 0x2b7   : > { %v6338_v42 = vpop.eup %6337  ;;  %4304 = vst.msk [vmem:[%s6808_s22 + $0x740] sm:$0xff] %vm4071_vm1, %v6336_v5  ;;  %6357 = vpow2.f32 %v4775_v47 }
 0x2b8   : > { %v6340_v40 = vpop.eup %6339  ;;  %4179 = vst.msk [vmem:[%s6808_s22 + $0x358] sm:$0xff] %vm4071_vm1, %v6338_v42  ;;  %6359 = vpow2.f32 %v4903_v61  ;;  %v4910_v61 = vmul.f32 -1.442695, %v7720_v50  ;;  %v4783_v50 = vmul.f32 -1.442695, %v7738_v34 }
 0x2b9   : > { %v6342_v46 = vpop.eup %6341  ;;  %4307 = vst.msk [vmem:[%s6808_s22 + $0x758] sm:$0xff] %vm4071_vm1, %v6340_v40  ;;  %6361 = vpow2.f32 %v4780_v55  ;;  %v4785_v55 = vmul.f32 -1.442695, %v7728_v9  ;;  %v4911_v9 = vmul.f32 -1.442695, %v7740_v25 }
 0x2ba   : > { %v6344_v58 = vpop.eup %6343  ;;  %4177 = vst.msk [vmem:[%s6808_s22 + $0x348] sm:$0xff] %vm4071_vm1, %v6342_v46  ;;  %6363 = vpow2.f32 %v4908_v0  ;;  %v4913_v0 = vmul.f32 -1.442695, %v7730_v27  ;;  %v4788_v27 = vmul.f32 -1.442695, %v7759_v29 }
 0x2bb   : > { %v6346_v43 = vpop.eup %6345  ;;  %4305 = vst.msk [vmem:[%s6808_s22 + $0x748] sm:$0xff] %vm4071_vm1, %v6344_v58  ;;  %6365 = vpow2.f32 %v4778_v8  ;;  %v4916_v34 = vmul.f32 -1.442695, %v7761_v16  ;;  %v4786_v25 = vmul.f32 -1.442695, %v7765_v24 }
 0x2bc   : > { %v6348_v57 = vpop.eup %6347  ;;  %4182 = vst.msk [vmem:[%s6808_s22 + $0x370] sm:$0xff] %vm4071_vm1, %v6346_v43  ;;  %6367 = vpow2.f32 %v4906_v15  ;;  %v4914_v29 = vmul.f32 -1.442695, %v7767_v3  ;;  %v4789_v16 = vmul.f32 -1.442695, %v7769_v32  ;;  %v8129_v43 = vld [vmem:[#allocation3_spill] sm:$0xff] }
 0x2bd   : > { %v6350_v37 = vpop.eup %6349  ;;  %4310 = vst.msk [vmem:[%s6808_s22 + $0x770] sm:$0xff] %vm4071_vm1, %v6348_v57  ;;  %6369 = vpow2.f32 %v4781_v12  ;;  %v4917_v24 = vmul.f32 -1.442695, %v8129_v43  ;;  %v8130_v57 = vld [vmem:[#allocation4_spill] sm:$0xff] }
 0x2be   : > { %v6352_v21 = vpop.eup %6351  ;;  %4180 = vst.msk [vmem:[%s6808_s22 + $0x360] sm:$0xff] %vm4071_vm1, %v6350_v37  ;;  %6371 = vpow2.f32 %v4909_v48 }
 0x2bf   : > { %v6354_v14 = vpop.eup %6353  ;;  %4308 = vst.msk [vmem:[%s6808_s22 + $0x760] sm:$0xff] %vm4071_vm1, %v6352_v21  ;;  %6373 = vpow2.f32 %v4779_v51 }
 0x2c0   : > { %v6356_v13 = vpop.eup %6355  ;;  %4183 = vst.msk [vmem:[%s6808_s22 + $0x378] sm:$0xff] %vm4071_vm1, %v6354_v14  ;;  %6375 = vpow2.f32 %v4907_v18  ;;  %v4787_v18 = vmul.f32 -1.442695, %v8130_v57 }
 0x2c1   : > { %v6358_v30 = vpop.eup %6357  ;;  %v3542_v11 = vadd.f32 1.0, %v6356_v13  ;;  %6377 = vpow2.f32 %v4784_v45 }
 0x2c2   : > { %v6360_v31 = vpop.eup %6359  ;;  %v3412_v20 = vadd.f32 1.0, %v6358_v30  ;;  %6379 = vpow2.f32 %v4912_v52 }
 0x2c3   : > { %v6362_v60 = vpop.eup %6361  ;;  %6381 = vrcp.f32 %v3542_v11  ;;  %v3540_v35 = vadd.f32 1.0, %v6360_v31 }
 0x2c4   : > { %v6364_v44 = vpop.eup %6363  ;;  %6383 = vrcp.f32 %v3412_v20  ;;  %v3417_v28 = vadd.f32 1.0, %v6362_v60 }
 0x2c5   : > { %v6366_v19 = vpop.eup %6365  ;;  %6385 = vrcp.f32 %v3540_v35  ;;  %v3545_v23 = vadd.f32 1.0, %v6364_v44 }
 0x2c6   : > { %v6368_v7 = vpop.eup %6367  ;;  %6387 = vrcp.f32 %v3417_v28  ;;  %v3415_v59 = vadd.f32 1.0, %v6366_v19 }
 0x2c7   : > { %v6370_v4 = vpop.eup %6369  ;;  %6389 = vrcp.f32 %v3545_v23  ;;  %v3543_v2 = vadd.f32 1.0, %v6368_v7 }
 0x2c8   : > { %v6372_v1 = vpop.eup %6371  ;;  %6391 = vrcp.f32 %v3415_v59  ;;  %v3418_v17 = vadd.f32 1.0, %v6370_v4 }
 0x2c9   : > { %v6374_v38 = vpop.eup %6373  ;;  %6393 = vrcp.f32 %v3543_v2  ;;  %v3546_v26 = vadd.f32 1.0, %v6372_v1 }
 0x2ca   : > { %v6376_v6 = vpop.eup %6375  ;;  %6395 = vrcp.f32 %v3418_v17  ;;  %v3416_v22 = vadd.f32 1.0, %v6374_v38 }
 0x2cb   : > { %v6378_v63 = vpop.eup %6377  ;;  %6397 = vrcp.f32 %v3546_v26  ;;  %v3544_v33 = vadd.f32 1.0, %v6376_v6  ;;  %v4915_v6 = vmul.f32 -1.442695, %v7775_v36 }
 0x2cc   : > { %v6380_v53 = vpop.eup %6379  ;;  %6399 = vrcp.f32 %v3416_v22  ;;  %v3421_v49 = vadd.f32 1.0, %v6378_v63 }
 0x2cd   : > { %v6382_v47 = vpop.eup %6381  ;;  %6401 = vrcp.f32 %v3544_v33  ;;  %v3549_v10 = vadd.f32 1.0, %v6380_v53  ;;  %v4792_v33 = vmul.f32 -1.442695, %v7800_v41  ;;  %v8132_v41 = vld [vmem:[#allocation6_spill] sm:$0xff] }
 0x2ce   : > { %v6384_v62 = vpop.eup %6383  ;;  %4311 = vst.msk [vmem:[%s6808_s22 + $0x778] sm:$0xff] %vm4071_vm1, %v6382_v47  ;;  %6403 = vrcp.f32 %v3421_v49  ;;  %v4920_v49 = vmul.f32 -1.442695, %v7802_v39  ;;  %v8133_v39 = vld [vmem:[#allocation7_spill] sm:$0xff] }
 0x2cf   : > { %v6386_v5 = vpop.eup %6385  ;;  %4181 = vst.msk [vmem:[%s6808_s22 + $0x368] sm:$0xff] %vm4071_vm1, %v6384_v62  ;;  %6405 = vrcp.f32 %v3549_v10  ;;  %v4918_v10 = vmul.f32 -1.442695, %v8132_v41  ;;  %v4793_v62 = vmul.f32 -1.442695, %v8133_v39 }
 0x2d0   : > { %v6388_v42 = vpop.eup %6387  ;;  %4309 = vst.msk [vmem:[%s6808_s22 + $0x768] sm:$0xff] %vm4071_vm1, %v6386_v5  ;;  %6407 = vpow2.f32 %v4782_v54  ;;  %v8131_v54 = vld [vmem:[#allocation5_spill] sm:$0xff]  ;;  %v8134_v5 = vld [vmem:[#allocation8_spill] sm:$0xff] }
 0x2d1   : > { %v6390_v8 = vpop.eup %6389  ;;  %4186 = vst.msk [vmem:[%s6808_s22 + $0x390] sm:$0xff] %vm4071_vm1, %v6388_v42  ;;  %6409 = vpow2.f32 %v4910_v61  ;;  %v4790_v36 = vmul.f32 -1.442695, %v8131_v54 }
 0x2d2   : > { %v6392_v40 = vpop.eup %6391  ;;  %4314 = vst.msk [vmem:[%s6808_s22 + $0x790] sm:$0xff] %vm4071_vm1, %v6390_v8  ;;  %6411 = vpow2.f32 %v4785_v55 }
 0x2d3   : > { %v6394_v15 = vpop.eup %6393  ;;  %4184 = vst.msk [vmem:[%s6808_s22 + $0x380] sm:$0xff] %vm4071_vm1, %v6392_v40  ;;  %6413 = vpow2.f32 %v4913_v0  ;;  %v4921_v0 = vmul.f32 -1.442695, %v8134_v5  ;;  %v8136_v40 = vld [vmem:[#allocation10_spill] sm:$0xff] }
 0x2d4   : > { %v6396_v46 = vpop.eup %6395  ;;  %4312 = vst.msk [vmem:[%s6808_s22 + $0x780] sm:$0xff] %vm4071_vm1, %v6394_v15  ;;  %6415 = vpow2.f32 %v4783_v50  ;;  %v8135_v50 = vld [vmem:[#allocation9_spill] sm:$0xff] }
 0x2d5   : > { %v6398_v12 = vpop.eup %6397  ;;  %4187 = vst.msk [vmem:[%s6808_s22 + $0x398] sm:$0xff] %vm4071_vm1, %v6396_v46  ;;  %6417 = vpow2.f32 %v4911_v9  ;;  %v4791_v8 = vmul.f32 -1.442695, %v8135_v50 }
 0x2d6   : > { %v6400_v58 = vpop.eup %6399  ;;  %4315 = vst.msk [vmem:[%s6808_s22 + $0x798] sm:$0xff] %vm4071_vm1, %v6398_v12  ;;  %6419 = vpow2.f32 %v4788_v27  ;;  %v4919_v27 = vmul.f32 -1.442695, %v8136_v40 }
 0x2d7   : > { %v6402_v48 = vpop.eup %6401  ;;  %4185 = vst.msk [vmem:[%s6808_s22 + $0x388] sm:$0xff] %vm4071_vm1, %v6400_v58  ;;  %6421 = vpow2.f32 %v4916_v34 }
 0x2d8   : > { %v6404_v51 = vpop.eup %6403  ;;  %4313 = vst.msk [vmem:[%s6808_s22 + $0x788] sm:$0xff] %vm4071_vm1, %v6402_v48  ;;  %6423 = vpow2.f32 %v4786_v25 }
 0x2d9   : > { %v6406_v3 = vpop.eup %6405  ;;  %4190 = vst.msk [vmem:[%s6808_s22 + $0x3b0] sm:$0xff] %vm4071_vm1, %v6404_v51  ;;  %6425 = vpow2.f32 %v4914_v29 }
 0x2da   : > { %v6408_v37 = vpop.eup %6407  ;;  %4318 = vst.msk [vmem:[%s6808_s22 + $0x7b0] sm:$0xff] %vm4071_vm1, %v6406_v3  ;;  %6427 = vpow2.f32 %v4789_v16 }
 0x2db   : > { %v6410_v32 = vpop.eup %6409  ;;  %v3419_v45 = vadd.f32 1.0, %v6408_v37  ;;  %6429 = vpow2.f32 %v4917_v24 }
 0x2dc   : > { %v6412_v21 = vpop.eup %6411  ;;  %v3547_v52 = vadd.f32 1.0, %v6410_v32  ;;  %6431 = vpow2.f32 %v4787_v18 }
 0x2dd   : > { %v6414_v14 = vpop.eup %6413  ;;  %6433 = vrcp.f32 %v3419_v45  ;;  %v3422_v13 = vadd.f32 1.0, %v6412_v21 }
 0x2de   : > { %v6416_v30 = vpop.eup %6415  ;;  %6435 = vrcp.f32 %v3547_v52  ;;  %v3550_v11 = vadd.f32 1.0, %v6414_v14 }
 0x2df   : > { %v6418_v31 = vpop.eup %6417  ;;  %6437 = vrcp.f32 %v3422_v13  ;;  %v3420_v20 = vadd.f32 1.0, %v6416_v30 }
 0x2e0   : > { %v6420_v60 = vpop.eup %6419  ;;  %6439 = vrcp.f32 %v3550_v11  ;;  %v3548_v35 = vadd.f32 1.0, %v6418_v31 }
 0x2e1   : > { %v6422_v44 = vpop.eup %6421  ;;  %6441 = vrcp.f32 %v3420_v20  ;;  %v3425_v28 = vadd.f32 1.0, %v6420_v60 }
 0x2e2   : > { %v6424_v19 = vpop.eup %6423  ;;  %6443 = vrcp.f32 %v3548_v35  ;;  %v3553_v23 = vadd.f32 1.0, %v6422_v44 }
 0x2e3   : > { %v6426_v7 = vpop.eup %6425  ;;  %6445 = vrcp.f32 %v3425_v28  ;;  %v3423_v59 = vadd.f32 1.0, %v6424_v19 }
 0x2e4   : > { %v6428_v4 = vpop.eup %6427  ;;  %6447 = vrcp.f32 %v3553_v23  ;;  %v3551_v2 = vadd.f32 1.0, %v6426_v7 }
 0x2e5   : > { %v6430_v1 = vpop.eup %6429  ;;  %6449 = vrcp.f32 %v3423_v59  ;;  %v3426_v17 = vadd.f32 1.0, %v6428_v4 }
 0x2e6   : > { %v6432_v38 = vpop.eup %6431  ;;  %6451 = vrcp.f32 %v3551_v2  ;;  %v3554_v26 = vadd.f32 1.0, %v6430_v1 }
 0x2e7   : > { %v6434_v22 = vpop.eup %6433  ;;  %6453 = vrcp.f32 %v3426_v17  ;;  %v3424_v63 = vadd.f32 1.0, %v6432_v38 }
 0x2e8   : > { %v6436_v53 = vpop.eup %6435  ;;  %4188 = vst.msk [vmem:[%s6808_s22 + $0x3a0] sm:$0xff] %vm4071_vm1, %v6434_v22  ;;  %6455 = vrcp.f32 %v3554_v26 }
 0x2e9   : > { %v6438_v56 = vpop.eup %6437  ;;  %4316 = vst.msk [vmem:[%s6808_s22 + $0x7a0] sm:$0xff] %vm4071_vm1, %v6436_v53  ;;  %6457 = vrcp.f32 %v3424_v63 }
 0x2ea   : > { %v6440_v47 = vpop.eup %6439  ;;  %4191 = vst.msk [vmem:[%s6808_s22 + $0x3b8] sm:$0xff] %vm4071_vm1, %v6438_v56  ;;  %6459 = vpow2.f32 %v4915_v6 }
 0x2eb   : > { %v6442_v61 = vpop.eup %6441  ;;  %4319 = vst.msk [vmem:[%s6808_s22 + $0x7b8] sm:$0xff] %vm4071_vm1, %v6440_v47  ;;  %6461 = vpow2.f32 %v4792_v33 }
 0x2ec   : > { %v6444_v55 = vpop.eup %6443  ;;  %4189 = vst.msk [vmem:[%s6808_s22 + $0x3a8] sm:$0xff] %vm4071_vm1, %v6442_v61  ;;  %6463 = vpow2.f32 %v4920_v49 }
 0x2ed   : > { %v6446_v42 = vpop.eup %6445  ;;  %4317 = vst.msk [vmem:[%s6808_s22 + $0x7a8] sm:$0xff] %vm4071_vm1, %v6444_v55  ;;  %6465 = vpow2.f32 %v4790_v36 }
 0x2ee   : > { %v6448_v9 = vpop.eup %6447  ;;  %4194 = vst.msk [vmem:[%s6808_s22 + $0x3d0] sm:$0xff] %vm4071_vm1, %v6446_v42  ;;  %6467 = vpow2.f32 %v4918_v10 }
 0x2ef   : > { %v6450_v15 = vpop.eup %6449  ;;  %4322 = vst.msk [vmem:[%s6808_s22 + $0x7d0] sm:$0xff] %vm4071_vm1, %v6448_v9  ;;  %6469 = vpow2.f32 %v4793_v62 }
 0x2f0   : > { %v6452_v34 = vpop.eup %6451  ;;  %4192 = vst.msk [vmem:[%s6808_s22 + $0x3c0] sm:$0xff] %vm4071_vm1, %v6450_v15  ;;  %6471 = vpow2.f32 %v4921_v0 }
 0x2f1   : > { %v6454_v46 = vpop.eup %6453  ;;  %4320 = vst.msk [vmem:[%s6808_s22 + $0x7c0] sm:$0xff] %vm4071_vm1, %v6452_v34  ;;  %6473 = vpow2.f32 %v4791_v8 }
 0x2f2   : > { %v6456_v25 = vpop.eup %6455  ;;  %4195 = vst.msk [vmem:[%s6808_s22 + $0x3d8] sm:$0xff] %vm4071_vm1, %v6454_v46  ;;  %6475 = vpow2.f32 %v4919_v27 }
 0x2f3   : > { %v6458_v12 = vpop.eup %6457  ;;  %4323 = vst.msk [vmem:[%s6808_s22 + $0x7d8] sm:$0xff] %vm4071_vm1, %v6456_v25 }
 0x2f4   : > { %v6460_v29 = vpop.eup %6459  ;;  %4193 = vst.msk [vmem:[%s6808_s22 + $0x3c8] sm:$0xff] %vm4071_vm1, %v6458_v12 }
 0x2f5   : > { %v6462_v58 = vpop.eup %6461  ;;  %v3552_v16 = vadd.f32 1.0, %v6460_v29 }
 0x2f6   : > { %v6464_v48 = vpop.eup %6463  ;;  %v3429_v43 = vadd.f32 1.0, %v6462_v58 }
 0x2f7   : > { %v6466_v24 = vpop.eup %6465  ;;  %6477 = vrcp.f32 %v3552_v16  ;;  %v3557_v51 = vadd.f32 1.0, %v6464_v48 }
 0x2f8   : > { %v6468_v57 = vpop.eup %6467  ;;  %6479 = vrcp.f32 %v3429_v43  ;;  %v3427_v18 = vadd.f32 1.0, %v6466_v24 }
 0x2f9   : > { %v6470_v3 = vpop.eup %6469  ;;  %6481 = vrcp.f32 %v3557_v51  ;;  %v3555_v37 = vadd.f32 1.0, %v6468_v57 }
 0x2fa   : > { %v6472_v32 = vpop.eup %6471  ;;  %6483 = vrcp.f32 %v3427_v18  ;;  %v3430_v45 = vadd.f32 1.0, %v6470_v3 }
 0x2fb   : > { %v6474_v21 = vpop.eup %6473  ;;  %6485 = vrcp.f32 %v3555_v37  ;;  %v3558_v52 = vadd.f32 1.0, %v6472_v32 }
 0x2fc   : > { %v6476_v14 = vpop.eup %6475  ;;  %6487 = vrcp.f32 %v3430_v45  ;;  %v3428_v13 = vadd.f32 1.0, %v6474_v21 }
 0x2fd   : > { %6489 = vrcp.f32 %v3558_v52  ;;  %v3556_v30 = vadd.f32 1.0, %v6476_v14 }
 0x2fe   : > { %6491 = vrcp.f32 %v3428_v13 }
 0x2ff   : > { %6493 = vrcp.f32 %v3556_v30 }
 0x301   : > { %v6478_v11 = vpop.eup %6477 }
 0x302   : > { %v6480_v31 = vpop.eup %6479  ;;  %4321 = vst.msk [vmem:[%s6808_s22 + $0x7c8] sm:$0xff] %vm4071_vm1, %v6478_v11 }
 0x303   : > { %v6482_v20 = vpop.eup %6481  ;;  %4198 = vst.msk [vmem:[%s6808_s22 + $0x3f0] sm:$0xff] %vm4071_vm1, %v6480_v31 }
 0x304   : > { %v6484_v60 = vpop.eup %6483  ;;  %4326 = vst.msk [vmem:[%s6808_s22 + $0x7f0] sm:$0xff] %vm4071_vm1, %v6482_v20 }
 0x305   : > { %v6486_v35 = vpop.eup %6485  ;;  %4196 = vst.msk [vmem:[%s6808_s22 + $0x3e0] sm:$0xff] %vm4071_vm1, %v6484_v60 }
 0x306   : > { %v6488_v44 = vpop.eup %6487  ;;  %4324 = vst.msk [vmem:[%s6808_s22 + $0x7e0] sm:$0xff] %vm4071_vm1, %v6486_v35 }
 0x307   : > { %v6490_v28 = vpop.eup %6489  ;;  %4199 = vst.msk [vmem:[%s6808_s22 + $0x3f8] sm:$0xff] %vm4071_vm1, %v6488_v44 }
 0x308   : > { %v6492_v19 = vpop.eup %6491  ;;  %4327 = vst.msk [vmem:[%s6808_s22 + $0x7f8] sm:$0xff] %vm4071_vm1, %v6490_v28 }
 0x309   : > { %v6494_v23 = vpop.eup %6493  ;;  %4197 = vst.msk [vmem:[%s6808_s22 + $0x3e8] sm:$0xff] %vm4071_vm1, %v6492_v19 }
 0x30a   : > { %4325 = vst.msk [vmem:[%s6808_s22 + $0x7e8] sm:$0xff] %vm4071_vm1, %v6494_v23 }
 0x30b PF: > { %s12_s9 = sadd.s32 1, %s6501_s9  }
 0x30c   : > { %p9_p4 = scmp.ge.s32.totalorder %s12_s9, 6  }
 0x30e   :  { %11 = sbr.rel (!%p9_p4) target bundleno = 1 (0x1), region = 61 }

</bundles_post_ra>
